<compile_context>
chip_gen: v5e
topology: v5e:2x2
jax: 0.10.0
libtpu: 0.0.40
codegen_flags: <defaults>
</compile_context>

<pallas_src>
import functools

import numpy as np
import jax
import jax.numpy as jnp
from jax.experimental import pallas as pl
from jax.experimental.pallas import tpu as pltpu

LANE = 128   # TPU lane width (last dim)
SUB = 8      # f32 sublane width (second-to-last dim)


# -----------------------------------------------------------------------------
# Fused forward kernel
# -----------------------------------------------------------------------------
def _fused_kernel(x_ref, w_pre_ref, v_pre_ref, scal_ref, cz_ref, zmat_ref,
                  w_post_ref, v_post_ref, o_ref, *, dims, n_qubits, n_layers):
    n = len(dims)
    Bp = x_ref.shape[0]
    dim = 1 << n_qubits

    # ---- Part 1: feature_extractor + quantum input_proj (4 fused layers) ----
    h = x_ref[...]
    features = None
    for li, (d_valid, act) in enumerate(dims):
        h = (jnp.dot(h, w_pre_ref[li], preferred_element_type=jnp.float32)
             + v_pre_ref[li:li + 1, :])
        # LayerNorm over the d_valid real features.  Padded lanes of h are exactly
        # zero (weights / biases zero-padded), so unmasked lane sums == masked sums.
        inv_d = 1.0 / float(d_valid)
        mu = jnp.sum(h, axis=-1, keepdims=True) * inv_d
        ms = jnp.sum(h * h, axis=-1, keepdims=True) * inv_d
        h = (h - mu) * jax.lax.rsqrt(ms - mu * mu + 1e-5)
        # gamma rows are zero in padded lanes -> padding returns to exactly 0.
        h = h * v_pre_ref[n + li:n + li + 1, :] + v_pre_ref[2 * n + li:2 * n + li + 1, :]
        if act:  # SiLU
            h = h * (1.0 / (1.0 + jnp.exp(-h)))
        if li == 1:
            features = h
    q_in = h                                   # [Bp, 128]; lanes >= n_qubits are 0

    # ---- Part 2: data-dependent trig in-kernel (EUP), no HBM trig tensor ----
    half = 0.5 * q_in                          # encoding half-angles in lanes < Q
    enc_c = jnp.cos(half)
    enc_s = jnp.sin(half)

    # ---- Part 3: 8-qubit statevector circuit, split real/imag f32 [Bp, 2^Q] ----
    col = jax.lax.broadcasted_iota(jnp.int32, (Bp, dim), 1)
    # hoisted per-shift bit masks, reused by every gate
    hi = [((col >> s) & 1) == 1 for s in range(n_qubits)]
    # CZ chain sign mask: pairs (i, i+1), i < n_qubits-1 (identical every layer)
    czsign = jnp.ones((Bp, dim), jnp.float32)
    for i in range(n_qubits - 1):
        bi = (col >> (n_qubits - 1 - i)) & 1
        bj = (col >> (n_qubits - 2 - i)) & 1
        czsign = czsign * jnp.where((bi & bj) == 1, -1.0, 1.0)

    def partner(a, hm, s):
        """a[:, j ^ s] via two static lane rotations (XLU) + select."""
        return jnp.where(hm, pltpu.roll(a, s, axis=1), pltpu.roll(a, dim - s, axis=1))

    def apply_u(sr, si, wire, ur, ui, si_zero):
        # general composed 2x2 unitary (u00, u01, u10, u11) from the SMEM table
        shift = n_qubits - 1 - wire
        hm = hi[shift]
        s = 1 << shift
        pr = partner(sr, hm, s)
        a_re = jnp.where(hm, ur[3], ur[0])
        a_im = jnp.where(hm, ui[3], ui[0])
        b_re = jnp.where(hm, ur[2], ur[1])
        b_im = jnp.where(hm, ui[2], ui[1])
        if si_zero:                       # real-only prefix: skip imag-part work
            nr = a_re * sr + b_re * pr
            ni = a_im * sr + b_im * pr
        else:
            pi = partner(si, hm, s)
            nr = a_re * sr - a_im * si + b_re * pr - b_im * pi
            ni = a_re * si + a_im * sr + b_re * pi + b_im * pr
        return nr, ni

    def apply_ry(sr, si, wire, c, s_):
        # RY: u00=u11=c, u01=-s, u10=s (real); c, s_ are [Bp, 1] lane slices
        shift = n_qubits - 1 - wire
        hm = hi[shift]
        s = 1 << shift
        pr = partner(sr, hm, s)
        pi = partner(si, hm, s)
        b = jnp.where(hm, s_, -s_)
        return c * sr + b * pr, c * si + b * pi

    def apply_rx(sr, si, wire, c, s_):
        # RX: u00=u11=c, u01=u10=-i*s; c, s_ are SMEM scalars
        shift = n_qubits - 1 - wire
        hm = hi[shift]
        s = 1 << shift
        pr = partner(sr, hm, s)
        pi = partner(si, hm, s)
        return c * sr + s_ * pi, c * si - s_ * pr

    # data-encoding RY(inputs[i]) applied to |0...0> == real product state:
    # sr[:, j] = prod_i (cos_i if bit_i(j)==0 else sin_i); si stays 0.  No rolls.
    sr = jnp.where(hi[n_qubits - 1], enc_s[:, 0:1], enc_c[:, 0:1])
    for i in range(1, n_qubits):
        shift = n_qubits - 1 - i
        sr = sr * jnp.where(hi[shift], enc_s[:, i:i + 1], enc_c[:, i:i + 1])
    si = jnp.zeros((Bp, dim), jnp.float32)     # dead until first gate (DCE'd)

    n_u = n_layers * n_qubits * 4
    first = True
    for l in range(n_layers):
        for i in range(n_qubits):
            off = (l * n_qubits + i) * 4
            ur = tuple(scal_ref[off + t] for t in range(4))
            ui = tuple(scal_ref[n_u + off + t] for t in range(4))
            sr, si = apply_u(sr, si, i, ur, ui, first)   # RZ @ RY @ RX composed
            first = False
        sr = sr * czsign
        si = si * czsign
        if l % 2 == 1:                                   # data re-uploading
            reup_half = half * cz_ref[l:l + 1, :]        # 0.5*inputs[i]*w_cz[l,i]
            rc = jnp.cos(reup_half)
            rs = jnp.sin(reup_half)
            for i in range(n_qubits):
                sr, si = apply_ry(sr, si, i, rc[:, i:i + 1], rs[:, i:i + 1])

    fin = 2 * n_u
    for i in range(n_qubits):
        sr, si = apply_rx(sr, si, i, scal_ref[fin + i], scal_ref[fin + n_qubits + i])

    # ---- Part 4: <Z_i> for all qubits in one MXU pass (zmat cols >= Q are 0) ----
    prob = sr * sr + si * si
    qout = jnp.dot(prob, zmat_ref[...], preferred_element_type=jnp.float32)  # [Bp,128]

    # ---- Part 5: output_proj, residual, output head ----
    h = jnp.dot(qout, w_post_ref[0], preferred_element_type=jnp.float32) + v_post_ref[0:1, :]
    h = h * (1.0 / (1.0 + jnp.exp(-h)))
    qf = jnp.dot(h, w_post_ref[1], preferred_element_type=jnp.float32) + v_post_ref[1:2, :]

    comb = features + qf
    h = jnp.dot(comb, w_post_ref[2], preferred_element_type=jnp.float32) + v_post_ref[2:3, :]
    h = h * (1.0 / (1.0 + jnp.exp(-h)))
    o_ref[...] = jnp.dot(h, w_post_ref[3], preferred_element_type=jnp.float32) + v_post_ref[3:4, :]


# -----------------------------------------------------------------------------
# Parameters
# -----------------------------------------------------------------------------
def init_params(key, input_dim, output_dim, hidden_dim, n_qubits, n_layers):
    H, H2, Q = hidden_dim, hidden_dim // 2, n_qubits
    ks = iter(jax.random.split(key, 32))

    def lin(din, dout):
        return (0.1 * jax.random.normal(next(ks), (din, dout), jnp.float32),
                jnp.zeros((dout,), jnp.float32))

    def ln(d):
        return (jnp.ones((d,), jnp.float32), jnp.zeros((d,), jnp.float32))

    p = {}
    # feature_extractor
    p["fe_w1"], p["fe_b1"] = lin(input_dim, H2); p["fe_g1"], p["fe_bt1"] = ln(H2)
    p["fe_w2"], p["fe_b2"] = lin(H2, H);         p["fe_g2"], p["fe_bt2"] = ln(H)
    # quantum input_proj
    p["ip_w1"], p["ip_b1"] = lin(H, H2);         p["ip_g1"], p["ip_bt1"] = ln(H2)
    p["ip_w2"], p["ip_b2"] = lin(H2, Q);         p["ip_g2"], p["ip_bt2"] = ln(Q)
    # quantum circuit weights (TorchLayer default init: uniform [0, 2*pi))
    p["w_rx"] = jax.random.uniform(next(ks), (n_layers, Q), jnp.float32, 0.0, 2 * jnp.pi)
    p["w_ry"] = jax.random.uniform(next(ks), (n_layers, Q), jnp.float32, 0.0, 2 * jnp.pi)
    p["w_rz"] = jax.random.uniform(next(ks), (n_layers, Q), jnp.float32, 0.0, 2 * jnp.pi)
    p["w_cz"] = jax.random.uniform(next(ks), (n_layers, Q), jnp.float32, 0.0, 2 * jnp.pi)
    p["final_rot"] = jax.random.uniform(next(ks), (Q,), jnp.float32, 0.0, 2 * jnp.pi)
    # quantum output_proj
    p["op_w1"], p["op_b1"] = lin(Q, H2)
    p["op_w2"], p["op_b2"] = lin(H2, H)
    # output_layer
    p["ol_w1"], p["ol_b1"] = lin(H, H2)
    p["ol_w2"], p["ol_b2"] = lin(H2, output_dim)
    return p


def _pad2(a, rows, cols):
    return jnp.zeros((rows, cols), jnp.float32).at[:a.shape[0], :a.shape[1]].set(a)


def prepare_params(p, *, n_qubits, n_layers):
    """One-time padding / packing into the lane-dense layout the kernel expects."""
    Q = n_qubits

    # pre-quantum stack: stacked padded weights + packed bias/gamma/beta slab
    w_pre = jnp.stack([_pad2(p["fe_w1"], LANE, LANE), _pad2(p["fe_w2"], LANE, LANE),
                       _pad2(p["ip_w1"], LANE, LANE), _pad2(p["ip_w2"], LANE, LANE)])
    v_pre = jnp.zeros((16, LANE), jnp.float32)
    for li, (b, g, bt) in enumerate([
            (p["fe_b1"], p["fe_g1"], p["fe_bt1"]),
            (p["fe_b2"], p["fe_g2"], p["fe_bt2"]),
            (p["ip_b1"], p["ip_g1"], p["ip_bt1"]),
            (p["ip_b2"], p["ip_g2"], p["ip_bt2"])]):
        v_pre = v_pre.at[li, :b.shape[0]].set(b)
        v_pre = v_pre.at[4 + li, :g.shape[0]].set(g)
        v_pre = v_pre.at[8 + li, :bt.shape[0]].set(bt)

    # post-quantum stack
    w_post = jnp.stack([_pad2(p["op_w1"], LANE, LANE), _pad2(p["op_w2"], LANE, LANE),
                        _pad2(p["ol_w1"], LANE, LANE), _pad2(p["ol_w2"], LANE, LANE)])
    v_post = jnp.zeros((8, LANE), jnp.float32)
    for li, b in enumerate([p["op_b1"], p["op_b2"], p["ol_b1"], p["ol_b2"]]):
        v_post = v_post.at[li, :b.shape[0]].set(b)

    # pre-compose RZ(w_rz) @ RY(w_ry) @ RX(w_rx) per (layer, qubit)
    def _rx(t):
        c = jnp.cos(t / 2).astype(jnp.complex64)
        s = jnp.sin(t / 2).astype(jnp.complex64)
        return jnp.stack([jnp.stack([c, -1j * s], -1), jnp.stack([-1j * s, c], -1)], -2)

    def _ry(t):
        c = jnp.cos(t / 2).astype(jnp.complex64)
        s = jnp.sin(t / 2).astype(jnp.complex64)
        return jnp.stack([jnp.stack([c, -s], -1), jnp.stack([s, c], -1)], -2)

    def _rz(t):
        e = jnp.exp(-0.5j * t.astype(jnp.complex64))
        z = jnp.zeros_like(e)
        return jnp.stack([jnp.stack([e, z], -1), jnp.stack([z, jnp.conj(e)], -1)], -2)

    u = jnp.matmul(_rz(p["w_rz"]), jnp.matmul(_ry(p["w_ry"]), _rx(p["w_rx"])))  # [L,Q,2,2]
    gate_scal = jnp.concatenate([
        jnp.real(u).reshape(-1), jnp.imag(u).reshape(-1),
        jnp.cos(p["final_rot"] / 2), jnp.sin(p["final_rot"] / 2),
    ]).astype(jnp.float32)                                  # SMEM scalar table

    # re-uploading weights as lane rows: cz_rows[l, i] = w_cz[l, i] for i < Q
    cz_rows = jnp.zeros((n_layers, LANE), jnp.float32).at[:, :Q].set(p["w_cz"])

    # PauliZ measurement matrix: prob [B, 2^Q] @ zmat [2^Q, 128] -> <Z_i> in lane i.
    dim = 1 << n_qubits
    zm = np.zeros((dim, LANE), np.float32)
    idx = np.arange(dim)
    for i in range(n_qubits):
        zm[:, i] = 1.0 - 2.0 * ((idx >> (n_qubits - 1 - i)) & 1)
    zmat = jnp.asarray(zm)

    return dict(w_pre=w_pre, v_pre=v_pre, w_post=w_post, v_post=v_post,
                gate_scal=gate_scal, cz_rows=cz_rows, zmat=zmat)


# -----------------------------------------------------------------------------
# Forward pass: one pallas_call, no grid, no pipeline machinery
# -----------------------------------------------------------------------------
def quantum_regression_net_forward(pp, x, *, hidden_dim, n_qubits, n_layers, output_dim):
    B, d_in = x.shape
    Bp = max(SUB, -(-B // SUB) * SUB)
    H, H2, Q = hidden_dim, hidden_dim // 2, n_qubits

    # pad once: batch -> multiple of 8 sublanes, features -> 128 lanes
    x_pad = jnp.zeros((Bp, LANE), jnp.float32).at[:B, :d_in].set(x)

    dims = ((H2, True), (H, True), (H2, True), (Q, False))
    vspec = pl.BlockSpec(memory_space=pltpu.MemorySpace.VMEM)
    sspec = pl.BlockSpec(memory_space=pltpu.MemorySpace.SMEM)

    out_pad = pl.pallas_call(
        functools.partial(_fused_kernel, dims=dims, n_qubits=n_qubits, n_layers=n_layers),
        out_shape=jax.ShapeDtypeStruct((Bp, LANE), jnp.float32),
        in_specs=[vspec,   # x_pad
                  vspec,   # w_pre
                  vspec,   # v_pre
                  sspec,   # gate scalar table (SMEM)
                  vspec,   # cz_rows
                  vspec,   # zmat
                  vspec,   # w_post
                  vspec],  # v_post
        out_specs=vspec,
    )(x_pad, pp["w_pre"], pp["v_pre"], pp["gate_scal"], pp["cz_rows"],
      pp["zmat"], pp["w_post"], pp["v_post"])

    return out_pad[:B, :output_dim]


if __name__ == "__main__":
    B, INPUT_DIM, OUTPUT_DIM, HIDDEN_DIM = 2, 16, 1, 32
    N_QUBITS, N_LAYERS = 8, 3

    key = jax.random.PRNGKey(0)
    k_param, k_x = jax.random.split(key)
    raw_params = init_params(k_param, INPUT_DIM, OUTPUT_DIM, HIDDEN_DIM, N_QUBITS, N_LAYERS)
    params = prepare_params(raw_params, n_qubits=N_QUBITS, n_layers=N_LAYERS)
    x = jax.random.normal(k_x, (B, INPUT_DIM), jnp.float32)

    fwd = jax.jit(functools.partial(
        quantum_regression_net_forward,
        hidden_dim=HIDDEN_DIM, n_qubits=N_QUBITS, n_layers=N_LAYERS, output_dim=OUTPUT_DIM))
    y = fwd(params, x)
    jax.block_until_ready(y)
    assert y.shape == (B, OUTPUT_DIM) and y.dtype == jnp.float32
    assert bool(jnp.all(jnp.isfinite(y)))
    print("KERNEL_OK")
</pallas_src>

<mosaic_0001>
module attributes {stable_mosaic.version = 11 : i64} {
  func.func @_fused_kernel(%arg0: memref<8x128xf32, #tpu.memory_space<vmem>>, %arg1: memref<4x128x128xf32, #tpu.memory_space<vmem>>, %arg2: memref<16x128xf32, #tpu.memory_space<vmem>>, %arg3: memref<208xf32, #tpu.memory_space<smem>>, %arg4: memref<3x128xf32, #tpu.memory_space<vmem>>, %arg5: memref<256x128xf32, #tpu.memory_space<vmem>>, %arg6: memref<4x128x128xf32, #tpu.memory_space<vmem>>, %arg7: memref<8x128xf32, #tpu.memory_space<vmem>>, %arg8: memref<8x128xf32, #tpu.memory_space<vmem>>) attributes {dimension_semantics = [], scalar_prefetch = 0 : i64, scratch_operands = 0 : i64, tpu.core_type = #tpu.core_type<tc>} {
    %c0 = arith.constant 0 : index
    %c0_0 = arith.constant 0 : index
    %0 = vector.load %arg0[%c0, %c0_0] : memref<8x128xf32, #tpu.memory_space<vmem>>, vector<8x128xf32>
    %c0_1 = arith.constant 0 : index
    %c0_2 = arith.constant 0 : index
    %c0_3 = arith.constant 0 : index
    %1 = vector.load %arg1[%c0_1, %c0_2, %c0_3] : memref<4x128x128xf32, #tpu.memory_space<vmem>>, vector<1x128x128xf32>
    %2 = vector.shape_cast %1 : vector<1x128x128xf32> to vector<128x128xf32>
    %cst = arith.constant dense<0.000000e+00> : vector<8x128xf32>
    %3 = tpu.matmul %0, %2, %cst {dimension_numbers = #tpu.dot_dimension_numbers<[1], [0], [0], [1], [0, 0, 1, 1], [], []>} : vector<8x128xf32>, vector<128x128xf32>, vector<8x128xf32> -> vector<8x128xf32>
    %c0_4 = arith.constant 0 : index
    %c0_5 = arith.constant 0 : index
    %4 = vector.load %arg2[%c0_4, %c0_5] : memref<16x128xf32, #tpu.memory_space<vmem>>, vector<1x128xf32>
    %5 = vector.broadcast %4 : vector<1x128xf32> to vector<8x128xf32>
    %6 = arith.addf %3, %5 : vector<8x128xf32>
    %cst_6 = arith.constant dense<0.000000e+00> : vector<8xf32>
    %7 = vector.multi_reduction <add>, %6, %cst_6 [1] : vector<8x128xf32> to vector<8xf32>
    %8 = vector.shape_cast %7 : vector<8xf32> to vector<8x1xf32>
    %cst_7 = arith.constant 6.250000e-02 : f32
    %9 = vector.broadcast %cst_7 : f32 to vector<8x1xf32>
    %10 = arith.mulf %8, %9 : vector<8x1xf32>
    %11 = arith.mulf %6, %6 : vector<8x128xf32>
    %cst_8 = arith.constant dense<0.000000e+00> : vector<8xf32>
    %12 = vector.multi_reduction <add>, %11, %cst_8 [1] : vector<8x128xf32> to vector<8xf32>
    %13 = vector.shape_cast %12 : vector<8xf32> to vector<8x1xf32>
    %cst_9 = arith.constant 6.250000e-02 : f32
    %14 = vector.broadcast %cst_9 : f32 to vector<8x1xf32>
    %15 = arith.mulf %13, %14 : vector<8x1xf32>
    %16 = vector.broadcast %10 : vector<8x1xf32> to vector<8x128xf32>
    %17 = arith.subf %6, %16 : vector<8x128xf32>
    %18 = arith.mulf %10, %10 : vector<8x1xf32>
    %19 = arith.subf %15, %18 : vector<8x1xf32>
    %cst_10 = arith.constant 9.99999974E-6 : f32
    %20 = vector.broadcast %cst_10 : f32 to vector<8x1xf32>
    %21 = arith.addf %19, %20 : vector<8x1xf32>
    %22 = math.rsqrt %21 : vector<8x1xf32>
    %23 = vector.broadcast %22 : vector<8x1xf32> to vector<8x128xf32>
    %24 = arith.mulf %17, %23 : vector<8x128xf32>
    %c4 = arith.constant 4 : index
    %c0_11 = arith.constant 0 : index
    %25 = vector.load %arg2[%c4, %c0_11] : memref<16x128xf32, #tpu.memory_space<vmem>>, vector<1x128xf32>
    %26 = vector.broadcast %25 : vector<1x128xf32> to vector<8x128xf32>
    %27 = arith.mulf %24, %26 : vector<8x128xf32>
    %c8 = arith.constant 8 : index
    %c0_12 = arith.constant 0 : index
    %28 = vector.load %arg2[%c8, %c0_12] : memref<16x128xf32, #tpu.memory_space<vmem>>, vector<1x128xf32>
    %29 = vector.broadcast %28 : vector<1x128xf32> to vector<8x128xf32>
    %30 = arith.addf %27, %29 : vector<8x128xf32>
    %cst_13 = arith.constant 0.000000e+00 : f32
    %31 = vector.broadcast %cst_13 : f32 to vector<8x128xf32>
    %32 = arith.subf %31, %30 : vector<8x128xf32>
    %33 = math.exp %32 : vector<8x128xf32>
    %cst_14 = arith.constant 1.000000e+00 : f32
    %34 = vector.broadcast %cst_14 : f32 to vector<8x128xf32>
    %35 = arith.addf %34, %33 : vector<8x128xf32>
    %cst_15 = arith.constant 1.000000e+00 : f32
    %36 = vector.broadcast %cst_15 : f32 to vector<8x128xf32>
    %37 = arith.divf %36, %35 : vector<8x128xf32>
    %38 = arith.mulf %30, %37 : vector<8x128xf32>
    %c1 = arith.constant 1 : index
    %c0_16 = arith.constant 0 : index
    %c0_17 = arith.constant 0 : index
    %39 = vector.load %arg1[%c1, %c0_16, %c0_17] : memref<4x128x128xf32, #tpu.memory_space<vmem>>, vector<1x128x128xf32>
    %40 = vector.shape_cast %39 : vector<1x128x128xf32> to vector<128x128xf32>
    %cst_18 = arith.constant dense<0.000000e+00> : vector<8x128xf32>
    %41 = tpu.matmul %38, %40, %cst_18 {dimension_numbers = #tpu.dot_dimension_numbers<[1], [0], [0], [1], [0, 0, 1, 1], [], []>} : vector<8x128xf32>, vector<128x128xf32>, vector<8x128xf32> -> vector<8x128xf32>
    %c1_19 = arith.constant 1 : index
    %c0_20 = arith.constant 0 : index
    %42 = vector.load %arg2[%c1_19, %c0_20] : memref<16x128xf32, #tpu.memory_space<vmem>>, vector<1x128xf32>
    %43 = vector.broadcast %42 : vector<1x128xf32> to vector<8x128xf32>
    %44 = arith.addf %41, %43 : vector<8x128xf32>
    %cst_21 = arith.constant dense<0.000000e+00> : vector<8xf32>
    %45 = vector.multi_reduction <add>, %44, %cst_21 [1] : vector<8x128xf32> to vector<8xf32>
    %46 = vector.shape_cast %45 : vector<8xf32> to vector<8x1xf32>
    %cst_22 = arith.constant 3.125000e-02 : f32
    %47 = vector.broadcast %cst_22 : f32 to vector<8x1xf32>
    %48 = arith.mulf %46, %47 : vector<8x1xf32>
    %49 = arith.mulf %44, %44 : vector<8x128xf32>
    %cst_23 = arith.constant dense<0.000000e+00> : vector<8xf32>
    %50 = vector.multi_reduction <add>, %49, %cst_23 [1] : vector<8x128xf32> to vector<8xf32>
    %51 = vector.shape_cast %50 : vector<8xf32> to vector<8x1xf32>
    %cst_24 = arith.constant 3.125000e-02 : f32
    %52 = vector.broadcast %cst_24 : f32 to vector<8x1xf32>
    %53 = arith.mulf %51, %52 : vector<8x1xf32>
    %54 = vector.broadcast %48 : vector<8x1xf32> to vector<8x128xf32>
    %55 = arith.subf %44, %54 : vector<8x128xf32>
    %56 = arith.mulf %48, %48 : vector<8x1xf32>
    %57 = arith.subf %53, %56 : vector<8x1xf32>
    %cst_25 = arith.constant 9.99999974E-6 : f32
    %58 = vector.broadcast %cst_25 : f32 to vector<8x1xf32>
    %59 = arith.addf %57, %58 : vector<8x1xf32>
    %60 = math.rsqrt %59 : vector<8x1xf32>
    %61 = vector.broadcast %60 : vector<8x1xf32> to vector<8x128xf32>
    %62 = arith.mulf %55, %61 : vector<8x128xf32>
    %c5 = arith.constant 5 : index
    %c0_26 = arith.constant 0 : index
    %63 = vector.load %arg2[%c5, %c0_26] : memref<16x128xf32, #tpu.memory_space<vmem>>, vector<1x128xf32>
    %64 = vector.broadcast %63 : vector<1x128xf32> to vector<8x128xf32>
    %65 = arith.mulf %62, %64 : vector<8x128xf32>
    %c9 = arith.constant 9 : index
    %c0_27 = arith.constant 0 : index
    %66 = vector.load %arg2[%c9, %c0_27] : memref<16x128xf32, #tpu.memory_space<vmem>>, vector<1x128xf32>
    %67 = vector.broadcast %66 : vector<1x128xf32> to vector<8x128xf32>
    %68 = arith.addf %65, %67 : vector<8x128xf32>
    %cst_28 = arith.constant 0.000000e+00 : f32
    %69 = vector.broadcast %cst_28 : f32 to vector<8x128xf32>
    %70 = arith.subf %69, %68 : vector<8x128xf32>
    %71 = math.exp %70 : vector<8x128xf32>
    %cst_29 = arith.constant 1.000000e+00 : f32
    %72 = vector.broadcast %cst_29 : f32 to vector<8x128xf32>
    %73 = arith.addf %72, %71 : vector<8x128xf32>
    %cst_30 = arith.constant 1.000000e+00 : f32
    %74 = vector.broadcast %cst_30 : f32 to vector<8x128xf32>
    %75 = arith.divf %74, %73 : vector<8x128xf32>
    %76 = arith.mulf %68, %75 : vector<8x128xf32>
    %c2 = arith.constant 2 : index
    %c0_31 = arith.constant 0 : index
    %c0_32 = arith.constant 0 : index
    %77 = vector.load %arg1[%c2, %c0_31, %c0_32] : memref<4x128x128xf32, #tpu.memory_space<vmem>>, vector<1x128x128xf32>
    %78 = vector.shape_cast %77 : vector<1x128x128xf32> to vector<128x128xf32>
    %cst_33 = arith.constant dense<0.000000e+00> : vector<8x128xf32>
    %79 = tpu.matmul %76, %78, %cst_33 {dimension_numbers = #tpu.dot_dimension_numbers<[1], [0], [0], [1], [0, 0, 1, 1], [], []>} : vector<8x128xf32>, vector<128x128xf32>, vector<8x128xf32> -> vector<8x128xf32>
    %c2_34 = arith.constant 2 : index
    %c0_35 = arith.constant 0 : index
    %80 = vector.load %arg2[%c2_34, %c0_35] : memref<16x128xf32, #tpu.memory_space<vmem>>, vector<1x128xf32>
    %81 = vector.broadcast %80 : vector<1x128xf32> to vector<8x128xf32>
    %82 = arith.addf %79, %81 : vector<8x128xf32>
    %cst_36 = arith.constant dense<0.000000e+00> : vector<8xf32>
    %83 = vector.multi_reduction <add>, %82, %cst_36 [1] : vector<8x128xf32> to vector<8xf32>
    %84 = vector.shape_cast %83 : vector<8xf32> to vector<8x1xf32>
    %cst_37 = arith.constant 6.250000e-02 : f32
    %85 = vector.broadcast %cst_37 : f32 to vector<8x1xf32>
    %86 = arith.mulf %84, %85 : vector<8x1xf32>
    %87 = arith.mulf %82, %82 : vector<8x128xf32>
    %cst_38 = arith.constant dense<0.000000e+00> : vector<8xf32>
    %88 = vector.multi_reduction <add>, %87, %cst_38 [1] : vector<8x128xf32> to vector<8xf32>
    %89 = vector.shape_cast %88 : vector<8xf32> to vector<8x1xf32>
    %cst_39 = arith.constant 6.250000e-02 : f32
    %90 = vector.broadcast %cst_39 : f32 to vector<8x1xf32>
    %91 = arith.mulf %89, %90 : vector<8x1xf32>
    %92 = vector.broadcast %86 : vector<8x1xf32> to vector<8x128xf32>
    %93 = arith.subf %82, %92 : vector<8x128xf32>
    %94 = arith.mulf %86, %86 : vector<8x1xf32>
    %95 = arith.subf %91, %94 : vector<8x1xf32>
    %cst_40 = arith.constant 9.99999974E-6 : f32
    %96 = vector.broadcast %cst_40 : f32 to vector<8x1xf32>
    %97 = arith.addf %95, %96 : vector<8x1xf32>
    %98 = math.rsqrt %97 : vector<8x1xf32>
    %99 = vector.broadcast %98 : vector<8x1xf32> to vector<8x128xf32>
    %100 = arith.mulf %93, %99 : vector<8x128xf32>
    %c6 = arith.constant 6 : index
    %c0_41 = arith.constant 0 : index
    %101 = vector.load %arg2[%c6, %c0_41] : memref<16x128xf32, #tpu.memory_space<vmem>>, vector<1x128xf32>
    %102 = vector.broadcast %101 : vector<1x128xf32> to vector<8x128xf32>
    %103 = arith.mulf %100, %102 : vector<8x128xf32>
    %c10 = arith.constant 10 : index
    %c0_42 = arith.constant 0 : index
    %104 = vector.load %arg2[%c10, %c0_42] : memref<16x128xf32, #tpu.memory_space<vmem>>, vector<1x128xf32>
    %105 = vector.broadcast %104 : vector<1x128xf32> to vector<8x128xf32>
    %106 = arith.addf %103, %105 : vector<8x128xf32>
    %cst_43 = arith.constant 0.000000e+00 : f32
    %107 = vector.broadcast %cst_43 : f32 to vector<8x128xf32>
    %108 = arith.subf %107, %106 : vector<8x128xf32>
    %109 = math.exp %108 : vector<8x128xf32>
    %cst_44 = arith.constant 1.000000e+00 : f32
    %110 = vector.broadcast %cst_44 : f32 to vector<8x128xf32>
    %111 = arith.addf %110, %109 : vector<8x128xf32>
    %cst_45 = arith.constant 1.000000e+00 : f32
    %112 = vector.broadcast %cst_45 : f32 to vector<8x128xf32>
    %113 = arith.divf %112, %111 : vector<8x128xf32>
    %114 = arith.mulf %106, %113 : vector<8x128xf32>
    %c3 = arith.constant 3 : index
    %c0_46 = arith.constant 0 : index
    %c0_47 = arith.constant 0 : index
    %115 = vector.load %arg1[%c3, %c0_46, %c0_47] : memref<4x128x128xf32, #tpu.memory_space<vmem>>, vector<1x128x128xf32>
    %116 = vector.shape_cast %115 : vector<1x128x128xf32> to vector<128x128xf32>
    %cst_48 = arith.constant dense<0.000000e+00> : vector<8x128xf32>
    %117 = tpu.matmul %114, %116, %cst_48 {dimension_numbers = #tpu.dot_dimension_numbers<[1], [0], [0], [1], [0, 0, 1, 1], [], []>} : vector<8x128xf32>, vector<128x128xf32>, vector<8x128xf32> -> vector<8x128xf32>
    %c3_49 = arith.constant 3 : index
    %c0_50 = arith.constant 0 : index
    %118 = vector.load %arg2[%c3_49, %c0_50] : memref<16x128xf32, #tpu.memory_space<vmem>>, vector<1x128xf32>
    %119 = vector.broadcast %118 : vector<1x128xf32> to vector<8x128xf32>
    %120 = arith.addf %117, %119 : vector<8x128xf32>
    %cst_51 = arith.constant dense<0.000000e+00> : vector<8xf32>
    %121 = vector.multi_reduction <add>, %120, %cst_51 [1] : vector<8x128xf32> to vector<8xf32>
    %122 = vector.shape_cast %121 : vector<8xf32> to vector<8x1xf32>
    %cst_52 = arith.constant 1.250000e-01 : f32
    %123 = vector.broadcast %cst_52 : f32 to vector<8x1xf32>
    %124 = arith.mulf %122, %123 : vector<8x1xf32>
    %125 = arith.mulf %120, %120 : vector<8x128xf32>
    %cst_53 = arith.constant dense<0.000000e+00> : vector<8xf32>
    %126 = vector.multi_reduction <add>, %125, %cst_53 [1] : vector<8x128xf32> to vector<8xf32>
    %127 = vector.shape_cast %126 : vector<8xf32> to vector<8x1xf32>
    %cst_54 = arith.constant 1.250000e-01 : f32
    %128 = vector.broadcast %cst_54 : f32 to vector<8x1xf32>
    %129 = arith.mulf %127, %128 : vector<8x1xf32>
    %130 = vector.broadcast %124 : vector<8x1xf32> to vector<8x128xf32>
    %131 = arith.subf %120, %130 : vector<8x128xf32>
    %132 = arith.mulf %124, %124 : vector<8x1xf32>
    %133 = arith.subf %129, %132 : vector<8x1xf32>
    %cst_55 = arith.constant 9.99999974E-6 : f32
    %134 = vector.broadcast %cst_55 : f32 to vector<8x1xf32>
    %135 = arith.addf %133, %134 : vector<8x1xf32>
    %136 = math.rsqrt %135 : vector<8x1xf32>
    %137 = vector.broadcast %136 : vector<8x1xf32> to vector<8x128xf32>
    %138 = arith.mulf %131, %137 : vector<8x128xf32>
    %c7 = arith.constant 7 : index
    %c0_56 = arith.constant 0 : index
    %139 = vector.load %arg2[%c7, %c0_56] : memref<16x128xf32, #tpu.memory_space<vmem>>, vector<1x128xf32>
    %140 = vector.broadcast %139 : vector<1x128xf32> to vector<8x128xf32>
    %141 = arith.mulf %138, %140 : vector<8x128xf32>
    %c11 = arith.constant 11 : index
    %c0_57 = arith.constant 0 : index
    %142 = vector.load %arg2[%c11, %c0_57] : memref<16x128xf32, #tpu.memory_space<vmem>>, vector<1x128xf32>
    %143 = vector.broadcast %142 : vector<1x128xf32> to vector<8x128xf32>
    %144 = arith.addf %141, %143 : vector<8x128xf32>
    %cst_58 = arith.constant 5.000000e-01 : f32
    %145 = vector.broadcast %cst_58 : f32 to vector<8x128xf32>
    %146 = arith.mulf %145, %144 : vector<8x128xf32>
    %147 = math.cos %146 : vector<8x128xf32>
    %148 = math.sin %146 : vector<8x128xf32>
    %149 = tpu.iota {dimensions = array<i32: 1>} : vector<8x256xi32>
    %c0_i32 = arith.constant 0 : i32
    %150 = vector.broadcast %c0_i32 : i32 to vector<8x256xi32>
    %151 = arith.shrsi %149, %150 : vector<8x256xi32>
    %c1_i32 = arith.constant 1 : i32
    %152 = vector.broadcast %c1_i32 : i32 to vector<8x256xi32>
    %153 = arith.andi %151, %152 : vector<8x256xi32>
    %c1_i32_59 = arith.constant 1 : i32
    %154 = vector.broadcast %c1_i32_59 : i32 to vector<8x256xi32>
    %155 = arith.cmpi eq, %153, %154 : vector<8x256xi32>
    %c1_i32_60 = arith.constant 1 : i32
    %156 = vector.broadcast %c1_i32_60 : i32 to vector<8x256xi32>
    %157 = arith.shrsi %149, %156 : vector<8x256xi32>
    %c1_i32_61 = arith.constant 1 : i32
    %158 = vector.broadcast %c1_i32_61 : i32 to vector<8x256xi32>
    %159 = arith.andi %157, %158 : vector<8x256xi32>
    %c1_i32_62 = arith.constant 1 : i32
    %160 = vector.broadcast %c1_i32_62 : i32 to vector<8x256xi32>
    %161 = arith.cmpi eq, %159, %160 : vector<8x256xi32>
    %c2_i32 = arith.constant 2 : i32
    %162 = vector.broadcast %c2_i32 : i32 to vector<8x256xi32>
    %163 = arith.shrsi %149, %162 : vector<8x256xi32>
    %c1_i32_63 = arith.constant 1 : i32
    %164 = vector.broadcast %c1_i32_63 : i32 to vector<8x256xi32>
    %165 = arith.andi %163, %164 : vector<8x256xi32>
    %c1_i32_64 = arith.constant 1 : i32
    %166 = vector.broadcast %c1_i32_64 : i32 to vector<8x256xi32>
    %167 = arith.cmpi eq, %165, %166 : vector<8x256xi32>
    %c3_i32 = arith.constant 3 : i32
    %168 = vector.broadcast %c3_i32 : i32 to vector<8x256xi32>
    %169 = arith.shrsi %149, %168 : vector<8x256xi32>
    %c1_i32_65 = arith.constant 1 : i32
    %170 = vector.broadcast %c1_i32_65 : i32 to vector<8x256xi32>
    %171 = arith.andi %169, %170 : vector<8x256xi32>
    %c1_i32_66 = arith.constant 1 : i32
    %172 = vector.broadcast %c1_i32_66 : i32 to vector<8x256xi32>
    %173 = arith.cmpi eq, %171, %172 : vector<8x256xi32>
    %c4_i32 = arith.constant 4 : i32
    %174 = vector.broadcast %c4_i32 : i32 to vector<8x256xi32>
    %175 = arith.shrsi %149, %174 : vector<8x256xi32>
    %c1_i32_67 = arith.constant 1 : i32
    %176 = vector.broadcast %c1_i32_67 : i32 to vector<8x256xi32>
    %177 = arith.andi %175, %176 : vector<8x256xi32>
    %c1_i32_68 = arith.constant 1 : i32
    %178 = vector.broadcast %c1_i32_68 : i32 to vector<8x256xi32>
    %179 = arith.cmpi eq, %177, %178 : vector<8x256xi32>
    %c5_i32 = arith.constant 5 : i32
    %180 = vector.broadcast %c5_i32 : i32 to vector<8x256xi32>
    %181 = arith.shrsi %149, %180 : vector<8x256xi32>
    %c1_i32_69 = arith.constant 1 : i32
    %182 = vector.broadcast %c1_i32_69 : i32 to vector<8x256xi32>
    %183 = arith.andi %181, %182 : vector<8x256xi32>
    %c1_i32_70 = arith.constant 1 : i32
    %184 = vector.broadcast %c1_i32_70 : i32 to vector<8x256xi32>
    %185 = arith.cmpi eq, %183, %184 : vector<8x256xi32>
    %c6_i32 = arith.constant 6 : i32
    %186 = vector.broadcast %c6_i32 : i32 to vector<8x256xi32>
    %187 = arith.shrsi %149, %186 : vector<8x256xi32>
    %c1_i32_71 = arith.constant 1 : i32
    %188 = vector.broadcast %c1_i32_71 : i32 to vector<8x256xi32>
    %189 = arith.andi %187, %188 : vector<8x256xi32>
    %c1_i32_72 = arith.constant 1 : i32
    %190 = vector.broadcast %c1_i32_72 : i32 to vector<8x256xi32>
    %191 = arith.cmpi eq, %189, %190 : vector<8x256xi32>
    %c7_i32 = arith.constant 7 : i32
    %192 = vector.broadcast %c7_i32 : i32 to vector<8x256xi32>
    %193 = arith.shrsi %149, %192 : vector<8x256xi32>
    %c1_i32_73 = arith.constant 1 : i32
    %194 = vector.broadcast %c1_i32_73 : i32 to vector<8x256xi32>
    %195 = arith.andi %193, %194 : vector<8x256xi32>
    %c1_i32_74 = arith.constant 1 : i32
    %196 = vector.broadcast %c1_i32_74 : i32 to vector<8x256xi32>
    %197 = arith.cmpi eq, %195, %196 : vector<8x256xi32>
    %cst_75 = arith.constant 1.000000e+00 : f32
    %198 = vector.broadcast %cst_75 : f32 to vector<8x256xf32>
    %c7_i32_76 = arith.constant 7 : i32
    %199 = vector.broadcast %c7_i32_76 : i32 to vector<8x256xi32>
    %200 = arith.shrsi %149, %199 : vector<8x256xi32>
    %c1_i32_77 = arith.constant 1 : i32
    %201 = vector.broadcast %c1_i32_77 : i32 to vector<8x256xi32>
    %202 = arith.andi %200, %201 : vector<8x256xi32>
    %c6_i32_78 = arith.constant 6 : i32
    %203 = vector.broadcast %c6_i32_78 : i32 to vector<8x256xi32>
    %204 = arith.shrsi %149, %203 : vector<8x256xi32>
    %c1_i32_79 = arith.constant 1 : i32
    %205 = vector.broadcast %c1_i32_79 : i32 to vector<8x256xi32>
    %206 = arith.andi %204, %205 : vector<8x256xi32>
    %207 = arith.andi %202, %206 : vector<8x256xi32>
    %c1_i32_80 = arith.constant 1 : i32
    %208 = vector.broadcast %c1_i32_80 : i32 to vector<8x256xi32>
    %209 = arith.cmpi eq, %207, %208 : vector<8x256xi32>
    %cst_81 = arith.constant -1.000000e+00 : f32
    %cst_82 = arith.constant 1.000000e+00 : f32
    %210 = vector.broadcast %cst_81 : f32 to vector<8x256xf32>
    %211 = vector.broadcast %cst_82 : f32 to vector<8x256xf32>
    %212 = arith.select %209, %210, %211 : vector<8x256xi1>, vector<8x256xf32>
    %213 = arith.mulf %198, %212 : vector<8x256xf32>
    %c6_i32_83 = arith.constant 6 : i32
    %214 = vector.broadcast %c6_i32_83 : i32 to vector<8x256xi32>
    %215 = arith.shrsi %149, %214 : vector<8x256xi32>
    %c1_i32_84 = arith.constant 1 : i32
    %216 = vector.broadcast %c1_i32_84 : i32 to vector<8x256xi32>
    %217 = arith.andi %215, %216 : vector<8x256xi32>
    %c5_i32_85 = arith.constant 5 : i32
    %218 = vector.broadcast %c5_i32_85 : i32 to vector<8x256xi32>
    %219 = arith.shrsi %149, %218 : vector<8x256xi32>
    %c1_i32_86 = arith.constant 1 : i32
    %220 = vector.broadcast %c1_i32_86 : i32 to vector<8x256xi32>
    %221 = arith.andi %219, %220 : vector<8x256xi32>
    %222 = arith.andi %217, %221 : vector<8x256xi32>
    %c1_i32_87 = arith.constant 1 : i32
    %223 = vector.broadcast %c1_i32_87 : i32 to vector<8x256xi32>
    %224 = arith.cmpi eq, %222, %223 : vector<8x256xi32>
    %cst_88 = arith.constant -1.000000e+00 : f32
    %cst_89 = arith.constant 1.000000e+00 : f32
    %225 = vector.broadcast %cst_88 : f32 to vector<8x256xf32>
    %226 = vector.broadcast %cst_89 : f32 to vector<8x256xf32>
    %227 = arith.select %224, %225, %226 : vector<8x256xi1>, vector<8x256xf32>
    %228 = arith.mulf %213, %227 : vector<8x256xf32>
    %c5_i32_90 = arith.constant 5 : i32
    %229 = vector.broadcast %c5_i32_90 : i32 to vector<8x256xi32>
    %230 = arith.shrsi %149, %229 : vector<8x256xi32>
    %c1_i32_91 = arith.constant 1 : i32
    %231 = vector.broadcast %c1_i32_91 : i32 to vector<8x256xi32>
    %232 = arith.andi %230, %231 : vector<8x256xi32>
    %c4_i32_92 = arith.constant 4 : i32
    %233 = vector.broadcast %c4_i32_92 : i32 to vector<8x256xi32>
    %234 = arith.shrsi %149, %233 : vector<8x256xi32>
    %c1_i32_93 = arith.constant 1 : i32
    %235 = vector.broadcast %c1_i32_93 : i32 to vector<8x256xi32>
    %236 = arith.andi %234, %235 : vector<8x256xi32>
    %237 = arith.andi %232, %236 : vector<8x256xi32>
    %c1_i32_94 = arith.constant 1 : i32
    %238 = vector.broadcast %c1_i32_94 : i32 to vector<8x256xi32>
    %239 = arith.cmpi eq, %237, %238 : vector<8x256xi32>
    %cst_95 = arith.constant -1.000000e+00 : f32
    %cst_96 = arith.constant 1.000000e+00 : f32
    %240 = vector.broadcast %cst_95 : f32 to vector<8x256xf32>
    %241 = vector.broadcast %cst_96 : f32 to vector<8x256xf32>
    %242 = arith.select %239, %240, %241 : vector<8x256xi1>, vector<8x256xf32>
    %243 = arith.mulf %228, %242 : vector<8x256xf32>
    %c4_i32_97 = arith.constant 4 : i32
    %244 = vector.broadcast %c4_i32_97 : i32 to vector<8x256xi32>
    %245 = arith.shrsi %149, %244 : vector<8x256xi32>
    %c1_i32_98 = arith.constant 1 : i32
    %246 = vector.broadcast %c1_i32_98 : i32 to vector<8x256xi32>
    %247 = arith.andi %245, %246 : vector<8x256xi32>
    %c3_i32_99 = arith.constant 3 : i32
    %248 = vector.broadcast %c3_i32_99 : i32 to vector<8x256xi32>
    %249 = arith.shrsi %149, %248 : vector<8x256xi32>
    %c1_i32_100 = arith.constant 1 : i32
    %250 = vector.broadcast %c1_i32_100 : i32 to vector<8x256xi32>
    %251 = arith.andi %249, %250 : vector<8x256xi32>
    %252 = arith.andi %247, %251 : vector<8x256xi32>
    %c1_i32_101 = arith.constant 1 : i32
    %253 = vector.broadcast %c1_i32_101 : i32 to vector<8x256xi32>
    %254 = arith.cmpi eq, %252, %253 : vector<8x256xi32>
    %cst_102 = arith.constant -1.000000e+00 : f32
    %cst_103 = arith.constant 1.000000e+00 : f32
    %255 = vector.broadcast %cst_102 : f32 to vector<8x256xf32>
    %256 = vector.broadcast %cst_103 : f32 to vector<8x256xf32>
    %257 = arith.select %254, %255, %256 : vector<8x256xi1>, vector<8x256xf32>
    %258 = arith.mulf %243, %257 : vector<8x256xf32>
    %c3_i32_104 = arith.constant 3 : i32
    %259 = vector.broadcast %c3_i32_104 : i32 to vector<8x256xi32>
    %260 = arith.shrsi %149, %259 : vector<8x256xi32>
    %c1_i32_105 = arith.constant 1 : i32
    %261 = vector.broadcast %c1_i32_105 : i32 to vector<8x256xi32>
    %262 = arith.andi %260, %261 : vector<8x256xi32>
    %c2_i32_106 = arith.constant 2 : i32
    %263 = vector.broadcast %c2_i32_106 : i32 to vector<8x256xi32>
    %264 = arith.shrsi %149, %263 : vector<8x256xi32>
    %c1_i32_107 = arith.constant 1 : i32
    %265 = vector.broadcast %c1_i32_107 : i32 to vector<8x256xi32>
    %266 = arith.andi %264, %265 : vector<8x256xi32>
    %267 = arith.andi %262, %266 : vector<8x256xi32>
    %c1_i32_108 = arith.constant 1 : i32
    %268 = vector.broadcast %c1_i32_108 : i32 to vector<8x256xi32>
    %269 = arith.cmpi eq, %267, %268 : vector<8x256xi32>
    %cst_109 = arith.constant -1.000000e+00 : f32
    %cst_110 = arith.constant 1.000000e+00 : f32
    %270 = vector.broadcast %cst_109 : f32 to vector<8x256xf32>
    %271 = vector.broadcast %cst_110 : f32 to vector<8x256xf32>
    %272 = arith.select %269, %270, %271 : vector<8x256xi1>, vector<8x256xf32>
    %273 = arith.mulf %258, %272 : vector<8x256xf32>
    %c2_i32_111 = arith.constant 2 : i32
    %274 = vector.broadcast %c2_i32_111 : i32 to vector<8x256xi32>
    %275 = arith.shrsi %149, %274 : vector<8x256xi32>
    %c1_i32_112 = arith.constant 1 : i32
    %276 = vector.broadcast %c1_i32_112 : i32 to vector<8x256xi32>
    %277 = arith.andi %275, %276 : vector<8x256xi32>
    %c1_i32_113 = arith.constant 1 : i32
    %278 = vector.broadcast %c1_i32_113 : i32 to vector<8x256xi32>
    %279 = arith.shrsi %149, %278 : vector<8x256xi32>
    %c1_i32_114 = arith.constant 1 : i32
    %280 = vector.broadcast %c1_i32_114 : i32 to vector<8x256xi32>
    %281 = arith.andi %279, %280 : vector<8x256xi32>
    %282 = arith.andi %277, %281 : vector<8x256xi32>
    %c1_i32_115 = arith.constant 1 : i32
    %283 = vector.broadcast %c1_i32_115 : i32 to vector<8x256xi32>
    %284 = arith.cmpi eq, %282, %283 : vector<8x256xi32>
    %cst_116 = arith.constant -1.000000e+00 : f32
    %cst_117 = arith.constant 1.000000e+00 : f32
    %285 = vector.broadcast %cst_116 : f32 to vector<8x256xf32>
    %286 = vector.broadcast %cst_117 : f32 to vector<8x256xf32>
    %287 = arith.select %284, %285, %286 : vector<8x256xi1>, vector<8x256xf32>
    %288 = arith.mulf %273, %287 : vector<8x256xf32>
    %c1_i32_118 = arith.constant 1 : i32
    %289 = vector.broadcast %c1_i32_118 : i32 to vector<8x256xi32>
    %290 = arith.shrsi %149, %289 : vector<8x256xi32>
    %c1_i32_119 = arith.constant 1 : i32
    %291 = vector.broadcast %c1_i32_119 : i32 to vector<8x256xi32>
    %292 = arith.andi %290, %291 : vector<8x256xi32>
    %c0_i32_120 = arith.constant 0 : i32
    %293 = vector.broadcast %c0_i32_120 : i32 to vector<8x256xi32>
    %294 = arith.shrsi %149, %293 : vector<8x256xi32>
    %c1_i32_121 = arith.constant 1 : i32
    %295 = vector.broadcast %c1_i32_121 : i32 to vector<8x256xi32>
    %296 = arith.andi %294, %295 : vector<8x256xi32>
    %297 = arith.andi %292, %296 : vector<8x256xi32>
    %c1_i32_122 = arith.constant 1 : i32
    %298 = vector.broadcast %c1_i32_122 : i32 to vector<8x256xi32>
    %299 = arith.cmpi eq, %297, %298 : vector<8x256xi32>
    %cst_123 = arith.constant -1.000000e+00 : f32
    %cst_124 = arith.constant 1.000000e+00 : f32
    %300 = vector.broadcast %cst_123 : f32 to vector<8x256xf32>
    %301 = vector.broadcast %cst_124 : f32 to vector<8x256xf32>
    %302 = arith.select %299, %300, %301 : vector<8x256xi1>, vector<8x256xf32>
    %303 = arith.mulf %288, %302 : vector<8x256xf32>
    %304 = vector.extract_strided_slice %148 {offsets = [0, 0], sizes = [8, 1], strides = [1, 1]} : vector<8x128xf32> to vector<8x1xf32>
    %305 = vector.extract_strided_slice %147 {offsets = [0, 0], sizes = [8, 1], strides = [1, 1]} : vector<8x128xf32> to vector<8x1xf32>
    %306 = vector.shape_cast %304 : vector<8x1xf32> to vector<8x1xf32>
    %307 = vector.broadcast %306 : vector<8x1xf32> to vector<8x256xf32>
    %308 = vector.shape_cast %305 : vector<8x1xf32> to vector<8x1xf32>
    %309 = vector.broadcast %308 : vector<8x1xf32> to vector<8x256xf32>
    %310 = arith.select %197, %307, %309 : vector<8x256xi1>, vector<8x256xf32>
    %311 = vector.extract_strided_slice %148 {offsets = [0, 1], sizes = [8, 1], strides = [1, 1]} : vector<8x128xf32> to vector<8x1xf32>
    %312 = vector.extract_strided_slice %147 {offsets = [0, 1], sizes = [8, 1], strides = [1, 1]} : vector<8x128xf32> to vector<8x1xf32>
    %313 = vector.shape_cast %311 : vector<8x1xf32> to vector<8x1xf32>
    %314 = vector.broadcast %313 : vector<8x1xf32> to vector<8x256xf32>
    %315 = vector.shape_cast %312 : vector<8x1xf32> to vector<8x1xf32>
    %316 = vector.broadcast %315 : vector<8x1xf32> to vector<8x256xf32>
    %317 = arith.select %191, %314, %316 : vector<8x256xi1>, vector<8x256xf32>
    %318 = arith.mulf %310, %317 : vector<8x256xf32>
    %319 = vector.extract_strided_slice %148 {offsets = [0, 2], sizes = [8, 1], strides = [1, 1]} : vector<8x128xf32> to vector<8x1xf32>
    %320 = vector.extract_strided_slice %147 {offsets = [0, 2], sizes = [8, 1], strides = [1, 1]} : vector<8x128xf32> to vector<8x1xf32>
    %321 = vector.shape_cast %319 : vector<8x1xf32> to vector<8x1xf32>
    %322 = vector.broadcast %321 : vector<8x1xf32> to vector<8x256xf32>
    %323 = vector.shape_cast %320 : vector<8x1xf32> to vector<8x1xf32>
    %324 = vector.broadcast %323 : vector<8x1xf32> to vector<8x256xf32>
    %325 = arith.select %185, %322, %324 : vector<8x256xi1>, vector<8x256xf32>
    %326 = arith.mulf %318, %325 : vector<8x256xf32>
    %327 = vector.extract_strided_slice %148 {offsets = [0, 3], sizes = [8, 1], strides = [1, 1]} : vector<8x128xf32> to vector<8x1xf32>
    %328 = vector.extract_strided_slice %147 {offsets = [0, 3], sizes = [8, 1], strides = [1, 1]} : vector<8x128xf32> to vector<8x1xf32>
    %329 = vector.shape_cast %327 : vector<8x1xf32> to vector<8x1xf32>
    %330 = vector.broadcast %329 : vector<8x1xf32> to vector<8x256xf32>
    %331 = vector.shape_cast %328 : vector<8x1xf32> to vector<8x1xf32>
    %332 = vector.broadcast %331 : vector<8x1xf32> to vector<8x256xf32>
    %333 = arith.select %179, %330, %332 : vector<8x256xi1>, vector<8x256xf32>
    %334 = arith.mulf %326, %333 : vector<8x256xf32>
    %335 = vector.extract_strided_slice %148 {offsets = [0, 4], sizes = [8, 1], strides = [1, 1]} : vector<8x128xf32> to vector<8x1xf32>
    %336 = vector.extract_strided_slice %147 {offsets = [0, 4], sizes = [8, 1], strides = [1, 1]} : vector<8x128xf32> to vector<8x1xf32>
    %337 = vector.shape_cast %335 : vector<8x1xf32> to vector<8x1xf32>
    %338 = vector.broadcast %337 : vector<8x1xf32> to vector<8x256xf32>
    %339 = vector.shape_cast %336 : vector<8x1xf32> to vector<8x1xf32>
    %340 = vector.broadcast %339 : vector<8x1xf32> to vector<8x256xf32>
    %341 = arith.select %173, %338, %340 : vector<8x256xi1>, vector<8x256xf32>
    %342 = arith.mulf %334, %341 : vector<8x256xf32>
    %343 = vector.extract_strided_slice %148 {offsets = [0, 5], sizes = [8, 1], strides = [1, 1]} : vector<8x128xf32> to vector<8x1xf32>
    %344 = vector.extract_strided_slice %147 {offsets = [0, 5], sizes = [8, 1], strides = [1, 1]} : vector<8x128xf32> to vector<8x1xf32>
    %345 = vector.shape_cast %343 : vector<8x1xf32> to vector<8x1xf32>
    %346 = vector.broadcast %345 : vector<8x1xf32> to vector<8x256xf32>
    %347 = vector.shape_cast %344 : vector<8x1xf32> to vector<8x1xf32>
    %348 = vector.broadcast %347 : vector<8x1xf32> to vector<8x256xf32>
    %349 = arith.select %167, %346, %348 : vector<8x256xi1>, vector<8x256xf32>
    %350 = arith.mulf %342, %349 : vector<8x256xf32>
    %351 = vector.extract_strided_slice %148 {offsets = [0, 6], sizes = [8, 1], strides = [1, 1]} : vector<8x128xf32> to vector<8x1xf32>
    %352 = vector.extract_strided_slice %147 {offsets = [0, 6], sizes = [8, 1], strides = [1, 1]} : vector<8x128xf32> to vector<8x1xf32>
    %353 = vector.shape_cast %351 : vector<8x1xf32> to vector<8x1xf32>
    %354 = vector.broadcast %353 : vector<8x1xf32> to vector<8x256xf32>
    %355 = vector.shape_cast %352 : vector<8x1xf32> to vector<8x1xf32>
    %356 = vector.broadcast %355 : vector<8x1xf32> to vector<8x256xf32>
    %357 = arith.select %161, %354, %356 : vector<8x256xi1>, vector<8x256xf32>
    %358 = arith.mulf %350, %357 : vector<8x256xf32>
    %359 = vector.extract_strided_slice %148 {offsets = [0, 7], sizes = [8, 1], strides = [1, 1]} : vector<8x128xf32> to vector<8x1xf32>
    %360 = vector.extract_strided_slice %147 {offsets = [0, 7], sizes = [8, 1], strides = [1, 1]} : vector<8x128xf32> to vector<8x1xf32>
    %361 = vector.shape_cast %359 : vector<8x1xf32> to vector<8x1xf32>
    %362 = vector.broadcast %361 : vector<8x1xf32> to vector<8x256xf32>
    %363 = vector.shape_cast %360 : vector<8x1xf32> to vector<8x1xf32>
    %364 = vector.broadcast %363 : vector<8x1xf32> to vector<8x256xf32>
    %365 = arith.select %155, %362, %364 : vector<8x256xi1>, vector<8x256xf32>
    %366 = arith.mulf %358, %365 : vector<8x256xf32>
    %c0_125 = arith.constant 0 : index
    %367 = memref.load %arg3[%c0_125] : memref<208xf32, #tpu.memory_space<smem>>
    %c1_126 = arith.constant 1 : index
    %368 = memref.load %arg3[%c1_126] : memref<208xf32, #tpu.memory_space<smem>>
    %c2_127 = arith.constant 2 : index
    %369 = memref.load %arg3[%c2_127] : memref<208xf32, #tpu.memory_space<smem>>
    %c3_128 = arith.constant 3 : index
    %370 = memref.load %arg3[%c3_128] : memref<208xf32, #tpu.memory_space<smem>>
    %c96 = arith.constant 96 : index
    %371 = memref.load %arg3[%c96] : memref<208xf32, #tpu.memory_space<smem>>
    %c97 = arith.constant 97 : index
    %372 = memref.load %arg3[%c97] : memref<208xf32, #tpu.memory_space<smem>>
    %c98 = arith.constant 98 : index
    %373 = memref.load %arg3[%c98] : memref<208xf32, #tpu.memory_space<smem>>
    %c99 = arith.constant 99 : index
    %374 = memref.load %arg3[%c99] : memref<208xf32, #tpu.memory_space<smem>>
    %c128_i32 = arith.constant 128 : i32
    %375 = tpu.dynamic_rotate %366 by %c128_i32 dim 1 : vector<8x256xf32>, i32 -> vector<8x256xf32>
    %c128_i32_129 = arith.constant 128 : i32
    %376 = tpu.dynamic_rotate %366 by %c128_i32_129 dim 1 : vector<8x256xf32>, i32 -> vector<8x256xf32>
    %377 = arith.select %197, %375, %376 : vector<8x256xi1>, vector<8x256xf32>
    %378 = vector.broadcast %370 : f32 to vector<8x256xf32>
    %379 = vector.broadcast %367 : f32 to vector<8x256xf32>
    %380 = arith.select %197, %378, %379 : vector<8x256xi1>, vector<8x256xf32>
    %381 = vector.broadcast %374 : f32 to vector<8x256xf32>
    %382 = vector.broadcast %371 : f32 to vector<8x256xf32>
    %383 = arith.select %197, %381, %382 : vector<8x256xi1>, vector<8x256xf32>
    %384 = vector.broadcast %369 : f32 to vector<8x256xf32>
    %385 = vector.broadcast %368 : f32 to vector<8x256xf32>
    %386 = arith.select %197, %384, %385 : vector<8x256xi1>, vector<8x256xf32>
    %387 = vector.broadcast %373 : f32 to vector<8x256xf32>
    %388 = vector.broadcast %372 : f32 to vector<8x256xf32>
    %389 = arith.select %197, %387, %388 : vector<8x256xi1>, vector<8x256xf32>
    %390 = arith.mulf %380, %366 : vector<8x256xf32>
    %391 = arith.mulf %386, %377 : vector<8x256xf32>
    %392 = arith.addf %390, %391 : vector<8x256xf32>
    %393 = arith.mulf %383, %366 : vector<8x256xf32>
    %394 = arith.mulf %389, %377 : vector<8x256xf32>
    %395 = arith.addf %393, %394 : vector<8x256xf32>
    %c4_130 = arith.constant 4 : index
    %396 = memref.load %arg3[%c4_130] : memref<208xf32, #tpu.memory_space<smem>>
    %c5_131 = arith.constant 5 : index
    %397 = memref.load %arg3[%c5_131] : memref<208xf32, #tpu.memory_space<smem>>
    %c6_132 = arith.constant 6 : index
    %398 = memref.load %arg3[%c6_132] : memref<208xf32, #tpu.memory_space<smem>>
    %c7_133 = arith.constant 7 : index
    %399 = memref.load %arg3[%c7_133] : memref<208xf32, #tpu.memory_space<smem>>
    %c100 = arith.constant 100 : index
    %400 = memref.load %arg3[%c100] : memref<208xf32, #tpu.memory_space<smem>>
    %c101 = arith.constant 101 : index
    %401 = memref.load %arg3[%c101] : memref<208xf32, #tpu.memory_space<smem>>
    %c102 = arith.constant 102 : index
    %402 = memref.load %arg3[%c102] : memref<208xf32, #tpu.memory_space<smem>>
    %c103 = arith.constant 103 : index
    %403 = memref.load %arg3[%c103] : memref<208xf32, #tpu.memory_space<smem>>
    %c64_i32 = arith.constant 64 : i32
    %404 = tpu.dynamic_rotate %392 by %c64_i32 dim 1 : vector<8x256xf32>, i32 -> vector<8x256xf32>
    %c192_i32 = arith.constant 192 : i32
    %405 = tpu.dynamic_rotate %392 by %c192_i32 dim 1 : vector<8x256xf32>, i32 -> vector<8x256xf32>
    %406 = arith.select %191, %404, %405 : vector<8x256xi1>, vector<8x256xf32>
    %407 = vector.broadcast %399 : f32 to vector<8x256xf32>
    %408 = vector.broadcast %396 : f32 to vector<8x256xf32>
    %409 = arith.select %191, %407, %408 : vector<8x256xi1>, vector<8x256xf32>
    %410 = vector.broadcast %403 : f32 to vector<8x256xf32>
    %411 = vector.broadcast %400 : f32 to vector<8x256xf32>
    %412 = arith.select %191, %410, %411 : vector<8x256xi1>, vector<8x256xf32>
    %413 = vector.broadcast %398 : f32 to vector<8x256xf32>
    %414 = vector.broadcast %397 : f32 to vector<8x256xf32>
    %415 = arith.select %191, %413, %414 : vector<8x256xi1>, vector<8x256xf32>
    %416 = vector.broadcast %402 : f32 to vector<8x256xf32>
    %417 = vector.broadcast %401 : f32 to vector<8x256xf32>
    %418 = arith.select %191, %416, %417 : vector<8x256xi1>, vector<8x256xf32>
    %c64_i32_134 = arith.constant 64 : i32
    %419 = tpu.dynamic_rotate %395 by %c64_i32_134 dim 1 : vector<8x256xf32>, i32 -> vector<8x256xf32>
    %c192_i32_135 = arith.constant 192 : i32
    %420 = tpu.dynamic_rotate %395 by %c192_i32_135 dim 1 : vector<8x256xf32>, i32 -> vector<8x256xf32>
    %421 = arith.select %191, %419, %420 : vector<8x256xi1>, vector<8x256xf32>
    %422 = arith.mulf %409, %392 : vector<8x256xf32>
    %423 = arith.mulf %412, %395 : vector<8x256xf32>
    %424 = arith.subf %422, %423 : vector<8x256xf32>
    %425 = arith.mulf %415, %406 : vector<8x256xf32>
    %426 = arith.addf %424, %425 : vector<8x256xf32>
    %427 = arith.mulf %418, %421 : vector<8x256xf32>
    %428 = arith.subf %426, %427 : vector<8x256xf32>
    %429 = arith.mulf %409, %395 : vector<8x256xf32>
    %430 = arith.mulf %412, %392 : vector<8x256xf32>
    %431 = arith.addf %429, %430 : vector<8x256xf32>
    %432 = arith.mulf %415, %421 : vector<8x256xf32>
    %433 = arith.addf %431, %432 : vector<8x256xf32>
    %434 = arith.mulf %418, %406 : vector<8x256xf32>
    %435 = arith.addf %433, %434 : vector<8x256xf32>
    %c8_136 = arith.constant 8 : index
    %436 = memref.load %arg3[%c8_136] : memref<208xf32, #tpu.memory_space<smem>>
    %c9_137 = arith.constant 9 : index
    %437 = memref.load %arg3[%c9_137] : memref<208xf32, #tpu.memory_space<smem>>
    %c10_138 = arith.constant 10 : index
    %438 = memref.load %arg3[%c10_138] : memref<208xf32, #tpu.memory_space<smem>>
    %c11_139 = arith.constant 11 : index
    %439 = memref.load %arg3[%c11_139] : memref<208xf32, #tpu.memory_space<smem>>
    %c104 = arith.constant 104 : index
    %440 = memref.load %arg3[%c104] : memref<208xf32, #tpu.memory_space<smem>>
    %c105 = arith.constant 105 : index
    %441 = memref.load %arg3[%c105] : memref<208xf32, #tpu.memory_space<smem>>
    %c106 = arith.constant 106 : index
    %442 = memref.load %arg3[%c106] : memref<208xf32, #tpu.memory_space<smem>>
    %c107 = arith.constant 107 : index
    %443 = memref.load %arg3[%c107] : memref<208xf32, #tpu.memory_space<smem>>
    %c32_i32 = arith.constant 32 : i32
    %444 = tpu.dynamic_rotate %428 by %c32_i32 dim 1 : vector<8x256xf32>, i32 -> vector<8x256xf32>
    %c224_i32 = arith.constant 224 : i32
    %445 = tpu.dynamic_rotate %428 by %c224_i32 dim 1 : vector<8x256xf32>, i32 -> vector<8x256xf32>
    %446 = arith.select %185, %444, %445 : vector<8x256xi1>, vector<8x256xf32>
    %447 = vector.broadcast %439 : f32 to vector<8x256xf32>
    %448 = vector.broadcast %436 : f32 to vector<8x256xf32>
    %449 = arith.select %185, %447, %448 : vector<8x256xi1>, vector<8x256xf32>
    %450 = vector.broadcast %443 : f32 to vector<8x256xf32>
    %451 = vector.broadcast %440 : f32 to vector<8x256xf32>
    %452 = arith.select %185, %450, %451 : vector<8x256xi1>, vector<8x256xf32>
    %453 = vector.broadcast %438 : f32 to vector<8x256xf32>
    %454 = vector.broadcast %437 : f32 to vector<8x256xf32>
    %455 = arith.select %185, %453, %454 : vector<8x256xi1>, vector<8x256xf32>
    %456 = vector.broadcast %442 : f32 to vector<8x256xf32>
    %457 = vector.broadcast %441 : f32 to vector<8x256xf32>
    %458 = arith.select %185, %456, %457 : vector<8x256xi1>, vector<8x256xf32>
    %c32_i32_140 = arith.constant 32 : i32
    %459 = tpu.dynamic_rotate %435 by %c32_i32_140 dim 1 : vector<8x256xf32>, i32 -> vector<8x256xf32>
    %c224_i32_141 = arith.constant 224 : i32
    %460 = tpu.dynamic_rotate %435 by %c224_i32_141 dim 1 : vector<8x256xf32>, i32 -> vector<8x256xf32>
    %461 = arith.select %185, %459, %460 : vector<8x256xi1>, vector<8x256xf32>
    %462 = arith.mulf %449, %428 : vector<8x256xf32>
    %463 = arith.mulf %452, %435 : vector<8x256xf32>
    %464 = arith.subf %462, %463 : vector<8x256xf32>
    %465 = arith.mulf %455, %446 : vector<8x256xf32>
    %466 = arith.addf %464, %465 : vector<8x256xf32>
    %467 = arith.mulf %458, %461 : vector<8x256xf32>
    %468 = arith.subf %466, %467 : vector<8x256xf32>
    %469 = arith.mulf %449, %435 : vector<8x256xf32>
    %470 = arith.mulf %452, %428 : vector<8x256xf32>
    %471 = arith.addf %469, %470 : vector<8x256xf32>
    %472 = arith.mulf %455, %461 : vector<8x256xf32>
    %473 = arith.addf %471, %472 : vector<8x256xf32>
    %474 = arith.mulf %458, %446 : vector<8x256xf32>
    %475 = arith.addf %473, %474 : vector<8x256xf32>
    %c12 = arith.constant 12 : index
    %476 = memref.load %arg3[%c12] : memref<208xf32, #tpu.memory_space<smem>>
    %c13 = arith.constant 13 : index
    %477 = memref.load %arg3[%c13] : memref<208xf32, #tpu.memory_space<smem>>
    %c14 = arith.constant 14 : index
    %478 = memref.load %arg3[%c14] : memref<208xf32, #tpu.memory_space<smem>>
    %c15 = arith.constant 15 : index
    %479 = memref.load %arg3[%c15] : memref<208xf32, #tpu.memory_space<smem>>
    %c108 = arith.constant 108 : index
    %480 = memref.load %arg3[%c108] : memref<208xf32, #tpu.memory_space<smem>>
    %c109 = arith.constant 109 : index
    %481 = memref.load %arg3[%c109] : memref<208xf32, #tpu.memory_space<smem>>
    %c110 = arith.constant 110 : index
    %482 = memref.load %arg3[%c110] : memref<208xf32, #tpu.memory_space<smem>>
    %c111 = arith.constant 111 : index
    %483 = memref.load %arg3[%c111] : memref<208xf32, #tpu.memory_space<smem>>
    %c16_i32 = arith.constant 16 : i32
    %484 = tpu.dynamic_rotate %468 by %c16_i32 dim 1 : vector<8x256xf32>, i32 -> vector<8x256xf32>
    %c240_i32 = arith.constant 240 : i32
    %485 = tpu.dynamic_rotate %468 by %c240_i32 dim 1 : vector<8x256xf32>, i32 -> vector<8x256xf32>
    %486 = arith.select %179, %484, %485 : vector<8x256xi1>, vector<8x256xf32>
    %487 = vector.broadcast %479 : f32 to vector<8x256xf32>
    %488 = vector.broadcast %476 : f32 to vector<8x256xf32>
    %489 = arith.select %179, %487, %488 : vector<8x256xi1>, vector<8x256xf32>
    %490 = vector.broadcast %483 : f32 to vector<8x256xf32>
    %491 = vector.broadcast %480 : f32 to vector<8x256xf32>
    %492 = arith.select %179, %490, %491 : vector<8x256xi1>, vector<8x256xf32>
    %493 = vector.broadcast %478 : f32 to vector<8x256xf32>
    %494 = vector.broadcast %477 : f32 to vector<8x256xf32>
    %495 = arith.select %179, %493, %494 : vector<8x256xi1>, vector<8x256xf32>
    %496 = vector.broadcast %482 : f32 to vector<8x256xf32>
    %497 = vector.broadcast %481 : f32 to vector<8x256xf32>
    %498 = arith.select %179, %496, %497 : vector<8x256xi1>, vector<8x256xf32>
    %c16_i32_142 = arith.constant 16 : i32
    %499 = tpu.dynamic_rotate %475 by %c16_i32_142 dim 1 : vector<8x256xf32>, i32 -> vector<8x256xf32>
    %c240_i32_143 = arith.constant 240 : i32
    %500 = tpu.dynamic_rotate %475 by %c240_i32_143 dim 1 : vector<8x256xf32>, i32 -> vector<8x256xf32>
    %501 = arith.select %179, %499, %500 : vector<8x256xi1>, vector<8x256xf32>
    %502 = arith.mulf %489, %468 : vector<8x256xf32>
    %503 = arith.mulf %492, %475 : vector<8x256xf32>
    %504 = arith.subf %502, %503 : vector<8x256xf32>
    %505 = arith.mulf %495, %486 : vector<8x256xf32>
    %506 = arith.addf %504, %505 : vector<8x256xf32>
    %507 = arith.mulf %498, %501 : vector<8x256xf32>
    %508 = arith.subf %506, %507 : vector<8x256xf32>
    %509 = arith.mulf %489, %475 : vector<8x256xf32>
    %510 = arith.mulf %492, %468 : vector<8x256xf32>
    %511 = arith.addf %509, %510 : vector<8x256xf32>
    %512 = arith.mulf %495, %501 : vector<8x256xf32>
    %513 = arith.addf %511, %512 : vector<8x256xf32>
    %514 = arith.mulf %498, %486 : vector<8x256xf32>
    %515 = arith.addf %513, %514 : vector<8x256xf32>
    %c16 = arith.constant 16 : index
    %516 = memref.load %arg3[%c16] : memref<208xf32, #tpu.memory_space<smem>>
    %c17 = arith.constant 17 : index
    %517 = memref.load %arg3[%c17] : memref<208xf32, #tpu.memory_space<smem>>
    %c18 = arith.constant 18 : index
    %518 = memref.load %arg3[%c18] : memref<208xf32, #tpu.memory_space<smem>>
    %c19 = arith.constant 19 : index
    %519 = memref.load %arg3[%c19] : memref<208xf32, #tpu.memory_space<smem>>
    %c112 = arith.constant 112 : index
    %520 = memref.load %arg3[%c112] : memref<208xf32, #tpu.memory_space<smem>>
    %c113 = arith.constant 113 : index
    %521 = memref.load %arg3[%c113] : memref<208xf32, #tpu.memory_space<smem>>
    %c114 = arith.constant 114 : index
    %522 = memref.load %arg3[%c114] : memref<208xf32, #tpu.memory_space<smem>>
    %c115 = arith.constant 115 : index
    %523 = memref.load %arg3[%c115] : memref<208xf32, #tpu.memory_space<smem>>
    %c8_i32 = arith.constant 8 : i32
    %524 = tpu.dynamic_rotate %508 by %c8_i32 dim 1 : vector<8x256xf32>, i32 -> vector<8x256xf32>
    %c248_i32 = arith.constant 248 : i32
    %525 = tpu.dynamic_rotate %508 by %c248_i32 dim 1 : vector<8x256xf32>, i32 -> vector<8x256xf32>
    %526 = arith.select %173, %524, %525 : vector<8x256xi1>, vector<8x256xf32>
    %527 = vector.broadcast %519 : f32 to vector<8x256xf32>
    %528 = vector.broadcast %516 : f32 to vector<8x256xf32>
    %529 = arith.select %173, %527, %528 : vector<8x256xi1>, vector<8x256xf32>
    %530 = vector.broadcast %523 : f32 to vector<8x256xf32>
    %531 = vector.broadcast %520 : f32 to vector<8x256xf32>
    %532 = arith.select %173, %530, %531 : vector<8x256xi1>, vector<8x256xf32>
    %533 = vector.broadcast %518 : f32 to vector<8x256xf32>
    %534 = vector.broadcast %517 : f32 to vector<8x256xf32>
    %535 = arith.select %173, %533, %534 : vector<8x256xi1>, vector<8x256xf32>
    %536 = vector.broadcast %522 : f32 to vector<8x256xf32>
    %537 = vector.broadcast %521 : f32 to vector<8x256xf32>
    %538 = arith.select %173, %536, %537 : vector<8x256xi1>, vector<8x256xf32>
    %c8_i32_144 = arith.constant 8 : i32
    %539 = tpu.dynamic_rotate %515 by %c8_i32_144 dim 1 : vector<8x256xf32>, i32 -> vector<8x256xf32>
    %c248_i32_145 = arith.constant 248 : i32
    %540 = tpu.dynamic_rotate %515 by %c248_i32_145 dim 1 : vector<8x256xf32>, i32 -> vector<8x256xf32>
    %541 = arith.select %173, %539, %540 : vector<8x256xi1>, vector<8x256xf32>
    %542 = arith.mulf %529, %508 : vector<8x256xf32>
    %543 = arith.mulf %532, %515 : vector<8x256xf32>
    %544 = arith.subf %542, %543 : vector<8x256xf32>
    %545 = arith.mulf %535, %526 : vector<8x256xf32>
    %546 = arith.addf %544, %545 : vector<8x256xf32>
    %547 = arith.mulf %538, %541 : vector<8x256xf32>
    %548 = arith.subf %546, %547 : vector<8x256xf32>
    %549 = arith.mulf %529, %515 : vector<8x256xf32>
    %550 = arith.mulf %532, %508 : vector<8x256xf32>
    %551 = arith.addf %549, %550 : vector<8x256xf32>
    %552 = arith.mulf %535, %541 : vector<8x256xf32>
    %553 = arith.addf %551, %552 : vector<8x256xf32>
    %554 = arith.mulf %538, %526 : vector<8x256xf32>
    %555 = arith.addf %553, %554 : vector<8x256xf32>
    %c20 = arith.constant 20 : index
    %556 = memref.load %arg3[%c20] : memref<208xf32, #tpu.memory_space<smem>>
    %c21 = arith.constant 21 : index
    %557 = memref.load %arg3[%c21] : memref<208xf32, #tpu.memory_space<smem>>
    %c22 = arith.constant 22 : index
    %558 = memref.load %arg3[%c22] : memref<208xf32, #tpu.memory_space<smem>>
    %c23 = arith.constant 23 : index
    %559 = memref.load %arg3[%c23] : memref<208xf32, #tpu.memory_space<smem>>
    %c116 = arith.constant 116 : index
    %560 = memref.load %arg3[%c116] : memref<208xf32, #tpu.memory_space<smem>>
    %c117 = arith.constant 117 : index
    %561 = memref.load %arg3[%c117] : memref<208xf32, #tpu.memory_space<smem>>
    %c118 = arith.constant 118 : index
    %562 = memref.load %arg3[%c118] : memref<208xf32, #tpu.memory_space<smem>>
    %c119 = arith.constant 119 : index
    %563 = memref.load %arg3[%c119] : memref<208xf32, #tpu.memory_space<smem>>
    %c4_i32_146 = arith.constant 4 : i32
    %564 = tpu.dynamic_rotate %548 by %c4_i32_146 dim 1 : vector<8x256xf32>, i32 -> vector<8x256xf32>
    %c252_i32 = arith.constant 252 : i32
    %565 = tpu.dynamic_rotate %548 by %c252_i32 dim 1 : vector<8x256xf32>, i32 -> vector<8x256xf32>
    %566 = arith.select %167, %564, %565 : vector<8x256xi1>, vector<8x256xf32>
    %567 = vector.broadcast %559 : f32 to vector<8x256xf32>
    %568 = vector.broadcast %556 : f32 to vector<8x256xf32>
    %569 = arith.select %167, %567, %568 : vector<8x256xi1>, vector<8x256xf32>
    %570 = vector.broadcast %563 : f32 to vector<8x256xf32>
    %571 = vector.broadcast %560 : f32 to vector<8x256xf32>
    %572 = arith.select %167, %570, %571 : vector<8x256xi1>, vector<8x256xf32>
    %573 = vector.broadcast %558 : f32 to vector<8x256xf32>
    %574 = vector.broadcast %557 : f32 to vector<8x256xf32>
    %575 = arith.select %167, %573, %574 : vector<8x256xi1>, vector<8x256xf32>
    %576 = vector.broadcast %562 : f32 to vector<8x256xf32>
    %577 = vector.broadcast %561 : f32 to vector<8x256xf32>
    %578 = arith.select %167, %576, %577 : vector<8x256xi1>, vector<8x256xf32>
    %c4_i32_147 = arith.constant 4 : i32
    %579 = tpu.dynamic_rotate %555 by %c4_i32_147 dim 1 : vector<8x256xf32>, i32 -> vector<8x256xf32>
    %c252_i32_148 = arith.constant 252 : i32
    %580 = tpu.dynamic_rotate %555 by %c252_i32_148 dim 1 : vector<8x256xf32>, i32 -> vector<8x256xf32>
    %581 = arith.select %167, %579, %580 : vector<8x256xi1>, vector<8x256xf32>
    %582 = arith.mulf %569, %548 : vector<8x256xf32>
    %583 = arith.mulf %572, %555 : vector<8x256xf32>
    %584 = arith.subf %582, %583 : vector<8x256xf32>
    %585 = arith.mulf %575, %566 : vector<8x256xf32>
    %586 = arith.addf %584, %585 : vector<8x256xf32>
    %587 = arith.mulf %578, %581 : vector<8x256xf32>
    %588 = arith.subf %586, %587 : vector<8x256xf32>
    %589 = arith.mulf %569, %555 : vector<8x256xf32>
    %590 = arith.mulf %572, %548 : vector<8x256xf32>
    %591 = arith.addf %589, %590 : vector<8x256xf32>
    %592 = arith.mulf %575, %581 : vector<8x256xf32>
    %593 = arith.addf %591, %592 : vector<8x256xf32>
    %594 = arith.mulf %578, %566 : vector<8x256xf32>
    %595 = arith.addf %593, %594 : vector<8x256xf32>
    %c24 = arith.constant 24 : index
    %596 = memref.load %arg3[%c24] : memref<208xf32, #tpu.memory_space<smem>>
    %c25 = arith.constant 25 : index
    %597 = memref.load %arg3[%c25] : memref<208xf32, #tpu.memory_space<smem>>
    %c26 = arith.constant 26 : index
    %598 = memref.load %arg3[%c26] : memref<208xf32, #tpu.memory_space<smem>>
    %c27 = arith.constant 27 : index
    %599 = memref.load %arg3[%c27] : memref<208xf32, #tpu.memory_space<smem>>
    %c120 = arith.constant 120 : index
    %600 = memref.load %arg3[%c120] : memref<208xf32, #tpu.memory_space<smem>>
    %c121 = arith.constant 121 : index
    %601 = memref.load %arg3[%c121] : memref<208xf32, #tpu.memory_space<smem>>
    %c122 = arith.constant 122 : index
    %602 = memref.load %arg3[%c122] : memref<208xf32, #tpu.memory_space<smem>>
    %c123 = arith.constant 123 : index
    %603 = memref.load %arg3[%c123] : memref<208xf32, #tpu.memory_space<smem>>
    %c2_i32_149 = arith.constant 2 : i32
    %604 = tpu.dynamic_rotate %588 by %c2_i32_149 dim 1 : vector<8x256xf32>, i32 -> vector<8x256xf32>
    %c254_i32 = arith.constant 254 : i32
    %605 = tpu.dynamic_rotate %588 by %c254_i32 dim 1 : vector<8x256xf32>, i32 -> vector<8x256xf32>
    %606 = arith.select %161, %604, %605 : vector<8x256xi1>, vector<8x256xf32>
    %607 = vector.broadcast %599 : f32 to vector<8x256xf32>
    %608 = vector.broadcast %596 : f32 to vector<8x256xf32>
    %609 = arith.select %161, %607, %608 : vector<8x256xi1>, vector<8x256xf32>
    %610 = vector.broadcast %603 : f32 to vector<8x256xf32>
    %611 = vector.broadcast %600 : f32 to vector<8x256xf32>
    %612 = arith.select %161, %610, %611 : vector<8x256xi1>, vector<8x256xf32>
    %613 = vector.broadcast %598 : f32 to vector<8x256xf32>
    %614 = vector.broadcast %597 : f32 to vector<8x256xf32>
    %615 = arith.select %161, %613, %614 : vector<8x256xi1>, vector<8x256xf32>
    %616 = vector.broadcast %602 : f32 to vector<8x256xf32>
    %617 = vector.broadcast %601 : f32 to vector<8x256xf32>
    %618 = arith.select %161, %616, %617 : vector<8x256xi1>, vector<8x256xf32>
    %c2_i32_150 = arith.constant 2 : i32
    %619 = tpu.dynamic_rotate %595 by %c2_i32_150 dim 1 : vector<8x256xf32>, i32 -> vector<8x256xf32>
    %c254_i32_151 = arith.constant 254 : i32
    %620 = tpu.dynamic_rotate %595 by %c254_i32_151 dim 1 : vector<8x256xf32>, i32 -> vector<8x256xf32>
    %621 = arith.select %161, %619, %620 : vector<8x256xi1>, vector<8x256xf32>
    %622 = arith.mulf %609, %588 : vector<8x256xf32>
    %623 = arith.mulf %612, %595 : vector<8x256xf32>
    %624 = arith.subf %622, %623 : vector<8x256xf32>
    %625 = arith.mulf %615, %606 : vector<8x256xf32>
    %626 = arith.addf %624, %625 : vector<8x256xf32>
    %627 = arith.mulf %618, %621 : vector<8x256xf32>
    %628 = arith.subf %626, %627 : vector<8x256xf32>
    %629 = arith.mulf %609, %595 : vector<8x256xf32>
    %630 = arith.mulf %612, %588 : vector<8x256xf32>
    %631 = arith.addf %629, %630 : vector<8x256xf32>
    %632 = arith.mulf %615, %621 : vector<8x256xf32>
    %633 = arith.addf %631, %632 : vector<8x256xf32>
    %634 = arith.mulf %618, %606 : vector<8x256xf32>
    %635 = arith.addf %633, %634 : vector<8x256xf32>
    %c28 = arith.constant 28 : index
    %636 = memref.load %arg3[%c28] : memref<208xf32, #tpu.memory_space<smem>>
    %c29 = arith.constant 29 : index
    %637 = memref.load %arg3[%c29] : memref<208xf32, #tpu.memory_space<smem>>
    %c30 = arith.constant 30 : index
    %638 = memref.load %arg3[%c30] : memref<208xf32, #tpu.memory_space<smem>>
    %c31 = arith.constant 31 : index
    %639 = memref.load %arg3[%c31] : memref<208xf32, #tpu.memory_space<smem>>
    %c124 = arith.constant 124 : index
    %640 = memref.load %arg3[%c124] : memref<208xf32, #tpu.memory_space<smem>>
    %c125 = arith.constant 125 : index
    %641 = memref.load %arg3[%c125] : memref<208xf32, #tpu.memory_space<smem>>
    %c126 = arith.constant 126 : index
    %642 = memref.load %arg3[%c126] : memref<208xf32, #tpu.memory_space<smem>>
    %c127 = arith.constant 127 : index
    %643 = memref.load %arg3[%c127] : memref<208xf32, #tpu.memory_space<smem>>
    %c1_i32_152 = arith.constant 1 : i32
    %644 = tpu.dynamic_rotate %628 by %c1_i32_152 dim 1 : vector<8x256xf32>, i32 -> vector<8x256xf32>
    %c255_i32 = arith.constant 255 : i32
    %645 = tpu.dynamic_rotate %628 by %c255_i32 dim 1 : vector<8x256xf32>, i32 -> vector<8x256xf32>
    %646 = arith.select %155, %644, %645 : vector<8x256xi1>, vector<8x256xf32>
    %647 = vector.broadcast %639 : f32 to vector<8x256xf32>
    %648 = vector.broadcast %636 : f32 to vector<8x256xf32>
    %649 = arith.select %155, %647, %648 : vector<8x256xi1>, vector<8x256xf32>
    %650 = vector.broadcast %643 : f32 to vector<8x256xf32>
    %651 = vector.broadcast %640 : f32 to vector<8x256xf32>
    %652 = arith.select %155, %650, %651 : vector<8x256xi1>, vector<8x256xf32>
    %653 = vector.broadcast %638 : f32 to vector<8x256xf32>
    %654 = vector.broadcast %637 : f32 to vector<8x256xf32>
    %655 = arith.select %155, %653, %654 : vector<8x256xi1>, vector<8x256xf32>
    %656 = vector.broadcast %642 : f32 to vector<8x256xf32>
    %657 = vector.broadcast %641 : f32 to vector<8x256xf32>
    %658 = arith.select %155, %656, %657 : vector<8x256xi1>, vector<8x256xf32>
    %c1_i32_153 = arith.constant 1 : i32
    %659 = tpu.dynamic_rotate %635 by %c1_i32_153 dim 1 : vector<8x256xf32>, i32 -> vector<8x256xf32>
    %c255_i32_154 = arith.constant 255 : i32
    %660 = tpu.dynamic_rotate %635 by %c255_i32_154 dim 1 : vector<8x256xf32>, i32 -> vector<8x256xf32>
    %661 = arith.select %155, %659, %660 : vector<8x256xi1>, vector<8x256xf32>
    %662 = arith.mulf %649, %628 : vector<8x256xf32>
    %663 = arith.mulf %652, %635 : vector<8x256xf32>
    %664 = arith.subf %662, %663 : vector<8x256xf32>
    %665 = arith.mulf %655, %646 : vector<8x256xf32>
    %666 = arith.addf %664, %665 : vector<8x256xf32>
    %667 = arith.mulf %658, %661 : vector<8x256xf32>
    %668 = arith.subf %666, %667 : vector<8x256xf32>
    %669 = arith.mulf %649, %635 : vector<8x256xf32>
    %670 = arith.mulf %652, %628 : vector<8x256xf32>
    %671 = arith.addf %669, %670 : vector<8x256xf32>
    %672 = arith.mulf %655, %661 : vector<8x256xf32>
    %673 = arith.addf %671, %672 : vector<8x256xf32>
    %674 = arith.mulf %658, %646 : vector<8x256xf32>
    %675 = arith.addf %673, %674 : vector<8x256xf32>
    %676 = arith.mulf %668, %303 : vector<8x256xf32>
    %677 = arith.mulf %675, %303 : vector<8x256xf32>
    %c32 = arith.constant 32 : index
    %678 = memref.load %arg3[%c32] : memref<208xf32, #tpu.memory_space<smem>>
    %c33 = arith.constant 33 : index
    %679 = memref.load %arg3[%c33] : memref<208xf32, #tpu.memory_space<smem>>
    %c34 = arith.constant 34 : index
    %680 = memref.load %arg3[%c34] : memref<208xf32, #tpu.memory_space<smem>>
    %c35 = arith.constant 35 : index
    %681 = memref.load %arg3[%c35] : memref<208xf32, #tpu.memory_space<smem>>
    %c128 = arith.constant 128 : index
    %682 = memref.load %arg3[%c128] : memref<208xf32, #tpu.memory_space<smem>>
    %c129 = arith.constant 129 : index
    %683 = memref.load %arg3[%c129] : memref<208xf32, #tpu.memory_space<smem>>
    %c130 = arith.constant 130 : index
    %684 = memref.load %arg3[%c130] : memref<208xf32, #tpu.memory_space<smem>>
    %c131 = arith.constant 131 : index
    %685 = memref.load %arg3[%c131] : memref<208xf32, #tpu.memory_space<smem>>
    %c128_i32_155 = arith.constant 128 : i32
    %686 = tpu.dynamic_rotate %676 by %c128_i32_155 dim 1 : vector<8x256xf32>, i32 -> vector<8x256xf32>
    %c128_i32_156 = arith.constant 128 : i32
    %687 = tpu.dynamic_rotate %676 by %c128_i32_156 dim 1 : vector<8x256xf32>, i32 -> vector<8x256xf32>
    %688 = arith.select %197, %686, %687 : vector<8x256xi1>, vector<8x256xf32>
    %689 = vector.broadcast %681 : f32 to vector<8x256xf32>
    %690 = vector.broadcast %678 : f32 to vector<8x256xf32>
    %691 = arith.select %197, %689, %690 : vector<8x256xi1>, vector<8x256xf32>
    %692 = vector.broadcast %685 : f32 to vector<8x256xf32>
    %693 = vector.broadcast %682 : f32 to vector<8x256xf32>
    %694 = arith.select %197, %692, %693 : vector<8x256xi1>, vector<8x256xf32>
    %695 = vector.broadcast %680 : f32 to vector<8x256xf32>
    %696 = vector.broadcast %679 : f32 to vector<8x256xf32>
    %697 = arith.select %197, %695, %696 : vector<8x256xi1>, vector<8x256xf32>
    %698 = vector.broadcast %684 : f32 to vector<8x256xf32>
    %699 = vector.broadcast %683 : f32 to vector<8x256xf32>
    %700 = arith.select %197, %698, %699 : vector<8x256xi1>, vector<8x256xf32>
    %c128_i32_157 = arith.constant 128 : i32
    %701 = tpu.dynamic_rotate %677 by %c128_i32_157 dim 1 : vector<8x256xf32>, i32 -> vector<8x256xf32>
    %c128_i32_158 = arith.constant 128 : i32
    %702 = tpu.dynamic_rotate %677 by %c128_i32_158 dim 1 : vector<8x256xf32>, i32 -> vector<8x256xf32>
    %703 = arith.select %197, %701, %702 : vector<8x256xi1>, vector<8x256xf32>
    %704 = arith.mulf %691, %676 : vector<8x256xf32>
    %705 = arith.mulf %694, %677 : vector<8x256xf32>
    %706 = arith.subf %704, %705 : vector<8x256xf32>
    %707 = arith.mulf %697, %688 : vector<8x256xf32>
    %708 = arith.addf %706, %707 : vector<8x256xf32>
    %709 = arith.mulf %700, %703 : vector<8x256xf32>
    %710 = arith.subf %708, %709 : vector<8x256xf32>
    %711 = arith.mulf %691, %677 : vector<8x256xf32>
    %712 = arith.mulf %694, %676 : vector<8x256xf32>
    %713 = arith.addf %711, %712 : vector<8x256xf32>
    %714 = arith.mulf %697, %703 : vector<8x256xf32>
    %715 = arith.addf %713, %714 : vector<8x256xf32>
    %716 = arith.mulf %700, %688 : vector<8x256xf32>
    %717 = arith.addf %715, %716 : vector<8x256xf32>
    %c36 = arith.constant 36 : index
    %718 = memref.load %arg3[%c36] : memref<208xf32, #tpu.memory_space<smem>>
    %c37 = arith.constant 37 : index
    %719 = memref.load %arg3[%c37] : memref<208xf32, #tpu.memory_space<smem>>
    %c38 = arith.constant 38 : index
    %720 = memref.load %arg3[%c38] : memref<208xf32, #tpu.memory_space<smem>>
    %c39 = arith.constant 39 : index
    %721 = memref.load %arg3[%c39] : memref<208xf32, #tpu.memory_space<smem>>
    %c132 = arith.constant 132 : index
    %722 = memref.load %arg3[%c132] : memref<208xf32, #tpu.memory_space<smem>>
    %c133 = arith.constant 133 : index
    %723 = memref.load %arg3[%c133] : memref<208xf32, #tpu.memory_space<smem>>
    %c134 = arith.constant 134 : index
    %724 = memref.load %arg3[%c134] : memref<208xf32, #tpu.memory_space<smem>>
    %c135 = arith.constant 135 : index
    %725 = memref.load %arg3[%c135] : memref<208xf32, #tpu.memory_space<smem>>
    %c64_i32_159 = arith.constant 64 : i32
    %726 = tpu.dynamic_rotate %710 by %c64_i32_159 dim 1 : vector<8x256xf32>, i32 -> vector<8x256xf32>
    %c192_i32_160 = arith.constant 192 : i32
    %727 = tpu.dynamic_rotate %710 by %c192_i32_160 dim 1 : vector<8x256xf32>, i32 -> vector<8x256xf32>
    %728 = arith.select %191, %726, %727 : vector<8x256xi1>, vector<8x256xf32>
    %729 = vector.broadcast %721 : f32 to vector<8x256xf32>
    %730 = vector.broadcast %718 : f32 to vector<8x256xf32>
    %731 = arith.select %191, %729, %730 : vector<8x256xi1>, vector<8x256xf32>
    %732 = vector.broadcast %725 : f32 to vector<8x256xf32>
    %733 = vector.broadcast %722 : f32 to vector<8x256xf32>
    %734 = arith.select %191, %732, %733 : vector<8x256xi1>, vector<8x256xf32>
    %735 = vector.broadcast %720 : f32 to vector<8x256xf32>
    %736 = vector.broadcast %719 : f32 to vector<8x256xf32>
    %737 = arith.select %191, %735, %736 : vector<8x256xi1>, vector<8x256xf32>
    %738 = vector.broadcast %724 : f32 to vector<8x256xf32>
    %739 = vector.broadcast %723 : f32 to vector<8x256xf32>
    %740 = arith.select %191, %738, %739 : vector<8x256xi1>, vector<8x256xf32>
    %c64_i32_161 = arith.constant 64 : i32
    %741 = tpu.dynamic_rotate %717 by %c64_i32_161 dim 1 : vector<8x256xf32>, i32 -> vector<8x256xf32>
    %c192_i32_162 = arith.constant 192 : i32
    %742 = tpu.dynamic_rotate %717 by %c192_i32_162 dim 1 : vector<8x256xf32>, i32 -> vector<8x256xf32>
    %743 = arith.select %191, %741, %742 : vector<8x256xi1>, vector<8x256xf32>
    %744 = arith.mulf %731, %710 : vector<8x256xf32>
    %745 = arith.mulf %734, %717 : vector<8x256xf32>
    %746 = arith.subf %744, %745 : vector<8x256xf32>
    %747 = arith.mulf %737, %728 : vector<8x256xf32>
    %748 = arith.addf %746, %747 : vector<8x256xf32>
    %749 = arith.mulf %740, %743 : vector<8x256xf32>
    %750 = arith.subf %748, %749 : vector<8x256xf32>
    %751 = arith.mulf %731, %717 : vector<8x256xf32>
    %752 = arith.mulf %734, %710 : vector<8x256xf32>
    %753 = arith.addf %751, %752 : vector<8x256xf32>
    %754 = arith.mulf %737, %743 : vector<8x256xf32>
    %755 = arith.addf %753, %754 : vector<8x256xf32>
    %756 = arith.mulf %740, %728 : vector<8x256xf32>
    %757 = arith.addf %755, %756 : vector<8x256xf32>
    %c40 = arith.constant 40 : index
    %758 = memref.load %arg3[%c40] : memref<208xf32, #tpu.memory_space<smem>>
    %c41 = arith.constant 41 : index
    %759 = memref.load %arg3[%c41] : memref<208xf32, #tpu.memory_space<smem>>
    %c42 = arith.constant 42 : index
    %760 = memref.load %arg3[%c42] : memref<208xf32, #tpu.memory_space<smem>>
    %c43 = arith.constant 43 : index
    %761 = memref.load %arg3[%c43] : memref<208xf32, #tpu.memory_space<smem>>
    %c136 = arith.constant 136 : index
    %762 = memref.load %arg3[%c136] : memref<208xf32, #tpu.memory_space<smem>>
    %c137 = arith.constant 137 : index
    %763 = memref.load %arg3[%c137] : memref<208xf32, #tpu.memory_space<smem>>
    %c138 = arith.constant 138 : index
    %764 = memref.load %arg3[%c138] : memref<208xf32, #tpu.memory_space<smem>>
    %c139 = arith.constant 139 : index
    %765 = memref.load %arg3[%c139] : memref<208xf32, #tpu.memory_space<smem>>
    %c32_i32_163 = arith.constant 32 : i32
    %766 = tpu.dynamic_rotate %750 by %c32_i32_163 dim 1 : vector<8x256xf32>, i32 -> vector<8x256xf32>
    %c224_i32_164 = arith.constant 224 : i32
    %767 = tpu.dynamic_rotate %750 by %c224_i32_164 dim 1 : vector<8x256xf32>, i32 -> vector<8x256xf32>
    %768 = arith.select %185, %766, %767 : vector<8x256xi1>, vector<8x256xf32>
    %769 = vector.broadcast %761 : f32 to vector<8x256xf32>
    %770 = vector.broadcast %758 : f32 to vector<8x256xf32>
    %771 = arith.select %185, %769, %770 : vector<8x256xi1>, vector<8x256xf32>
    %772 = vector.broadcast %765 : f32 to vector<8x256xf32>
    %773 = vector.broadcast %762 : f32 to vector<8x256xf32>
    %774 = arith.select %185, %772, %773 : vector<8x256xi1>, vector<8x256xf32>
    %775 = vector.broadcast %760 : f32 to vector<8x256xf32>
    %776 = vector.broadcast %759 : f32 to vector<8x256xf32>
    %777 = arith.select %185, %775, %776 : vector<8x256xi1>, vector<8x256xf32>
    %778 = vector.broadcast %764 : f32 to vector<8x256xf32>
    %779 = vector.broadcast %763 : f32 to vector<8x256xf32>
    %780 = arith.select %185, %778, %779 : vector<8x256xi1>, vector<8x256xf32>
    %c32_i32_165 = arith.constant 32 : i32
    %781 = tpu.dynamic_rotate %757 by %c32_i32_165 dim 1 : vector<8x256xf32>, i32 -> vector<8x256xf32>
    %c224_i32_166 = arith.constant 224 : i32
    %782 = tpu.dynamic_rotate %757 by %c224_i32_166 dim 1 : vector<8x256xf32>, i32 -> vector<8x256xf32>
    %783 = arith.select %185, %781, %782 : vector<8x256xi1>, vector<8x256xf32>
    %784 = arith.mulf %771, %750 : vector<8x256xf32>
    %785 = arith.mulf %774, %757 : vector<8x256xf32>
    %786 = arith.subf %784, %785 : vector<8x256xf32>
    %787 = arith.mulf %777, %768 : vector<8x256xf32>
    %788 = arith.addf %786, %787 : vector<8x256xf32>
    %789 = arith.mulf %780, %783 : vector<8x256xf32>
    %790 = arith.subf %788, %789 : vector<8x256xf32>
    %791 = arith.mulf %771, %757 : vector<8x256xf32>
    %792 = arith.mulf %774, %750 : vector<8x256xf32>
    %793 = arith.addf %791, %792 : vector<8x256xf32>
    %794 = arith.mulf %777, %783 : vector<8x256xf32>
    %795 = arith.addf %793, %794 : vector<8x256xf32>
    %796 = arith.mulf %780, %768 : vector<8x256xf32>
    %797 = arith.addf %795, %796 : vector<8x256xf32>
    %c44 = arith.constant 44 : index
    %798 = memref.load %arg3[%c44] : memref<208xf32, #tpu.memory_space<smem>>
    %c45 = arith.constant 45 : index
    %799 = memref.load %arg3[%c45] : memref<208xf32, #tpu.memory_space<smem>>
    %c46 = arith.constant 46 : index
    %800 = memref.load %arg3[%c46] : memref<208xf32, #tpu.memory_space<smem>>
    %c47 = arith.constant 47 : index
    %801 = memref.load %arg3[%c47] : memref<208xf32, #tpu.memory_space<smem>>
    %c140 = arith.constant 140 : index
    %802 = memref.load %arg3[%c140] : memref<208xf32, #tpu.memory_space<smem>>
    %c141 = arith.constant 141 : index
    %803 = memref.load %arg3[%c141] : memref<208xf32, #tpu.memory_space<smem>>
    %c142 = arith.constant 142 : index
    %804 = memref.load %arg3[%c142] : memref<208xf32, #tpu.memory_space<smem>>
    %c143 = arith.constant 143 : index
    %805 = memref.load %arg3[%c143] : memref<208xf32, #tpu.memory_space<smem>>
    %c16_i32_167 = arith.constant 16 : i32
    %806 = tpu.dynamic_rotate %790 by %c16_i32_167 dim 1 : vector<8x256xf32>, i32 -> vector<8x256xf32>
    %c240_i32_168 = arith.constant 240 : i32
    %807 = tpu.dynamic_rotate %790 by %c240_i32_168 dim 1 : vector<8x256xf32>, i32 -> vector<8x256xf32>
    %808 = arith.select %179, %806, %807 : vector<8x256xi1>, vector<8x256xf32>
    %809 = vector.broadcast %801 : f32 to vector<8x256xf32>
    %810 = vector.broadcast %798 : f32 to vector<8x256xf32>
    %811 = arith.select %179, %809, %810 : vector<8x256xi1>, vector<8x256xf32>
    %812 = vector.broadcast %805 : f32 to vector<8x256xf32>
    %813 = vector.broadcast %802 : f32 to vector<8x256xf32>
    %814 = arith.select %179, %812, %813 : vector<8x256xi1>, vector<8x256xf32>
    %815 = vector.broadcast %800 : f32 to vector<8x256xf32>
    %816 = vector.broadcast %799 : f32 to vector<8x256xf32>
    %817 = arith.select %179, %815, %816 : vector<8x256xi1>, vector<8x256xf32>
    %818 = vector.broadcast %804 : f32 to vector<8x256xf32>
    %819 = vector.broadcast %803 : f32 to vector<8x256xf32>
    %820 = arith.select %179, %818, %819 : vector<8x256xi1>, vector<8x256xf32>
    %c16_i32_169 = arith.constant 16 : i32
    %821 = tpu.dynamic_rotate %797 by %c16_i32_169 dim 1 : vector<8x256xf32>, i32 -> vector<8x256xf32>
    %c240_i32_170 = arith.constant 240 : i32
    %822 = tpu.dynamic_rotate %797 by %c240_i32_170 dim 1 : vector<8x256xf32>, i32 -> vector<8x256xf32>
    %823 = arith.select %179, %821, %822 : vector<8x256xi1>, vector<8x256xf32>
    %824 = arith.mulf %811, %790 : vector<8x256xf32>
    %825 = arith.mulf %814, %797 : vector<8x256xf32>
    %826 = arith.subf %824, %825 : vector<8x256xf32>
    %827 = arith.mulf %817, %808 : vector<8x256xf32>
    %828 = arith.addf %826, %827 : vector<8x256xf32>
    %829 = arith.mulf %820, %823 : vector<8x256xf32>
    %830 = arith.subf %828, %829 : vector<8x256xf32>
    %831 = arith.mulf %811, %797 : vector<8x256xf32>
    %832 = arith.mulf %814, %790 : vector<8x256xf32>
    %833 = arith.addf %831, %832 : vector<8x256xf32>
    %834 = arith.mulf %817, %823 : vector<8x256xf32>
    %835 = arith.addf %833, %834 : vector<8x256xf32>
    %836 = arith.mulf %820, %808 : vector<8x256xf32>
    %837 = arith.addf %835, %836 : vector<8x256xf32>
    %c48 = arith.constant 48 : index
    %838 = memref.load %arg3[%c48] : memref<208xf32, #tpu.memory_space<smem>>
    %c49 = arith.constant 49 : index
    %839 = memref.load %arg3[%c49] : memref<208xf32, #tpu.memory_space<smem>>
    %c50 = arith.constant 50 : index
    %840 = memref.load %arg3[%c50] : memref<208xf32, #tpu.memory_space<smem>>
    %c51 = arith.constant 51 : index
    %841 = memref.load %arg3[%c51] : memref<208xf32, #tpu.memory_space<smem>>
    %c144 = arith.constant 144 : index
    %842 = memref.load %arg3[%c144] : memref<208xf32, #tpu.memory_space<smem>>
    %c145 = arith.constant 145 : index
    %843 = memref.load %arg3[%c145] : memref<208xf32, #tpu.memory_space<smem>>
    %c146 = arith.constant 146 : index
    %844 = memref.load %arg3[%c146] : memref<208xf32, #tpu.memory_space<smem>>
    %c147 = arith.constant 147 : index
    %845 = memref.load %arg3[%c147] : memref<208xf32, #tpu.memory_space<smem>>
    %c8_i32_171 = arith.constant 8 : i32
    %846 = tpu.dynamic_rotate %830 by %c8_i32_171 dim 1 : vector<8x256xf32>, i32 -> vector<8x256xf32>
    %c248_i32_172 = arith.constant 248 : i32
    %847 = tpu.dynamic_rotate %830 by %c248_i32_172 dim 1 : vector<8x256xf32>, i32 -> vector<8x256xf32>
    %848 = arith.select %173, %846, %847 : vector<8x256xi1>, vector<8x256xf32>
    %849 = vector.broadcast %841 : f32 to vector<8x256xf32>
    %850 = vector.broadcast %838 : f32 to vector<8x256xf32>
    %851 = arith.select %173, %849, %850 : vector<8x256xi1>, vector<8x256xf32>
    %852 = vector.broadcast %845 : f32 to vector<8x256xf32>
    %853 = vector.broadcast %842 : f32 to vector<8x256xf32>
    %854 = arith.select %173, %852, %853 : vector<8x256xi1>, vector<8x256xf32>
    %855 = vector.broadcast %840 : f32 to vector<8x256xf32>
    %856 = vector.broadcast %839 : f32 to vector<8x256xf32>
    %857 = arith.select %173, %855, %856 : vector<8x256xi1>, vector<8x256xf32>
    %858 = vector.broadcast %844 : f32 to vector<8x256xf32>
    %859 = vector.broadcast %843 : f32 to vector<8x256xf32>
    %860 = arith.select %173, %858, %859 : vector<8x256xi1>, vector<8x256xf32>
    %c8_i32_173 = arith.constant 8 : i32
    %861 = tpu.dynamic_rotate %837 by %c8_i32_173 dim 1 : vector<8x256xf32>, i32 -> vector<8x256xf32>
    %c248_i32_174 = arith.constant 248 : i32
    %862 = tpu.dynamic_rotate %837 by %c248_i32_174 dim 1 : vector<8x256xf32>, i32 -> vector<8x256xf32>
    %863 = arith.select %173, %861, %862 : vector<8x256xi1>, vector<8x256xf32>
    %864 = arith.mulf %851, %830 : vector<8x256xf32>
    %865 = arith.mulf %854, %837 : vector<8x256xf32>
    %866 = arith.subf %864, %865 : vector<8x256xf32>
    %867 = arith.mulf %857, %848 : vector<8x256xf32>
    %868 = arith.addf %866, %867 : vector<8x256xf32>
    %869 = arith.mulf %860, %863 : vector<8x256xf32>
    %870 = arith.subf %868, %869 : vector<8x256xf32>
    %871 = arith.mulf %851, %837 : vector<8x256xf32>
    %872 = arith.mulf %854, %830 : vector<8x256xf32>
    %873 = arith.addf %871, %872 : vector<8x256xf32>
    %874 = arith.mulf %857, %863 : vector<8x256xf32>
    %875 = arith.addf %873, %874 : vector<8x256xf32>
    %876 = arith.mulf %860, %848 : vector<8x256xf32>
    %877 = arith.addf %875, %876 : vector<8x256xf32>
    %c52 = arith.constant 52 : index
    %878 = memref.load %arg3[%c52] : memref<208xf32, #tpu.memory_space<smem>>
    %c53 = arith.constant 53 : index
    %879 = memref.load %arg3[%c53] : memref<208xf32, #tpu.memory_space<smem>>
    %c54 = arith.constant 54 : index
    %880 = memref.load %arg3[%c54] : memref<208xf32, #tpu.memory_space<smem>>
    %c55 = arith.constant 55 : index
    %881 = memref.load %arg3[%c55] : memref<208xf32, #tpu.memory_space<smem>>
    %c148 = arith.constant 148 : index
    %882 = memref.load %arg3[%c148] : memref<208xf32, #tpu.memory_space<smem>>
    %c149 = arith.constant 149 : index
    %883 = memref.load %arg3[%c149] : memref<208xf32, #tpu.memory_space<smem>>
    %c150 = arith.constant 150 : index
    %884 = memref.load %arg3[%c150] : memref<208xf32, #tpu.memory_space<smem>>
    %c151 = arith.constant 151 : index
    %885 = memref.load %arg3[%c151] : memref<208xf32, #tpu.memory_space<smem>>
    %c4_i32_175 = arith.constant 4 : i32
    %886 = tpu.dynamic_rotate %870 by %c4_i32_175 dim 1 : vector<8x256xf32>, i32 -> vector<8x256xf32>
    %c252_i32_176 = arith.constant 252 : i32
    %887 = tpu.dynamic_rotate %870 by %c252_i32_176 dim 1 : vector<8x256xf32>, i32 -> vector<8x256xf32>
    %888 = arith.select %167, %886, %887 : vector<8x256xi1>, vector<8x256xf32>
    %889 = vector.broadcast %881 : f32 to vector<8x256xf32>
    %890 = vector.broadcast %878 : f32 to vector<8x256xf32>
    %891 = arith.select %167, %889, %890 : vector<8x256xi1>, vector<8x256xf32>
    %892 = vector.broadcast %885 : f32 to vector<8x256xf32>
    %893 = vector.broadcast %882 : f32 to vector<8x256xf32>
    %894 = arith.select %167, %892, %893 : vector<8x256xi1>, vector<8x256xf32>
    %895 = vector.broadcast %880 : f32 to vector<8x256xf32>
    %896 = vector.broadcast %879 : f32 to vector<8x256xf32>
    %897 = arith.select %167, %895, %896 : vector<8x256xi1>, vector<8x256xf32>
    %898 = vector.broadcast %884 : f32 to vector<8x256xf32>
    %899 = vector.broadcast %883 : f32 to vector<8x256xf32>
    %900 = arith.select %167, %898, %899 : vector<8x256xi1>, vector<8x256xf32>
    %c4_i32_177 = arith.constant 4 : i32
    %901 = tpu.dynamic_rotate %877 by %c4_i32_177 dim 1 : vector<8x256xf32>, i32 -> vector<8x256xf32>
    %c252_i32_178 = arith.constant 252 : i32
    %902 = tpu.dynamic_rotate %877 by %c252_i32_178 dim 1 : vector<8x256xf32>, i32 -> vector<8x256xf32>
    %903 = arith.select %167, %901, %902 : vector<8x256xi1>, vector<8x256xf32>
    %904 = arith.mulf %891, %870 : vector<8x256xf32>
    %905 = arith.mulf %894, %877 : vector<8x256xf32>
    %906 = arith.subf %904, %905 : vector<8x256xf32>
    %907 = arith.mulf %897, %888 : vector<8x256xf32>
    %908 = arith.addf %906, %907 : vector<8x256xf32>
    %909 = arith.mulf %900, %903 : vector<8x256xf32>
    %910 = arith.subf %908, %909 : vector<8x256xf32>
    %911 = arith.mulf %891, %877 : vector<8x256xf32>
    %912 = arith.mulf %894, %870 : vector<8x256xf32>
    %913 = arith.addf %911, %912 : vector<8x256xf32>
    %914 = arith.mulf %897, %903 : vector<8x256xf32>
    %915 = arith.addf %913, %914 : vector<8x256xf32>
    %916 = arith.mulf %900, %888 : vector<8x256xf32>
    %917 = arith.addf %915, %916 : vector<8x256xf32>
    %c56 = arith.constant 56 : index
    %918 = memref.load %arg3[%c56] : memref<208xf32, #tpu.memory_space<smem>>
    %c57 = arith.constant 57 : index
    %919 = memref.load %arg3[%c57] : memref<208xf32, #tpu.memory_space<smem>>
    %c58 = arith.constant 58 : index
    %920 = memref.load %arg3[%c58] : memref<208xf32, #tpu.memory_space<smem>>
    %c59 = arith.constant 59 : index
    %921 = memref.load %arg3[%c59] : memref<208xf32, #tpu.memory_space<smem>>
    %c152 = arith.constant 152 : index
    %922 = memref.load %arg3[%c152] : memref<208xf32, #tpu.memory_space<smem>>
    %c153 = arith.constant 153 : index
    %923 = memref.load %arg3[%c153] : memref<208xf32, #tpu.memory_space<smem>>
    %c154 = arith.constant 154 : index
    %924 = memref.load %arg3[%c154] : memref<208xf32, #tpu.memory_space<smem>>
    %c155 = arith.constant 155 : index
    %925 = memref.load %arg3[%c155] : memref<208xf32, #tpu.memory_space<smem>>
    %c2_i32_179 = arith.constant 2 : i32
    %926 = tpu.dynamic_rotate %910 by %c2_i32_179 dim 1 : vector<8x256xf32>, i32 -> vector<8x256xf32>
    %c254_i32_180 = arith.constant 254 : i32
    %927 = tpu.dynamic_rotate %910 by %c254_i32_180 dim 1 : vector<8x256xf32>, i32 -> vector<8x256xf32>
    %928 = arith.select %161, %926, %927 : vector<8x256xi1>, vector<8x256xf32>
    %929 = vector.broadcast %921 : f32 to vector<8x256xf32>
    %930 = vector.broadcast %918 : f32 to vector<8x256xf32>
    %931 = arith.select %161, %929, %930 : vector<8x256xi1>, vector<8x256xf32>
    %932 = vector.broadcast %925 : f32 to vector<8x256xf32>
    %933 = vector.broadcast %922 : f32 to vector<8x256xf32>
    %934 = arith.select %161, %932, %933 : vector<8x256xi1>, vector<8x256xf32>
    %935 = vector.broadcast %920 : f32 to vector<8x256xf32>
    %936 = vector.broadcast %919 : f32 to vector<8x256xf32>
    %937 = arith.select %161, %935, %936 : vector<8x256xi1>, vector<8x256xf32>
    %938 = vector.broadcast %924 : f32 to vector<8x256xf32>
    %939 = vector.broadcast %923 : f32 to vector<8x256xf32>
    %940 = arith.select %161, %938, %939 : vector<8x256xi1>, vector<8x256xf32>
    %c2_i32_181 = arith.constant 2 : i32
    %941 = tpu.dynamic_rotate %917 by %c2_i32_181 dim 1 : vector<8x256xf32>, i32 -> vector<8x256xf32>
    %c254_i32_182 = arith.constant 254 : i32
    %942 = tpu.dynamic_rotate %917 by %c254_i32_182 dim 1 : vector<8x256xf32>, i32 -> vector<8x256xf32>
    %943 = arith.select %161, %941, %942 : vector<8x256xi1>, vector<8x256xf32>
    %944 = arith.mulf %931, %910 : vector<8x256xf32>
    %945 = arith.mulf %934, %917 : vector<8x256xf32>
    %946 = arith.subf %944, %945 : vector<8x256xf32>
    %947 = arith.mulf %937, %928 : vector<8x256xf32>
    %948 = arith.addf %946, %947 : vector<8x256xf32>
    %949 = arith.mulf %940, %943 : vector<8x256xf32>
    %950 = arith.subf %948, %949 : vector<8x256xf32>
    %951 = arith.mulf %931, %917 : vector<8x256xf32>
    %952 = arith.mulf %934, %910 : vector<8x256xf32>
    %953 = arith.addf %951, %952 : vector<8x256xf32>
    %954 = arith.mulf %937, %943 : vector<8x256xf32>
    %955 = arith.addf %953, %954 : vector<8x256xf32>
    %956 = arith.mulf %940, %928 : vector<8x256xf32>
    %957 = arith.addf %955, %956 : vector<8x256xf32>
    %c60 = arith.constant 60 : index
    %958 = memref.load %arg3[%c60] : memref<208xf32, #tpu.memory_space<smem>>
    %c61 = arith.constant 61 : index
    %959 = memref.load %arg3[%c61] : memref<208xf32, #tpu.memory_space<smem>>
    %c62 = arith.constant 62 : index
    %960 = memref.load %arg3[%c62] : memref<208xf32, #tpu.memory_space<smem>>
    %c63 = arith.constant 63 : index
    %961 = memref.load %arg3[%c63] : memref<208xf32, #tpu.memory_space<smem>>
    %c156 = arith.constant 156 : index
    %962 = memref.load %arg3[%c156] : memref<208xf32, #tpu.memory_space<smem>>
    %c157 = arith.constant 157 : index
    %963 = memref.load %arg3[%c157] : memref<208xf32, #tpu.memory_space<smem>>
    %c158 = arith.constant 158 : index
    %964 = memref.load %arg3[%c158] : memref<208xf32, #tpu.memory_space<smem>>
    %c159 = arith.constant 159 : index
    %965 = memref.load %arg3[%c159] : memref<208xf32, #tpu.memory_space<smem>>
    %c1_i32_183 = arith.constant 1 : i32
    %966 = tpu.dynamic_rotate %950 by %c1_i32_183 dim 1 : vector<8x256xf32>, i32 -> vector<8x256xf32>
    %c255_i32_184 = arith.constant 255 : i32
    %967 = tpu.dynamic_rotate %950 by %c255_i32_184 dim 1 : vector<8x256xf32>, i32 -> vector<8x256xf32>
    %968 = arith.select %155, %966, %967 : vector<8x256xi1>, vector<8x256xf32>
    %969 = vector.broadcast %961 : f32 to vector<8x256xf32>
    %970 = vector.broadcast %958 : f32 to vector<8x256xf32>
    %971 = arith.select %155, %969, %970 : vector<8x256xi1>, vector<8x256xf32>
    %972 = vector.broadcast %965 : f32 to vector<8x256xf32>
    %973 = vector.broadcast %962 : f32 to vector<8x256xf32>
    %974 = arith.select %155, %972, %973 : vector<8x256xi1>, vector<8x256xf32>
    %975 = vector.broadcast %960 : f32 to vector<8x256xf32>
    %976 = vector.broadcast %959 : f32 to vector<8x256xf32>
    %977 = arith.select %155, %975, %976 : vector<8x256xi1>, vector<8x256xf32>
    %978 = vector.broadcast %964 : f32 to vector<8x256xf32>
    %979 = vector.broadcast %963 : f32 to vector<8x256xf32>
    %980 = arith.select %155, %978, %979 : vector<8x256xi1>, vector<8x256xf32>
    %c1_i32_185 = arith.constant 1 : i32
    %981 = tpu.dynamic_rotate %957 by %c1_i32_185 dim 1 : vector<8x256xf32>, i32 -> vector<8x256xf32>
    %c255_i32_186 = arith.constant 255 : i32
    %982 = tpu.dynamic_rotate %957 by %c255_i32_186 dim 1 : vector<8x256xf32>, i32 -> vector<8x256xf32>
    %983 = arith.select %155, %981, %982 : vector<8x256xi1>, vector<8x256xf32>
    %984 = arith.mulf %971, %950 : vector<8x256xf32>
    %985 = arith.mulf %974, %957 : vector<8x256xf32>
    %986 = arith.subf %984, %985 : vector<8x256xf32>
    %987 = arith.mulf %977, %968 : vector<8x256xf32>
    %988 = arith.addf %986, %987 : vector<8x256xf32>
    %989 = arith.mulf %980, %983 : vector<8x256xf32>
    %990 = arith.subf %988, %989 : vector<8x256xf32>
    %991 = arith.mulf %971, %957 : vector<8x256xf32>
    %992 = arith.mulf %974, %950 : vector<8x256xf32>
    %993 = arith.addf %991, %992 : vector<8x256xf32>
    %994 = arith.mulf %977, %983 : vector<8x256xf32>
    %995 = arith.addf %993, %994 : vector<8x256xf32>
    %996 = arith.mulf %980, %968 : vector<8x256xf32>
    %997 = arith.addf %995, %996 : vector<8x256xf32>
    %998 = arith.mulf %990, %303 : vector<8x256xf32>
    %999 = arith.mulf %997, %303 : vector<8x256xf32>
    %c1_187 = arith.constant 1 : index
    %c0_188 = arith.constant 0 : index
    %1000 = vector.load %arg4[%c1_187, %c0_188] : memref<3x128xf32, #tpu.memory_space<vmem>>, vector<1x128xf32>
    %1001 = vector.broadcast %1000 : vector<1x128xf32> to vector<8x128xf32>
    %1002 = arith.mulf %146, %1001 : vector<8x128xf32>
    %1003 = math.cos %1002 : vector<8x128xf32>
    %1004 = math.sin %1002 : vector<8x128xf32>
    %1005 = vector.extract_strided_slice %1003 {offsets = [0, 0], sizes = [8, 1], strides = [1, 1]} : vector<8x128xf32> to vector<8x1xf32>
    %1006 = vector.extract_strided_slice %1004 {offsets = [0, 0], sizes = [8, 1], strides = [1, 1]} : vector<8x128xf32> to vector<8x1xf32>
    %c128_i32_189 = arith.constant 128 : i32
    %1007 = tpu.dynamic_rotate %998 by %c128_i32_189 dim 1 : vector<8x256xf32>, i32 -> vector<8x256xf32>
    %c128_i32_190 = arith.constant 128 : i32
    %1008 = tpu.dynamic_rotate %998 by %c128_i32_190 dim 1 : vector<8x256xf32>, i32 -> vector<8x256xf32>
    %1009 = arith.select %197, %1007, %1008 : vector<8x256xi1>, vector<8x256xf32>
    %c128_i32_191 = arith.constant 128 : i32
    %1010 = tpu.dynamic_rotate %999 by %c128_i32_191 dim 1 : vector<8x256xf32>, i32 -> vector<8x256xf32>
    %c128_i32_192 = arith.constant 128 : i32
    %1011 = tpu.dynamic_rotate %999 by %c128_i32_192 dim 1 : vector<8x256xf32>, i32 -> vector<8x256xf32>
    %1012 = arith.select %197, %1010, %1011 : vector<8x256xi1>, vector<8x256xf32>
    %cst_193 = arith.constant 0.000000e+00 : f32
    %1013 = vector.broadcast %cst_193 : f32 to vector<8x1xf32>
    %1014 = arith.subf %1013, %1006 : vector<8x1xf32>
    %1015 = vector.shape_cast %1006 : vector<8x1xf32> to vector<8x1xf32>
    %1016 = vector.broadcast %1015 : vector<8x1xf32> to vector<8x256xf32>
    %1017 = vector.shape_cast %1014 : vector<8x1xf32> to vector<8x1xf32>
    %1018 = vector.broadcast %1017 : vector<8x1xf32> to vector<8x256xf32>
    %1019 = arith.select %197, %1016, %1018 : vector<8x256xi1>, vector<8x256xf32>
    %1020 = vector.broadcast %1005 : vector<8x1xf32> to vector<8x256xf32>
    %1021 = arith.mulf %1020, %998 : vector<8x256xf32>
    %1022 = arith.mulf %1019, %1009 : vector<8x256xf32>
    %1023 = arith.addf %1021, %1022 : vector<8x256xf32>
    %1024 = vector.broadcast %1005 : vector<8x1xf32> to vector<8x256xf32>
    %1025 = arith.mulf %1024, %999 : vector<8x256xf32>
    %1026 = arith.mulf %1019, %1012 : vector<8x256xf32>
    %1027 = arith.addf %1025, %1026 : vector<8x256xf32>
    %1028 = vector.extract_strided_slice %1003 {offsets = [0, 1], sizes = [8, 1], strides = [1, 1]} : vector<8x128xf32> to vector<8x1xf32>
    %1029 = vector.extract_strided_slice %1004 {offsets = [0, 1], sizes = [8, 1], strides = [1, 1]} : vector<8x128xf32> to vector<8x1xf32>
    %c64_i32_194 = arith.constant 64 : i32
    %1030 = tpu.dynamic_rotate %1023 by %c64_i32_194 dim 1 : vector<8x256xf32>, i32 -> vector<8x256xf32>
    %c192_i32_195 = arith.constant 192 : i32
    %1031 = tpu.dynamic_rotate %1023 by %c192_i32_195 dim 1 : vector<8x256xf32>, i32 -> vector<8x256xf32>
    %1032 = arith.select %191, %1030, %1031 : vector<8x256xi1>, vector<8x256xf32>
    %c64_i32_196 = arith.constant 64 : i32
    %1033 = tpu.dynamic_rotate %1027 by %c64_i32_196 dim 1 : vector<8x256xf32>, i32 -> vector<8x256xf32>
    %c192_i32_197 = arith.constant 192 : i32
    %1034 = tpu.dynamic_rotate %1027 by %c192_i32_197 dim 1 : vector<8x256xf32>, i32 -> vector<8x256xf32>
    %1035 = arith.select %191, %1033, %1034 : vector<8x256xi1>, vector<8x256xf32>
    %cst_198 = arith.constant 0.000000e+00 : f32
    %1036 = vector.broadcast %cst_198 : f32 to vector<8x1xf32>
    %1037 = arith.subf %1036, %1029 : vector<8x1xf32>
    %1038 = vector.shape_cast %1029 : vector<8x1xf32> to vector<8x1xf32>
    %1039 = vector.broadcast %1038 : vector<8x1xf32> to vector<8x256xf32>
    %1040 = vector.shape_cast %1037 : vector<8x1xf32> to vector<8x1xf32>
    %1041 = vector.broadcast %1040 : vector<8x1xf32> to vector<8x256xf32>
    %1042 = arith.select %191, %1039, %1041 : vector<8x256xi1>, vector<8x256xf32>
    %1043 = vector.broadcast %1028 : vector<8x1xf32> to vector<8x256xf32>
    %1044 = arith.mulf %1043, %1023 : vector<8x256xf32>
    %1045 = arith.mulf %1042, %1032 : vector<8x256xf32>
    %1046 = arith.addf %1044, %1045 : vector<8x256xf32>
    %1047 = vector.broadcast %1028 : vector<8x1xf32> to vector<8x256xf32>
    %1048 = arith.mulf %1047, %1027 : vector<8x256xf32>
    %1049 = arith.mulf %1042, %1035 : vector<8x256xf32>
    %1050 = arith.addf %1048, %1049 : vector<8x256xf32>
    %1051 = vector.extract_strided_slice %1003 {offsets = [0, 2], sizes = [8, 1], strides = [1, 1]} : vector<8x128xf32> to vector<8x1xf32>
    %1052 = vector.extract_strided_slice %1004 {offsets = [0, 2], sizes = [8, 1], strides = [1, 1]} : vector<8x128xf32> to vector<8x1xf32>
    %c32_i32_199 = arith.constant 32 : i32
    %1053 = tpu.dynamic_rotate %1046 by %c32_i32_199 dim 1 : vector<8x256xf32>, i32 -> vector<8x256xf32>
    %c224_i32_200 = arith.constant 224 : i32
    %1054 = tpu.dynamic_rotate %1046 by %c224_i32_200 dim 1 : vector<8x256xf32>, i32 -> vector<8x256xf32>
    %1055 = arith.select %185, %1053, %1054 : vector<8x256xi1>, vector<8x256xf32>
    %c32_i32_201 = arith.constant 32 : i32
    %1056 = tpu.dynamic_rotate %1050 by %c32_i32_201 dim 1 : vector<8x256xf32>, i32 -> vector<8x256xf32>
    %c224_i32_202 = arith.constant 224 : i32
    %1057 = tpu.dynamic_rotate %1050 by %c224_i32_202 dim 1 : vector<8x256xf32>, i32 -> vector<8x256xf32>
    %1058 = arith.select %185, %1056, %1057 : vector<8x256xi1>, vector<8x256xf32>
    %cst_203 = arith.constant 0.000000e+00 : f32
    %1059 = vector.broadcast %cst_203 : f32 to vector<8x1xf32>
    %1060 = arith.subf %1059, %1052 : vector<8x1xf32>
    %1061 = vector.shape_cast %1052 : vector<8x1xf32> to vector<8x1xf32>
    %1062 = vector.broadcast %1061 : vector<8x1xf32> to vector<8x256xf32>
    %1063 = vector.shape_cast %1060 : vector<8x1xf32> to vector<8x1xf32>
    %1064 = vector.broadcast %1063 : vector<8x1xf32> to vector<8x256xf32>
    %1065 = arith.select %185, %1062, %1064 : vector<8x256xi1>, vector<8x256xf32>
    %1066 = vector.broadcast %1051 : vector<8x1xf32> to vector<8x256xf32>
    %1067 = arith.mulf %1066, %1046 : vector<8x256xf32>
    %1068 = arith.mulf %1065, %1055 : vector<8x256xf32>
    %1069 = arith.addf %1067, %1068 : vector<8x256xf32>
    %1070 = vector.broadcast %1051 : vector<8x1xf32> to vector<8x256xf32>
    %1071 = arith.mulf %1070, %1050 : vector<8x256xf32>
    %1072 = arith.mulf %1065, %1058 : vector<8x256xf32>
    %1073 = arith.addf %1071, %1072 : vector<8x256xf32>
    %1074 = vector.extract_strided_slice %1003 {offsets = [0, 3], sizes = [8, 1], strides = [1, 1]} : vector<8x128xf32> to vector<8x1xf32>
    %1075 = vector.extract_strided_slice %1004 {offsets = [0, 3], sizes = [8, 1], strides = [1, 1]} : vector<8x128xf32> to vector<8x1xf32>
    %c16_i32_204 = arith.constant 16 : i32
    %1076 = tpu.dynamic_rotate %1069 by %c16_i32_204 dim 1 : vector<8x256xf32>, i32 -> vector<8x256xf32>
    %c240_i32_205 = arith.constant 240 : i32
    %1077 = tpu.dynamic_rotate %1069 by %c240_i32_205 dim 1 : vector<8x256xf32>, i32 -> vector<8x256xf32>
    %1078 = arith.select %179, %1076, %1077 : vector<8x256xi1>, vector<8x256xf32>
    %c16_i32_206 = arith.constant 16 : i32
    %1079 = tpu.dynamic_rotate %1073 by %c16_i32_206 dim 1 : vector<8x256xf32>, i32 -> vector<8x256xf32>
    %c240_i32_207 = arith.constant 240 : i32
    %1080 = tpu.dynamic_rotate %1073 by %c240_i32_207 dim 1 : vector<8x256xf32>, i32 -> vector<8x256xf32>
    %1081 = arith.select %179, %1079, %1080 : vector<8x256xi1>, vector<8x256xf32>
    %cst_208 = arith.constant 0.000000e+00 : f32
    %1082 = vector.broadcast %cst_208 : f32 to vector<8x1xf32>
    %1083 = arith.subf %1082, %1075 : vector<8x1xf32>
    %1084 = vector.shape_cast %1075 : vector<8x1xf32> to vector<8x1xf32>
    %1085 = vector.broadcast %1084 : vector<8x1xf32> to vector<8x256xf32>
    %1086 = vector.shape_cast %1083 : vector<8x1xf32> to vector<8x1xf32>
    %1087 = vector.broadcast %1086 : vector<8x1xf32> to vector<8x256xf32>
    %1088 = arith.select %179, %1085, %1087 : vector<8x256xi1>, vector<8x256xf32>
    %1089 = vector.broadcast %1074 : vector<8x1xf32> to vector<8x256xf32>
    %1090 = arith.mulf %1089, %1069 : vector<8x256xf32>
    %1091 = arith.mulf %1088, %1078 : vector<8x256xf32>
    %1092 = arith.addf %1090, %1091 : vector<8x256xf32>
    %1093 = vector.broadcast %1074 : vector<8x1xf32> to vector<8x256xf32>
    %1094 = arith.mulf %1093, %1073 : vector<8x256xf32>
    %1095 = arith.mulf %1088, %1081 : vector<8x256xf32>
    %1096 = arith.addf %1094, %1095 : vector<8x256xf32>
    %1097 = vector.extract_strided_slice %1003 {offsets = [0, 4], sizes = [8, 1], strides = [1, 1]} : vector<8x128xf32> to vector<8x1xf32>
    %1098 = vector.extract_strided_slice %1004 {offsets = [0, 4], sizes = [8, 1], strides = [1, 1]} : vector<8x128xf32> to vector<8x1xf32>
    %c8_i32_209 = arith.constant 8 : i32
    %1099 = tpu.dynamic_rotate %1092 by %c8_i32_209 dim 1 : vector<8x256xf32>, i32 -> vector<8x256xf32>
    %c248_i32_210 = arith.constant 248 : i32
    %1100 = tpu.dynamic_rotate %1092 by %c248_i32_210 dim 1 : vector<8x256xf32>, i32 -> vector<8x256xf32>
    %1101 = arith.select %173, %1099, %1100 : vector<8x256xi1>, vector<8x256xf32>
    %c8_i32_211 = arith.constant 8 : i32
    %1102 = tpu.dynamic_rotate %1096 by %c8_i32_211 dim 1 : vector<8x256xf32>, i32 -> vector<8x256xf32>
    %c248_i32_212 = arith.constant 248 : i32
    %1103 = tpu.dynamic_rotate %1096 by %c248_i32_212 dim 1 : vector<8x256xf32>, i32 -> vector<8x256xf32>
    %1104 = arith.select %173, %1102, %1103 : vector<8x256xi1>, vector<8x256xf32>
    %cst_213 = arith.constant 0.000000e+00 : f32
    %1105 = vector.broadcast %cst_213 : f32 to vector<8x1xf32>
    %1106 = arith.subf %1105, %1098 : vector<8x1xf32>
    %1107 = vector.shape_cast %1098 : vector<8x1xf32> to vector<8x1xf32>
    %1108 = vector.broadcast %1107 : vector<8x1xf32> to vector<8x256xf32>
    %1109 = vector.shape_cast %1106 : vector<8x1xf32> to vector<8x1xf32>
    %1110 = vector.broadcast %1109 : vector<8x1xf32> to vector<8x256xf32>
    %1111 = arith.select %173, %1108, %1110 : vector<8x256xi1>, vector<8x256xf32>
    %1112 = vector.broadcast %1097 : vector<8x1xf32> to vector<8x256xf32>
    %1113 = arith.mulf %1112, %1092 : vector<8x256xf32>
    %1114 = arith.mulf %1111, %1101 : vector<8x256xf32>
    %1115 = arith.addf %1113, %1114 : vector<8x256xf32>
    %1116 = vector.broadcast %1097 : vector<8x1xf32> to vector<8x256xf32>
    %1117 = arith.mulf %1116, %1096 : vector<8x256xf32>
    %1118 = arith.mulf %1111, %1104 : vector<8x256xf32>
    %1119 = arith.addf %1117, %1118 : vector<8x256xf32>
    %1120 = vector.extract_strided_slice %1003 {offsets = [0, 5], sizes = [8, 1], strides = [1, 1]} : vector<8x128xf32> to vector<8x1xf32>
    %1121 = vector.extract_strided_slice %1004 {offsets = [0, 5], sizes = [8, 1], strides = [1, 1]} : vector<8x128xf32> to vector<8x1xf32>
    %c4_i32_214 = arith.constant 4 : i32
    %1122 = tpu.dynamic_rotate %1115 by %c4_i32_214 dim 1 : vector<8x256xf32>, i32 -> vector<8x256xf32>
    %c252_i32_215 = arith.constant 252 : i32
    %1123 = tpu.dynamic_rotate %1115 by %c252_i32_215 dim 1 : vector<8x256xf32>, i32 -> vector<8x256xf32>
    %1124 = arith.select %167, %1122, %1123 : vector<8x256xi1>, vector<8x256xf32>
    %c4_i32_216 = arith.constant 4 : i32
    %1125 = tpu.dynamic_rotate %1119 by %c4_i32_216 dim 1 : vector<8x256xf32>, i32 -> vector<8x256xf32>
    %c252_i32_217 = arith.constant 252 : i32
    %1126 = tpu.dynamic_rotate %1119 by %c252_i32_217 dim 1 : vector<8x256xf32>, i32 -> vector<8x256xf32>
    %1127 = arith.select %167, %1125, %1126 : vector<8x256xi1>, vector<8x256xf32>
    %cst_218 = arith.constant 0.000000e+00 : f32
    %1128 = vector.broadcast %cst_218 : f32 to vector<8x1xf32>
    %1129 = arith.subf %1128, %1121 : vector<8x1xf32>
    %1130 = vector.shape_cast %1121 : vector<8x1xf32> to vector<8x1xf32>
    %1131 = vector.broadcast %1130 : vector<8x1xf32> to vector<8x256xf32>
    %1132 = vector.shape_cast %1129 : vector<8x1xf32> to vector<8x1xf32>
    %1133 = vector.broadcast %1132 : vector<8x1xf32> to vector<8x256xf32>
    %1134 = arith.select %167, %1131, %1133 : vector<8x256xi1>, vector<8x256xf32>
    %1135 = vector.broadcast %1120 : vector<8x1xf32> to vector<8x256xf32>
    %1136 = arith.mulf %1135, %1115 : vector<8x256xf32>
    %1137 = arith.mulf %1134, %1124 : vector<8x256xf32>
    %1138 = arith.addf %1136, %1137 : vector<8x256xf32>
    %1139 = vector.broadcast %1120 : vector<8x1xf32> to vector<8x256xf32>
    %1140 = arith.mulf %1139, %1119 : vector<8x256xf32>
    %1141 = arith.mulf %1134, %1127 : vector<8x256xf32>
    %1142 = arith.addf %1140, %1141 : vector<8x256xf32>
    %1143 = vector.extract_strided_slice %1003 {offsets = [0, 6], sizes = [8, 1], strides = [1, 1]} : vector<8x128xf32> to vector<8x1xf32>
    %1144 = vector.extract_strided_slice %1004 {offsets = [0, 6], sizes = [8, 1], strides = [1, 1]} : vector<8x128xf32> to vector<8x1xf32>
    %c2_i32_219 = arith.constant 2 : i32
    %1145 = tpu.dynamic_rotate %1138 by %c2_i32_219 dim 1 : vector<8x256xf32>, i32 -> vector<8x256xf32>
    %c254_i32_220 = arith.constant 254 : i32
    %1146 = tpu.dynamic_rotate %1138 by %c254_i32_220 dim 1 : vector<8x256xf32>, i32 -> vector<8x256xf32>
    %1147 = arith.select %161, %1145, %1146 : vector<8x256xi1>, vector<8x256xf32>
    %c2_i32_221 = arith.constant 2 : i32
    %1148 = tpu.dynamic_rotate %1142 by %c2_i32_221 dim 1 : vector<8x256xf32>, i32 -> vector<8x256xf32>
    %c254_i32_222 = arith.constant 254 : i32
    %1149 = tpu.dynamic_rotate %1142 by %c254_i32_222 dim 1 : vector<8x256xf32>, i32 -> vector<8x256xf32>
    %1150 = arith.select %161, %1148, %1149 : vector<8x256xi1>, vector<8x256xf32>
    %cst_223 = arith.constant 0.000000e+00 : f32
    %1151 = vector.broadcast %cst_223 : f32 to vector<8x1xf32>
    %1152 = arith.subf %1151, %1144 : vector<8x1xf32>
    %1153 = vector.shape_cast %1144 : vector<8x1xf32> to vector<8x1xf32>
    %1154 = vector.broadcast %1153 : vector<8x1xf32> to vector<8x256xf32>
    %1155 = vector.shape_cast %1152 : vector<8x1xf32> to vector<8x1xf32>
    %1156 = vector.broadcast %1155 : vector<8x1xf32> to vector<8x256xf32>
    %1157 = arith.select %161, %1154, %1156 : vector<8x256xi1>, vector<8x256xf32>
    %1158 = vector.broadcast %1143 : vector<8x1xf32> to vector<8x256xf32>
    %1159 = arith.mulf %1158, %1138 : vector<8x256xf32>
    %1160 = arith.mulf %1157, %1147 : vector<8x256xf32>
    %1161 = arith.addf %1159, %1160 : vector<8x256xf32>
    %1162 = vector.broadcast %1143 : vector<8x1xf32> to vector<8x256xf32>
    %1163 = arith.mulf %1162, %1142 : vector<8x256xf32>
    %1164 = arith.mulf %1157, %1150 : vector<8x256xf32>
    %1165 = arith.addf %1163, %1164 : vector<8x256xf32>
    %1166 = vector.extract_strided_slice %1003 {offsets = [0, 7], sizes = [8, 1], strides = [1, 1]} : vector<8x128xf32> to vector<8x1xf32>
    %1167 = vector.extract_strided_slice %1004 {offsets = [0, 7], sizes = [8, 1], strides = [1, 1]} : vector<8x128xf32> to vector<8x1xf32>
    %c1_i32_224 = arith.constant 1 : i32
    %1168 = tpu.dynamic_rotate %1161 by %c1_i32_224 dim 1 : vector<8x256xf32>, i32 -> vector<8x256xf32>
    %c255_i32_225 = arith.constant 255 : i32
    %1169 = tpu.dynamic_rotate %1161 by %c255_i32_225 dim 1 : vector<8x256xf32>, i32 -> vector<8x256xf32>
    %1170 = arith.select %155, %1168, %1169 : vector<8x256xi1>, vector<8x256xf32>
    %c1_i32_226 = arith.constant 1 : i32
    %1171 = tpu.dynamic_rotate %1165 by %c1_i32_226 dim 1 : vector<8x256xf32>, i32 -> vector<8x256xf32>
    %c255_i32_227 = arith.constant 255 : i32
    %1172 = tpu.dynamic_rotate %1165 by %c255_i32_227 dim 1 : vector<8x256xf32>, i32 -> vector<8x256xf32>
    %1173 = arith.select %155, %1171, %1172 : vector<8x256xi1>, vector<8x256xf32>
    %cst_228 = arith.constant 0.000000e+00 : f32
    %1174 = vector.broadcast %cst_228 : f32 to vector<8x1xf32>
    %1175 = arith.subf %1174, %1167 : vector<8x1xf32>
    %1176 = vector.shape_cast %1167 : vector<8x1xf32> to vector<8x1xf32>
    %1177 = vector.broadcast %1176 : vector<8x1xf32> to vector<8x256xf32>
    %1178 = vector.shape_cast %1175 : vector<8x1xf32> to vector<8x1xf32>
    %1179 = vector.broadcast %1178 : vector<8x1xf32> to vector<8x256xf32>
    %1180 = arith.select %155, %1177, %1179 : vector<8x256xi1>, vector<8x256xf32>
    %1181 = vector.broadcast %1166 : vector<8x1xf32> to vector<8x256xf32>
    %1182 = arith.mulf %1181, %1161 : vector<8x256xf32>
    %1183 = arith.mulf %1180, %1170 : vector<8x256xf32>
    %1184 = arith.addf %1182, %1183 : vector<8x256xf32>
    %1185 = vector.broadcast %1166 : vector<8x1xf32> to vector<8x256xf32>
    %1186 = arith.mulf %1185, %1165 : vector<8x256xf32>
    %1187 = arith.mulf %1180, %1173 : vector<8x256xf32>
    %1188 = arith.addf %1186, %1187 : vector<8x256xf32>
    %c64 = arith.constant 64 : index
    %1189 = memref.load %arg3[%c64] : memref<208xf32, #tpu.memory_space<smem>>
    %c65 = arith.constant 65 : index
    %1190 = memref.load %arg3[%c65] : memref<208xf32, #tpu.memory_space<smem>>
    %c66 = arith.constant 66 : index
    %1191 = memref.load %arg3[%c66] : memref<208xf32, #tpu.memory_space<smem>>
    %c67 = arith.constant 67 : index
    %1192 = memref.load %arg3[%c67] : memref<208xf32, #tpu.memory_space<smem>>
    %c160 = arith.constant 160 : index
    %1193 = memref.load %arg3[%c160] : memref<208xf32, #tpu.memory_space<smem>>
    %c161 = arith.constant 161 : index
    %1194 = memref.load %arg3[%c161] : memref<208xf32, #tpu.memory_space<smem>>
    %c162 = arith.constant 162 : index
    %1195 = memref.load %arg3[%c162] : memref<208xf32, #tpu.memory_space<smem>>
    %c163 = arith.constant 163 : index
    %1196 = memref.load %arg3[%c163] : memref<208xf32, #tpu.memory_space<smem>>
    %c128_i32_229 = arith.constant 128 : i32
    %1197 = tpu.dynamic_rotate %1184 by %c128_i32_229 dim 1 : vector<8x256xf32>, i32 -> vector<8x256xf32>
    %c128_i32_230 = arith.constant 128 : i32
    %1198 = tpu.dynamic_rotate %1184 by %c128_i32_230 dim 1 : vector<8x256xf32>, i32 -> vector<8x256xf32>
    %1199 = arith.select %197, %1197, %1198 : vector<8x256xi1>, vector<8x256xf32>
    %1200 = vector.broadcast %1192 : f32 to vector<8x256xf32>
    %1201 = vector.broadcast %1189 : f32 to vector<8x256xf32>
    %1202 = arith.select %197, %1200, %1201 : vector<8x256xi1>, vector<8x256xf32>
    %1203 = vector.broadcast %1196 : f32 to vector<8x256xf32>
    %1204 = vector.broadcast %1193 : f32 to vector<8x256xf32>
    %1205 = arith.select %197, %1203, %1204 : vector<8x256xi1>, vector<8x256xf32>
    %1206 = vector.broadcast %1191 : f32 to vector<8x256xf32>
    %1207 = vector.broadcast %1190 : f32 to vector<8x256xf32>
    %1208 = arith.select %197, %1206, %1207 : vector<8x256xi1>, vector<8x256xf32>
    %1209 = vector.broadcast %1195 : f32 to vector<8x256xf32>
    %1210 = vector.broadcast %1194 : f32 to vector<8x256xf32>
    %1211 = arith.select %197, %1209, %1210 : vector<8x256xi1>, vector<8x256xf32>
    %c128_i32_231 = arith.constant 128 : i32
    %1212 = tpu.dynamic_rotate %1188 by %c128_i32_231 dim 1 : vector<8x256xf32>, i32 -> vector<8x256xf32>
    %c128_i32_232 = arith.constant 128 : i32
    %1213 = tpu.dynamic_rotate %1188 by %c128_i32_232 dim 1 : vector<8x256xf32>, i32 -> vector<8x256xf32>
    %1214 = arith.select %197, %1212, %1213 : vector<8x256xi1>, vector<8x256xf32>
    %1215 = arith.mulf %1202, %1184 : vector<8x256xf32>
    %1216 = arith.mulf %1205, %1188 : vector<8x256xf32>
    %1217 = arith.subf %1215, %1216 : vector<8x256xf32>
    %1218 = arith.mulf %1208, %1199 : vector<8x256xf32>
    %1219 = arith.addf %1217, %1218 : vector<8x256xf32>
    %1220 = arith.mulf %1211, %1214 : vector<8x256xf32>
    %1221 = arith.subf %1219, %1220 : vector<8x256xf32>
    %1222 = arith.mulf %1202, %1188 : vector<8x256xf32>
    %1223 = arith.mulf %1205, %1184 : vector<8x256xf32>
    %1224 = arith.addf %1222, %1223 : vector<8x256xf32>
    %1225 = arith.mulf %1208, %1214 : vector<8x256xf32>
    %1226 = arith.addf %1224, %1225 : vector<8x256xf32>
    %1227 = arith.mulf %1211, %1199 : vector<8x256xf32>
    %1228 = arith.addf %1226, %1227 : vector<8x256xf32>
    %c68 = arith.constant 68 : index
    %1229 = memref.load %arg3[%c68] : memref<208xf32, #tpu.memory_space<smem>>
    %c69 = arith.constant 69 : index
    %1230 = memref.load %arg3[%c69] : memref<208xf32, #tpu.memory_space<smem>>
    %c70 = arith.constant 70 : index
    %1231 = memref.load %arg3[%c70] : memref<208xf32, #tpu.memory_space<smem>>
    %c71 = arith.constant 71 : index
    %1232 = memref.load %arg3[%c71] : memref<208xf32, #tpu.memory_space<smem>>
    %c164 = arith.constant 164 : index
    %1233 = memref.load %arg3[%c164] : memref<208xf32, #tpu.memory_space<smem>>
    %c165 = arith.constant 165 : index
    %1234 = memref.load %arg3[%c165] : memref<208xf32, #tpu.memory_space<smem>>
    %c166 = arith.constant 166 : index
    %1235 = memref.load %arg3[%c166] : memref<208xf32, #tpu.memory_space<smem>>
    %c167 = arith.constant 167 : index
    %1236 = memref.load %arg3[%c167] : memref<208xf32, #tpu.memory_space<smem>>
    %c64_i32_233 = arith.constant 64 : i32
    %1237 = tpu.dynamic_rotate %1221 by %c64_i32_233 dim 1 : vector<8x256xf32>, i32 -> vector<8x256xf32>
    %c192_i32_234 = arith.constant 192 : i32
    %1238 = tpu.dynamic_rotate %1221 by %c192_i32_234 dim 1 : vector<8x256xf32>, i32 -> vector<8x256xf32>
    %1239 = arith.select %191, %1237, %1238 : vector<8x256xi1>, vector<8x256xf32>
    %1240 = vector.broadcast %1232 : f32 to vector<8x256xf32>
    %1241 = vector.broadcast %1229 : f32 to vector<8x256xf32>
    %1242 = arith.select %191, %1240, %1241 : vector<8x256xi1>, vector<8x256xf32>
    %1243 = vector.broadcast %1236 : f32 to vector<8x256xf32>
    %1244 = vector.broadcast %1233 : f32 to vector<8x256xf32>
    %1245 = arith.select %191, %1243, %1244 : vector<8x256xi1>, vector<8x256xf32>
    %1246 = vector.broadcast %1231 : f32 to vector<8x256xf32>
    %1247 = vector.broadcast %1230 : f32 to vector<8x256xf32>
    %1248 = arith.select %191, %1246, %1247 : vector<8x256xi1>, vector<8x256xf32>
    %1249 = vector.broadcast %1235 : f32 to vector<8x256xf32>
    %1250 = vector.broadcast %1234 : f32 to vector<8x256xf32>
    %1251 = arith.select %191, %1249, %1250 : vector<8x256xi1>, vector<8x256xf32>
    %c64_i32_235 = arith.constant 64 : i32
    %1252 = tpu.dynamic_rotate %1228 by %c64_i32_235 dim 1 : vector<8x256xf32>, i32 -> vector<8x256xf32>
    %c192_i32_236 = arith.constant 192 : i32
    %1253 = tpu.dynamic_rotate %1228 by %c192_i32_236 dim 1 : vector<8x256xf32>, i32 -> vector<8x256xf32>
    %1254 = arith.select %191, %1252, %1253 : vector<8x256xi1>, vector<8x256xf32>
    %1255 = arith.mulf %1242, %1221 : vector<8x256xf32>
    %1256 = arith.mulf %1245, %1228 : vector<8x256xf32>
    %1257 = arith.subf %1255, %1256 : vector<8x256xf32>
    %1258 = arith.mulf %1248, %1239 : vector<8x256xf32>
    %1259 = arith.addf %1257, %1258 : vector<8x256xf32>
    %1260 = arith.mulf %1251, %1254 : vector<8x256xf32>
    %1261 = arith.subf %1259, %1260 : vector<8x256xf32>
    %1262 = arith.mulf %1242, %1228 : vector<8x256xf32>
    %1263 = arith.mulf %1245, %1221 : vector<8x256xf32>
    %1264 = arith.addf %1262, %1263 : vector<8x256xf32>
    %1265 = arith.mulf %1248, %1254 : vector<8x256xf32>
    %1266 = arith.addf %1264, %1265 : vector<8x256xf32>
    %1267 = arith.mulf %1251, %1239 : vector<8x256xf32>
    %1268 = arith.addf %1266, %1267 : vector<8x256xf32>
    %c72 = arith.constant 72 : index
    %1269 = memref.load %arg3[%c72] : memref<208xf32, #tpu.memory_space<smem>>
    %c73 = arith.constant 73 : index
    %1270 = memref.load %arg3[%c73] : memref<208xf32, #tpu.memory_space<smem>>
    %c74 = arith.constant 74 : index
    %1271 = memref.load %arg3[%c74] : memref<208xf32, #tpu.memory_space<smem>>
    %c75 = arith.constant 75 : index
    %1272 = memref.load %arg3[%c75] : memref<208xf32, #tpu.memory_space<smem>>
    %c168 = arith.constant 168 : index
    %1273 = memref.load %arg3[%c168] : memref<208xf32, #tpu.memory_space<smem>>
    %c169 = arith.constant 169 : index
    %1274 = memref.load %arg3[%c169] : memref<208xf32, #tpu.memory_space<smem>>
    %c170 = arith.constant 170 : index
    %1275 = memref.load %arg3[%c170] : memref<208xf32, #tpu.memory_space<smem>>
    %c171 = arith.constant 171 : index
    %1276 = memref.load %arg3[%c171] : memref<208xf32, #tpu.memory_space<smem>>
    %c32_i32_237 = arith.constant 32 : i32
    %1277 = tpu.dynamic_rotate %1261 by %c32_i32_237 dim 1 : vector<8x256xf32>, i32 -> vector<8x256xf32>
    %c224_i32_238 = arith.constant 224 : i32
    %1278 = tpu.dynamic_rotate %1261 by %c224_i32_238 dim 1 : vector<8x256xf32>, i32 -> vector<8x256xf32>
    %1279 = arith.select %185, %1277, %1278 : vector<8x256xi1>, vector<8x256xf32>
    %1280 = vector.broadcast %1272 : f32 to vector<8x256xf32>
    %1281 = vector.broadcast %1269 : f32 to vector<8x256xf32>
    %1282 = arith.select %185, %1280, %1281 : vector<8x256xi1>, vector<8x256xf32>
    %1283 = vector.broadcast %1276 : f32 to vector<8x256xf32>
    %1284 = vector.broadcast %1273 : f32 to vector<8x256xf32>
    %1285 = arith.select %185, %1283, %1284 : vector<8x256xi1>, vector<8x256xf32>
    %1286 = vector.broadcast %1271 : f32 to vector<8x256xf32>
    %1287 = vector.broadcast %1270 : f32 to vector<8x256xf32>
    %1288 = arith.select %185, %1286, %1287 : vector<8x256xi1>, vector<8x256xf32>
    %1289 = vector.broadcast %1275 : f32 to vector<8x256xf32>
    %1290 = vector.broadcast %1274 : f32 to vector<8x256xf32>
    %1291 = arith.select %185, %1289, %1290 : vector<8x256xi1>, vector<8x256xf32>
    %c32_i32_239 = arith.constant 32 : i32
    %1292 = tpu.dynamic_rotate %1268 by %c32_i32_239 dim 1 : vector<8x256xf32>, i32 -> vector<8x256xf32>
    %c224_i32_240 = arith.constant 224 : i32
    %1293 = tpu.dynamic_rotate %1268 by %c224_i32_240 dim 1 : vector<8x256xf32>, i32 -> vector<8x256xf32>
    %1294 = arith.select %185, %1292, %1293 : vector<8x256xi1>, vector<8x256xf32>
    %1295 = arith.mulf %1282, %1261 : vector<8x256xf32>
    %1296 = arith.mulf %1285, %1268 : vector<8x256xf32>
    %1297 = arith.subf %1295, %1296 : vector<8x256xf32>
    %1298 = arith.mulf %1288, %1279 : vector<8x256xf32>
    %1299 = arith.addf %1297, %1298 : vector<8x256xf32>
    %1300 = arith.mulf %1291, %1294 : vector<8x256xf32>
    %1301 = arith.subf %1299, %1300 : vector<8x256xf32>
    %1302 = arith.mulf %1282, %1268 : vector<8x256xf32>
    %1303 = arith.mulf %1285, %1261 : vector<8x256xf32>
    %1304 = arith.addf %1302, %1303 : vector<8x256xf32>
    %1305 = arith.mulf %1288, %1294 : vector<8x256xf32>
    %1306 = arith.addf %1304, %1305 : vector<8x256xf32>
    %1307 = arith.mulf %1291, %1279 : vector<8x256xf32>
    %1308 = arith.addf %1306, %1307 : vector<8x256xf32>
    %c76 = arith.constant 76 : index
    %1309 = memref.load %arg3[%c76] : memref<208xf32, #tpu.memory_space<smem>>
    %c77 = arith.constant 77 : index
    %1310 = memref.load %arg3[%c77] : memref<208xf32, #tpu.memory_space<smem>>
    %c78 = arith.constant 78 : index
    %1311 = memref.load %arg3[%c78] : memref<208xf32, #tpu.memory_space<smem>>
    %c79 = arith.constant 79 : index
    %1312 = memref.load %arg3[%c79] : memref<208xf32, #tpu.memory_space<smem>>
    %c172 = arith.constant 172 : index
    %1313 = memref.load %arg3[%c172] : memref<208xf32, #tpu.memory_space<smem>>
    %c173 = arith.constant 173 : index
    %1314 = memref.load %arg3[%c173] : memref<208xf32, #tpu.memory_space<smem>>
    %c174 = arith.constant 174 : index
    %1315 = memref.load %arg3[%c174] : memref<208xf32, #tpu.memory_space<smem>>
    %c175 = arith.constant 175 : index
    %1316 = memref.load %arg3[%c175] : memref<208xf32, #tpu.memory_space<smem>>
    %c16_i32_241 = arith.constant 16 : i32
    %1317 = tpu.dynamic_rotate %1301 by %c16_i32_241 dim 1 : vector<8x256xf32>, i32 -> vector<8x256xf32>
    %c240_i32_242 = arith.constant 240 : i32
    %1318 = tpu.dynamic_rotate %1301 by %c240_i32_242 dim 1 : vector<8x256xf32>, i32 -> vector<8x256xf32>
    %1319 = arith.select %179, %1317, %1318 : vector<8x256xi1>, vector<8x256xf32>
    %1320 = vector.broadcast %1312 : f32 to vector<8x256xf32>
    %1321 = vector.broadcast %1309 : f32 to vector<8x256xf32>
    %1322 = arith.select %179, %1320, %1321 : vector<8x256xi1>, vector<8x256xf32>
    %1323 = vector.broadcast %1316 : f32 to vector<8x256xf32>
    %1324 = vector.broadcast %1313 : f32 to vector<8x256xf32>
    %1325 = arith.select %179, %1323, %1324 : vector<8x256xi1>, vector<8x256xf32>
    %1326 = vector.broadcast %1311 : f32 to vector<8x256xf32>
    %1327 = vector.broadcast %1310 : f32 to vector<8x256xf32>
    %1328 = arith.select %179, %1326, %1327 : vector<8x256xi1>, vector<8x256xf32>
    %1329 = vector.broadcast %1315 : f32 to vector<8x256xf32>
    %1330 = vector.broadcast %1314 : f32 to vector<8x256xf32>
    %1331 = arith.select %179, %1329, %1330 : vector<8x256xi1>, vector<8x256xf32>
    %c16_i32_243 = arith.constant 16 : i32
    %1332 = tpu.dynamic_rotate %1308 by %c16_i32_243 dim 1 : vector<8x256xf32>, i32 -> vector<8x256xf32>
    %c240_i32_244 = arith.constant 240 : i32
    %1333 = tpu.dynamic_rotate %1308 by %c240_i32_244 dim 1 : vector<8x256xf32>, i32 -> vector<8x256xf32>
    %1334 = arith.select %179, %1332, %1333 : vector<8x256xi1>, vector<8x256xf32>
    %1335 = arith.mulf %1322, %1301 : vector<8x256xf32>
    %1336 = arith.mulf %1325, %1308 : vector<8x256xf32>
    %1337 = arith.subf %1335, %1336 : vector<8x256xf32>
    %1338 = arith.mulf %1328, %1319 : vector<8x256xf32>
    %1339 = arith.addf %1337, %1338 : vector<8x256xf32>
    %1340 = arith.mulf %1331, %1334 : vector<8x256xf32>
    %1341 = arith.subf %1339, %1340 : vector<8x256xf32>
    %1342 = arith.mulf %1322, %1308 : vector<8x256xf32>
    %1343 = arith.mulf %1325, %1301 : vector<8x256xf32>
    %1344 = arith.addf %1342, %1343 : vector<8x256xf32>
    %1345 = arith.mulf %1328, %1334 : vector<8x256xf32>
    %1346 = arith.addf %1344, %1345 : vector<8x256xf32>
    %1347 = arith.mulf %1331, %1319 : vector<8x256xf32>
    %1348 = arith.addf %1346, %1347 : vector<8x256xf32>
    %c80 = arith.constant 80 : index
    %1349 = memref.load %arg3[%c80] : memref<208xf32, #tpu.memory_space<smem>>
    %c81 = arith.constant 81 : index
    %1350 = memref.load %arg3[%c81] : memref<208xf32, #tpu.memory_space<smem>>
    %c82 = arith.constant 82 : index
    %1351 = memref.load %arg3[%c82] : memref<208xf32, #tpu.memory_space<smem>>
    %c83 = arith.constant 83 : index
    %1352 = memref.load %arg3[%c83] : memref<208xf32, #tpu.memory_space<smem>>
    %c176 = arith.constant 176 : index
    %1353 = memref.load %arg3[%c176] : memref<208xf32, #tpu.memory_space<smem>>
    %c177 = arith.constant 177 : index
    %1354 = memref.load %arg3[%c177] : memref<208xf32, #tpu.memory_space<smem>>
    %c178 = arith.constant 178 : index
    %1355 = memref.load %arg3[%c178] : memref<208xf32, #tpu.memory_space<smem>>
    %c179 = arith.constant 179 : index
    %1356 = memref.load %arg3[%c179] : memref<208xf32, #tpu.memory_space<smem>>
    %c8_i32_245 = arith.constant 8 : i32
    %1357 = tpu.dynamic_rotate %1341 by %c8_i32_245 dim 1 : vector<8x256xf32>, i32 -> vector<8x256xf32>
    %c248_i32_246 = arith.constant 248 : i32
    %1358 = tpu.dynamic_rotate %1341 by %c248_i32_246 dim 1 : vector<8x256xf32>, i32 -> vector<8x256xf32>
    %1359 = arith.select %173, %1357, %1358 : vector<8x256xi1>, vector<8x256xf32>
    %1360 = vector.broadcast %1352 : f32 to vector<8x256xf32>
    %1361 = vector.broadcast %1349 : f32 to vector<8x256xf32>
    %1362 = arith.select %173, %1360, %1361 : vector<8x256xi1>, vector<8x256xf32>
    %1363 = vector.broadcast %1356 : f32 to vector<8x256xf32>
    %1364 = vector.broadcast %1353 : f32 to vector<8x256xf32>
    %1365 = arith.select %173, %1363, %1364 : vector<8x256xi1>, vector<8x256xf32>
    %1366 = vector.broadcast %1351 : f32 to vector<8x256xf32>
    %1367 = vector.broadcast %1350 : f32 to vector<8x256xf32>
    %1368 = arith.select %173, %1366, %1367 : vector<8x256xi1>, vector<8x256xf32>
    %1369 = vector.broadcast %1355 : f32 to vector<8x256xf32>
    %1370 = vector.broadcast %1354 : f32 to vector<8x256xf32>
    %1371 = arith.select %173, %1369, %1370 : vector<8x256xi1>, vector<8x256xf32>
    %c8_i32_247 = arith.constant 8 : i32
    %1372 = tpu.dynamic_rotate %1348 by %c8_i32_247 dim 1 : vector<8x256xf32>, i32 -> vector<8x256xf32>
    %c248_i32_248 = arith.constant 248 : i32
    %1373 = tpu.dynamic_rotate %1348 by %c248_i32_248 dim 1 : vector<8x256xf32>, i32 -> vector<8x256xf32>
    %1374 = arith.select %173, %1372, %1373 : vector<8x256xi1>, vector<8x256xf32>
    %1375 = arith.mulf %1362, %1341 : vector<8x256xf32>
    %1376 = arith.mulf %1365, %1348 : vector<8x256xf32>
    %1377 = arith.subf %1375, %1376 : vector<8x256xf32>
    %1378 = arith.mulf %1368, %1359 : vector<8x256xf32>
    %1379 = arith.addf %1377, %1378 : vector<8x256xf32>
    %1380 = arith.mulf %1371, %1374 : vector<8x256xf32>
    %1381 = arith.subf %1379, %1380 : vector<8x256xf32>
    %1382 = arith.mulf %1362, %1348 : vector<8x256xf32>
    %1383 = arith.mulf %1365, %1341 : vector<8x256xf32>
    %1384 = arith.addf %1382, %1383 : vector<8x256xf32>
    %1385 = arith.mulf %1368, %1374 : vector<8x256xf32>
    %1386 = arith.addf %1384, %1385 : vector<8x256xf32>
    %1387 = arith.mulf %1371, %1359 : vector<8x256xf32>
    %1388 = arith.addf %1386, %1387 : vector<8x256xf32>
    %c84 = arith.constant 84 : index
    %1389 = memref.load %arg3[%c84] : memref<208xf32, #tpu.memory_space<smem>>
    %c85 = arith.constant 85 : index
    %1390 = memref.load %arg3[%c85] : memref<208xf32, #tpu.memory_space<smem>>
    %c86 = arith.constant 86 : index
    %1391 = memref.load %arg3[%c86] : memref<208xf32, #tpu.memory_space<smem>>
    %c87 = arith.constant 87 : index
    %1392 = memref.load %arg3[%c87] : memref<208xf32, #tpu.memory_space<smem>>
    %c180 = arith.constant 180 : index
    %1393 = memref.load %arg3[%c180] : memref<208xf32, #tpu.memory_space<smem>>
    %c181 = arith.constant 181 : index
    %1394 = memref.load %arg3[%c181] : memref<208xf32, #tpu.memory_space<smem>>
    %c182 = arith.constant 182 : index
    %1395 = memref.load %arg3[%c182] : memref<208xf32, #tpu.memory_space<smem>>
    %c183 = arith.constant 183 : index
    %1396 = memref.load %arg3[%c183] : memref<208xf32, #tpu.memory_space<smem>>
    %c4_i32_249 = arith.constant 4 : i32
    %1397 = tpu.dynamic_rotate %1381 by %c4_i32_249 dim 1 : vector<8x256xf32>, i32 -> vector<8x256xf32>
    %c252_i32_250 = arith.constant 252 : i32
    %1398 = tpu.dynamic_rotate %1381 by %c252_i32_250 dim 1 : vector<8x256xf32>, i32 -> vector<8x256xf32>
    %1399 = arith.select %167, %1397, %1398 : vector<8x256xi1>, vector<8x256xf32>
    %1400 = vector.broadcast %1392 : f32 to vector<8x256xf32>
    %1401 = vector.broadcast %1389 : f32 to vector<8x256xf32>
    %1402 = arith.select %167, %1400, %1401 : vector<8x256xi1>, vector<8x256xf32>
    %1403 = vector.broadcast %1396 : f32 to vector<8x256xf32>
    %1404 = vector.broadcast %1393 : f32 to vector<8x256xf32>
    %1405 = arith.select %167, %1403, %1404 : vector<8x256xi1>, vector<8x256xf32>
    %1406 = vector.broadcast %1391 : f32 to vector<8x256xf32>
    %1407 = vector.broadcast %1390 : f32 to vector<8x256xf32>
    %1408 = arith.select %167, %1406, %1407 : vector<8x256xi1>, vector<8x256xf32>
    %1409 = vector.broadcast %1395 : f32 to vector<8x256xf32>
    %1410 = vector.broadcast %1394 : f32 to vector<8x256xf32>
    %1411 = arith.select %167, %1409, %1410 : vector<8x256xi1>, vector<8x256xf32>
    %c4_i32_251 = arith.constant 4 : i32
    %1412 = tpu.dynamic_rotate %1388 by %c4_i32_251 dim 1 : vector<8x256xf32>, i32 -> vector<8x256xf32>
    %c252_i32_252 = arith.constant 252 : i32
    %1413 = tpu.dynamic_rotate %1388 by %c252_i32_252 dim 1 : vector<8x256xf32>, i32 -> vector<8x256xf32>
    %1414 = arith.select %167, %1412, %1413 : vector<8x256xi1>, vector<8x256xf32>
    %1415 = arith.mulf %1402, %1381 : vector<8x256xf32>
    %1416 = arith.mulf %1405, %1388 : vector<8x256xf32>
    %1417 = arith.subf %1415, %1416 : vector<8x256xf32>
    %1418 = arith.mulf %1408, %1399 : vector<8x256xf32>
    %1419 = arith.addf %1417, %1418 : vector<8x256xf32>
    %1420 = arith.mulf %1411, %1414 : vector<8x256xf32>
    %1421 = arith.subf %1419, %1420 : vector<8x256xf32>
    %1422 = arith.mulf %1402, %1388 : vector<8x256xf32>
    %1423 = arith.mulf %1405, %1381 : vector<8x256xf32>
    %1424 = arith.addf %1422, %1423 : vector<8x256xf32>
    %1425 = arith.mulf %1408, %1414 : vector<8x256xf32>
    %1426 = arith.addf %1424, %1425 : vector<8x256xf32>
    %1427 = arith.mulf %1411, %1399 : vector<8x256xf32>
    %1428 = arith.addf %1426, %1427 : vector<8x256xf32>
    %c88 = arith.constant 88 : index
    %1429 = memref.load %arg3[%c88] : memref<208xf32, #tpu.memory_space<smem>>
    %c89 = arith.constant 89 : index
    %1430 = memref.load %arg3[%c89] : memref<208xf32, #tpu.memory_space<smem>>
    %c90 = arith.constant 90 : index
    %1431 = memref.load %arg3[%c90] : memref<208xf32, #tpu.memory_space<smem>>
    %c91 = arith.constant 91 : index
    %1432 = memref.load %arg3[%c91] : memref<208xf32, #tpu.memory_space<smem>>
    %c184 = arith.constant 184 : index
    %1433 = memref.load %arg3[%c184] : memref<208xf32, #tpu.memory_space<smem>>
    %c185 = arith.constant 185 : index
    %1434 = memref.load %arg3[%c185] : memref<208xf32, #tpu.memory_space<smem>>
    %c186 = arith.constant 186 : index
    %1435 = memref.load %arg3[%c186] : memref<208xf32, #tpu.memory_space<smem>>
    %c187 = arith.constant 187 : index
    %1436 = memref.load %arg3[%c187] : memref<208xf32, #tpu.memory_space<smem>>
    %c2_i32_253 = arith.constant 2 : i32
    %1437 = tpu.dynamic_rotate %1421 by %c2_i32_253 dim 1 : vector<8x256xf32>, i32 -> vector<8x256xf32>
    %c254_i32_254 = arith.constant 254 : i32
    %1438 = tpu.dynamic_rotate %1421 by %c254_i32_254 dim 1 : vector<8x256xf32>, i32 -> vector<8x256xf32>
    %1439 = arith.select %161, %1437, %1438 : vector<8x256xi1>, vector<8x256xf32>
    %1440 = vector.broadcast %1432 : f32 to vector<8x256xf32>
    %1441 = vector.broadcast %1429 : f32 to vector<8x256xf32>
    %1442 = arith.select %161, %1440, %1441 : vector<8x256xi1>, vector<8x256xf32>
    %1443 = vector.broadcast %1436 : f32 to vector<8x256xf32>
    %1444 = vector.broadcast %1433 : f32 to vector<8x256xf32>
    %1445 = arith.select %161, %1443, %1444 : vector<8x256xi1>, vector<8x256xf32>
    %1446 = vector.broadcast %1431 : f32 to vector<8x256xf32>
    %1447 = vector.broadcast %1430 : f32 to vector<8x256xf32>
    %1448 = arith.select %161, %1446, %1447 : vector<8x256xi1>, vector<8x256xf32>
    %1449 = vector.broadcast %1435 : f32 to vector<8x256xf32>
    %1450 = vector.broadcast %1434 : f32 to vector<8x256xf32>
    %1451 = arith.select %161, %1449, %1450 : vector<8x256xi1>, vector<8x256xf32>
    %c2_i32_255 = arith.constant 2 : i32
    %1452 = tpu.dynamic_rotate %1428 by %c2_i32_255 dim 1 : vector<8x256xf32>, i32 -> vector<8x256xf32>
    %c254_i32_256 = arith.constant 254 : i32
    %1453 = tpu.dynamic_rotate %1428 by %c254_i32_256 dim 1 : vector<8x256xf32>, i32 -> vector<8x256xf32>
    %1454 = arith.select %161, %1452, %1453 : vector<8x256xi1>, vector<8x256xf32>
    %1455 = arith.mulf %1442, %1421 : vector<8x256xf32>
    %1456 = arith.mulf %1445, %1428 : vector<8x256xf32>
    %1457 = arith.subf %1455, %1456 : vector<8x256xf32>
    %1458 = arith.mulf %1448, %1439 : vector<8x256xf32>
    %1459 = arith.addf %1457, %1458 : vector<8x256xf32>
    %1460 = arith.mulf %1451, %1454 : vector<8x256xf32>
    %1461 = arith.subf %1459, %1460 : vector<8x256xf32>
    %1462 = arith.mulf %1442, %1428 : vector<8x256xf32>
    %1463 = arith.mulf %1445, %1421 : vector<8x256xf32>
    %1464 = arith.addf %1462, %1463 : vector<8x256xf32>
    %1465 = arith.mulf %1448, %1454 : vector<8x256xf32>
    %1466 = arith.addf %1464, %1465 : vector<8x256xf32>
    %1467 = arith.mulf %1451, %1439 : vector<8x256xf32>
    %1468 = arith.addf %1466, %1467 : vector<8x256xf32>
    %c92 = arith.constant 92 : index
    %1469 = memref.load %arg3[%c92] : memref<208xf32, #tpu.memory_space<smem>>
    %c93 = arith.constant 93 : index
    %1470 = memref.load %arg3[%c93] : memref<208xf32, #tpu.memory_space<smem>>
    %c94 = arith.constant 94 : index
    %1471 = memref.load %arg3[%c94] : memref<208xf32, #tpu.memory_space<smem>>
    %c95 = arith.constant 95 : index
    %1472 = memref.load %arg3[%c95] : memref<208xf32, #tpu.memory_space<smem>>
    %c188 = arith.constant 188 : index
    %1473 = memref.load %arg3[%c188] : memref<208xf32, #tpu.memory_space<smem>>
    %c189 = arith.constant 189 : index
    %1474 = memref.load %arg3[%c189] : memref<208xf32, #tpu.memory_space<smem>>
    %c190 = arith.constant 190 : index
    %1475 = memref.load %arg3[%c190] : memref<208xf32, #tpu.memory_space<smem>>
    %c191 = arith.constant 191 : index
    %1476 = memref.load %arg3[%c191] : memref<208xf32, #tpu.memory_space<smem>>
    %c1_i32_257 = arith.constant 1 : i32
    %1477 = tpu.dynamic_rotate %1461 by %c1_i32_257 dim 1 : vector<8x256xf32>, i32 -> vector<8x256xf32>
    %c255_i32_258 = arith.constant 255 : i32
    %1478 = tpu.dynamic_rotate %1461 by %c255_i32_258 dim 1 : vector<8x256xf32>, i32 -> vector<8x256xf32>
    %1479 = arith.select %155, %1477, %1478 : vector<8x256xi1>, vector<8x256xf32>
    %1480 = vector.broadcast %1472 : f32 to vector<8x256xf32>
    %1481 = vector.broadcast %1469 : f32 to vector<8x256xf32>
    %1482 = arith.select %155, %1480, %1481 : vector<8x256xi1>, vector<8x256xf32>
    %1483 = vector.broadcast %1476 : f32 to vector<8x256xf32>
    %1484 = vector.broadcast %1473 : f32 to vector<8x256xf32>
    %1485 = arith.select %155, %1483, %1484 : vector<8x256xi1>, vector<8x256xf32>
    %1486 = vector.broadcast %1471 : f32 to vector<8x256xf32>
    %1487 = vector.broadcast %1470 : f32 to vector<8x256xf32>
    %1488 = arith.select %155, %1486, %1487 : vector<8x256xi1>, vector<8x256xf32>
    %1489 = vector.broadcast %1475 : f32 to vector<8x256xf32>
    %1490 = vector.broadcast %1474 : f32 to vector<8x256xf32>
    %1491 = arith.select %155, %1489, %1490 : vector<8x256xi1>, vector<8x256xf32>
    %c1_i32_259 = arith.constant 1 : i32
    %1492 = tpu.dynamic_rotate %1468 by %c1_i32_259 dim 1 : vector<8x256xf32>, i32 -> vector<8x256xf32>
    %c255_i32_260 = arith.constant 255 : i32
    %1493 = tpu.dynamic_rotate %1468 by %c255_i32_260 dim 1 : vector<8x256xf32>, i32 -> vector<8x256xf32>
    %1494 = arith.select %155, %1492, %1493 : vector<8x256xi1>, vector<8x256xf32>
    %1495 = arith.mulf %1482, %1461 : vector<8x256xf32>
    %1496 = arith.mulf %1485, %1468 : vector<8x256xf32>
    %1497 = arith.subf %1495, %1496 : vector<8x256xf32>
    %1498 = arith.mulf %1488, %1479 : vector<8x256xf32>
    %1499 = arith.addf %1497, %1498 : vector<8x256xf32>
    %1500 = arith.mulf %1491, %1494 : vector<8x256xf32>
    %1501 = arith.subf %1499, %1500 : vector<8x256xf32>
    %1502 = arith.mulf %1482, %1468 : vector<8x256xf32>
    %1503 = arith.mulf %1485, %1461 : vector<8x256xf32>
    %1504 = arith.addf %1502, %1503 : vector<8x256xf32>
    %1505 = arith.mulf %1488, %1494 : vector<8x256xf32>
    %1506 = arith.addf %1504, %1505 : vector<8x256xf32>
    %1507 = arith.mulf %1491, %1479 : vector<8x256xf32>
    %1508 = arith.addf %1506, %1507 : vector<8x256xf32>
    %1509 = arith.mulf %1501, %303 : vector<8x256xf32>
    %1510 = arith.mulf %1508, %303 : vector<8x256xf32>
    %c192 = arith.constant 192 : index
    %1511 = memref.load %arg3[%c192] : memref<208xf32, #tpu.memory_space<smem>>
    %c200 = arith.constant 200 : index
    %1512 = memref.load %arg3[%c200] : memref<208xf32, #tpu.memory_space<smem>>
    %c128_i32_261 = arith.constant 128 : i32
    %1513 = tpu.dynamic_rotate %1509 by %c128_i32_261 dim 1 : vector<8x256xf32>, i32 -> vector<8x256xf32>
    %c128_i32_262 = arith.constant 128 : i32
    %1514 = tpu.dynamic_rotate %1509 by %c128_i32_262 dim 1 : vector<8x256xf32>, i32 -> vector<8x256xf32>
    %1515 = arith.select %197, %1513, %1514 : vector<8x256xi1>, vector<8x256xf32>
    %c128_i32_263 = arith.constant 128 : i32
    %1516 = tpu.dynamic_rotate %1510 by %c128_i32_263 dim 1 : vector<8x256xf32>, i32 -> vector<8x256xf32>
    %c128_i32_264 = arith.constant 128 : i32
    %1517 = tpu.dynamic_rotate %1510 by %c128_i32_264 dim 1 : vector<8x256xf32>, i32 -> vector<8x256xf32>
    %1518 = arith.select %197, %1516, %1517 : vector<8x256xi1>, vector<8x256xf32>
    %1519 = vector.broadcast %1511 : f32 to vector<8x256xf32>
    %1520 = arith.mulf %1519, %1509 : vector<8x256xf32>
    %1521 = vector.broadcast %1512 : f32 to vector<8x256xf32>
    %1522 = arith.mulf %1521, %1518 : vector<8x256xf32>
    %1523 = arith.addf %1520, %1522 : vector<8x256xf32>
    %1524 = vector.broadcast %1511 : f32 to vector<8x256xf32>
    %1525 = arith.mulf %1524, %1510 : vector<8x256xf32>
    %1526 = vector.broadcast %1512 : f32 to vector<8x256xf32>
    %1527 = arith.mulf %1526, %1515 : vector<8x256xf32>
    %1528 = arith.subf %1525, %1527 : vector<8x256xf32>
    %c193 = arith.constant 193 : index
    %1529 = memref.load %arg3[%c193] : memref<208xf32, #tpu.memory_space<smem>>
    %c201 = arith.constant 201 : index
    %1530 = memref.load %arg3[%c201] : memref<208xf32, #tpu.memory_space<smem>>
    %c64_i32_265 = arith.constant 64 : i32
    %1531 = tpu.dynamic_rotate %1523 by %c64_i32_265 dim 1 : vector<8x256xf32>, i32 -> vector<8x256xf32>
    %c192_i32_266 = arith.constant 192 : i32
    %1532 = tpu.dynamic_rotate %1523 by %c192_i32_266 dim 1 : vector<8x256xf32>, i32 -> vector<8x256xf32>
    %1533 = arith.select %191, %1531, %1532 : vector<8x256xi1>, vector<8x256xf32>
    %c64_i32_267 = arith.constant 64 : i32
    %1534 = tpu.dynamic_rotate %1528 by %c64_i32_267 dim 1 : vector<8x256xf32>, i32 -> vector<8x256xf32>
    %c192_i32_268 = arith.constant 192 : i32
    %1535 = tpu.dynamic_rotate %1528 by %c192_i32_268 dim 1 : vector<8x256xf32>, i32 -> vector<8x256xf32>
    %1536 = arith.select %191, %1534, %1535 : vector<8x256xi1>, vector<8x256xf32>
    %1537 = vector.broadcast %1529 : f32 to vector<8x256xf32>
    %1538 = arith.mulf %1537, %1523 : vector<8x256xf32>
    %1539 = vector.broadcast %1530 : f32 to vector<8x256xf32>
    %1540 = arith.mulf %1539, %1536 : vector<8x256xf32>
    %1541 = arith.addf %1538, %1540 : vector<8x256xf32>
    %1542 = vector.broadcast %1529 : f32 to vector<8x256xf32>
    %1543 = arith.mulf %1542, %1528 : vector<8x256xf32>
    %1544 = vector.broadcast %1530 : f32 to vector<8x256xf32>
    %1545 = arith.mulf %1544, %1533 : vector<8x256xf32>
    %1546 = arith.subf %1543, %1545 : vector<8x256xf32>
    %c194 = arith.constant 194 : index
    %1547 = memref.load %arg3[%c194] : memref<208xf32, #tpu.memory_space<smem>>
    %c202 = arith.constant 202 : index
    %1548 = memref.load %arg3[%c202] : memref<208xf32, #tpu.memory_space<smem>>
    %c32_i32_269 = arith.constant 32 : i32
    %1549 = tpu.dynamic_rotate %1541 by %c32_i32_269 dim 1 : vector<8x256xf32>, i32 -> vector<8x256xf32>
    %c224_i32_270 = arith.constant 224 : i32
    %1550 = tpu.dynamic_rotate %1541 by %c224_i32_270 dim 1 : vector<8x256xf32>, i32 -> vector<8x256xf32>
    %1551 = arith.select %185, %1549, %1550 : vector<8x256xi1>, vector<8x256xf32>
    %c32_i32_271 = arith.constant 32 : i32
    %1552 = tpu.dynamic_rotate %1546 by %c32_i32_271 dim 1 : vector<8x256xf32>, i32 -> vector<8x256xf32>
    %c224_i32_272 = arith.constant 224 : i32
    %1553 = tpu.dynamic_rotate %1546 by %c224_i32_272 dim 1 : vector<8x256xf32>, i32 -> vector<8x256xf32>
    %1554 = arith.select %185, %1552, %1553 : vector<8x256xi1>, vector<8x256xf32>
    %1555 = vector.broadcast %1547 : f32 to vector<8x256xf32>
    %1556 = arith.mulf %1555, %1541 : vector<8x256xf32>
    %1557 = vector.broadcast %1548 : f32 to vector<8x256xf32>
    %1558 = arith.mulf %1557, %1554 : vector<8x256xf32>
    %1559 = arith.addf %1556, %1558 : vector<8x256xf32>
    %1560 = vector.broadcast %1547 : f32 to vector<8x256xf32>
    %1561 = arith.mulf %1560, %1546 : vector<8x256xf32>
    %1562 = vector.broadcast %1548 : f32 to vector<8x256xf32>
    %1563 = arith.mulf %1562, %1551 : vector<8x256xf32>
    %1564 = arith.subf %1561, %1563 : vector<8x256xf32>
    %c195 = arith.constant 195 : index
    %1565 = memref.load %arg3[%c195] : memref<208xf32, #tpu.memory_space<smem>>
    %c203 = arith.constant 203 : index
    %1566 = memref.load %arg3[%c203] : memref<208xf32, #tpu.memory_space<smem>>
    %c16_i32_273 = arith.constant 16 : i32
    %1567 = tpu.dynamic_rotate %1559 by %c16_i32_273 dim 1 : vector<8x256xf32>, i32 -> vector<8x256xf32>
    %c240_i32_274 = arith.constant 240 : i32
    %1568 = tpu.dynamic_rotate %1559 by %c240_i32_274 dim 1 : vector<8x256xf32>, i32 -> vector<8x256xf32>
    %1569 = arith.select %179, %1567, %1568 : vector<8x256xi1>, vector<8x256xf32>
    %c16_i32_275 = arith.constant 16 : i32
    %1570 = tpu.dynamic_rotate %1564 by %c16_i32_275 dim 1 : vector<8x256xf32>, i32 -> vector<8x256xf32>
    %c240_i32_276 = arith.constant 240 : i32
    %1571 = tpu.dynamic_rotate %1564 by %c240_i32_276 dim 1 : vector<8x256xf32>, i32 -> vector<8x256xf32>
    %1572 = arith.select %179, %1570, %1571 : vector<8x256xi1>, vector<8x256xf32>
    %1573 = vector.broadcast %1565 : f32 to vector<8x256xf32>
    %1574 = arith.mulf %1573, %1559 : vector<8x256xf32>
    %1575 = vector.broadcast %1566 : f32 to vector<8x256xf32>
    %1576 = arith.mulf %1575, %1572 : vector<8x256xf32>
    %1577 = arith.addf %1574, %1576 : vector<8x256xf32>
    %1578 = vector.broadcast %1565 : f32 to vector<8x256xf32>
    %1579 = arith.mulf %1578, %1564 : vector<8x256xf32>
    %1580 = vector.broadcast %1566 : f32 to vector<8x256xf32>
    %1581 = arith.mulf %1580, %1569 : vector<8x256xf32>
    %1582 = arith.subf %1579, %1581 : vector<8x256xf32>
    %c196 = arith.constant 196 : index
    %1583 = memref.load %arg3[%c196] : memref<208xf32, #tpu.memory_space<smem>>
    %c204 = arith.constant 204 : index
    %1584 = memref.load %arg3[%c204] : memref<208xf32, #tpu.memory_space<smem>>
    %c8_i32_277 = arith.constant 8 : i32
    %1585 = tpu.dynamic_rotate %1577 by %c8_i32_277 dim 1 : vector<8x256xf32>, i32 -> vector<8x256xf32>
    %c248_i32_278 = arith.constant 248 : i32
    %1586 = tpu.dynamic_rotate %1577 by %c248_i32_278 dim 1 : vector<8x256xf32>, i32 -> vector<8x256xf32>
    %1587 = arith.select %173, %1585, %1586 : vector<8x256xi1>, vector<8x256xf32>
    %c8_i32_279 = arith.constant 8 : i32
    %1588 = tpu.dynamic_rotate %1582 by %c8_i32_279 dim 1 : vector<8x256xf32>, i32 -> vector<8x256xf32>
    %c248_i32_280 = arith.constant 248 : i32
    %1589 = tpu.dynamic_rotate %1582 by %c248_i32_280 dim 1 : vector<8x256xf32>, i32 -> vector<8x256xf32>
    %1590 = arith.select %173, %1588, %1589 : vector<8x256xi1>, vector<8x256xf32>
    %1591 = vector.broadcast %1583 : f32 to vector<8x256xf32>
    %1592 = arith.mulf %1591, %1577 : vector<8x256xf32>
    %1593 = vector.broadcast %1584 : f32 to vector<8x256xf32>
    %1594 = arith.mulf %1593, %1590 : vector<8x256xf32>
    %1595 = arith.addf %1592, %1594 : vector<8x256xf32>
    %1596 = vector.broadcast %1583 : f32 to vector<8x256xf32>
    %1597 = arith.mulf %1596, %1582 : vector<8x256xf32>
    %1598 = vector.broadcast %1584 : f32 to vector<8x256xf32>
    %1599 = arith.mulf %1598, %1587 : vector<8x256xf32>
    %1600 = arith.subf %1597, %1599 : vector<8x256xf32>
    %c197 = arith.constant 197 : index
    %1601 = memref.load %arg3[%c197] : memref<208xf32, #tpu.memory_space<smem>>
    %c205 = arith.constant 205 : index
    %1602 = memref.load %arg3[%c205] : memref<208xf32, #tpu.memory_space<smem>>
    %c4_i32_281 = arith.constant 4 : i32
    %1603 = tpu.dynamic_rotate %1595 by %c4_i32_281 dim 1 : vector<8x256xf32>, i32 -> vector<8x256xf32>
    %c252_i32_282 = arith.constant 252 : i32
    %1604 = tpu.dynamic_rotate %1595 by %c252_i32_282 dim 1 : vector<8x256xf32>, i32 -> vector<8x256xf32>
    %1605 = arith.select %167, %1603, %1604 : vector<8x256xi1>, vector<8x256xf32>
    %c4_i32_283 = arith.constant 4 : i32
    %1606 = tpu.dynamic_rotate %1600 by %c4_i32_283 dim 1 : vector<8x256xf32>, i32 -> vector<8x256xf32>
    %c252_i32_284 = arith.constant 252 : i32
    %1607 = tpu.dynamic_rotate %1600 by %c252_i32_284 dim 1 : vector<8x256xf32>, i32 -> vector<8x256xf32>
    %1608 = arith.select %167, %1606, %1607 : vector<8x256xi1>, vector<8x256xf32>
    %1609 = vector.broadcast %1601 : f32 to vector<8x256xf32>
    %1610 = arith.mulf %1609, %1595 : vector<8x256xf32>
    %1611 = vector.broadcast %1602 : f32 to vector<8x256xf32>
    %1612 = arith.mulf %1611, %1608 : vector<8x256xf32>
    %1613 = arith.addf %1610, %1612 : vector<8x256xf32>
    %1614 = vector.broadcast %1601 : f32 to vector<8x256xf32>
    %1615 = arith.mulf %1614, %1600 : vector<8x256xf32>
    %1616 = vector.broadcast %1602 : f32 to vector<8x256xf32>
    %1617 = arith.mulf %1616, %1605 : vector<8x256xf32>
    %1618 = arith.subf %1615, %1617 : vector<8x256xf32>
    %c198 = arith.constant 198 : index
    %1619 = memref.load %arg3[%c198] : memref<208xf32, #tpu.memory_space<smem>>
    %c206 = arith.constant 206 : index
    %1620 = memref.load %arg3[%c206] : memref<208xf32, #tpu.memory_space<smem>>
    %c2_i32_285 = arith.constant 2 : i32
    %1621 = tpu.dynamic_rotate %1613 by %c2_i32_285 dim 1 : vector<8x256xf32>, i32 -> vector<8x256xf32>
    %c254_i32_286 = arith.constant 254 : i32
    %1622 = tpu.dynamic_rotate %1613 by %c254_i32_286 dim 1 : vector<8x256xf32>, i32 -> vector<8x256xf32>
    %1623 = arith.select %161, %1621, %1622 : vector<8x256xi1>, vector<8x256xf32>
    %c2_i32_287 = arith.constant 2 : i32
    %1624 = tpu.dynamic_rotate %1618 by %c2_i32_287 dim 1 : vector<8x256xf32>, i32 -> vector<8x256xf32>
    %c254_i32_288 = arith.constant 254 : i32
    %1625 = tpu.dynamic_rotate %1618 by %c254_i32_288 dim 1 : vector<8x256xf32>, i32 -> vector<8x256xf32>
    %1626 = arith.select %161, %1624, %1625 : vector<8x256xi1>, vector<8x256xf32>
    %1627 = vector.broadcast %1619 : f32 to vector<8x256xf32>
    %1628 = arith.mulf %1627, %1613 : vector<8x256xf32>
    %1629 = vector.broadcast %1620 : f32 to vector<8x256xf32>
    %1630 = arith.mulf %1629, %1626 : vector<8x256xf32>
    %1631 = arith.addf %1628, %1630 : vector<8x256xf32>
    %1632 = vector.broadcast %1619 : f32 to vector<8x256xf32>
    %1633 = arith.mulf %1632, %1618 : vector<8x256xf32>
    %1634 = vector.broadcast %1620 : f32 to vector<8x256xf32>
    %1635 = arith.mulf %1634, %1623 : vector<8x256xf32>
    %1636 = arith.subf %1633, %1635 : vector<8x256xf32>
    %c199 = arith.constant 199 : index
    %1637 = memref.load %arg3[%c199] : memref<208xf32, #tpu.memory_space<smem>>
    %c207 = arith.constant 207 : index
    %1638 = memref.load %arg3[%c207] : memref<208xf32, #tpu.memory_space<smem>>
    %c1_i32_289 = arith.constant 1 : i32
    %1639 = tpu.dynamic_rotate %1631 by %c1_i32_289 dim 1 : vector<8x256xf32>, i32 -> vector<8x256xf32>
    %c255_i32_290 = arith.constant 255 : i32
    %1640 = tpu.dynamic_rotate %1631 by %c255_i32_290 dim 1 : vector<8x256xf32>, i32 -> vector<8x256xf32>
    %1641 = arith.select %155, %1639, %1640 : vector<8x256xi1>, vector<8x256xf32>
    %c1_i32_291 = arith.constant 1 : i32
    %1642 = tpu.dynamic_rotate %1636 by %c1_i32_291 dim 1 : vector<8x256xf32>, i32 -> vector<8x256xf32>
    %c255_i32_292 = arith.constant 255 : i32
    %1643 = tpu.dynamic_rotate %1636 by %c255_i32_292 dim 1 : vector<8x256xf32>, i32 -> vector<8x256xf32>
    %1644 = arith.select %155, %1642, %1643 : vector<8x256xi1>, vector<8x256xf32>
    %1645 = vector.broadcast %1637 : f32 to vector<8x256xf32>
    %1646 = arith.mulf %1645, %1631 : vector<8x256xf32>
    %1647 = vector.broadcast %1638 : f32 to vector<8x256xf32>
    %1648 = arith.mulf %1647, %1644 : vector<8x256xf32>
    %1649 = arith.addf %1646, %1648 : vector<8x256xf32>
    %1650 = vector.broadcast %1637 : f32 to vector<8x256xf32>
    %1651 = arith.mulf %1650, %1636 : vector<8x256xf32>
    %1652 = vector.broadcast %1638 : f32 to vector<8x256xf32>
    %1653 = arith.mulf %1652, %1641 : vector<8x256xf32>
    %1654 = arith.subf %1651, %1653 : vector<8x256xf32>
    %1655 = arith.mulf %1649, %1649 : vector<8x256xf32>
    %1656 = arith.mulf %1654, %1654 : vector<8x256xf32>
    %1657 = arith.addf %1655, %1656 : vector<8x256xf32>
    %c0_293 = arith.constant 0 : index
    %c0_294 = arith.constant 0 : index
    %1658 = vector.load %arg5[%c0_293, %c0_294] : memref<256x128xf32, #tpu.memory_space<vmem>>, vector<256x128xf32>
    %cst_295 = arith.constant dense<0.000000e+00> : vector<8x128xf32>
    %1659 = tpu.matmul %1657, %1658, %cst_295 {dimension_numbers = #tpu.dot_dimension_numbers<[1], [0], [0], [1], [0, 0, 1, 1], [], []>} : vector<8x256xf32>, vector<256x128xf32>, vector<8x128xf32> -> vector<8x128xf32>
    %c0_296 = arith.constant 0 : index
    %c0_297 = arith.constant 0 : index
    %c0_298 = arith.constant 0 : index
    %1660 = vector.load %arg6[%c0_296, %c0_297, %c0_298] : memref<4x128x128xf32, #tpu.memory_space<vmem>>, vector<1x128x128xf32>
    %1661 = vector.shape_cast %1660 : vector<1x128x128xf32> to vector<128x128xf32>
    %cst_299 = arith.constant dense<0.000000e+00> : vector<8x128xf32>
    %1662 = tpu.matmul %1659, %1661, %cst_299 {dimension_numbers = #tpu.dot_dimension_numbers<[1], [0], [0], [1], [0, 0, 1, 1], [], []>} : vector<8x128xf32>, vector<128x128xf32>, vector<8x128xf32> -> vector<8x128xf32>
    %c0_300 = arith.constant 0 : index
    %c0_301 = arith.constant 0 : index
    %1663 = vector.load %arg7[%c0_300, %c0_301] : memref<8x128xf32, #tpu.memory_space<vmem>>, vector<1x128xf32>
    %1664 = vector.broadcast %1663 : vector<1x128xf32> to vector<8x128xf32>
    %1665 = arith.addf %1662, %1664 : vector<8x128xf32>
    %cst_302 = arith.constant 0.000000e+00 : f32
    %1666 = vector.broadcast %cst_302 : f32 to vector<8x128xf32>
    %1667 = arith.subf %1666, %1665 : vector<8x128xf32>
    %1668 = math.exp %1667 : vector<8x128xf32>
    %cst_303 = arith.constant 1.000000e+00 : f32
    %1669 = vector.broadcast %cst_303 : f32 to vector<8x128xf32>
    %1670 = arith.addf %1669, %1668 : vector<8x128xf32>
    %cst_304 = arith.constant 1.000000e+00 : f32
    %1671 = vector.broadcast %cst_304 : f32 to vector<8x128xf32>
    %1672 = arith.divf %1671, %1670 : vector<8x128xf32>
    %1673 = arith.mulf %1665, %1672 : vector<8x128xf32>
    %c1_305 = arith.constant 1 : index
    %c0_306 = arith.constant 0 : index
    %c0_307 = arith.constant 0 : index
    %1674 = vector.load %arg6[%c1_305, %c0_306, %c0_307] : memref<4x128x128xf32, #tpu.memory_space<vmem>>, vector<1x128x128xf32>
    %1675 = vector.shape_cast %1674 : vector<1x128x128xf32> to vector<128x128xf32>
    %cst_308 = arith.constant dense<0.000000e+00> : vector<8x128xf32>
    %1676 = tpu.matmul %1673, %1675, %cst_308 {dimension_numbers = #tpu.dot_dimension_numbers<[1], [0], [0], [1], [0, 0, 1, 1], [], []>} : vector<8x128xf32>, vector<128x128xf32>, vector<8x128xf32> -> vector<8x128xf32>
    %c1_309 = arith.constant 1 : index
    %c0_310 = arith.constant 0 : index
    %1677 = vector.load %arg7[%c1_309, %c0_310] : memref<8x128xf32, #tpu.memory_space<vmem>>, vector<1x128xf32>
    %1678 = vector.broadcast %1677 : vector<1x128xf32> to vector<8x128xf32>
    %1679 = arith.addf %1676, %1678 : vector<8x128xf32>
    %1680 = arith.addf %76, %1679 : vector<8x128xf32>
    %c2_311 = arith.constant 2 : index
    %c0_312 = arith.constant 0 : index
    %c0_313 = arith.constant 0 : index
    %1681 = vector.load %arg6[%c2_311, %c0_312, %c0_313] : memref<4x128x128xf32, #tpu.memory_space<vmem>>, vector<1x128x128xf32>
    %1682 = vector.shape_cast %1681 : vector<1x128x128xf32> to vector<128x128xf32>
    %cst_314 = arith.constant dense<0.000000e+00> : vector<8x128xf32>
    %1683 = tpu.matmul %1680, %1682, %cst_314 {dimension_numbers = #tpu.dot_dimension_numbers<[1], [0], [0], [1], [0, 0, 1, 1], [], []>} : vector<8x128xf32>, vector<128x128xf32>, vector<8x128xf32> -> vector<8x128xf32>
    %c2_315 = arith.constant 2 : index
    %c0_316 = arith.constant 0 : index
    %1684 = vector.load %arg7[%c2_315, %c0_316] : memref<8x128xf32, #tpu.memory_space<vmem>>, vector<1x128xf32>
    %1685 = vector.broadcast %1684 : vector<1x128xf32> to vector<8x128xf32>
    %1686 = arith.addf %1683, %1685 : vector<8x128xf32>
    %cst_317 = arith.constant 0.000000e+00 : f32
    %1687 = vector.broadcast %cst_317 : f32 to vector<8x128xf32>
    %1688 = arith.subf %1687, %1686 : vector<8x128xf32>
    %1689 = math.exp %1688 : vector<8x128xf32>
    %cst_318 = arith.constant 1.000000e+00 : f32
    %1690 = vector.broadcast %cst_318 : f32 to vector<8x128xf32>
    %1691 = arith.addf %1690, %1689 : vector<8x128xf32>
    %cst_319 = arith.constant 1.000000e+00 : f32
    %1692 = vector.broadcast %cst_319 : f32 to vector<8x128xf32>
    %1693 = arith.divf %1692, %1691 : vector<8x128xf32>
    %1694 = arith.mulf %1686, %1693 : vector<8x128xf32>
    %c3_320 = arith.constant 3 : index
    %c0_321 = arith.constant 0 : index
    %c0_322 = arith.constant 0 : index
    %1695 = vector.load %arg6[%c3_320, %c0_321, %c0_322] : memref<4x128x128xf32, #tpu.memory_space<vmem>>, vector<1x128x128xf32>
    %1696 = vector.shape_cast %1695 : vector<1x128x128xf32> to vector<128x128xf32>
    %cst_323 = arith.constant dense<0.000000e+00> : vector<8x128xf32>
    %1697 = tpu.matmul %1694, %1696, %cst_323 {dimension_numbers = #tpu.dot_dimension_numbers<[1], [0], [0], [1], [0, 0, 1, 1], [], []>} : vector<8x128xf32>, vector<128x128xf32>, vector<8x128xf32> -> vector<8x128xf32>
    %c3_324 = arith.constant 3 : index
    %c0_325 = arith.constant 0 : index
    %1698 = vector.load %arg7[%c3_324, %c0_325] : memref<8x128xf32, #tpu.memory_space<vmem>>, vector<1x128xf32>
    %1699 = vector.broadcast %1698 : vector<1x128xf32> to vector<8x128xf32>
    %1700 = arith.addf %1697, %1699 : vector<8x128xf32>
    %c0_326 = arith.constant 0 : index
    %c0_327 = arith.constant 0 : index
    %1701 = vector.load %arg8[%c0_326, %c0_327] : memref<8x128xf32, #tpu.memory_space<vmem>>, vector<8x128xf32>
    tpu.vector_store %arg8[%c0_326, %c0_327], %1700 {strides = array<i32>} : memref<8x128xf32, #tpu.memory_space<vmem>>, vector<8x128xf32>,
    return
  }
}

</mosaic_0001>

<bundles_post_ra>
// kernel: quantum_regression_net_forward.1
= control target key start
LH: loop header
LB: loop body
LE: loop exit
PB: predicated region body
PF: predicated region fallthrough
CT: control target
= control target key end

     0   :  { %13 = vsyncpa [#allocation3], 0  ;;  %s6849_s0 = inlined_call_operand.vmem [shape: f32[8,128], index: 0, kind: input, shape index: {}]   ;;  %s6850_s1 = inlined_call_operand.hbm [shape: f32[4,128,128], index: 1, kind: input, shape index: {}]   ;;  %s6851_s2 = inlined_call_operand.hbm [shape: f32[16,128], index: 2, kind: input, shape index: {}]   ;;  %s6852_s3 = inlined_call_operand.hbm [shape: f32[208], index: 3, kind: input, shape index: {}]   ;;  %s6853_s4 = inlined_call_operand.vmem [shape: f32[3,128], index: 4, kind: input, shape index: {}]   ;;  %s6854_s5 = inlined_call_operand.hbm [shape: f32[256,128], index: 5, kind: input, shape index: {}]   ;;  %s6855_s6 = inlined_call_operand.hbm [shape: f32[4,128,128], index: 6, kind: input, shape index: {}]   ;;  %s6856_s7 = inlined_call_operand.vmem [shape: f32[8,128], index: 7, kind: input, shape index: {}]   ;;  %s6857_s8 = inlined_call_operand.vmem [shape: f32[8,128], index: 8, kind: output, shape index: {}]  }
   0x1   :  { %14 = vsyncpa [#allocation6], 0 }
   0x2   :  { %15 = vsyncpa [#allocation4], 0 }
   0x3   :  { %16 = vsyncpa [#allocation10], 0  ;;  %s36_s29 = sshll.u32 %s6851_s2, 4  ;;  %s4510_s30 = smov [#allocation5]   ;;  %s37_s29 = int_to_ptr.hbm [resolvable:$true] %s36_s29 }
   0x4   :  { %s38_s9 = sshll.u32 %s4510_s30, 4  ;;  %s23_s12 = sshll.u32 %s6850_s1, 4  ;;  %s39_s9 = int_to_ptr.vmem [resolvable:$true] %s38_s9  ;;  %s24_s12 = int_to_ptr.hbm [resolvable:$true] %s23_s12 }
   0x5   :  { %s4511_s13 = smov 128   ;;  %s4512_s14 = smov 8  }
   0x6   :  { %44 = dma.hbm_to_vmem [thread:$0]  %s37_s29, 256, %s39_s9, [#allocation6], %s4511_s13, %s4511_s13, %s4512_s14  }
   0x7   :  { %s4513_s15 = smov [#allocation2]   ;;  %s50_s19 = sshll.u32 %s6852_s3, 4  ;;  %s51_s19 = int_to_ptr.hbm [resolvable:$true] %s50_s19 }
   0x8   :  { %s25_s16 = sshll.u32 %s4513_s15, 4  ;;  %s60_s21 = sshll.u32 %s6854_s5, 4  ;;  %s26_s16 = int_to_ptr.vmem [resolvable:$true] %s25_s16  ;;  %s61_s21 = int_to_ptr.hbm [resolvable:$true] %s60_s21 }
   0x9   :  { %31 = dma.hbm_to_vmem [thread:$0]  %s24_s12, 8192, %s26_s16, [#allocation3], %s4511_s13, %s4511_s13, %s4512_s14  }
   0xa   :  { %s4514_s1 = smov [#allocation7]   ;;  %s4515_s22 = smov [#allocation8]  }
   0xb   :  { %53 = dma.hbm_to_smem %s51_s19, 32, %s4514_s1, [#allocation4]  }
   0xc   :  { %s62_s23 = sshll.u32 %s4515_s22, 4  ;;  %s73_s26 = sshll.u32 %s6855_s6, 4  ;;  %s63_s23 = int_to_ptr.vmem [resolvable:$true] %s62_s23  ;;  %s74_s26 = int_to_ptr.hbm [resolvable:$true] %s73_s26 }
   0xd   :  { %68 = dma.hbm_to_vmem [thread:$0]  %s61_s21, 4096, %s63_s23, [#allocation6], %s4511_s13, %s4511_s13, %s4512_s14  }
   0xe   :  { %s4516_s3 = smov [#allocation9]  }
   0xf   :  { %s75_s27 = sshll.u32 %s4516_s3, 4  ;;  %s76_s27 = int_to_ptr.vmem [resolvable:$true] %s75_s27 }
  0x10   :  { %81 = dma.hbm_to_vmem [thread:$0]  %s74_s26, 8192, %s76_s27, [#allocation10], %s4511_s13, %s4511_s13, %s4512_s14  }
  0x11   :  { %4500 = dma.done.wait [#allocation3], 8192  }
  0x12   :  { %4501 = vsyncadd [#allocation3], 4294959104 }
  0x13   :  { %4502 = dma.done.wait [#allocation6], 256  }
  0x14   :  { %4503 = vsyncadd [#allocation6], 4294967040 }
  0x15   :  { %4504 = dma.done.wait [#allocation4], 32  }
  0x16   :  { %4505 = vsyncadd [#allocation4], 4294967264 }
  0x17   :  { %4506 = dma.done.wait [#allocation6], 4096  }
  0x18   :  { %4507 = vsyncadd [#allocation6], 4294963200 }
  0x19   :  { %4508 = dma.done.wait [#allocation10], 8192  }
  0x1a   :  { %4509 = vsyncadd [#allocation10], 4294959104 }
  0x1b   :  { %104 = sfence }
  0x1c   :  { %v121_v0 = vld [vmem:[#allocation2 + $0x78] sm:$0xff]  ;;  %v120_v1 = vld [vmem:[#allocation2 + $0x70] sm:$0xff]  ;;  %v119_v2 = vld [vmem:[#allocation2 + $0x68] sm:$0xff]  ;;  %s4822_s29 = sld [smem:[#allocation7 + $0x61]]  ;;  %s4531_s19 = smov 64  }
  0x1d   :  { %124 = vmatpush.msra.mxu0 %v121_v0  ;;  %v118_v3 = vld [vmem:[#allocation2 + $0x60] sm:$0xff]  ;;  %v117_v4 = vld [vmem:[#allocation2 + $0x58] sm:$0xff]  ;;  %v116_v5 = vld [vmem:[#allocation2 + $0x50] sm:$0xff]  ;;  %s4826_s30 = sld [smem:[#allocation7 + $0x62]]  ;;  %s4532_s26 = smov 32  }
  0x1e   :  { %v115_v6 = vld [vmem:[#allocation2 + $0x48] sm:$0xff]  ;;  %v114_v7 = vld [vmem:[#allocation2 + $0x40] sm:$0xff]  ;;  %v113_v8 = vld [vmem:[#allocation2 + $0x38] sm:$0xff]  ;;  %s4832_s9 = sld [smem:[#allocation7 + $0x63]]  ;;  %s4533_s3 = smov 96  }
  0x1f   :  { %125 = vmatpush.msra.mxu0 %v120_v1  ;;  %v112_v9 = vld [vmem:[#allocation2 + $0x30] sm:$0xff]  ;;  %v111_v10 = vld [vmem:[#allocation2 + $0x28] sm:$0xff]  ;;  %v110_v11 = vld [vmem:[#allocation2 + $0x20] sm:$0xff]  ;;  %s4842_s10 = sld [smem:[#allocation7 + $0x4]] }
  0x20   :  { %v109_v12 = vld [vmem:[#allocation2 + $0x18] sm:$0xff]  ;;  %v108_v13 = vld [vmem:[#allocation2 + $0x10] sm:$0xff]  ;;  %v107_v14 = vld [vmem:[#allocation2 + $0x8] sm:$0xff]  ;;  %s4850_s11 = sld [smem:[#allocation7 + $0x7]] }
  0x21   :  { %126 = vmatpush.msra.mxu0 %v119_v2  ;;  %v106_v15 = vld [vmem:[#allocation2] sm:$0xff]  ;;  %v208_v21 = vld [vmem:[#allocation2 + $0xf8] sm:$0xff]  ;;  %v207_v22 = vld [vmem:[#allocation2 + $0xf0] sm:$0xff]  ;;  %s4860_s12 = sld [smem:[#allocation7]] }
  0x22   :  { %v105_v16 = vld [vmem:[%s6849_s0] sm:$0xff]  ;;  %211 = vmatpush.msra.mxu1 %v208_v21  ;;  %v206_v23 = vld [vmem:[#allocation2 + $0xe8] sm:$0xff]  ;;  %v204_v26 = vld [vmem:[#allocation2 + $0xd8] sm:$0xff]  ;;  %s4866_s13 = sld [smem:[#allocation7 + $0x3]] }
  0x23   :  { %127 = vmatpush.msra.mxu0 %v118_v3  ;;  %v4347_v17 = vld [vmem:[#allocation5] ss:$0 sm:$0xff]  ;;  %v203_v27 = vld [vmem:[#allocation2 + $0xd0] sm:$0xff]  ;;  %v202_v29 = vld [vmem:[#allocation2 + $0xc8] sm:$0xff]  ;;  %s4874_s15 = sld [smem:[#allocation7 + $0x1]] }
  0x24   :  { %212 = vmatpush.msra.mxu1 %v207_v22  ;;  %v205_v25 = vld [vmem:[#allocation2 + $0xe0] sm:$0xff]  ;;  %v200_v34 = vld [vmem:[#allocation2 + $0xb8] sm:$0xff]  ;;  %v199_v36 = vld [vmem:[#allocation2 + $0xb0] sm:$0xff]  ;;  %s4876_s16 = sld [smem:[#allocation7 + $0x2]] }
  0x25   :  { %128 = vmatpush.msra.mxu0 %v117_v4  ;;  %v201_v31 = vld [vmem:[#allocation2 + $0xc0] sm:$0xff]  ;;  %v198_v38 = vld [vmem:[#allocation2 + $0xa8] sm:$0xff]  ;;  %v196_v40 = vld [vmem:[#allocation2 + $0x98] sm:$0xff]  ;;  %s4880_s17 = sld [smem:[#allocation7 + $0x64]] }
  0x26   :  { %213 = vmatpush.msra.mxu1 %v206_v23  ;;  %v197_v39 = vld [vmem:[#allocation2 + $0xa0] sm:$0xff]  ;;  %v195_v41 = vld [vmem:[#allocation2 + $0x90] sm:$0xff]  ;;  %v194_v44 = vld [vmem:[#allocation2 + $0x88] sm:$0xff]  ;;  %s4884_s18 = sld [smem:[#allocation7 + $0x67]] }
  0x27   :  { %129 = vmatpush.msra.mxu0 %v116_v5  ;;  %v193_v46 = vld [vmem:[#allocation2 + $0x80] sm:$0xff]  ;;  %v4349_v54 = vld [vmem:[#allocation5 + $0x8] ss:$0 sm:$0xff]  ;;  %s4068_s2 = sld [smem:[#allocation7 + $0x5]] }
  0x28   :  { %214 = vmatpush.msra.mxu1 %v205_v25  ;;  %v4348_v51 = vld [vmem:[#allocation5 + $0x4] ss:$0 sm:$0xff]  ;;  %v287_v25 = vld [vmem:[#allocation2 + $0x138] sm:$0xff]  ;;  %s4069_s20 = sld [smem:[#allocation7 + $0x6]] }
  0x29   :  { %130 = vmatpush.msra.mxu0 %v115_v6  ;;  %v288_v22 = vld [vmem:[#allocation2 + $0x140] sm:$0xff]  ;;  %s4072_s21 = sld [smem:[#allocation7 + $0x65]] }
  0x2a   :  { %215 = vmatpush.msra.mxu1 %v204_v26  ;;  %s4073_s1 = sld [smem:[#allocation7 + $0x66]] }
  0x2b   :  { %131 = vmatpush.msra.mxu0 %v114_v7  ;;  %s4961_s22 = sld [smem:[#allocation7 + $0x8]] }
  0x2c   :  { %216 = vmatpush.msra.mxu1 %v203_v27  ;;  %v286_v27 = vld [vmem:[#allocation2 + $0x130] sm:$0xff]  ;;  %s4078_s23 = sld [smem:[#allocation7 + $0xb]] }
  0x2d   :  { %132 = vmatpush.msra.mxu0 %v113_v8  ;;  %v4350_v8 = vld [vmem:[#allocation5 + $0x1] ss:$0 sm:$0xff]  ;;  %s4963_s24 = sld [smem:[#allocation7 + $0x68]] }
  0x2e   :  { %217 = vmatpush.msra.mxu1 %v202_v29  ;;  %v285_v29 = vld [vmem:[#allocation2 + $0x128] sm:$0xff]  ;;  %s4965_s25 = sld [smem:[#allocation7 + $0x6b]] }
  0x2f   :  { %133 = vmatpush.msra.mxu0 %v112_v9  ;;  %s4076_s27 = sld [smem:[#allocation7 + $0x9]] }
  0x30   :  { %218 = vmatpush.msra.mxu1 %v201_v31  ;;  %v283_v31 = vld [vmem:[#allocation2 + $0x118] sm:$0xff]  ;;  %s4077_s5 = sld [smem:[#allocation7 + $0xa]] }
  0x31   :  { %134 = vmatpush.msra.mxu0 %v111_v10  ;;  %s4080_s6 = sld [smem:[#allocation7 + $0x69]] }
  0x32   :  { %219 = vmatpush.msra.mxu1 %v200_v34  ;;  %s4081_s0 = sld [smem:[#allocation7 + $0x6a]] }
  0x33   :  { %135 = vmatpush.msra.mxu0 %v110_v11  ;;  %s5021_s28 = sld [smem:[#allocation7 + $0xc]] }
  0x34   :  { %220 = vmatpush.msra.mxu1 %v199_v36 }
  0x35   :  { %136 = vmatpush.msra.mxu0 %v109_v12  ;;  %v295_v12 = vld [vmem:[#allocation2 + $0x178] sm:$0xff] }
  0x36   :  { %221 = vmatpush.msra.mxu1 %v198_v38  ;;  %298 = vmatpush.msra.mxu2 %v295_v12 }
  0x37   :  { %137 = vmatpush.msra.mxu0 %v108_v13  ;;  %v294_v13 = vld [vmem:[#allocation2 + $0x170] sm:$0xff] }
  0x38   :  { %222 = vmatpush.msra.mxu1 %v197_v39  ;;  %299 = vmatpush.msra.mxu2 %v294_v13  ;;  %v375_v13 = vld [vmem:[#allocation2 + $0x1c0] sm:$0xff] }
  0x39   :  { %138 = vmatpush.msra.mxu0 %v107_v14  ;;  %v293_v14 = vld [vmem:[#allocation2 + $0x168] sm:$0xff] }
  0x3a   :  { %223 = vmatpush.msra.mxu1 %v196_v40  ;;  %300 = vmatpush.msra.mxu2 %v293_v14 }
  0x3b   :  { %139 = vmatpush.msra.mxu0 %v106_v15 }
  0x3c   :  { %140 = vmatmul.f32.vlgmr.msra.gmra.mxu0 %v105_v16  ;;  %224 = vmatpush.msra.mxu1 %v195_v41  ;;  %v292_v16 = vld [vmem:[#allocation2 + $0x160] sm:$0xff] }
  0x3d   :  { %301 = vmatpush.msra.mxu2 %v292_v16  ;;  %v374_v16 = vld [vmem:[#allocation2 + $0x1b8] sm:$0xff] }
  0x3e   :  { %225 = vmatpush.msra.mxu1 %v194_v44 }
  0x40   :  { %226 = vmatpush.msra.mxu1 %v193_v46 }
  0xb9   :  { %v141_v18 = vpop.f32.mrf.mxu0 }
  0xba   :  { %v142_v19 = vadd.f32 %v4347_v17, %v141_v18  ;;  %v291_v17 = vld [vmem:[#allocation2 + $0x158] sm:$0xff]  ;;  %v290_v18 = vld [vmem:[#allocation2 + $0x150] sm:$0xff] }
  0xbb   :  { %302 = vmatpush.msra.mxu2 %v291_v17 }
  0xbc   :  { %144 = vadd.xlane.f32.xlu0 %v142_v19  ;;  %v147_v20 = vmul.f32 %v142_v19, %v142_v19 }
  0xbd   :  { %303 = vmatpush.msra.mxu2 %v290_v18  ;;  %v373_v18 = vld [vmem:[#allocation2 + $0x1b0] sm:$0xff] }
  0xc4   :  { %148 = vadd.xlane.f32.xlu0 %v147_v20  ;;  %v289_v20 = vld [vmem:[#allocation2 + $0x148] sm:$0xff] }
  0xc5   :  { %304 = vmatpush.msra.mxu2 %v289_v20  ;;  %v372_v20 = vld [vmem:[#allocation2 + $0x1a8] sm:$0xff] }
  0xc7   :  { %305 = vmatpush.msra.mxu2 %v288_v22  ;;  %v370_v22 = vld [vmem:[#allocation2 + $0x198] sm:$0xff] }
  0xc9   :  { %306 = vmatpush.msra.mxu2 %v287_v25 }
  0xcb   :  { %307 = vmatpush.msra.mxu2 %v286_v27 }
  0xcd   :  { %308 = vmatpush.msra.mxu2 %v285_v29 }
 0x12f   :  { %v145_v24 = vpop.xlane.xlu0 %144 }
 0x130   :  { %v146_v28 = vmul.f32 0.0625, %v145_v24 }
 0x132   :  { %v152_v32 = vmul.f32 %v146_v28, %v146_v28  ;;  %v151_v50 = vsub.f32 %v142_v19, %v146_v28 }
 0x137   :  { %v149_v30 = vpop.xlane.xlu0 %148 }
 0x138   :  { %v150_v33 = vmul.f32 0.0625, %v149_v30  ;;  %v284_v30 = vld [vmem:[#allocation2 + $0x120] sm:$0xff] }
 0x139   :  { %309 = vmatpush.msra.mxu2 %v284_v30 }
 0x13a   :  { %v153_v35 = vsub.f32 %v150_v33, %v152_v32  ;;  %v282_v32 = vld [vmem:[#allocation2 + $0x110] sm:$0xff] }
 0x13b   :  { %310 = vmatpush.msra.mxu2 %v283_v31 }
 0x13c   :  { %v154_v37 = vadd.f32 1e-05, %v153_v35  ;;  %v281_v35 = vld [vmem:[#allocation2 + $0x108] sm:$0xff] }
 0x13d   :  { %311 = vmatpush.msra.mxu2 %v282_v32 }
 0x13e   :  { %4364 = vrsqrt.f32 %v154_v37  ;;  %vm161_vm1 = vweird.f32 %v154_v37 }
 0x13f   :  { %312 = vmatpush.msra.mxu2 %v281_v35 }
 0x144   :  { %v4365_v42 = vpop.eup %4364 }
 0x145   :  { %v156_v43 = vmul.f32 %v4365_v42, %v154_v37  ;;  %vm162_vm0 = vweird.f32 %v4365_v42  ;;  %v280_v37 = vld [vmem:[#allocation2 + $0x100] sm:$0xff] }
 0x146   :  { %vm163_vm2 = vmor %vm161_vm1, %vm162_vm0  ;;  %313 = vmatpush.msra.mxu2 %v280_v37 }
 0x147   :  { %v157_v45 = vmul.f32 %v4365_v42, %v156_v43 }
 0x149   :  { %v158_v47 = vmul.f32 0.5, %v157_v45  ;;  %v4352_v45 = vld [vmem:[#allocation5 + $0x9] ss:$0 sm:$0xff] }
 0x14b   :  { %v159_v48 = vsub.f32 1.5, %v158_v47 }
 0x14d   :  { %v160_v49 = vmul.f32 %v4365_v42, %v159_v48 }
 0x14f   :  { %v164_v52 = vsel %vm163_vm2, %v4365_v42, %v160_v49  ;;  %v4351_v42 = vld [vmem:[#allocation5 + $0x5] ss:$0 sm:$0xff] }
 0x150   :  { %v165_v53 = vmul.f32 %v164_v52, %v151_v50 }
 0x152   :  { %v168_v55 = vmul.f32 %v4348_v51, %v165_v53 }
 0x154   :  { %v171_v56 = vadd.f32 %v4349_v54, %v168_v55 }
 0x156   :  { %v172_v57 = vsub.f32 0.0, %v171_v56 }
 0x158   :  { %v173_v58 = vmul.f32 1.442695, %v172_v57 }
 0x15a   :  { %4366 = vpow2.f32 %v173_v58 }
 0x160   :  { %v4367_v59 = vpop.eup %4366 }
 0x161   :  { %v175_v60 = vadd.f32 1.0, %v4367_v59 }
 0x163   :  { %4368 = vrcp.f32 %v175_v60  ;;  %v187_v0 = vand.u32 2147483648, %v175_v60  ;;  %v185_v2 = vand.u32 2147483647, %v175_v60  ;;  %vm181_vm4 = vweird.f32 %v175_v60 }
 0x165   :  { %v188_v4 = vor.u32 1.1754944e-38, %v187_v0  ;;  %vm186_vm6 = vcmp.eq.f32.partialorder %v185_v2, 8.507059e+37 }
 0x169   :  { %v4369_v61 = vpop.eup %4368 }
 0x16a   :  { %v177_v62 = vmul.f32 %v4369_v61, %v175_v60  ;;  %vm182_vm3 = vweird.f32 %v4369_v61 }
 0x16b   :  { %vm183_vm5 = vmor %vm181_vm4, %vm182_vm3 }
 0x16c   :  { %v178_v63 = vsub.f32 1.0, %v177_v62 }
 0x16e   :  { %v179_v1 = vmul.f32 %v4369_v61, %v178_v63  ;;  %v4353_v63 = vld [vmem:[#allocation5 + $0x2] ss:$0 sm:$0xff] }
 0x170   :  { %v180_v3 = vadd.f32 %v4369_v61, %v179_v1 }
 0x172   :  { %v184_v5 = vsel %vm183_vm5, %v4369_v61, %v180_v3  ;;  %v382_v3 = vld [vmem:[#allocation2 + $0x1f8] sm:$0xff] }
 0x173   :  { %v189_v6 = vsel %vm186_vm6, %v188_v4, %v184_v5  ;;  %v381_v4 = vld [vmem:[#allocation2 + $0x1f0] sm:$0xff]  ;;  %385 = vmatpush.msra.mxu3 %v382_v3  ;;  %v380_v5 = vld [vmem:[#allocation2 + $0x1e8] sm:$0xff] }
 0x174   :  { %v191_v7 = vmul.f32 %v189_v6, %v171_v56 }
 0x175   :  { %386 = vmatpush.msra.mxu3 %v381_v4  ;;  %v6887_v4 = vmov 1  }
 0x176   :  { %227 = vmatmul.f32.vlgmr.msra.gmra.mxu1 %v191_v7  ;;  %v379_v7 = vld [vmem:[#allocation2 + $0x1e0] sm:$0xff]  ;;  %4309 = vset.pattern.permute.xlu1 %v6887_v4 }
 0x177   :  { %387 = vmatpush.msra.mxu3 %v380_v5  ;;  %v4518_v5 = vmov 0  }
 0x178   :  { %4308 = vset.pattern.permute.xlu0 %v4518_v5  ;;  %4307 = vset.pattern.permute.xlu2 %v4518_v5 }
 0x179   :  { %388 = vmatpush.msra.mxu3 %v379_v7 }
 0x1f3   :  { %v228_v9 = vpop.f32.mrf.mxu1 }
 0x1f4   :  { %v229_v10 = vadd.f32 %v4350_v8, %v228_v9  ;;  %v378_v8 = vld [vmem:[#allocation2 + $0x1d8] sm:$0xff]  ;;  %v377_v9 = vld [vmem:[#allocation2 + $0x1d0] sm:$0xff] }
 0x1f5   :  { %389 = vmatpush.msra.mxu3 %v378_v8 }
 0x1f6   :  { %231 = vadd.xlane.f32.xlu1 %v229_v10  ;;  %v234_v11 = vmul.f32 %v229_v10, %v229_v10 }
 0x1f7   :  { %390 = vmatpush.msra.mxu3 %v377_v9 }
 0x1fe   :  { %235 = vadd.xlane.f32.xlu1 %v234_v11  ;;  %v376_v11 = vld [vmem:[#allocation2 + $0x1c8] sm:$0xff] }
 0x1ff   :  { %391 = vmatpush.msra.mxu3 %v376_v11  ;;  %v4357_v11 = vld [vmem:[#allocation5 + $0x7] ss:$0 sm:$0xff] }
 0x201   :  { %392 = vmatpush.msra.mxu3 %v375_v13  ;;  %v4358_v13 = vld [vmem:[#allocation5 + $0xb] ss:$0 sm:$0xff] }
 0x203   :  { %393 = vmatpush.msra.mxu3 %v374_v16 }
 0x205   :  { %394 = vmatpush.msra.mxu3 %v373_v18 }
 0x207   :  { %395 = vmatpush.msra.mxu3 %v372_v20 }
 0x269   :  { %v232_v15 = vpop.xlane.xlu1 %231 }
 0x26a   :  { %v233_v19 = vmul.f32 0.03125, %v232_v15 }
 0x26c   :  { %v239_v23 = vmul.f32 %v233_v19, %v233_v19  ;;  %v238_v41 = vsub.f32 %v229_v10, %v233_v19 }
 0x271   :  { %v236_v21 = vpop.xlane.xlu1 %235 }
 0x272   :  { %v237_v24 = vmul.f32 0.03125, %v236_v21  ;;  %v371_v21 = vld [vmem:[#allocation2 + $0x1a0] sm:$0xff] }
 0x273   :  { %396 = vmatpush.msra.mxu3 %v371_v21 }
 0x274   :  { %v240_v26 = vsub.f32 %v237_v24, %v239_v23  ;;  %v369_v23 = vld [vmem:[#allocation2 + $0x190] sm:$0xff] }
 0x275   :  { %397 = vmatpush.msra.mxu3 %v370_v22 }
 0x276   :  { %v241_v28 = vadd.f32 1e-05, %v240_v26  ;;  %v368_v26 = vld [vmem:[#allocation2 + $0x188] sm:$0xff] }
 0x277   :  { %398 = vmatpush.msra.mxu3 %v369_v23 }
 0x278   :  { %4370 = vrsqrt.f32 %v241_v28  ;;  %vm248_vm8 = vweird.f32 %v241_v28 }
 0x279   :  { %399 = vmatpush.msra.mxu3 %v368_v26 }
 0x27e   :  { %v4371_v33 = vpop.eup %4370 }
 0x27f   :  { %v243_v34 = vmul.f32 %v4371_v33, %v241_v28  ;;  %vm249_vm7 = vweird.f32 %v4371_v33  ;;  %v367_v28 = vld [vmem:[#allocation2 + $0x180] sm:$0xff] }
 0x280   :  { %vm250_vm9 = vmor %vm248_vm8, %vm249_vm7  ;;  %400 = vmatpush.msra.mxu3 %v367_v28 }
 0x281   :  { %v244_v36 = vmul.f32 %v4371_v33, %v243_v34 }
 0x283   :  { %v245_v38 = vmul.f32 0.5, %v244_v36  ;;  %v4355_v36 = vld [vmem:[#allocation5 + $0xa] ss:$0 sm:$0xff] }
 0x285   :  { %v246_v39 = vsub.f32 1.5, %v245_v38 }
 0x287   :  { %v247_v40 = vmul.f32 %v4371_v33, %v246_v39 }
 0x289   :  { %v251_v43 = vsel %vm250_vm9, %v4371_v33, %v247_v40  ;;  %v4354_v33 = vld [vmem:[#allocation5 + $0x6] ss:$0 sm:$0xff] }
 0x28a   :  { %v252_v44 = vmul.f32 %v251_v43, %v238_v41 }
 0x28c   :  { %v255_v46 = vmul.f32 %v4351_v42, %v252_v44 }
 0x28e   :  { %v258_v47 = vadd.f32 %v4352_v45, %v255_v46 }
 0x290   :  { %v259_v48 = vsub.f32 0.0, %v258_v47 }
 0x292   :  { %v260_v49 = vmul.f32 1.442695, %v259_v48 }
 0x294   :  { %4372 = vpow2.f32 %v260_v49 }
 0x29a   :  { %v4373_v50 = vpop.eup %4372 }
 0x29b   :  { %v262_v51 = vadd.f32 1.0, %v4373_v50 }
 0x29d   :  { %4374 = vrcp.f32 %v262_v51  ;;  %v274_v55 = vand.u32 2147483648, %v262_v51  ;;  %v272_v57 = vand.u32 2147483647, %v262_v51  ;;  %vm268_vm11 = vweird.f32 %v262_v51 }
 0x29f   :  { %v275_v59 = vor.u32 1.1754944e-38, %v274_v55  ;;  %vm273_vm13 = vcmp.eq.f32.partialorder %v272_v57, 8.507059e+37 }
 0x2a3   :  { %v4375_v52 = vpop.eup %4374 }
 0x2a4   :  { %v264_v53 = vmul.f32 %v4375_v52, %v262_v51  ;;  %vm269_vm10 = vweird.f32 %v4375_v52 }
 0x2a5   :  { %vm270_vm12 = vmor %vm268_vm11, %vm269_vm10 }
 0x2a6   :  { %v265_v54 = vsub.f32 1.0, %v264_v53 }
 0x2a8   :  { %v266_v56 = vmul.f32 %v4375_v52, %v265_v54  ;;  %v4356_v54 = vld [vmem:[#allocation5 + $0x3] ss:$0 sm:$0xff] }
 0x2aa   :  { %v267_v58 = vadd.f32 %v4375_v52, %v266_v56 }
 0x2ac   :  { %v271_v60 = vsel %vm270_vm12, %v4375_v52, %v267_v58 }
 0x2ad   :  { %v276_v61 = vsel %vm273_vm13, %v275_v59, %v271_v60 }
 0x2ae   :  { %v4611_v62 = vmul.f32 %v276_v61, %v258_v47 }
 0x2b0   :  { %314 = vmatmul.f32.vlgmr.msra.gmra.mxu2 %v4611_v62 }
 0x333   :  { %v315_v0 = vpop.f32.mrf.mxu2 }
 0x334   :  { %v316_v1 = vadd.f32 %v4353_v63, %v315_v0 }
 0x336   :  { %318 = vadd.xlane.f32.xlu2 %v316_v1  ;;  %v321_v2 = vmul.f32 %v316_v1, %v316_v1 }
 0x33e   :  { %322 = vadd.xlane.f32.xlu2 %v321_v2 }
 0x3a9   :  { %v319_v6 = vpop.xlane.xlu2 %318 }
 0x3aa   :  { %v320_v10 = vmul.f32 0.0625, %v319_v6 }
 0x3ac   :  { %v326_v14 = vmul.f32 %v320_v10, %v320_v10  ;;  %v325_v32 = vsub.f32 %v316_v1, %v320_v10 }
 0x3b1   :  { %v323_v12 = vpop.xlane.xlu2 %322 }
 0x3b2   :  { %v324_v15 = vmul.f32 0.0625, %v323_v12 }
 0x3b4   :  { %v327_v17 = vsub.f32 %v324_v15, %v326_v14 }
 0x3b6   :  { %v328_v19 = vadd.f32 1e-05, %v327_v17  ;;  %v4359_v17 = vld [vmem:[%s6853_s4 + $0x1] ss:$0 sm:$0xff]  ;;  %s4814_s4 = sld [smem:[#allocation7 + $0x60]] }
 0x3b8   :  { %4376 = vrsqrt.f32 %v328_v19  ;;  %vm335_vm15 = vweird.f32 %v328_v19 }
 0x3be   :  { %v4377_v24 = vpop.eup %4376 }
 0x3bf   :  { %v330_v25 = vmul.f32 %v4377_v24, %v328_v19  ;;  %vm336_vm14 = vweird.f32 %v4377_v24 }
 0x3c0   :  { %vm337_vm0 = vmor %vm335_vm15, %vm336_vm14 }
 0x3c1   :  { %v331_v27 = vmul.f32 %v4377_v24, %v330_v25 }
 0x3c3   :  { %v332_v29 = vmul.f32 0.5, %v331_v27 }
 0x3c5   :  { %v333_v30 = vsub.f32 1.5, %v332_v29 }
 0x3c7   :  { %v334_v31 = vmul.f32 %v4377_v24, %v333_v30 }
 0x3c9   :  { %v338_v34 = vsel %vm337_vm0, %v4377_v24, %v334_v31 }
 0x3ca   :  { %v339_v35 = vmul.f32 %v338_v34, %v325_v32 }
 0x3cc   :  { %v342_v37 = vmul.f32 %v4354_v33, %v339_v35 }
 0x3ce   :  { %v345_v38 = vadd.f32 %v4355_v36, %v342_v37 }
 0x3d0   :  { %v346_v39 = vsub.f32 0.0, %v345_v38 }
 0x3d2   :  { %v347_v40 = vmul.f32 1.442695, %v346_v39 }
 0x3d4   :  { %4378 = vpow2.f32 %v347_v40 }
 0x3da   :  { %v4379_v41 = vpop.eup %4378 }
 0x3db   :  { %v349_v42 = vadd.f32 1.0, %v4379_v41 }
 0x3dd   :  { %4380 = vrcp.f32 %v349_v42  ;;  %v361_v46 = vand.u32 2147483648, %v349_v42  ;;  %v359_v48 = vand.u32 2147483647, %v349_v42  ;;  %vm355_vm2 = vweird.f32 %v349_v42 }
 0x3df   :  { %v362_v50 = vor.u32 1.1754944e-38, %v361_v46  ;;  %vm360_vm4 = vcmp.eq.f32.partialorder %v359_v48, 8.507059e+37  ;;  %v4521_v46 = vmov 2131351028   ;;  %v4522_v48 = vmov 2102212464  }
 0x3e3   :  { %v4381_v43 = vpop.eup %4380 }
 0x3e4   :  { %v351_v44 = vmul.f32 %v4381_v43, %v349_v42  ;;  %vm356_vm1 = vweird.f32 %v4381_v43  ;;  %v4519_v42 = vmov 683565275  }
 0x3e5   :  { %vm357_vm3 = vmor %vm355_vm2, %vm356_vm1 }
 0x3e6   :  { %v352_v45 = vsub.f32 1.0, %v351_v44  ;;  %v4520_v44 = vmov 2475754826  }
 0x3e8   :  { %v353_v47 = vmul.f32 %v4381_v43, %v352_v45 }
 0x3ea   :  { %v354_v49 = vadd.f32 %v4381_v43, %v353_v47 }
 0x3ec   :  { %v358_v51 = vsel %vm357_vm3, %v4381_v43, %v354_v49 }
 0x3ed   :  { %v363_v52 = vsel %vm360_vm4, %v362_v50, %v358_v51  ;;  %v4523_v50 = vmov 920167782  }
 0x3ee   :  { %v365_v53 = vmul.f32 %v363_v52, %v345_v38 }
 0x3f0   :  { %401 = vmatmul.f32.vlgmr.msra.gmra.mxu3 %v365_v53 }
 0x473   :  { %v402_v55 = vpop.f32.mrf.mxu3 }
 0x474   :  { %v403_v56 = vadd.f32 %v4356_v54, %v402_v55 }
 0x476   :  { %405 = vadd.xlane.f32.xlu0 %v403_v56  ;;  %v408_v57 = vmul.f32 %v403_v56, %v403_v56 }
 0x478   :  { %409 = vadd.xlane.f32.xlu1 %v408_v57  ;;  %v4524_v57 = vmov 1326507024  }
 0x4e9   :  { %v406_v58 = vpop.xlane.xlu0 %405 }
 0x4ea   :  { %v407_v59 = vmul.f32 0.125, %v406_v58 }
 0x4eb   :  { %v410_v60 = vpop.xlane.xlu1 %409 }
 0x4ec   :  { %v413_v61 = vmul.f32 %v407_v59, %v407_v59  ;;  %v411_v63 = vmul.f32 0.125, %v410_v60  ;;  %v412_v10 = vsub.f32 %v403_v56, %v407_v59 }
 0x4ee   :  { %v414_v0 = vsub.f32 %v411_v63, %v413_v61 }
 0x4f0   :  { %v415_v1 = vadd.f32 1e-05, %v414_v0 }
 0x4f2   :  { %4382 = vrsqrt.f32 %v415_v1  ;;  %vm422_vm6 = vweird.f32 %v415_v1 }
 0x4f8   :  { %v4383_v2 = vpop.eup %4382 }
 0x4f9   :  { %v417_v3 = vmul.f32 %v4383_v2, %v415_v1  ;;  %vm423_vm5 = vweird.f32 %v4383_v2 }
 0x4fa   :  { %vm424_vm7 = vmor %vm422_vm6, %vm423_vm5 }
 0x4fb   :  { %v418_v6 = vmul.f32 %v4383_v2, %v417_v3 }
 0x4fd   :  { %v419_v7 = vmul.f32 0.5, %v418_v6 }
 0x4ff   :  { %v420_v8 = vsub.f32 1.5, %v419_v7 }
 0x501   :  { %v421_v9 = vmul.f32 %v4383_v2, %v420_v8 }
 0x503   :  { %v425_v12 = vsel %vm424_vm7, %v4383_v2, %v421_v9 }
 0x504   :  { %v426_v14 = vmul.f32 %v425_v12, %v412_v10 }
 0x506   :  { %v429_v15 = vmul.f32 %v4357_v11, %v426_v14 }
 0x508   :  { %v432_v16 = vadd.f32 %v4358_v13, %v429_v15 }
 0x50a   :  { %v4620_v18 = vmul.f32 0.5, %v432_v16 }
 0x50c   :  { %v437_v19 = vand.u32 2139095040, %v4620_v18  ;;  %v434_v20 = vand.u32 2147483647, %v4620_v18  ;;  %v4625_v21 = vmul.f32 %v4359_v17, %v4620_v18 }
 0x50e   :  { %v438_v22 = vshrl.u32 %v437_v19, 23  ;;  %v441_v23 = vand.u32 8388607, %v434_v20  ;;  %v2150_v24 = vand.u32 2147483647, %v4625_v21  ;;  %v2153_v25 = vand.u32 2139095040, %v4625_v21 }
 0x510   :  { %v4054_v26 = vadd.s32 4294967169, %v438_v22  ;;  %v442_v27 = vor.u32 8388608, %v441_v23  ;;  %v2154_v28 = vshrl.u32 %v2153_v25, 23  ;;  %v2157_v29 = vand.u32 8388607, %v2150_v24 }
 0x512   :  { %v444_v30 = vadd.s32 1, %v4054_v26  ;;  %v4633_v31 = vshll.u32 %v442_v27, 8  ;;  %v4187_v32 = vadd.s32 4294967169, %v2154_v28  ;;  %v2158_v33 = vor.u32 8388608, %v2157_v29 }
 0x514   :  { %vm445_vm8 = vcmp.gt.s32.totalorder %v444_v30, 0  ;;  %v2160_v35 = vadd.s32 1, %v4187_v32  ;;  %v483_v38 = vand.u32 65535, %v4633_v31  ;;  %v4637_v39 = vshrl.u32 %v4633_v31, 16 }
 0x515   :  { %v446_v34 = vsel %vm445_vm8, %v444_v30, 0  ;;  %v4639_v40 = vshll.u32 %v2158_v33, 8 }
 0x516   :  { %v447_v36 = vshrl.u32 %v446_v34, 5  ;;  %v448_v37 = vand.u32 31, %v446_v34  ;;  %vm2161_vm9 = vcmp.gt.s32.totalorder %v2160_v35, 0 }
 0x517   :  { %v2162_v63 = vsel %vm2161_vm9, %v2160_v35, 0 }
 0x518   :  { %v449_v41 = vsub.s32 32, %v448_v37  ;;  %v451_v43 = vshll.u32 %v4519_v42, %v448_v37  ;;  %v454_v45 = vshll.u32 %v4520_v44, %v448_v37  ;;  %v457_v47 = vshll.u32 %v4521_v46, %v448_v37 }
 0x519   :  { %v460_v49 = vshll.u32 %v4522_v48, %v448_v37  ;;  %v463_v51 = vshll.u32 %v4523_v50, %v448_v37  ;;  %vm466_vm10 = vcmp.lt.s32.totalorder %v447_v36, 1  ;;  %vm467_vm11 = vcmp.lt.s32.totalorder %v447_v36, 2 }
 0x51a   :  { %v452_v52 = vshrl.u32 %v4520_v44, %v449_v41  ;;  %v455_v53 = vshrl.u32 %v4521_v46, %v449_v41  ;;  %v458_v54 = vshrl.u32 %v4522_v48, %v449_v41  ;;  %v450_v55 = vshrl.u32 %v4519_v42, %v449_v41 }
 0x51b   :  { %v461_v56 = vshrl.u32 %v4523_v50, %v449_v41  ;;  %v464_v58 = vshrl.u32 %v4524_v57, %v449_v41  ;;  %vm468_vm12 = vcmp.lt.s32.totalorder %v447_v36, 3  ;;  %vm469_vm13 = vcmp.lt.s32.totalorder %v447_v36, 4 }
 0x51c   :  { %v453_v59 = vor.u32 %v452_v52, %v451_v43  ;;  %v456_v60 = vor.u32 %v455_v53, %v454_v45  ;;  %v459_v61 = vor.u32 %v458_v54, %v457_v47  ;;  %v2164_v2 = vand.u32 31, %v2162_v63 }
 0x51d   :  { %v462_v0 = vor.u32 %v461_v56, %v460_v49  ;;  %v465_v1 = vor.u32 %v464_v58, %v463_v51  ;;  %v4656_v16 = vshrl.u32 %v2162_v63, 5 }
 0x51e   :  { %v470_v3 = vsel %vm466_vm10, %v450_v55, %v453_v59  ;;  %v471_v6 = vsel %vm469_vm13, %v459_v61, 2102212464  ;;  %v474_v7 = vsel %vm466_vm10, %v453_v59, %v456_v60  ;;  %v478_v8 = vsel %vm466_vm10, %v456_v60, %v459_v61 }
 0x51f   :  { %v472_v9 = vsel %vm468_vm12, %v456_v60, %v471_v6  ;;  %v475_v10 = vsel %vm469_vm13, %v462_v0, 920167782  ;;  %v479_v11 = vsel %vm469_vm13, %v465_v1, 1326507024  ;;  %v2165_v12 = vsub.s32 32, %v2164_v2 }
 0x520   :  { %v4652_v13 = vsel %vm467_vm11, %v470_v3, %v472_v9  ;;  %v476_v14 = vsel %vm468_vm12, %v459_v61, %v475_v10  ;;  %v480_v15 = vsel %vm468_vm12, %v462_v0, %v479_v11  ;;  %v2167_v23 = vshll.u32 %v4519_v42, %v2164_v2 }
 0x521   :  { %v477_v17 = vsel %vm467_vm11, %v474_v7, %v476_v14  ;;  %v481_v19 = vsel %vm467_vm11, %v478_v8, %v480_v15  ;;  %v2166_v22 = vshrl.u32 %v4519_v42, %v2165_v12  ;;  %v2168_v29 = vshrl.u32 %v4520_v44, %v2165_v12 }
 0x522   :  { %v485_v25 = vand.u32 65535, %v481_v19  ;;  %v486_v26 = vshrl.u32 %v481_v19, 16  ;;  %v507_v27 = vand.u32 65535, %v477_v17  ;;  %v508_v28 = vshrl.u32 %v477_v17, 16 }
 0x523   :  { %v2170_v30 = vshll.u32 %v4520_v44, %v2164_v2  ;;  %v2171_v32 = vshrl.u32 %v4521_v46, %v2165_v12  ;;  %v2173_v33 = vshll.u32 %v4521_v46, %v2164_v2  ;;  %v2169_v56 = vor.u32 %v2168_v29, %v2167_v23 }
 0x524   :  { %v487_v34 = vmul.u32 %v485_v25, %v483_v38  ;;  %v488_v35 = vmul.u32 %v486_v26, %v483_v38  ;;  %v489_v37 = vmul.u32 %v485_v25, %v4637_v39  ;;  %v490_v41 = vmul.u32 %v486_v26, %v4637_v39 }
 0x525   :  { %v509_v43 = vmul.u32 %v507_v27, %v483_v38  ;;  %v510_v45 = vmul.u32 %v508_v28, %v483_v38  ;;  %v511_v36 = vmul.u32 %v507_v27, %v4637_v39  ;;  %v512_v42 = vmul.u32 %v508_v28, %v4637_v39 }
 0x526   :  { %v491_v47 = vshll.u32 %v488_v35, 16  ;;  %v492_v49 = vshrl.u32 %v488_v35, 16  ;;  %v493_v51 = vshll.u32 %v489_v37, 16  ;;  %v494_v52 = vshrl.u32 %v489_v37, 16 }
 0x527   :  { %v513_v53 = vshll.u32 %v510_v45, 16  ;;  %v514_v44 = vshrl.u32 %v510_v45, 16  ;;  %v515_v54 = vshll.u32 %v511_v36, 16  ;;  %v516_v46 = vshrl.u32 %v511_v36, 16 }
 0x528   :  { %vm495_vm14 = vc.u32 %v487_v34, %v491_v47  ;;  %v497_v55 = vadd.s32 %v491_v47, %v487_v34  ;;  %v2172_v58 = vor.u32 %v2171_v32, %v2170_v30  ;;  %v2174_v60 = vshrl.u32 %v4522_v48, %v2165_v12 }
 0x529   :  { %v496_v59 = vsel %vm495_vm14, 1, %v4518_v5  ;;  %vm517_vm15 = vc.u32 %v509_v43, %v513_v53  ;;  %v519_v38 = vadd.s32 %v513_v53, %v509_v43  ;;  %v2176_v63 = vshll.u32 %v4522_v48, %v2164_v2 }
 0x52a   :  { %v498_v61 = vadd.s32 %v496_v59, %v490_v41  ;;  %vm499_vm0 = vc.u32 %v497_v55, %v493_v51  ;;  %v518_v39 = vsel %vm517_vm15, 1, %v4518_v5  ;;  %v2175_v8 = vor.u32 %v2174_v60, %v2173_v33 }
 0x52b   :  { %v500_v0 = vsel %vm499_vm0, 1, %v4518_v5  ;;  %v520_v1 = vadd.s32 %v518_v39, %v512_v42  ;;  %vm521_vm1 = vc.u32 %v519_v38, %v515_v54  ;;  %v4669_v3 = vadd.s32 %v519_v38, %v515_v54 }
 0x52c   :  { %v502_v6 = vadd.s32 %v500_v0, %v498_v61  ;;  %v522_v7 = vsel %vm521_vm1, 1, %v4518_v5  ;;  %v2177_v9 = vshrl.u32 %v4523_v50, %v2165_v12  ;;  %v2179_v11 = vshll.u32 %v4523_v50, %v2164_v2 }
 0x52d   :  { %v524_v10 = vadd.s32 %v522_v7, %v520_v1  ;;  %v2180_v14 = vshrl.u32 %v4524_v57, %v2165_v12  ;;  %vm2182_vm2 = vcmp.lt.s32.totalorder %v4656_v16, 1  ;;  %vm2183_vm3 = vcmp.lt.s32.totalorder %v4656_v16, 2 }
 0x52e   :  { %v503_v48 = vadd.s32 %v502_v6, %v492_v49  ;;  %v2178_v15 = vor.u32 %v2177_v9, %v2176_v63  ;;  %vm2184_vm4 = vcmp.lt.s32.totalorder %v4656_v16, 3  ;;  %vm2185_vm5 = vcmp.lt.s32.totalorder %v4656_v16, 4 }
 0x52f   :  { %v525_v17 = vadd.s32 %v524_v10, %v514_v44  ;;  %v2181_v19 = vor.u32 %v2180_v14, %v2179_v11  ;;  %v2186_v23 = vsel %vm2182_vm2, %v2166_v22, %v2169_v56  ;;  %v2187_v50 = vsel %vm2185_vm5, %v2175_v8, 2102212464 }
 0x530   :  { %v4681_v25 = vadd.s32 %v503_v48, %v494_v52  ;;  %v2190_v57 = vsel %vm2182_vm2, %v2169_v56, %v2172_v58  ;;  %v2191_v2 = vsel %vm2185_vm5, %v2178_v15, 920167782  ;;  %v2188_v26 = vsel %vm2184_vm4, %v2172_v58, %v2187_v50 }
 0x531   :  { %v526_v12 = vadd.s32 %v525_v17, %v516_v46  ;;  %v2192_v27 = vsel %vm2184_vm4, %v2175_v8, %v2191_v2  ;;  %v2194_v28 = vsel %vm2182_vm2, %v2172_v58, %v2175_v8  ;;  %v4695_v22 = vsel %vm2183_vm3, %v2186_v23, %v2188_v26 }
 0x532   :  { %vm529_vm6 = vc.u32 %v4681_v25, %v4669_v3  ;;  %v2193_v29 = vsel %vm2183_vm3, %v2190_v57, %v2192_v27  ;;  %v2199_v30 = vand.u32 65535, %v4639_v40  ;;  %v2195_v33 = vsel %vm2185_vm5, %v2181_v19, 1326507024 }
 0x533   :  { %v530_v32 = vadd.s32 1, %v526_v12  ;;  %v2223_v34 = vand.u32 65535, %v2193_v29  ;;  %v2224_v35 = vshrl.u32 %v2193_v29, 16  ;;  %v527_v37 = vmul.u32 %v4633_v31, %v4652_v13 }
 0x534   :  { %v2196_v41 = vsel %vm2184_vm4, %v2178_v15, %v2195_v33  ;;  %v2200_v36 = vshrl.u32 %v4639_v40, 16  ;;  %v2243_v33 = vmul.u32 %v4639_v40, %v4695_v22  ;;  %vm436_vm15 = vcmp.lt.s32.totalorder %v4620_v18, 0 }
 0x535   :  { %v531_v43 = vsel %vm529_vm6, %v530_v32, %v526_v12  ;;  %v2197_v45 = vsel %vm2183_vm3, %v2194_v28, %v2196_v41  ;;  %v2226_v42 = vmul.u32 %v2224_v35, %v2199_v30  ;;  %v2225_v52 = vmul.u32 %v2223_v34, %v2199_v30 }
 0x536   :  { %v532_v47 = vadd.s32 %v531_v43, %v527_v37  ;;  %v2201_v49 = vand.u32 65535, %v2197_v45  ;;  %v2202_v51 = vshrl.u32 %v2197_v45, 16  ;;  %v2227_v53 = vmul.u32 %v2223_v34, %v2200_v36 }
 0x537   :  { %v2229_v44 = vshll.u32 %v2226_v42, 16  ;;  %v2228_v58 = vmul.u32 %v2224_v35, %v2200_v36  ;;  %v2230_v48 = vshrl.u32 %v2226_v42, 16  ;;  %v528_v34 = vadd.s32 %v4669_v3, %v4681_v25 }
 0x538   :  { %v533_v54 = vadd.s32 536870912, %v532_v47  ;;  %v2204_v46 = vmul.u32 %v2202_v51, %v2199_v30  ;;  %v2205_v55 = vmul.u32 %v2201_v49, %v2200_v36  ;;  %v2203_v13 = vmul.u32 %v2201_v49, %v2199_v30 }
 0x539   :  { %vm2233_vm7 = vc.u32 %v2225_v52, %v2229_v44  ;;  %v2206_v16 = vmul.u32 %v2202_v51, %v2200_v36  ;;  %v2231_v59 = vshll.u32 %v2227_v53, 16  ;;  %v2235_v60 = vadd.s32 %v2229_v44, %v2225_v52 }
 0x53a   :  { %v4707_v31 = vshrl.u32 %v533_v54, 30  ;;  %v2207_v56 = vshll.u32 %v2204_v46, 16  ;;  %v2234_v38 = vsel %vm2233_vm7, 1, %v4518_v5  ;;  %v2209_v39 = vshll.u32 %v2205_v55, 16 }
 0x53b   :  { %v2236_v1 = vadd.s32 %v2234_v38, %v2228_v58  ;;  %vm2237_vm9 = vc.u32 %v2235_v60, %v2231_v59  ;;  %v2208_v11 = vshrl.u32 %v2204_v46, 16  ;;  %v2232_v19 = vshrl.u32 %v2227_v53, 16 }
 0x53c   :  { %v535_v61 = vshll.u32 %v4707_v31, 30  ;;  %vm2211_vm8 = vc.u32 %v2203_v13, %v2207_v56  ;;  %v2213_v63 = vadd.s32 %v2207_v56, %v2203_v13  ;;  %v2238_v9 = vsel %vm2237_vm9, 1, %v4518_v5 }
 0x53d   :  { %v2212_v0 = vsel %vm2211_vm8, 1, %v4518_v5  ;;  %v2240_v15 = vadd.s32 %v2238_v9, %v2236_v1  ;;  %v2210_v50 = vshrl.u32 %v2205_v55, 16  ;;  %v2239_v27 = vadd.s32 %v2235_v60, %v2231_v59 }
 0x53e   :  { %v536_v6 = vsub.s32 %v532_v47, %v535_v61  ;;  %v2214_v7 = vadd.s32 %v2212_v0, %v2206_v16  ;;  %vm2215_vm10 = vc.u32 %v2213_v63, %v2209_v39  ;;  %vm435_vm0 = vcmp.le.f32.partialorder %v434_v20, 0.7853982 }
 0x53f   :  { %v2216_v8 = vsel %vm2215_vm10, 1, %v4518_v5  ;;  %v2241_v2 = vadd.s32 %v2240_v15, %v2230_v48  ;;  %v558_v56 = vsub.s32 4, %v4707_v31  ;;  %vm577_vm2 = vweird.f32 %v4620_v18 }
 0x540   :  { %vm537_vm11 = vcmp.lt.s32.totalorder %v536_v6, 0  ;;  %v538_v10 = vsub.s32 0, %v536_v6  ;;  %v2218_v14 = vadd.s32 %v2216_v8, %v2214_v7  ;;  %vm2152_vm4 = vcmp.lt.s32.totalorder %v4625_v21, 0 }
 0x541   :  { %v2242_v28 = vadd.s32 %v2241_v2, %v2232_v19  ;;  %v559_v60 = vsel %vm436_vm15, %v558_v56, %v4707_v31  ;;  %vm2151_vm10 = vcmp.le.f32.partialorder %v2150_v24, 0.7853982  ;;  %v6885_v56 = vmov 2  }
 0x542   :  { %v539_v17 = vsel %vm537_vm11, %v538_v10, %v536_v6  ;;  %v2219_v57 = vadd.s32 %v2218_v14, %v2208_v11  ;;  %v561_v7 = vsel %vm435_vm0, 0, %v559_v60 }
 0x543   :  { %v540_v23 = vclz %v539_v17  ;;  %v2246_v30 = vadd.s32 1, %v2242_v28  ;;  %v732_v17 = vadd.s32 3, %v561_v7 }
 0x544   :  { %v2220_v26 = vadd.s32 %v2219_v57, %v2210_v50  ;;  %v578_v57 = vand.u32 3, %v561_v7 }
 0x545   :  { %v4055_v12 = vadd.s32 4294967294, %v540_v23 }
 0x546   :  { %v2244_v29 = vadd.s32 %v2239_v27, %v2220_v26  ;;  %vm2245_vm13 = vc.u32 %v2220_v26, %v2239_v27  ;;  %v733_v27 = vand.u32 3, %v732_v17  ;;  %vm579_vm3 = vcmp.lt.s32.totalorder %v578_v57, 2 }
 0x547   :  { %vm4056_vm12 = vcmp.lt.s32.totalorder %v4055_v12, 0  ;;  %v2247_v41 = vsel %vm2245_vm13, %v2246_v30, %v2242_v28  ;;  %vm580_vm6 = vcmp.eq.s32.totalorder %v578_v57, 0  ;;  %vm583_vm7 = vcmp.eq.s32.totalorder %v578_v57, 2 }
 0x548   :  { %v543_v32 = vsel %vm4056_vm12, 0, %v4055_v12  ;;  %v2248_v43 = vadd.s32 %v2247_v41, %v2243_v33  ;;  %vm734_vm5 = vcmp.lt.s32.totalorder %v733_v27, 2  ;;  %vm735_vm8 = vcmp.eq.s32.totalorder %v733_v27, 0 }
 0x549   :  { %v544_v35 = vsub.s32 32, %v543_v32  ;;  %v548_v37 = vsub.s32 4294967266, %v543_v32  ;;  %v545_v45 = vshll.u32 %v536_v6, %v543_v32  ;;  %vm738_vm9 = vcmp.eq.s32.totalorder %v733_v27, 2 }
 0x54a   :  { %v2249_v47 = vadd.s32 536870912, %v2248_v43  ;;  %v6859_v17 = vmov 7   ;;  %v743_v57 = vlaneseq }
 0x54b   :  { %v546_v36 = vshrl.u32 %v528_v34, %v544_v35  ;;  %v549_v42 = vadd.s32 127, %v548_v37 }
 0x54c   :  { %v4718_v52 = vshrl.u32 %v2249_v47, 30 }
 0x54d   :  { %v547_v49 = vor.u32 %v546_v36, %v545_v45  ;;  %v550_v51 = vshll.u32 %v549_v42, 23 }
 0x54e   :  { %v2251_v44 = vshll.u32 %v4718_v52, 30  ;;  %v2274_v37 = vsub.s32 4, %v4718_v52 }
 0x54f   :  { %v551_v53 = vor.u32 4788187, %v550_v51  ;;  %v554_v40 = vcvt.s32.f32 %v547_v49 }
 0x550   :  { %v2252_v22 = vsub.s32 %v2248_v43, %v2251_v44  ;;  %v2275_v24 = vsel %vm2152_vm4, %v2274_v37, %v4718_v52 }
 0x551   :  { %v552_v54 = vand.u32 2147483647, %v551_v53 }
 0x552   :  { %vm2253_vm14 = vcmp.lt.s32.totalorder %v2252_v22, 0  ;;  %v2254_v3 = vsub.s32 0, %v2252_v22 }
 0x553   :  { %v555_v46 = vmul.f32 %v554_v40, %v552_v54 }
 0x554   :  { %v2255_v55 = vsel %vm2253_vm14, %v2254_v3, %v2252_v22 }
 0x555   :  { %v556_v25 = vxor.u32 2147483648, %v555_v46  ;;  %v2256_v58 = vclz %v2255_v55 }
 0x557   :  { %v557_v13 = vsel %vm436_vm15, %v556_v25, %v555_v46  ;;  %v4188_v38 = vadd.s32 4294967294, %v2256_v58  ;;  %v2277_v46 = vsel %vm2151_vm10, 0, %v2275_v24 }
 0x558   :  { %v560_v16 = vsel %vm435_vm0, %v4620_v18, %v557_v13  ;;  %v2448_v13 = vadd.s32 3, %v2277_v46 }
 0x559   :  { %v562_v59 = vmul.f32 %v560_v16, %v560_v16  ;;  %vm4189_vm1 = vcmp.lt.s32.totalorder %v4188_v38, 0 }
 0x55a   :  { %v2259_v63 = vsel %vm4189_vm1, 0, %v4188_v38  ;;  %v2449_v60 = vand.u32 3, %v2448_v13 }
 0x55b   :  { %v563_v61 = vmul.f32 -0.001358992, %v562_v59  ;;  %v570_v39 = vmul.f32 -0.00019511016, %v562_v59  ;;  %v2260_v6 = vsub.s32 32, %v2259_v63  ;;  %v2264_v8 = vsub.s32 4294967266, %v2259_v63 }
 0x55c   :  { %v2261_v10 = vshll.u32 %v2252_v22, %v2259_v63  ;;  %vm2454_vm11 = vcmp.eq.s32.totalorder %v2449_v60, 2  ;;  %vm2451_vm13 = vcmp.eq.s32.totalorder %v2449_v60, 0  ;;  %vm2450_vm15 = vcmp.lt.s32.totalorder %v2449_v60, 2 }
 0x55d   :  { %v564_v0 = vadd.f32 0.041655596, %v563_v61  ;;  %v571_v1 = vadd.f32 0.008332121, %v570_v39  ;;  %v2262_v11 = vshrl.u32 %v2244_v29, %v2260_v6  ;;  %v2265_v14 = vadd.s32 127, %v2264_v8 }
 0x55e   :  { %v2294_v61 = vand.u32 3, %v2277_v46 }
 0x55f   :  { %v565_v20 = vmul.f32 %v564_v0, %v562_v59  ;;  %v572_v9 = vmul.f32 %v571_v1, %v562_v59  ;;  %v2263_v19 = vor.u32 %v2262_v11, %v2261_v10  ;;  %v2266_v23 = vshll.u32 %v2265_v14, 23 }
 0x560   :  { %vm2299_vm12 = vcmp.eq.s32.totalorder %v2294_v61, 2  ;;  %vm2296_vm14 = vcmp.eq.s32.totalorder %v2294_v61, 0  ;;  %vm2295_vm0 = vcmp.lt.s32.totalorder %v2294_v61, 2 }
 0x561   :  { %v566_v48 = vadd.f32 -0.4999988, %v565_v20  ;;  %v573_v15 = vadd.f32 -0.16666654, %v572_v9  ;;  %v2267_v2 = vor.u32 4788187, %v2266_v23  ;;  %v2270_v30 = vcvt.s32.f32 %v2263_v19 }
 0x562   :  { %v6883_v20 = vmov 3   ;;  %v6861_v9 = vmov 6  }
 0x563   :  { %v567_v31 = vmul.f32 %v566_v48, %v562_v59  ;;  %v574_v50 = vmul.f32 %v573_v15, %v562_v59  ;;  %v2268_v28 = vand.u32 2147483647, %v2267_v2  ;;  %v6881_v59 = vmov 4  }
 0x564   :  { %v6863_v15 = vmov 5  }
 0x565   :  { %v568_v12 = vadd.f32 1.0, %v567_v31  ;;  %v575_v26 = vadd.f32 1.0, %v574_v50  ;;  %v2271_v29 = vmul.f32 %v2270_v30, %v2268_v28 }
 0x567   :  { %v576_v32 = vmul.f32 %v575_v26, %v560_v16  ;;  %v584_v33 = vxor.u32 2147483648, %v568_v12  ;;  %v2272_v35 = vxor.u32 2147483648, %v2271_v29 }
 0x569   :  { %v581_v34 = vxor.u32 2147483648, %v576_v32  ;;  %v740_v43 = vsel %vm738_vm9, %v584_v33, %v576_v32  ;;  %v585_v36 = vsel %vm583_vm7, %v584_v33, %v576_v32  ;;  %v2273_v49 = vsel %vm2152_vm4, %v2272_v35, %v2271_v29 }
 0x56a   :  { %v2276_v44 = vsel %vm2151_vm10, %v4625_v21, %v2273_v49 }
 0x56b   :  { %v737_v41 = vsel %vm735_vm8, %v568_v12, %v581_v34  ;;  %v582_v45 = vsel %vm580_vm6, %v568_v12, %v581_v34  ;;  %v2278_v54 = vmul.f32 %v2276_v44, %v2276_v44  ;;  %v4783_v12 = vand.u32 127, %v743_v57 }
 0x56c   :  { %v741_v42 = vsel %vm734_vm5, %v737_v41, %v740_v43  ;;  %v586_v47 = vsel %vm579_vm3, %v582_v45, %v585_v36 }
 0x56d   :  { %v4737_v51 = vsel %vm577_vm2, nan, %v741_v42  ;;  %v4741_v53 = vsel %vm577_vm2, nan, %v586_v47  ;;  %v2279_v40 = vmul.f32 -0.001358992, %v2278_v54  ;;  %v2286_v22 = vmul.f32 -0.00019511016, %v2278_v54 }
 0x56e   :  { %859 = vperm.xlu1 %4309, %v4737_v51   ;;  %848 = vperm.xlu2 %4307, %v4737_v51   ;;  %v4786_v26 = vadd.s32 128, %v4783_v12  ;;  %v780_v28 = vshra.s32 %v4783_v12, 6  ;;  %v786_v32 = vshra.s32 %v4783_v12, 7  ;;  %v774_v34 = vshra.s32 %v4783_v12, 5 }
 0x56f   :  { %853 = vperm.xlu0 %4308, %v4741_v53   ;;  %v2280_v3 = vadd.f32 0.041655596, %v2279_v40  ;;  %v2287_v18 = vadd.f32 0.008332121, %v2286_v22  ;;  %v768_v36 = vshra.s32 %v4783_v12, 4  ;;  %v756_v22 = vshra.s32 %v4783_v12, 2 }
 0x570   :  { %v781_v30 = vshra.s32 %v4786_v26, 6  ;;  %v775_v35 = vshra.s32 %v4786_v26, 5  ;;  %v4794_v37 = vand.u32 1, %v780_v28  ;;  %v4798_v43 = vand.u32 1, %v786_v32 }
 0x571   :  { %v2281_v25 = vmul.f32 %v2280_v3, %v2278_v54  ;;  %v2288_v55 = vmul.f32 %v2287_v18, %v2278_v54  ;;  %v769_v42 = vshra.s32 %v4786_v26, 4  ;;  %v4804_v47 = vand.u32 1, %v774_v34 }
 0x572   :  { %v4796_v41 = vand.u32 1, %v781_v30  ;;  %v4806_v49 = vand.u32 1, %v775_v35  ;;  %vm784_vm1 = vcmp.eq.s32.totalorder %v4794_v37, 1  ;;  %vm790_vm3 = vcmp.eq.s32.totalorder %v4798_v43, 1 }
 0x573   :  { %v2282_v58 = vadd.f32 -0.4999988, %v2281_v25  ;;  %v2289_v16 = vadd.f32 -0.16666654, %v2288_v55  ;;  %v4820_v24 = vand.u32 1, %v769_v42  ;;  %v757_v46 = vshra.s32 %v4786_v26, 2 }
 0x574   :  { %vm6866_vm2 = vcmp.eq.s32.totalorder %v4796_v41, 1  ;;  %vm778_vm5 = vcmp.eq.s32.totalorder %v4804_v47, 1  ;;  %vm779_vm6 = vcmp.eq.s32.totalorder %v4806_v49, 1  ;;  %v750_v3 = vshra.s32 %v4783_v12, 1 }
 0x575   :  { %v2283_v52 = vmul.f32 %v2282_v58, %v2278_v54  ;;  %v2290_v38 = vmul.f32 %v2289_v16, %v2278_v54  ;;  %v4818_v54 = vand.u32 1, %v768_v36  ;;  %v751_v18 = vshra.s32 %v4786_v26, 1 }
 0x576   :  { %4312 = vset.pattern.permute.xlu1 %v6885_v56  ;;  %4310 = vset.pattern.permute.xlu2 %v6887_v4  ;;  %vm6889_vm8 = vcmp.eq.s32.totalorder %v4820_v24, 1  ;;  %v954_v32 = vstv %s4832_s9  ;;  %s4534_s9 = smov 16  }
 0x577   :  { %4315 = vset.pattern.permute.xlu0 %v6881_v59  ;;  %875 = vperm.xlu1 %4312, %v4741_v53   ;;  %v2284_v39 = vadd.f32 1.0, %v2283_v52  ;;  %v2291_v63 = vadd.f32 1.0, %v2290_v38  ;;  %vm6890_vm7 = vcmp.eq.s32.totalorder %v4818_v54, 1 }
 0x578   :  { %863 = vperm.xlu2 %4310, %v4741_v53   ;;  %895 = vperm.xlu0 %4315, %v4737_v51  }
 0x579   :  { %v2292_v0 = vmul.f32 %v2291_v63, %v2276_v44  ;;  %v2300_v1 = vxor.u32 2147483648, %v2284_v39  ;;  %v763_v44 = vshra.s32 %v4786_v26, 3  ;;  %v4858_v63 = vand.u32 1, %v757_v46 }
 0x57a   :  { %v950_v46 = vstv %s4866_s13  ;;  %s4088_s13 = sld [smem:[#allocation7 + $0x6d]] }
 0x57b   :  { %v2297_v6 = vxor.u32 2147483648, %v2292_v0  ;;  %v2456_v7 = vsel %vm2454_vm11, %v2300_v1, %v2292_v0  ;;  %v2301_v8 = vsel %vm2299_vm12, %v2300_v1, %v2292_v0  ;;  %v4846_v38 = vand.u32 1, %v763_v44 }
 0x57c   :  { %vm6879_vm12 = vcmp.eq.s32.totalorder %v4858_v63, 1 }
 0x57d   :  { %v2453_v10 = vsel %vm2451_vm13, %v2284_v39, %v2297_v6  ;;  %v2298_v11 = vsel %vm2296_vm14, %v2284_v39, %v2297_v6  ;;  %v4856_v39 = vand.u32 1, %v756_v22  ;;  %v4862_v6 = vand.u32 1, %v750_v3 }
 0x57e   :  { %v4761_v14 = vsel %vm2450_vm15, %v2453_v10, %v2456_v7  ;;  %v4763_v48 = vsel %vm2295_vm0, %v2298_v11, %v2301_v8  ;;  %v4864_v7 = vand.u32 1, %v751_v18  ;;  %v746_v11 = vand.u32 1, %v4783_v12 }
 0x57f   :  { %4314 = vset.pattern.permute.xlu1 %v6883_v20  ;;  %vm6891_vm10 = vcmp.eq.s32.totalorder %v4846_v38, 1  ;;  %vm6880_vm11 = vcmp.eq.s32.totalorder %v4856_v39, 1  ;;  %vm6878_vm13 = vcmp.eq.s32.totalorder %v4862_v6, 1  ;;  %v951_v3 = vstv %s4860_s12  ;;  %s4085_s12 = sld [smem:[#allocation7 + $0xe]] }
 0x580   :  { %4311 = vset.pattern.permute.xlu2 %v6885_v56  ;;  %4320 = vset.pattern.permute.xlu0 %v6861_v9  ;;  %vm6877_vm14 = vcmp.eq.s32.totalorder %v4864_v7, 1  ;;  %vm4890_vm15 = vcmp.eq.s32.totalorder %v746_v11, 1 }
 0x581   :  { %887 = vperm.xlu1 %4314, %v4741_v53   ;;  %871 = vperm.xlu2 %4311, %v4737_v51  }
 0x582   :  { %923 = vperm.xlu0 %4320, %v4741_v53  }
 0x589   :  { %4317 = vset.pattern.permute.xlu1 %v6863_v15  ;;  %4313 = vset.pattern.permute.xlu2 %v6883_v20 }
 0x58a   :  { %907 = vperm.xlu1 %4317, %v4737_v51   ;;  %883 = vperm.xlu2 %4313, %v4737_v51  }
 0x58b   :  { %4323 = vset.pattern.permute.xlu0 %v4518_v5 }
 0x592   :  { %4319 = vset.pattern.permute.xlu1 %v6861_v9  ;;  %4316 = vset.pattern.permute.xlu2 %v6881_v59 }
 0x593   :  { %919 = vperm.xlu1 %4319, %v4737_v51   ;;  %899 = vperm.xlu2 %4316, %v4741_v53  }
 0x59b   :  { %4322 = vset.pattern.permute.xlu1 %v6859_v17  ;;  %4318 = vset.pattern.permute.xlu2 %v6863_v15 }
 0x59c   :  { %935 = vperm.xlu1 %4322, %v4741_v53   ;;  %911 = vperm.xlu2 %4318, %v4741_v53   ;;  %v762_v53 = vshra.s32 %v4783_v12, 3 }
 0x59e   :  { %v4844_v52 = vand.u32 1, %v762_v53 }
 0x5a0   :  { %vm766_vm9 = vcmp.eq.s32.totalorder %v4844_v52, 1 }
 0x5a4   :  { %4321 = vset.pattern.permute.xlu2 %v6859_v17  ;;  %4325 = vset.pattern.permute.xlu1 %v4518_v5 }
 0x5a5   :  { %931 = vperm.xlu2 %4321, %v4737_v51  }
 0x5ad   :  { %4324 = vset.pattern.permute.xlu2 %v4518_v5  ;;  %v787_v5 = vshra.s32 %v4786_v26, 7 }
 0x5af   :  { %v4800_v45 = vand.u32 1, %v787_v5  ;;  %v955_v5 = vstv %s4814_s4  ;;  %s4086_s4 = sld [smem:[#allocation7 + $0xf]] }
 0x5b1   :  { %vm6858_vm4 = vcmp.eq.s32.totalorder %v4800_v45, 1 }
 0x5c8   :  { %v849_v19 = vpop.permute.xlu2 %848 }
 0x5d2   :  { %v864_v23 = vpop.permute.xlu2 %863 }
 0x5db   :  { %v872_v50 = vpop.permute.xlu2 %871 }
 0x5e0   :  { %v860_v31 = vpop.permute.xlu1 %859 }
 0x5e1   :  { %v854_v29 = vpop.permute.xlu0 %853  ;;  %v866_v25 = vsel %vm784_vm1, %v860_v31, %v864_v23  ;;  %v867_v55 = vsel %vm6866_vm2, %v860_v31, %v864_v23 }
 0x5e2   :  { %v856_v13 = vsel %vm790_vm3, %v849_v19, %v854_v29  ;;  %v857_v58 = vsel %vm6858_vm4, %v849_v19, %v854_v29  ;;  %v747_v19 = vand.u32 1, %v4786_v26  ;;  %v963_v29 = vstv %s4822_s29  ;;  %s5025_s29 = sld [smem:[#allocation7 + $0x6c]] }
 0x5e3   :  { %v868_v0 = vmul.f32 %v866_v25, %v856_v13  ;;  %v869_v1 = vmul.f32 %v867_v55, %v857_v58  ;;  %v956_v25 = vsel %vm790_vm3, %v954_v32, %v955_v5  ;;  %v958_v58 = vstv %s4876_s16  ;;  %s4091_s16 = sld [smem:[#allocation7 + $0x10]] }
 0x5e4   :  { %v884_v27 = vpop.permute.xlu2 %883  ;;  %vm4896_vm0 = vcmp.eq.s32.totalorder %v747_v19, 1 }
 0x5e9   :  { %v876_v2 = vpop.permute.xlu1 %875 }
 0x5ea   :  { %v896_v16 = vpop.permute.xlu0 %895  ;;  %v878_v60 = vsel %vm778_vm5, %v872_v50, %v876_v2  ;;  %v879_v61 = vsel %vm779_vm6, %v872_v50, %v876_v2 }
 0x5eb   :  { %v880_v23 = vmul.f32 %v878_v60, %v868_v0  ;;  %v881_v31 = vmul.f32 %v879_v61, %v869_v1  ;;  %v995_v60 = vstv %s4850_s11  ;;  %v996_v61 = vstv %s4842_s10  ;;  %s4535_s10 = smov 112   ;;  %s4084_s11 = sld [smem:[#allocation7 + $0xd]] }
 0x5ec   :  { %v953_v0 = vsel %vm6858_vm4, %v950_v46, %v951_v3  ;;  %v952_v1 = vsel %vm790_vm3, %v950_v46, %v951_v3  ;;  %v998_v3 = vsel %vm6866_vm2, %v995_v60, %v996_v61 }
 0x5ed   :  { %v4808_v51 = vpop.permute.xlu2 %899 }
 0x5ee   :  { %v902_v34 = vsel %vm766_vm9, %v896_v16, %v4808_v51  ;;  %v903_v35 = vsel %vm6891_vm10, %v896_v16, %v4808_v51  ;;  %v959_v16 = vstv %s4874_s15  ;;  %s4089_s15 = sld [smem:[#allocation7 + $0x6e]] }
 0x5f3   :  { %v888_v33 = vpop.permute.xlu1 %887 }
 0x5f4   :  { %v890_v8 = vsel %vm6890_vm7, %v884_v27, %v888_v33  ;;  %v891_v10 = vsel %vm6889_vm8, %v884_v27, %v888_v33  ;;  %v962_v33 = vstv %s4826_s30  ;;  %v924_v53 = vpop.permute.xlu0 %923  ;;  %s5027_s30 = sld [smem:[#allocation7 + $0x6f]] }
 0x5f5   :  { %v892_v2 = vmul.f32 %v890_v8, %v880_v23  ;;  %v893_v27 = vmul.f32 %v891_v10, %v881_v31  ;;  %v964_v55 = vsel %vm790_vm3, %v962_v33, %v963_v29 }
 0x5f6   :  { %v912_v50 = vpop.permute.xlu2 %911 }
 0x5f7   :  { %v904_v44 = vmul.f32 %v902_v34, %v892_v2  ;;  %v905_v22 = vmul.f32 %v903_v35, %v893_v27  ;;  %v961_v34 = vsel %vm6858_vm4, %v958_v58, %v959_v16  ;;  %v960_v35 = vsel %vm790_vm3, %v958_v58, %v959_v16 }
 0x5fc   :  { %v908_v40 = vpop.permute.xlu1 %907 }
 0x5fd   :  { %v914_v36 = vsel %vm6880_vm11, %v908_v40, %v912_v50  ;;  %v915_v42 = vsel %vm6879_vm12, %v908_v40, %v912_v50  ;;  %v999_v50 = vstv %s4884_s18  ;;  %s5091_s18 = sld [smem:[#allocation7 + $0x70]] }
 0x5fe   :  { %v916_v40 = vmul.f32 %v914_v36, %v904_v44  ;;  %v917_v13 = vmul.f32 %v915_v42, %v905_v22  ;;  %v965_v44 = vsel %vm6858_vm4, %v962_v33, %v963_v29  ;;  %v997_v22 = vsel %vm784_vm1, %v995_v60, %v996_v61 }
 0x5ff   :  { %v932_v8 = vpop.permute.xlu2 %931 }
 0x605   :  { %v920_v57 = vpop.permute.xlu1 %919 }
 0x606   :  { %v926_v18 = vsel %vm6878_vm13, %v920_v57, %v924_v53  ;;  %v927_v51 = vsel %vm6877_vm14, %v920_v57, %v924_v53  ;;  %v1000_v57 = vstv %s4880_s17  ;;  %v957_v53 = vsel %vm6858_vm4, %v954_v32, %v955_v5  ;;  %s4094_s17 = sld [smem:[#allocation7 + $0x13]] }
 0x607   :  { %v928_v10 = vmul.f32 %v926_v18, %v916_v40  ;;  %v929_v23 = vmul.f32 %v927_v51, %v917_v13  ;;  %v1001_v46 = vsel %vm784_vm1, %v999_v50, %v1000_v57  ;;  %v1002_v33 = vsel %vm6866_vm2, %v999_v50, %v1000_v57 }
 0x608   :  { %vm6865_vm4 = vcmp.lt.s32.totalorder %v4783_v12, 64 }
 0x60e   :  { %v936_v31 = vpop.permute.xlu1 %935 }
 0x60f   :  { %v938_v2 = vsel %vm4890_vm15, %v932_v8, %v936_v31  ;;  %v939_v27 = vsel %vm4896_vm0, %v932_v8, %v936_v31 }
 0x610   :  { %v940_v36 = vmul.f32 %v938_v2, %v928_v10  ;;  %v941_v42 = vmul.f32 %v939_v27, %v929_v23 }
 0x612   :  { %v972_v18 = vmul.f32 %v956_v25, %v940_v36  ;;  %v974_v51 = vmul.f32 %v964_v55, %v941_v42  ;;  %v967_v40 = vmul.f32 %v953_v0, %v941_v42  ;;  %v969_v13 = vmul.f32 %v961_v34, %v940_v36 }
 0x613   :  { %v966_v58 = vmul.f32 %v952_v1, %v940_v36  ;;  %v968_v16 = vmul.f32 %v960_v35, %v941_v42  ;;  %v973_v8 = vmul.f32 %v957_v53, %v941_v42  ;;  %v975_v32 = vmul.f32 %v965_v44, %v940_v36 }
 0x614   :  { %v976_v5 = vadd.f32 %v974_v51, %v972_v18  ;;  %v971_v10 = vadd.f32 %v969_v13, %v967_v40  ;;  %v1003_v36 = vstv %s4069_s20  ;;  %v1004_v42 = vstv %s4068_s2  ;;  %s5101_s2 = sld [smem:[#allocation7 + $0x73]]  ;;  %s4536_s20 = smov 120  }
 0x615   :  { %v970_v29 = vadd.f32 %v968_v16, %v966_v58  ;;  %v977_v23 = vadd.f32 %v975_v32, %v973_v8  ;;  %v1007_v53 = vstv %s4073_s1  ;;  %v1008_v44 = vstv %s4072_s21  ;;  %s4092_s21 = sld [smem:[#allocation7 + $0x11]] }
 0x616   :  { %1011 = vrot.lane.b32.xlu0 %v976_v5, %s4531_s19  ;;  %v4955_v31 = vmul.f32 %v1001_v46, %v976_v5  ;;  %v1033_v25 = vmul.f32 %v997_v22, %v976_v5  ;;  %988 = vrot.lane.b32.xlu1 %v971_v10, %s4531_s19  ;;  %v1020_v55 = vmul.f32 %v998_v3, %v971_v10  ;;  %v1071_v58 = vstv %s4078_s23  ;;  %s4093_s1 = sld [smem:[#allocation7 + $0x12]] }
 0x617   :  { %v1036_v60 = vmul.f32 %v1002_v33, %v971_v10  ;;  %986 = vrot.lane.b32.xlu2 %v970_v29, %s4531_s19  ;;  %v1019_v61 = vmul.f32 %v997_v22, %v970_v29  ;;  %v1035_v0 = vmul.f32 %v1001_v46, %v970_v29  ;;  %v1022_v1 = vmul.f32 %v1002_v33, %v977_v23  ;;  %s4097_s23 = sld [smem:[#allocation7 + $0x72]] }
 0x618   :  { %v1034_v2 = vmul.f32 %v998_v3, %v977_v23  ;;  %v1005_v46 = vsel %vm784_vm1, %v1003_v36, %v1004_v42  ;;  %v1006_v3 = vsel %vm6866_vm2, %v1003_v36, %v1004_v42  ;;  %v1009_v18 = vsel %vm784_vm1, %v1007_v53, %v1008_v44 }
 0x619   :  { %v1023_v50 = vsub.f32 %v1019_v61, %v4955_v31  ;;  %v1037_v57 = vadd.f32 %v1035_v0, %v1033_v25  ;;  %v1024_v27 = vsub.f32 %v1020_v55, %v1022_v1  ;;  %v1010_v51 = vsel %vm6866_vm2, %v1007_v53, %v1008_v44 }
 0x61a   :  { %v1038_v34 = vadd.f32 %v1036_v60, %v1034_v2  ;;  %v1072_v16 = vstv %s4961_s22  ;;  %v1075_v8 = vstv %s4965_s25  ;;  %v1076_v32 = vstv %s4963_s24  ;;  %s4096_s22 = sld [smem:[#allocation7 + $0x71]] }
 0x61b   :  { %v1073_v0 = vsel %vm778_vm5, %v1071_v58, %v1072_v16  ;;  %v1074_v1 = vsel %vm779_vm6, %v1071_v58, %v1072_v16  ;;  %v1077_v36 = vsel %vm778_vm5, %v1075_v8, %v1076_v32  ;;  %v1078_v42 = vsel %vm779_vm6, %v1075_v8, %v1076_v32  ;;  %s4099_s24 = sld [smem:[#allocation7 + $0x14]] }
 0x61c   :  { %s4102_s25 = sld [smem:[#allocation7 + $0x17]] }
 0x61f   :  { %1013 = vrot.lane.b32.xlu2 %v977_v23, %s4531_s19 }
 0x671   :  { %v987_v35 = vpop.permute.xlu2 %986 }
 0x679   :  { %v1014_v22 = vpop.permute.xlu2 %1013 }
 0x688   :  { %v1012_v40 = vpop.permute.xlu0 %1011  ;;  %v989_v13 = vpop.permute.xlu1 %988 }
 0x689   :  { %v1015_v5 = vsel %vm6865_vm4, %v1012_v40, %v1014_v22  ;;  %v1016_v10 = vsel %vm6865_vm4, %v1014_v22, %v1012_v40  ;;  %v991_v33 = vsel %vm6865_vm4, %v987_v35, %v989_v13  ;;  %v992_v29 = vsel %vm6865_vm4, %v989_v13, %v987_v35 }
 0x68a   :  { %v1017_v23 = vsel %vm784_vm1, %v1016_v10, %v1015_v5  ;;  %v1018_v31 = vsel %vm6866_vm2, %v1015_v5, %v1016_v10  ;;  %v993_v25 = vsel %vm784_vm1, %v992_v29, %v991_v33  ;;  %v994_v55 = vsel %vm6866_vm2, %v991_v33, %v992_v29 }
 0x68b   :  { %v1039_v60 = vmul.f32 %v1017_v23, %v1005_v46  ;;  %v1040_v61 = vmul.f32 %v1018_v31, %v1006_v3  ;;  %v1025_v2 = vmul.f32 %v1005_v46, %v993_v25  ;;  %v1026_v35 = vmul.f32 %v1006_v3, %v994_v55 }
 0x68c   :  { %v1043_v22 = vmul.f32 %v1009_v18, %v993_v25  ;;  %v1044_v40 = vmul.f32 %v1010_v51, %v994_v55  ;;  %v1029_v13 = vmul.f32 %v1017_v23, %v1009_v18  ;;  %v1030_v5 = vmul.f32 %v1018_v31, %v1010_v51 }
 0x68d   :  { %v1041_v53 = vadd.f32 %v1039_v60, %v1037_v57  ;;  %v1042_v44 = vadd.f32 %v1040_v61, %v1038_v34  ;;  %v1027_v10 = vadd.f32 %v1025_v2, %v1023_v50  ;;  %v1028_v33 = vadd.f32 %v1026_v35, %v1024_v27 }
 0x68e   :  { %vm6868_vm4 = vcmp.lt.s32.totalorder %v4783_v12, 96  ;;  %vm6867_vm2 = vcmp.lt.s32.totalorder %v4783_v12, 32 }
 0x68f   :  { %v1045_v29 = vadd.f32 %v1043_v22, %v1041_v53  ;;  %v1046_v17 = vadd.f32 %v1044_v40, %v1042_v44  ;;  %v1032_v9 = vsub.f32 %v1028_v33, %v1030_v5  ;;  %v1031_v58 = vsub.f32 %v1027_v10, %v1029_v13 }
 0x690   :  { %v1083_v53 = vstv %s4081_s0  ;;  %v1084_v44 = vstv %s4080_s6  ;;  %v1153_v22 = vstv %s4086_s4  ;;  %v1154_v40 = vstv %s5021_s28  ;;  %s4537_s6 = smov 4   ;;  %s4538_s0 = smov 124  }
 0x691   :  { %v5003_v46 = vmul.f32 %v1077_v36, %v1045_v29  ;;  %v5005_v3 = vmul.f32 %v1078_v42, %v1046_v17  ;;  %v1115_v16 = vmul.f32 %v1073_v0, %v1045_v29  ;;  %v1116_v15 = vmul.f32 %v1074_v1, %v1046_v17  ;;  %1057 = vrot.lane.b32.xlu0 %v1032_v9, %s4532_s26  ;;  %s4100_s28 = sld [smem:[#allocation7 + $0x15]] }
 0x692   :  { %1062 = vrot.lane.b32.xlu2 %v1031_v58, %s4533_s3  ;;  %v1102_v57 = vmul.f32 %v1074_v1, %v1032_v9  ;;  %v1101_v34 = vmul.f32 %v1073_v0, %v1031_v58  ;;  %v1118_v50 = vmul.f32 %v1078_v42, %v1032_v9  ;;  %1055 = vrot.lane.b32.xlu1 %v1031_v58, %s4532_s26  ;;  %s4101_s4 = sld [smem:[#allocation7 + $0x16]] }
 0x693   :  { %v1117_v27 = vmul.f32 %v1077_v36, %v1031_v58  ;;  %v1085_v10 = vsel %vm778_vm5, %v1083_v53, %v1084_v44  ;;  %v1086_v33 = vsel %vm779_vm6, %v1083_v53, %v1084_v44 }
 0x694   :  { %v1106_v18 = vsub.f32 %v1102_v57, %v5005_v3  ;;  %v1105_v51 = vsub.f32 %v1101_v34, %v5003_v46  ;;  %v5012_v8 = vadd.f32 %v1118_v50, %v1116_v15  ;;  %v1155_v3 = vsel %vm6890_vm7, %v1153_v22, %v1154_v40 }
 0x695   :  { %v5014_v32 = vadd.f32 %v1117_v27, %v1115_v16  ;;  %v1156_v16 = vsel %vm6889_vm8, %v1153_v22, %v1154_v40  ;;  %v1157_v57 = vstv %s5027_s30  ;;  %v1158_v34 = vstv %s5025_s29  ;;  %s4104_s29 = sld [smem:[#allocation7 + $0x75]] }
 0x696   :  { %v1159_v44 = vsel %vm6890_vm7, %v1157_v57, %v1158_v34  ;;  %v1160_v22 = vsel %vm6889_vm8, %v1157_v57, %v1158_v34  ;;  %s4105_s30 = sld [smem:[#allocation7 + $0x76]] }
 0x699   :  { %1087 = vrot.lane.b32.xlu0 %v1045_v29, %s4532_s26 }
 0x69a   :  { %1089 = vrot.lane.b32.xlu2 %v1046_v17, %s4532_s26  ;;  %1064 = vrot.lane.b32.xlu1 %v1032_v9, %s4533_s3  ;;  %v1079_v9 = vstv %s4077_s5  ;;  %s5158_s5 = sld [smem:[#allocation7 + $0x77]] }
 0x6a1   :  { %1095 = vrot.lane.b32.xlu0 %v1046_v17, %s4533_s3  ;;  %v1080_v17 = vstv %s4076_s27  ;;  %s5156_s27 = sld [smem:[#allocation7 + $0x74]] }
 0x6a2   :  { %1093 = vrot.lane.b32.xlu1 %v1045_v29, %s4533_s3  ;;  %v1081_v2 = vsel %vm778_vm5, %v1079_v9, %v1080_v17  ;;  %v1082_v35 = vsel %vm779_vm6, %v1079_v9, %v1080_v17 }
 0x6ec   :  { %v1063_v15 = vpop.permute.xlu2 %1062 }
 0x6f4   :  { %v1090_v58 = vpop.permute.xlu2 %1089 }
 0x703   :  { %v1058_v23 = vpop.permute.xlu0 %1057 }
 0x704   :  { %v1056_v31 = vpop.permute.xlu1 %1055 }
 0x705   :  { %v1060_v0 = vsel %vm6867_vm2, %v1056_v31, %v1058_v23  ;;  %v1061_v1 = vsel %vm6867_vm2, %v1058_v23, %v1056_v31 }
 0x70b   :  { %v1088_v25 = vpop.permute.xlu0 %1087 }
 0x70c   :  { %v1065_v55 = vpop.permute.xlu1 %1064  ;;  %v1091_v50 = vsel %vm6867_vm2, %v1088_v25, %v1090_v58  ;;  %v1092_v27 = vsel %vm6867_vm2, %v1090_v58, %v1088_v25  ;;  %vm6869_vm2 = vcmp.lt.s32.totalorder %v4783_v12, 16 }
 0x70d   :  { %v1067_v60 = vsel %vm6868_vm4, %v1063_v15, %v1065_v55  ;;  %v1068_v61 = vsel %vm6868_vm4, %v1065_v55, %v1063_v15 }
 0x70e   :  { %v1069_v36 = vsel %vm778_vm5, %v1061_v1, %v1067_v60  ;;  %v1070_v42 = vsel %vm779_vm6, %v1060_v0, %v1068_v61 }
 0x70f   :  { %v1107_v13 = vmul.f32 %v1081_v2, %v1069_v36  ;;  %v1108_v5 = vmul.f32 %v1082_v35, %v1070_v42  ;;  %v1125_v53 = vmul.f32 %v1085_v10, %v1069_v36  ;;  %v1126_v25 = vmul.f32 %v1086_v33, %v1070_v42 }
 0x711   :  { %v1109_v15 = vadd.f32 %v1107_v13, %v1105_v51  ;;  %v1110_v9 = vadd.f32 %v1108_v5, %v1106_v18 }
 0x713   :  { %v1096_v29 = vpop.permute.xlu0 %1095 }
 0x714   :  { %v1094_v46 = vpop.permute.xlu1 %1093 }
 0x715   :  { %v1097_v23 = vsel %vm6868_vm4, %v1094_v46, %v1096_v29  ;;  %v1098_v31 = vsel %vm6868_vm4, %v1096_v29, %v1094_v46  ;;  %vm6870_vm4 = vcmp.lt.s32.totalorder %v4783_v12, 112 }
 0x716   :  { %v1099_v17 = vsel %vm778_vm5, %v1092_v27, %v1097_v23  ;;  %v1100_v55 = vsel %vm779_vm6, %v1091_v50, %v1098_v31  ;;  %v1161_v23 = vstv %s4085_s12  ;;  %v1162_v31 = vstv %s4084_s11  ;;  %s5219_s11 = sld [smem:[#allocation7 + $0x18]] }
 0x717   :  { %v1111_v60 = vmul.f32 %v1099_v17, %v1085_v10  ;;  %v1112_v61 = vmul.f32 %v1100_v55, %v1086_v33  ;;  %v1121_v0 = vmul.f32 %v1099_v17, %v1081_v2  ;;  %v1122_v1 = vmul.f32 %v1100_v55, %v1082_v35  ;;  %s4110_s12 = sld [smem:[#allocation7 + $0x1b]] }
 0x719   :  { %v1123_v18 = vadd.f32 %v1121_v0, %v5014_v32  ;;  %v1124_v51 = vadd.f32 %v1122_v1, %v5012_v8  ;;  %v1114_v40 = vsub.f32 %v1110_v9, %v1112_v61  ;;  %v1113_v13 = vsub.f32 %v1109_v15, %v1111_v60 }
 0x71a   :  { %v1163_v61 = vsel %vm6890_vm7, %v1161_v23, %v1162_v31  ;;  %v1164_v0 = vsel %vm6889_vm8, %v1161_v23, %v1162_v31 }
 0x71b   :  { %1139 = vrot.lane.b32.xlu1 %v1114_v40, %s4534_s9  ;;  %1144 = vrot.lane.b32.xlu0 %v1113_v13, %s4535_s10  ;;  %v1127_v2 = vadd.f32 %v1125_v53, %v1123_v18  ;;  %v1128_v35 = vadd.f32 %v1126_v25, %v1124_v51  ;;  %v5077_v36 = vmul.f32 %v1156_v16, %v1114_v40  ;;  %v1165_v25 = vstv %s4089_s15  ;;  %s5225_s15 = sld [smem:[#allocation7 + $0x7b]] }
 0x71c   :  { %1137 = vrot.lane.b32.xlu2 %v1113_v13, %s4534_s9  ;;  %v1183_v42 = vmul.f32 %v1155_v3, %v1113_v13  ;;  %v1200_v5 = vmul.f32 %v1160_v22, %v1114_v40  ;;  %v1199_v10 = vmul.f32 %v1159_v44, %v1113_v13  ;;  %v1236_v18 = vstv %s4091_s16  ;;  %s4539_s16 = smov 2  }
 0x71d   :  { %v1185_v32 = vmul.f32 %v1159_v44, %v1127_v2  ;;  %v1186_v33 = vmul.f32 %v1160_v22, %v1128_v35  ;;  %v1198_v8 = vmul.f32 %v1156_v16, %v1128_v35  ;;  %v1197_v29 = vmul.f32 %v1155_v3, %v1127_v2 }
 0x71e   :  { %v1166_v44 = vstv %s4088_s13  ;;  %v1235_v22 = vstv %s4094_s17  ;;  %s5223_s13 = sld [smem:[#allocation7 + $0x78]]  ;;  %s4540_s17 = smov 126  }
 0x71f   :  { %v1188_v58 = vsub.f32 %v5077_v36, %v1186_v33  ;;  %v1187_v46 = vsub.f32 %v1183_v42, %v1185_v32  ;;  %v5080_v57 = vadd.f32 %v1200_v5, %v1198_v8  ;;  %v5082_v34 = vadd.f32 %v1199_v10, %v1197_v29 }
 0x720   :  { %v1237_v5 = vsel %vm766_vm9, %v1235_v22, %v1236_v18  ;;  %v1238_v10 = vsel %vm6891_vm10, %v1235_v22, %v1236_v18  ;;  %v1239_v32 = vstv %s5101_s2  ;;  %v1240_v33 = vstv %s5091_s18  ;;  %s4108_s18 = sld [smem:[#allocation7 + $0x19]] }
 0x721   :  { %v1242_v22 = vsel %vm6891_vm10, %v1239_v32, %v1240_v33  ;;  %s4109_s2 = sld [smem:[#allocation7 + $0x1a]] }
 0x723   :  { %1169 = vrot.lane.b32.xlu1 %v1127_v2, %s4534_s9  ;;  %1171 = vrot.lane.b32.xlu0 %v1128_v35, %s4534_s9 }
 0x724   :  { %1146 = vrot.lane.b32.xlu2 %v1114_v40, %s4535_s10 }
 0x72b   :  { %1177 = vrot.lane.b32.xlu1 %v1128_v35, %s4535_s10  ;;  %v1168_v35 = vsel %vm6889_vm8, %v1165_v25, %v1166_v44 }
 0x72c   :  { %1175 = vrot.lane.b32.xlu2 %v1127_v2, %s4535_s10  ;;  %v1167_v2 = vsel %vm6890_vm7, %v1165_v25, %v1166_v44  ;;  %v1241_v44 = vsel %vm766_vm9, %v1239_v32, %v1240_v33 }
 0x776   :  { %v1138_v50 = vpop.permute.xlu2 %1137 }
 0x77e   :  { %v1147_v27 = vpop.permute.xlu2 %1146 }
 0x786   :  { %v1176_v36 = vpop.permute.xlu2 %1175 }
 0x78d   :  { %v1140_v3 = vpop.permute.xlu1 %1139  ;;  %v1145_v16 = vpop.permute.xlu0 %1144 }
 0x78e   :  { %v1142_v15 = vsel %vm6869_vm2, %v1138_v50, %v1140_v3  ;;  %v1143_v9 = vsel %vm6869_vm2, %v1140_v3, %v1138_v50  ;;  %v1149_v17 = vsel %vm6870_vm4, %v1145_v16, %v1147_v27  ;;  %v1150_v55 = vsel %vm6870_vm4, %v1147_v27, %v1145_v16 }
 0x78f   :  { %v1151_v1 = vsel %vm6890_vm7, %v1143_v9, %v1149_v17  ;;  %v1152_v53 = vsel %vm6889_vm8, %v1142_v15, %v1150_v55 }
 0x790   :  { %v1189_v51 = vmul.f32 %v1163_v61, %v1151_v1  ;;  %v1190_v40 = vmul.f32 %v1164_v0, %v1152_v53  ;;  %v1207_v25 = vmul.f32 %v1167_v2, %v1151_v1 }
 0x792   :  { %v1191_v16 = vadd.f32 %v1189_v51, %v1187_v46  ;;  %v1192_v27 = vadd.f32 %v1190_v40, %v1188_v58 }
 0x795   :  { %v1170_v60 = vpop.permute.xlu1 %1169  ;;  %v1172_v13 = vpop.permute.xlu0 %1171 }
 0x796   :  { %v1173_v8 = vsel %vm6869_vm2, %v1170_v60, %v1172_v13  ;;  %v1174_v29 = vsel %vm6869_vm2, %v1172_v13, %v1170_v60  ;;  %v1208_v60 = vmul.f32 %v1168_v35, %v1152_v53  ;;  %vm6871_vm2 = vcmp.lt.s32.totalorder %v4783_v12, 120 }
 0x79d   :  { %v1178_v42 = vpop.permute.xlu1 %1177 }
 0x79e   :  { %v1179_v50 = vsel %vm6870_vm4, %v1176_v36, %v1178_v42  ;;  %v1180_v3 = vsel %vm6870_vm4, %v1178_v42, %v1176_v36  ;;  %vm6872_vm4 = vcmp.lt.s32.totalorder %v4783_v12, 8 }
 0x79f   :  { %v1181_v23 = vsel %vm6890_vm7, %v1174_v29, %v1179_v50  ;;  %v1182_v31 = vsel %vm6889_vm8, %v1173_v8, %v1180_v3  ;;  %v1243_v50 = vstv %s4093_s1  ;;  %v1244_v3 = vstv %s4092_s21  ;;  %s4112_s21 = sld [smem:[#allocation7 + $0x79]] }
 0x7a0   :  { %v1193_v15 = vmul.f32 %v1181_v23, %v1167_v2  ;;  %v1194_v9 = vmul.f32 %v1182_v31, %v1168_v35  ;;  %v1203_v17 = vmul.f32 %v1181_v23, %v1163_v61  ;;  %v1204_v55 = vmul.f32 %v1182_v31, %v1164_v0  ;;  %s4113_s1 = sld [smem:[#allocation7 + $0x7a]] }
 0x7a2   :  { %v1205_v58 = vadd.f32 %v1203_v17, %v5082_v34  ;;  %v1206_v46 = vadd.f32 %v1204_v55, %v5080_v57  ;;  %v1196_v18 = vsub.f32 %v1192_v27, %v1194_v9  ;;  %v1195_v51 = vsub.f32 %v1191_v16, %v1193_v15 }
 0x7a3   :  { %v1245_v9 = vsel %vm766_vm9, %v1243_v50, %v1244_v3  ;;  %v1246_v17 = vsel %vm6891_vm10, %v1243_v50, %v1244_v3 }
 0x7a4   :  { %1221 = vrot.lane.b32.xlu2 %v1196_v18, %s4512_s14  ;;  %1226 = vrot.lane.b32.xlu1 %v1195_v51, %s4536_s20  ;;  %v1209_v61 = vadd.f32 %v1207_v25, %v1205_v58  ;;  %v1210_v0 = vadd.f32 %v1208_v60, %v1206_v46  ;;  %v5142_v1 = vmul.f32 %v1238_v10, %v1196_v18  ;;  %v1247_v60 = vstv %s4097_s23  ;;  %s4118_s23 = sld [smem:[#allocation7 + $0x1f]] }
 0x7a5   :  { %1219 = vrot.lane.b32.xlu0 %v1195_v51, %s4512_s14  ;;  %v1265_v53 = vmul.f32 %v1237_v5, %v1195_v51  ;;  %v1282_v40 = vmul.f32 %v1242_v22, %v1196_v18  ;;  %v1281_v13 = vmul.f32 %v1241_v44, %v1195_v51  ;;  %v1318_v58 = vstv %s4099_s24  ;;  %s5289_s24 = sld [smem:[#allocation7 + $0x7c]] }
 0x7a6   :  { %v1267_v2 = vmul.f32 %v1241_v44, %v1209_v61  ;;  %v1268_v34 = vmul.f32 %v1242_v22, %v1210_v0  ;;  %v1279_v35 = vmul.f32 %v1237_v5, %v1209_v61  ;;  %v1280_v57 = vmul.f32 %v1238_v10, %v1210_v0 }
 0x7a7   :  { %v1248_v44 = vstv %s4096_s22  ;;  %v1317_v22 = vstv %s4102_s25  ;;  %s4115_s22 = sld [smem:[#allocation7 + $0x1c]] }
 0x7a8   :  { %v1270_v36 = vsub.f32 %v5142_v1, %v1268_v34  ;;  %v1269_v42 = vsub.f32 %v1265_v53, %v1267_v2  ;;  %v5145_v32 = vadd.f32 %v1282_v40, %v1280_v57  ;;  %v5147_v33 = vadd.f32 %v1281_v13, %v1279_v35  ;;  %s5299_s25 = sld [smem:[#allocation7 + $0x7f]] }
 0x7a9   :  { %v1319_v40 = vsel %vm6880_vm11, %v1317_v22, %v1318_v58  ;;  %v1320_v13 = vsel %vm6879_vm12, %v1317_v22, %v1318_v58  ;;  %v1321_v2 = vstv %s5158_s5  ;;  %v1322_v34 = vstv %s5156_s27  ;;  %s4541_s27 = smov 1   ;;  %s4542_s5 = smov 127  }
 0x7aa   :  { %v1324_v22 = vsel %vm6879_vm12, %v1321_v2, %v1322_v34 }
 0x7ac   :  { %1251 = vrot.lane.b32.xlu2 %v1209_v61, %s4512_s14  ;;  %1253 = vrot.lane.b32.xlu1 %v1210_v0, %s4512_s14 }
 0x7ad   :  { %1228 = vrot.lane.b32.xlu0 %v1196_v18, %s4536_s20 }
 0x7b4   :  { %1259 = vrot.lane.b32.xlu2 %v1210_v0, %s4536_s20  ;;  %v1250_v0 = vsel %vm6891_vm10, %v1247_v60, %v1248_v44 }
 0x7b5   :  { %1257 = vrot.lane.b32.xlu0 %v1209_v61, %s4536_s20  ;;  %v1249_v61 = vsel %vm766_vm9, %v1247_v60, %v1248_v44  ;;  %v1323_v44 = vsel %vm6880_vm11, %v1321_v2, %v1322_v34 }
 0x7fe   :  { %v1222_v8 = vpop.permute.xlu2 %1221 }
 0x806   :  { %v1252_v29 = vpop.permute.xlu2 %1251 }
 0x80e   :  { %v1260_v1 = vpop.permute.xlu2 %1259 }
 0x816   :  { %v1227_v10 = vpop.permute.xlu1 %1226 }
 0x817   :  { %v1220_v5 = vpop.permute.xlu0 %1219 }
 0x818   :  { %v1224_v31 = vsel %vm6872_vm4, %v1220_v5, %v1222_v8  ;;  %v1225_v15 = vsel %vm6872_vm4, %v1222_v8, %v1220_v5 }
 0x81e   :  { %v1254_v46 = vpop.permute.xlu1 %1253 }
 0x81f   :  { %v1229_v16 = vpop.permute.xlu0 %1228  ;;  %v1255_v35 = vsel %vm6872_vm4, %v1252_v29, %v1254_v46  ;;  %v1256_v57 = vsel %vm6872_vm4, %v1254_v46, %v1252_v29  ;;  %vm6873_vm4 = vcmp.lt.s32.totalorder %v4783_v12, 4 }
 0x820   :  { %v1231_v27 = vsel %vm6871_vm2, %v1227_v10, %v1229_v16  ;;  %v1232_v23 = vsel %vm6871_vm2, %v1229_v16, %v1227_v10 }
 0x821   :  { %v1233_v55 = vsel %vm766_vm9, %v1225_v15, %v1231_v27  ;;  %v1234_v25 = vsel %vm6891_vm10, %v1224_v31, %v1232_v23 }
 0x822   :  { %v1271_v18 = vmul.f32 %v1245_v9, %v1233_v55  ;;  %v1272_v51 = vmul.f32 %v1246_v17, %v1234_v25  ;;  %v1289_v60 = vmul.f32 %v1249_v61, %v1233_v55  ;;  %v1290_v29 = vmul.f32 %v1250_v0, %v1234_v25 }
 0x824   :  { %v1273_v10 = vadd.f32 %v1271_v18, %v1269_v42  ;;  %v1274_v50 = vadd.f32 %v1272_v51, %v1270_v36 }
 0x827   :  { %v1258_v53 = vpop.permute.xlu0 %1257 }
 0x828   :  { %v1261_v8 = vsel %vm6871_vm2, %v1258_v53, %v1260_v1  ;;  %v1262_v5 = vsel %vm6871_vm2, %v1260_v1, %v1258_v53  ;;  %vm6874_vm2 = vcmp.lt.s32.totalorder %v4783_v12, 124 }
 0x829   :  { %v1263_v3 = vsel %vm766_vm9, %v1256_v57, %v1261_v8  ;;  %v1264_v16 = vsel %vm6891_vm10, %v1255_v35, %v1262_v5  ;;  %v1325_v8 = vstv %s4101_s4  ;;  %v1326_v5 = vstv %s4100_s28  ;;  %s5381_s28 = sld [smem:[#allocation7 + $0x1e]] }
 0x82a   :  { %v1275_v27 = vmul.f32 %v1263_v3, %v1249_v61  ;;  %v1276_v23 = vmul.f32 %v1264_v16, %v1250_v0  ;;  %v1285_v31 = vmul.f32 %v1263_v3, %v1245_v9  ;;  %v1286_v15 = vmul.f32 %v1264_v16, %v1246_v17  ;;  %s5384_s4 = sld [smem:[#allocation7 + $0x1d]] }
 0x82c   :  { %v1287_v36 = vadd.f32 %v1285_v31, %v5147_v33  ;;  %v1288_v42 = vadd.f32 %v1286_v15, %v5145_v32  ;;  %v1278_v58 = vsub.f32 %v1274_v50, %v1276_v23  ;;  %v1277_v46 = vsub.f32 %v1273_v10, %v1275_v27 }
 0x82d   :  { %v1327_v23 = vsel %vm6880_vm11, %v1325_v8, %v1326_v5  ;;  %v1328_v31 = vsel %vm6879_vm12, %v1325_v8, %v1326_v5 }
 0x82e   :  { %1303 = vrot.lane.b32.xlu0 %v1278_v58, %s4537_s6  ;;  %1308 = vrot.lane.b32.xlu2 %v1277_v46, %s4538_s0  ;;  %v1291_v9 = vadd.f32 %v1289_v60, %v1287_v36  ;;  %v1292_v17 = vadd.f32 %v1290_v29, %v1288_v42  ;;  %v5207_v55 = vmul.f32 %v1320_v13, %v1278_v58  ;;  %v1329_v29 = vstv %s4105_s30  ;;  %s5397_s30 = sld [smem:[#allocation7 + $0x7d]] }
 0x82f   :  { %1301 = vrot.lane.b32.xlu1 %v1277_v46, %s4537_s6  ;;  %v1347_v25 = vmul.f32 %v1319_v40, %v1277_v46  ;;  %v1364_v18 = vmul.f32 %v1324_v22, %v1278_v58  ;;  %v1363_v51 = vmul.f32 %v1323_v44, %v1277_v46  ;;  %v1400_v36 = vstv %s5219_s11  ;;  %s5401_s11 = sld [smem:[#allocation7 + $0x20]] }
 0x830   :  { %v1349_v33 = vmul.f32 %v1323_v44, %v1291_v9  ;;  %v1350_v61 = vmul.f32 %v1324_v22, %v1292_v17  ;;  %v1361_v32 = vmul.f32 %v1319_v40, %v1291_v9  ;;  %v1362_v0 = vmul.f32 %v1320_v13, %v1292_v17 }
 0x831   :  { %v1330_v44 = vstv %s4104_s29  ;;  %v1399_v22 = vstv %s4110_s12  ;;  %s5391_s29 = sld [smem:[#allocation7 + $0x7e]] }
 0x832   :  { %v1352_v1 = vsub.f32 %v5207_v55, %v1350_v61  ;;  %v1351_v53 = vsub.f32 %v1347_v25, %v1349_v33  ;;  %v5210_v2 = vadd.f32 %v1364_v18, %v1362_v0  ;;  %v5212_v34 = vadd.f32 %v1363_v51, %v1361_v32  ;;  %s5405_s12 = sld [smem:[#allocation7 + $0x21]] }
 0x833   :  { %v1331_v46 = vsel %vm6880_vm11, %v1329_v29, %v1330_v44  ;;  %v1401_v18 = vsel %vm6878_vm13, %v1399_v22, %v1400_v36  ;;  %v1402_v51 = vsel %vm6877_vm14, %v1399_v22, %v1400_v36  ;;  %v1403_v33 = vstv %s5225_s15  ;;  %s5418_s15 = sld [smem:[#allocation7 + $0x80]] }
 0x834   :  { %v1404_v61 = vstv %s5223_s13  ;;  %s5412_s13 = sld [smem:[#allocation7 + $0x23]] }
 0x835   :  { %v1406_v22 = vsel %vm6877_vm14, %v1403_v33, %v1404_v61 }
 0x836   :  { %1333 = vrot.lane.b32.xlu0 %v1291_v9, %s4537_s6  ;;  %1335 = vrot.lane.b32.xlu2 %v1292_v17, %s4537_s6 }
 0x837   :  { %1310 = vrot.lane.b32.xlu1 %v1278_v58, %s4538_s0 }
 0x83e   :  { %1341 = vrot.lane.b32.xlu0 %v1292_v17, %s4538_s0 }
 0x83f   :  { %1339 = vrot.lane.b32.xlu1 %v1291_v9, %s4538_s0  ;;  %v1332_v9 = vsel %vm6879_vm12, %v1329_v29, %v1330_v44  ;;  %v1405_v44 = vsel %vm6878_vm13, %v1403_v33, %v1404_v61 }
 0x888   :  { %v1309_v13 = vpop.permute.xlu2 %1308 }
 0x890   :  { %v1336_v55 = vpop.permute.xlu2 %1335 }
 0x8a0   :  { %v1304_v35 = vpop.permute.xlu0 %1303 }
 0x8a1   :  { %v1302_v40 = vpop.permute.xlu1 %1301 }
 0x8a2   :  { %v1306_v16 = vsel %vm6873_vm4, %v1302_v40, %v1304_v35  ;;  %v1307_v27 = vsel %vm6873_vm4, %v1304_v35, %v1302_v40 }
 0x8a8   :  { %v1334_v57 = vpop.permute.xlu0 %1333 }
 0x8a9   :  { %v1311_v10 = vpop.permute.xlu1 %1310  ;;  %v1337_v32 = vsel %vm6873_vm4, %v1334_v57, %v1336_v55  ;;  %v1338_v0 = vsel %vm6873_vm4, %v1336_v55, %v1334_v57  ;;  %vm6875_vm4 = vcmp.lt.s32.totalorder %v4783_v12, 2 }
 0x8aa   :  { %v1313_v50 = vsel %vm6874_vm2, %v1309_v13, %v1311_v10  ;;  %v1314_v3 = vsel %vm6874_vm2, %v1311_v10, %v1309_v13 }
 0x8ab   :  { %v1315_v15 = vsel %vm6880_vm11, %v1307_v27, %v1313_v50  ;;  %v1316_v60 = vsel %vm6879_vm12, %v1306_v16, %v1314_v3 }
 0x8ac   :  { %v1353_v42 = vmul.f32 %v1327_v23, %v1315_v15  ;;  %v1354_v58 = vmul.f32 %v1328_v31, %v1316_v60  ;;  %v1371_v29 = vmul.f32 %v1331_v46, %v1315_v15  ;;  %v1372_v57 = vmul.f32 %v1332_v9, %v1316_v60 }
 0x8ae   :  { %v1355_v13 = vadd.f32 %v1353_v42, %v1351_v53  ;;  %v1356_v8 = vadd.f32 %v1354_v58, %v1352_v1 }
 0x8b0   :  { %v1342_v17 = vpop.permute.xlu0 %1341 }
 0x8b1   :  { %v1340_v25 = vpop.permute.xlu1 %1339 }
 0x8b2   :  { %v1343_v35 = vsel %vm6874_vm2, %v1340_v25, %v1342_v17  ;;  %v1344_v40 = vsel %vm6874_vm2, %v1342_v17, %v1340_v25  ;;  %vm6876_vm2 = vcmp.lt.s32.totalorder %v4783_v12, 126 }
 0x8b3   :  { %v1345_v5 = vsel %vm6880_vm11, %v1338_v0, %v1343_v35  ;;  %v1346_v10 = vsel %vm6879_vm12, %v1337_v32, %v1344_v40  ;;  %v1407_v35 = vstv %s4109_s2  ;;  %v1408_v40 = vstv %s4108_s18  ;;  %s5421_s18 = sld [smem:[#allocation7 + $0x83]] }
 0x8b4   :  { %v1357_v50 = vmul.f32 %v1345_v5, %v1331_v46  ;;  %v1358_v3 = vmul.f32 %v1346_v10, %v1332_v9  ;;  %v1367_v16 = vmul.f32 %v1345_v5, %v1327_v23  ;;  %v1368_v27 = vmul.f32 %v1346_v10, %v1328_v31  ;;  %s5427_s2 = sld [smem:[#allocation7 + $0x22]] }
 0x8b6   :  { %v1369_v1 = vadd.f32 %v1367_v16, %v5212_v34  ;;  %v1370_v53 = vadd.f32 %v1368_v27, %v5210_v2  ;;  %v1360_v36 = vsub.f32 %v1356_v8, %v1358_v3  ;;  %v1359_v42 = vsub.f32 %v1355_v13, %v1357_v50 }
 0x8b7   :  { %v1409_v3 = vsel %vm6878_vm13, %v1407_v35, %v1408_v40  ;;  %v1410_v16 = vsel %vm6877_vm14, %v1407_v35, %v1408_v40 }
 0x8b8   :  { %1385 = vrot.lane.b32.xlu1 %v1360_v36, %s4539_s16  ;;  %1390 = vrot.lane.b32.xlu0 %v1359_v42, %s4540_s17  ;;  %v1373_v23 = vadd.f32 %v1371_v29, %v1369_v1  ;;  %v1374_v31 = vadd.f32 %v1372_v57, %v1370_v53  ;;  %v5275_v15 = vmul.f32 %v1402_v51, %v1360_v36  ;;  %v1411_v57 = vstv %s4113_s1  ;;  %s5442_s1 = sld [smem:[#allocation7 + $0x82]] }
 0x8b9   :  { %1383 = vrot.lane.b32.xlu2 %v1359_v42, %s4539_s16  ;;  %v1429_v60 = vmul.f32 %v1401_v18, %v1359_v42  ;;  %v1446_v58 = vmul.f32 %v1406_v22, %v1360_v36  ;;  %v1445_v46 = vmul.f32 %v1405_v44, %v1359_v42  ;;  %v1482_v1 = vstv %s4115_s22  ;;  %s5449_s22 = sld [smem:[#allocation7 + $0x24]] }
 0x8ba   :  { %v1431_v34 = vmul.f32 %v1405_v44, %v1373_v23  ;;  %v1432_v9 = vmul.f32 %v1406_v22, %v1374_v31  ;;  %v1444_v2 = vmul.f32 %v1402_v51, %v1374_v31  ;;  %v1443_v17 = vmul.f32 %v1401_v18, %v1373_v23 }
 0x8bb   :  { %v1412_v44 = vstv %s4112_s21  ;;  %v1481_v22 = vstv %s4118_s23  ;;  %s5434_s21 = sld [smem:[#allocation7 + $0x81]] }
 0x8bc   :  { %v1434_v55 = vsub.f32 %v5275_v15, %v1432_v9  ;;  %v1433_v25 = vsub.f32 %v1429_v60, %v1431_v34  ;;  %v5278_v33 = vadd.f32 %v1446_v58, %v1444_v2  ;;  %v5280_v61 = vadd.f32 %v1445_v46, %v1443_v17  ;;  %s5452_s23 = sld [smem:[#allocation7 + $0x27]] }
 0x8bd   :  { %v1483_v58 = vsel %vm4890_vm15, %v1481_v22, %v1482_v1  ;;  %v1484_v46 = vsel %vm4896_vm0, %v1481_v22, %v1482_v1  ;;  %v1485_v34 = vstv %s5299_s25  ;;  %v1486_v9 = vstv %s5289_s24  ;;  %s5457_s24 = sld [smem:[#allocation7 + $0x84]] }
 0x8be   :  { %v1488_v22 = vsel %vm4896_vm0, %v1485_v34, %v1486_v9  ;;  %s5461_s25 = sld [smem:[#allocation7 + $0x87]] }
 0x8c0   :  { %1415 = vrot.lane.b32.xlu1 %v1373_v23, %s4539_s16  ;;  %1417 = vrot.lane.b32.xlu0 %v1374_v31, %s4539_s16 }
 0x8c1   :  { %1392 = vrot.lane.b32.xlu2 %v1360_v36, %s4540_s17 }
 0x8c8   :  { %1423 = vrot.lane.b32.xlu1 %v1374_v31, %s4540_s17  ;;  %v1414_v31 = vsel %vm6877_vm14, %v1411_v57, %v1412_v44 }
 0x8c9   :  { %1421 = vrot.lane.b32.xlu2 %v1373_v23, %s4540_s17  ;;  %v1413_v23 = vsel %vm6878_vm13, %v1411_v57, %v1412_v44  ;;  %v1487_v44 = vsel %vm4890_vm15, %v1485_v34, %v1486_v9 }
 0x913   :  { %v1384_v32 = vpop.permute.xlu2 %1383 }
 0x91b   :  { %v1393_v0 = vpop.permute.xlu2 %1392 }
 0x923   :  { %v1422_v15 = vpop.permute.xlu2 %1421 }
 0x92a   :  { %v1386_v18 = vpop.permute.xlu1 %1385  ;;  %v1391_v51 = vpop.permute.xlu0 %1390 }
 0x92b   :  { %v1388_v13 = vsel %vm6875_vm4, %v1384_v32, %v1386_v18  ;;  %v1389_v8 = vsel %vm6875_vm4, %v1386_v18, %v1384_v32  ;;  %v1395_v5 = vsel %vm6876_vm2, %v1391_v51, %v1393_v0  ;;  %v1396_v10 = vsel %vm6876_vm2, %v1393_v0, %v1391_v51 }
 0x92c   :  { %v1397_v27 = vsel %vm6878_vm13, %v1389_v8, %v1395_v5  ;;  %v1398_v29 = vsel %vm6877_vm14, %v1388_v13, %v1396_v10 }
 0x92d   :  { %v1435_v53 = vmul.f32 %v1409_v3, %v1397_v27  ;;  %v1436_v36 = vmul.f32 %v1410_v16, %v1398_v29  ;;  %v1453_v57 = vmul.f32 %v1413_v23, %v1397_v27 }
 0x92f   :  { %v1437_v51 = vadd.f32 %v1435_v53, %v1433_v25  ;;  %v1438_v0 = vadd.f32 %v1436_v36, %v1434_v55 }
 0x932   :  { %v1416_v50 = vpop.permute.xlu1 %1415  ;;  %v1418_v42 = vpop.permute.xlu0 %1417 }
 0x933   :  { %v1419_v2 = vsel %vm6875_vm4, %v1416_v50, %v1418_v42  ;;  %v1420_v17 = vsel %vm6875_vm4, %v1418_v42, %v1416_v50  ;;  %v1454_v50 = vmul.f32 %v1414_v31, %v1398_v29 }
 0x93a   :  { %v1424_v60 = vpop.permute.xlu1 %1423 }
 0x93b   :  { %v1425_v32 = vsel %vm6876_vm2, %v1422_v15, %v1424_v60  ;;  %v1426_v18 = vsel %vm6876_vm2, %v1424_v60, %v1422_v15 }
 0x93c   :  { %v1427_v35 = vsel %vm6878_vm13, %v1420_v17, %v1425_v32  ;;  %v1428_v40 = vsel %vm6877_vm14, %v1419_v2, %v1426_v18  ;;  %v793_v2 = vand.u32 %v4800_v45, %v4796_v41  ;;  %v799_v17 = vand.u32 %v4796_v41, %v4806_v49 }
 0x93d   :  { %v1439_v13 = vmul.f32 %v1427_v35, %v1413_v23  ;;  %v1440_v8 = vmul.f32 %v1428_v40, %v1414_v31  ;;  %v1449_v5 = vmul.f32 %v1427_v35, %v1409_v3  ;;  %v1450_v10 = vmul.f32 %v1428_v40, %v1410_v16 }
 0x93e   :  { %v806_v32 = vand.u32 %v4804_v47, %v4818_v54  ;;  %vm795_vm14 = vcmp.eq.s32.totalorder %v793_v2, 1  ;;  %vm801_vm13 = vcmp.eq.s32.totalorder %v799_v17, 1  ;;  %v807_v18 = vand.u32 %v4806_v49, %v4820_v24 }
 0x93f   :  { %v1451_v55 = vadd.f32 %v1449_v5, %v5280_v61  ;;  %v1452_v25 = vadd.f32 %v1450_v10, %v5278_v33  ;;  %v1442_v1 = vsub.f32 %v1438_v0, %v1440_v8  ;;  %v1441_v53 = vsub.f32 %v1437_v51, %v1439_v13 }
 0x940   :  { %v4543_v51 = vmov 1.0   ;;  %vm808_vm12 = vcmp.eq.s32.totalorder %v806_v32, 1  ;;  %v814_v8 = vand.u32 %v4818_v54, %v4844_v52  ;;  %vm809_vm11 = vcmp.eq.s32.totalorder %v807_v18, 1 }
 0x941   :  { %1467 = vrot.lane.b32.xlu2 %v1442_v1, %s4541_s27  ;;  %1472 = vrot.lane.b32.xlu1 %v1441_v53, %s4542_s5  ;;  %v1455_v3 = vadd.f32 %v1453_v57, %v1451_v55  ;;  %v1456_v16 = vadd.f32 %v1454_v50, %v1452_v25  ;;  %v5340_v27 = vmul.f32 %v1484_v46, %v1442_v1  ;;  %v797_v40 = vsel %vm795_vm14, -1.0, %v4543_v51 }
 0x942   :  { %1465 = vrot.lane.b32.xlu0 %v1441_v53, %s4541_s27  ;;  %v5342_v29 = vmul.f32 %v1483_v58, %v1441_v53  ;;  %v1528_v36 = vmul.f32 %v1488_v22, %v1442_v1  ;;  %v1527_v61 = vmul.f32 %v1487_v44, %v1441_v53  ;;  %v803_v13 = vsel %vm801_vm13, -1.0, %v4543_v51 }
 0x943   :  { %v5344_v42 = vmul.f32 %v1487_v44, %v1455_v3  ;;  %v5346_v33 = vmul.f32 %v1488_v22, %v1456_v16  ;;  %v1525_v23 = vmul.f32 %v1483_v58, %v1455_v3  ;;  %v1526_v31 = vmul.f32 %v1484_v46, %v1456_v16 }
 0x944   :  { %v792_v58 = vand.u32 %v4798_v43, %v4794_v37  ;;  %v798_v46 = vand.u32 %v4794_v37, %v4804_v47  ;;  %v815_v5 = vand.u32 %v4820_v24, %v4846_v38  ;;  %v805_v50 = vmul.f32 %v803_v13, %v797_v40 }
 0x945   :  { %v1516_v15 = vsub.f32 %v5340_v27, %v5346_v33  ;;  %v1515_v60 = vsub.f32 %v5342_v29, %v5344_v42  ;;  %v5352_v34 = vadd.f32 %v1528_v36, %v1526_v31  ;;  %v5354_v9 = vadd.f32 %v1527_v61, %v1525_v23 }
 0x946   :  { %vm794_vm4 = vcmp.eq.s32.totalorder %v792_v58, 1  ;;  %vm800_vm2 = vcmp.eq.s32.totalorder %v798_v46, 1  ;;  %v810_v44 = vsel %vm808_vm12, -1.0, %v4543_v51  ;;  %v811_v22 = vsel %vm809_vm11, -1.0, %v4543_v51 }
 0x947   :  { %v796_v0 = vsel %vm794_vm4, -1.0, %v4543_v51  ;;  %v802_v35 = vsel %vm800_vm2, -1.0, %v4543_v51  ;;  %vm816_vm2 = vcmp.eq.s32.totalorder %v814_v8, 1  ;;  %v822_v55 = vand.u32 %v4844_v52, %v4856_v39 }
 0x948   :  { %v804_v10 = vmul.f32 %v802_v35, %v796_v0  ;;  %vm817_vm4 = vcmp.eq.s32.totalorder %v815_v5, 1  ;;  %v823_v25 = vand.u32 %v4846_v38, %v4858_v63  ;;  %v830_v61 = vand.u32 %v4856_v39, %v4862_v6 }
 0x949   :  { %1497 = vrot.lane.b32.xlu2 %v1455_v3, %s4541_s27  ;;  %1499 = vrot.lane.b32.xlu1 %v1456_v16, %s4541_s27  ;;  %v819_v36 = vsel %vm817_vm4, -1.0, %v4543_v51  ;;  %vm824_vm11 = vcmp.eq.s32.totalorder %v822_v55, 1  ;;  %v831_v23 = vand.u32 %v4858_v63, %v4864_v7  ;;  %v1489_v46 = vstv %s5381_s28  ;;  %s4132_s28 = sld [smem:[#allocation7 + $0x25]] }
 0x94a   :  { %1474 = vrot.lane.b32.xlu0 %v1442_v1, %s4542_s5  ;;  %v812_v1 = vmul.f32 %v810_v44, %v804_v10  ;;  %vm825_vm12 = vcmp.eq.s32.totalorder %v823_v25, 1  ;;  %v826_v17 = vsel %vm824_vm11, -1.0, %v4543_v51  ;;  %v1490_v32 = vstv %s5384_s4  ;;  %s4133_s4 = sld [smem:[#allocation7 + $0x26]] }
 0x94b   :  { %v827_v18 = vsel %vm825_vm12, -1.0, %v4543_v51  ;;  %vm832_vm13 = vcmp.eq.s32.totalorder %v830_v61, 1  ;;  %v838_v0 = vand.u32 %v4862_v6, %v746_v11  ;;  %vm1476_vm14 = vcmp.lt.s32.totalorder %v4783_v12, 127 }
 0x94c   :  { %v839_v40 = vand.u32 %v4864_v7, %v747_v19  ;;  %vm1469_vm4 = vcmp.lt.s32.totalorder %v4783_v12, 1  ;;  %v1491_v11 = vsel %vm4890_vm15, %v1489_v46, %v1490_v32  ;;  %v1493_v8 = vstv %s5391_s29  ;;  %s4136_s29 = sld [smem:[#allocation7 + $0x85]] }
 0x94d   :  { %vm840_vm11 = vcmp.eq.s32.totalorder %v838_v0, 1  ;;  %v1492_v25 = vsel %vm4896_vm0, %v1489_v46, %v1490_v32  ;;  %v1556_v0 = vstv %s5418_s15  ;;  %s5533_s15 = sld [smem:[#allocation7 + $0x8b]] }
 0x94e   :  { %vm841_vm12 = vcmp.eq.s32.totalorder %v839_v40, 1 }
 0x951   :  { %1505 = vrot.lane.b32.xlu2 %v1456_v16, %s4542_s5  ;;  %v818_v16 = vsel %vm816_vm2, -1.0, %v4543_v51  ;;  %vm833_vm2 = vcmp.eq.s32.totalorder %v831_v23, 1  ;;  %v1551_v23 = vstv %s5412_s13  ;;  %s5531_s13 = sld [smem:[#allocation7 + $0x88]] }
 0x952   :  { %1503 = vrot.lane.b32.xlu0 %v1455_v3, %s4542_s5  ;;  %v813_v3 = vmul.f32 %v811_v22, %v805_v50  ;;  %v820_v31 = vmul.f32 %v818_v16, %v812_v1  ;;  %v834_v50 = vsel %vm832_vm13, -1.0, %v4543_v51  ;;  %v835_v44 = vsel %vm833_vm2, -1.0, %v4543_v51 }
 0x953   :  { %v1494_v1 = vstv %s5397_s30  ;;  %vm6896_vm13 = vcmp.eq.s32.totalorder %v4800_v45, 1  ;;  %s4137_s30 = sld [smem:[#allocation7 + $0x86]] }
 0x954   :  { %v821_v2 = vmul.f32 %v819_v36, %v813_v3  ;;  %v828_v13 = vmul.f32 %v826_v17, %v820_v31  ;;  %v1552_v31 = vstv %s5401_s11  ;;  %v1495_v46 = vsel %vm4890_vm15, %v1493_v8, %v1494_v1  ;;  %vm6897_vm2 = vmmov %vm6896_vm13  ;;  %s4139_s11 = sld [smem:[#allocation7 + $0x28]] }
 0x955   :  { %v1496_v32 = vsel %vm4896_vm0, %v1493_v8, %v1494_v1 }
 0x956   :  { %v829_v10 = vmul.f32 %v827_v18, %v821_v2  ;;  %v836_v36 = vmul.f32 %v834_v50, %v828_v13  ;;  %v1559_v50 = vstv %s5427_s2  ;;  %s4141_s2 = sld [smem:[#allocation7 + $0x2a]] }
 0x958   :  { %v837_v61 = vmul.f32 %v835_v44, %v829_v10  ;;  %v1553_v10 = vsel %vm790_vm3, %v1551_v23, %v1552_v31 }
 0x99b   :  { %v1468_v57 = vpop.permute.xlu2 %1467 }
 0x9a3   :  { %v1498_v35 = vpop.permute.xlu2 %1497 }
 0x9ab   :  { %v1506_v40 = vpop.permute.xlu2 %1505 }
 0x9b3   :  { %v1473_v58 = vpop.permute.xlu1 %1472 }
 0x9b4   :  { %v1466_v53 = vpop.permute.xlu0 %1465 }
 0x9b5   :  { %v1470_v22 = vsel %vm1469_vm4, %v1466_v53, %v1468_v57  ;;  %v1471_v55 = vsel %vm1469_vm4, %v1468_v57, %v1466_v53  ;;  %v842_v57 = vsel %vm840_vm11, -1.0, %v4543_v51  ;;  %v843_v53 = vsel %vm841_vm12, -1.0, %v4543_v51  ;;  %vm6898_vm11 = vmmov %vm6897_vm2 }
 0x9b6   :  { %v5465_v18 = vmul.f32 %v842_v57, %v836_v36  ;;  %v1555_v51 = vstv %s5421_s18  ;;  %v5469_v13 = vmul.f32 %v843_v53, %v837_v61  ;;  %vm6899_vm12 = vmmov %vm6897_vm2  ;;  %s4140_s18 = sld [smem:[#allocation7 + $0x29]] }
 0x9bc   :  { %v1475_v5 = vpop.permute.xlu0 %1474 }
 0x9bd   :  { %v1477_v26 = vsel %vm1476_vm14, %v1473_v58, %v1475_v5  ;;  %v1478_v19 = vsel %vm1476_vm14, %v1475_v5, %v1473_v58  ;;  %v1500_v58 = vpop.permute.xlu1 %1499 }
 0x9be   :  { %v1479_v3 = vsel %vm4890_vm15, %v1471_v55, %v1477_v26  ;;  %v1480_v16 = vsel %vm4896_vm0, %v1470_v22, %v1478_v19  ;;  %v1560_v26 = vstv %s5405_s12  ;;  %v1501_v19 = vsel %vm1469_vm4, %v1498_v35, %v1500_v58  ;;  %s4142_s12 = sld [smem:[#allocation7 + $0x2b]] }
 0x9bf   :  { %v1517_v2 = vmul.f32 %v1491_v11, %v1479_v3  ;;  %v1518_v17 = vmul.f32 %v1492_v25, %v1480_v16  ;;  %v1502_v8 = vsel %vm1469_vm4, %v1500_v58, %v1498_v35  ;;  %v1535_v29 = vmul.f32 %v1495_v46, %v1479_v3 }
 0x9c0   :  { %v1536_v42 = vmul.f32 %v1496_v32, %v1480_v16  ;;  %v1561_v3 = vsel %vm790_vm3, %v1559_v50, %v1560_v26 }
 0x9c1   :  { %v1519_v55 = vadd.f32 %v1517_v2, %v1515_v60  ;;  %v1520_v1 = vadd.f32 %v1518_v17, %v1516_v15  ;;  %v1563_v60 = vstv %s5442_s1  ;;  %v1564_v2 = vstv %s5434_s21  ;;  %s4144_s21 = sld [smem:[#allocation7 + $0x89]] }
 0x9c2   :  { %s4145_s1 = sld [smem:[#allocation7 + $0x8a]] }
 0x9c4   :  { %v1504_v5 = vpop.permute.xlu0 %1503 }
 0x9c5   :  { %v1507_v44 = vsel %vm1476_vm14, %v1504_v5, %v1506_v40  ;;  %v1508_v22 = vsel %vm1476_vm14, %v1506_v40, %v1504_v5  ;;  %v1611_v40 = vstv %s5452_s23  ;;  %v1612_v5 = vstv %s5449_s22  ;;  %s4147_s22 = sld [smem:[#allocation7 + $0x2c]] }
 0x9c6   :  { %v1509_v36 = vsel %vm4890_vm15, %v1502_v8, %v1507_v44  ;;  %v1510_v35 = vsel %vm4896_vm0, %v1501_v19, %v1508_v22  ;;  %v1615_v8 = vstv %s5461_s25  ;;  %v1616_v44 = vstv %s5457_s24  ;;  %s4150_s23 = sld [smem:[#allocation7 + $0x2f]] }
 0x9c7   :  { %v1521_v61 = vmul.f32 %v1509_v36, %v1495_v46  ;;  %v1522_v57 = vmul.f32 %v1510_v35, %v1496_v32  ;;  %v1531_v53 = vmul.f32 %v1509_v36, %v1491_v11  ;;  %v1532_v58 = vmul.f32 %v1510_v35, %v1492_v25  ;;  %s5577_s24 = sld [smem:[#allocation7 + $0x8c]] }
 0x9c8   :  { %v1557_v25 = vsel %vm790_vm3, %v1555_v51, %v1556_v0  ;;  %v1558_v32 = vsel %vm6897_vm2, %v1555_v51, %v1556_v0  ;;  %v1617_v36 = vsel %vm784_vm1, %v1615_v8, %v1616_v44  ;;  %v1566_v35 = vsel %vm6899_vm12, %v1563_v60, %v1564_v2  ;;  %s5579_s25 = sld [smem:[#allocation7 + $0x8f]] }
 0x9c9   :  { %v1523_v27 = vsub.f32 %v1519_v55, %v1521_v61  ;;  %v1524_v33 = vsub.f32 %v1520_v1, %v1522_v57  ;;  %v1533_v15 = vadd.f32 %v1531_v53, %v5354_v9  ;;  %v1534_v17 = vadd.f32 %v1532_v58, %v5352_v34 }
 0x9ca   :  { %v1565_v9 = vsel %vm790_vm3, %v1563_v60, %v1564_v2  ;;  %v1554_v34 = vsel %vm6896_vm13, %v1551_v23, %v1552_v31  ;;  %v1562_v55 = vsel %vm6898_vm11, %v1559_v50, %v1560_v26  ;;  %v1613_v1 = vsel %vm784_vm1, %v1611_v40, %v1612_v5 }
 0x9cb   :  { %v1537_v19 = vadd.f32 %v1535_v29, %v1533_v15  ;;  %v1538_v22 = vadd.f32 %v1536_v42, %v1534_v17  ;;  %v1539_v59 = vmul.f32 %v1523_v27, %v5465_v18  ;;  %v1540_v11 = vmul.f32 %v1524_v33, %v5469_v13 }
 0x9cc   :  { %vm6900_vm13 = vcmp.eq.s32.totalorder %v4796_v41, 1  ;;  %vm6902_vm11 = vcmp.lt.s32.totalorder %v4783_v12, 64 }
 0x9cd   :  { %v1541_v16 = vmul.f32 %v1537_v19, %v5465_v18  ;;  %v1542_v46 = vmul.f32 %v1538_v22, %v5469_v13  ;;  %v1614_v23 = vsel %vm6900_vm13, %v1611_v40, %v1612_v5  ;;  %v1583_v61 = vmul.f32 %v1557_v25, %v1539_v59  ;;  %vm6901_vm2 = vmmov %vm6900_vm13 }
 0x9ce   :  { %v1568_v57 = vmul.f32 %v1554_v34, %v1540_v11  ;;  %v1567_v51 = vmul.f32 %v1553_v10, %v1539_v59  ;;  %v1584_v50 = vmul.f32 %v1558_v32, %v1540_v11  ;;  %v1574_v27 = vmul.f32 %v1562_v55, %v1539_v59  ;;  %vm6903_vm12 = vmmov %vm6902_vm11 }
 0x9cf   :  { %v1581_v31 = vmul.f32 %v1553_v10, %v1541_v16  ;;  %v1570_v53 = vmul.f32 %v1558_v32, %v1542_v46  ;;  %v1569_v0 = vmul.f32 %v1557_v25, %v1541_v16  ;;  %v1582_v58 = vmul.f32 %v1554_v34, %v1542_v46  ;;  %vm6904_vm13 = vmmov %vm6901_vm2 }
 0x9d0   :  { %v1587_v29 = vmul.f32 %v1561_v3, %v1542_v46  ;;  %v1573_v15 = vmul.f32 %v1561_v3, %v1540_v11  ;;  %v1588_v19 = vmul.f32 %v1562_v55, %v1541_v16  ;;  %v1591_v2 = vmul.f32 %v1565_v9, %v1540_v11 }
 0x9d1   :  { %v1585_v26 = vadd.f32 %v1583_v61, %v1581_v31  ;;  %v1572_v42 = vsub.f32 %v1568_v57, %v1570_v53  ;;  %v1571_v33 = vsub.f32 %v1567_v51, %v1569_v0  ;;  %v1586_v17 = vadd.f32 %v1584_v50, %v1582_v58 }
 0x9d2   :  { %v1578_v40 = vmul.f32 %v1566_v35, %v1541_v16  ;;  %v1577_v20 = vmul.f32 %v1565_v9, %v1542_v46  ;;  %v1592_v4 = vmul.f32 %v1566_v35, %v1539_v59  ;;  %v1618_v34 = vsel %vm6901_vm2, %v1615_v8, %v1616_v44 }
 0x9d3   :  { %v1589_v60 = vadd.f32 %v1587_v29, %v1585_v26  ;;  %v1576_v22 = vadd.f32 %v1574_v27, %v1572_v42  ;;  %v1575_v5 = vadd.f32 %v1573_v15, %v1571_v33  ;;  %v1590_v56 = vadd.f32 %v1588_v19, %v1586_v17 }
 0x9d4   :  { %v1623_v50 = vstv %s4137_s30  ;;  %v1624_v26 = vstv %s4136_s29  ;;  %v1685_v27 = vstv %s4142_s12  ;;  %v1686_v33 = vstv %s4139_s11  ;;  %s4152_s29 = sld [smem:[#allocation7 + $0x8d]] }
 0x9d5   :  { %v1593_v10 = vadd.f32 %v1591_v2, %v1589_v60  ;;  %v1580_v25 = vsub.f32 %v1576_v22, %v1578_v40  ;;  %v1579_v32 = vsub.f32 %v1575_v5, %v1577_v20  ;;  %v1594_v31 = vadd.f32 %v1592_v4, %v1590_v56  ;;  %s4153_s30 = sld [smem:[#allocation7 + $0x8e]] }
 0x9d6   :  { %v1619_v56 = vstv %s4133_s4  ;;  %v1620_v20 = vstv %s4132_s28  ;;  %v1625_v17 = vsel %vm784_vm1, %v1623_v50, %v1624_v26  ;;  %v1689_v2 = vstv %s5533_s15  ;;  %s4148_s28 = sld [smem:[#allocation7 + $0x2d]] }
 0x9d7   :  { %1627 = vrot.lane.b32.xlu2 %v1593_v10, %s4531_s19  ;;  %v1637_v3 = vmul.f32 %v1617_v36, %v1593_v10  ;;  %v1649_v61 = vmul.f32 %v1613_v1, %v1593_v10  ;;  %1605 = vrot.lane.b32.xlu0 %v1580_v25, %s4531_s19  ;;  %v1636_v11 = vmul.f32 %v1614_v23, %v1580_v25  ;;  %v1690_v22 = vstv %s5531_s13  ;;  %s4149_s4 = sld [smem:[#allocation7 + $0x2e]] }
 0x9d8   :  { %v1652_v55 = vmul.f32 %v1618_v34, %v1580_v25  ;;  %1603 = vrot.lane.b32.xlu1 %v1579_v32, %s4531_s19  ;;  %v1635_v9 = vmul.f32 %v1613_v1, %v1579_v32  ;;  %v1651_v16 = vmul.f32 %v1617_v36, %v1579_v32  ;;  %v1638_v59 = vmul.f32 %v1618_v34, %v1594_v31  ;;  %s4155_s11 = sld [smem:[#allocation7 + $0x30]] }
 0x9d9   :  { %v1650_v46 = vmul.f32 %v1614_v23, %v1594_v31  ;;  %v1621_v23 = vsel %vm784_vm1, %v1619_v56, %v1620_v20  ;;  %v1622_v51 = vsel %vm6904_vm13, %v1619_v56, %v1620_v20  ;;  %vm6906_vm13 = vmmov %vm6903_vm12  ;;  %v1687_v10 = vsel %vm778_vm5, %v1685_v27, %v1686_v33  ;;  %s4158_s12 = sld [smem:[#allocation7 + $0x33]] }
 0x9da   :  { %v1639_v35 = vsub.f32 %v1635_v9, %v1637_v3  ;;  %v1653_v57 = vadd.f32 %v1651_v16, %v1649_v61  ;;  %v1640_v53 = vsub.f32 %v1636_v11, %v1638_v59  ;;  %v1688_v25 = vsel %vm779_vm6, %v1685_v27, %v1686_v33  ;;  %s5631_s13 = sld [smem:[#allocation7 + $0x90]] }
 0x9db   :  { %v1654_v8 = vadd.f32 %v1652_v55, %v1650_v46  ;;  %v1691_v46 = vsel %vm778_vm5, %v1689_v2, %v1690_v22  ;;  %s5633_s15 = sld [smem:[#allocation7 + $0x93]] }
 0x9e0   :  { %1629 = vrot.lane.b32.xlu1 %v1594_v31, %s4531_s19 }
 0xa31   :  { %v1628_v15 = vpop.permute.xlu2 %1627 }
 0xa49   :  { %v1606_v4 = vpop.permute.xlu0 %1605 }
 0xa4a   :  { %v1604_v44 = vpop.permute.xlu1 %1603 }
 0xa4b   :  { %v1607_v1 = vsel %vm6902_vm11, %v1604_v44, %v1606_v4  ;;  %v1608_v36 = vsel %vm6903_vm12, %v1606_v4, %v1604_v44  ;;  %vm6905_vm11 = vmmov %vm6901_vm2  ;;  %v1692_v4 = vsel %vm779_vm6, %v1689_v2, %v1690_v22  ;;  %v1694_v2 = vstv %s4140_s18  ;;  %s4156_s18 = sld [smem:[#allocation7 + $0x31]] }
 0xa4c   :  { %v1609_v0 = vsel %vm784_vm1, %v1608_v36, %v1607_v1  ;;  %v1610_v58 = vsel %vm6901_vm2, %v1607_v1, %v1608_v36  ;;  %v1626_v19 = vsel %vm6905_vm11, %v1623_v50, %v1624_v26  ;;  %vm6907_vm11 = vcmp.lt.s32.totalorder %v4783_v12, 96 }
 0xa4d   :  { %v1641_v29 = vmul.f32 %v1621_v23, %v1609_v0  ;;  %v1642_v42 = vmul.f32 %v1622_v51, %v1610_v58  ;;  %v1659_v16 = vmul.f32 %v1625_v17, %v1609_v0  ;;  %v1660_v59 = vmul.f32 %v1626_v19, %v1610_v58 }
 0xa4f   :  { %v1643_v34 = vadd.f32 %v1641_v29, %v1639_v35  ;;  %v1644_v32 = vadd.f32 %v1642_v42, %v1640_v53 }
 0xa52   :  { %v1630_v60 = vpop.permute.xlu1 %1629 }
 0xa53   :  { %v1631_v40 = vsel %vm6903_vm12, %v1628_v15, %v1630_v60  ;;  %v1632_v5 = vsel %vm6906_vm13, %v1630_v60, %v1628_v15  ;;  %v1693_v60 = vstv %s4141_s2  ;;  %vm6908_vm12 = vmmov %vm6907_vm11  ;;  %vm6909_vm13 = vcmp.lt.s32.totalorder %v4783_v12, 32  ;;  %s4157_s2 = sld [smem:[#allocation7 + $0x32]] }
 0xa54   :  { %v1633_v31 = vsel %vm784_vm1, %v1632_v5, %v1631_v40  ;;  %v1634_v3 = vsel %vm6901_vm2, %v1631_v40, %v1632_v5  ;;  %vm6910_vm2 = vmmov %vm6909_vm13 }
 0xa55   :  { %v1645_v61 = vmul.f32 %v1633_v31, %v1625_v17  ;;  %v1646_v11 = vmul.f32 %v1634_v3, %v1626_v19  ;;  %v1655_v55 = vmul.f32 %v1633_v31, %v1621_v23  ;;  %v1656_v9 = vmul.f32 %v1634_v3, %v1622_v51 }
 0xa57   :  { %v1657_v35 = vadd.f32 %v1655_v55, %v1653_v57  ;;  %v1658_v53 = vadd.f32 %v1656_v9, %v1654_v8  ;;  %v1648_v56 = vsub.f32 %v1644_v32, %v1646_v11  ;;  %v1647_v20 = vsub.f32 %v1643_v34, %v1645_v61 }
 0xa58   :  { %v1695_v34 = vsel %vm778_vm5, %v1693_v60, %v1694_v2  ;;  %v1696_v32 = vsel %vm779_vm6, %v1693_v60, %v1694_v2  ;;  %v1697_v61 = vstv %s4145_s1  ;;  %v1698_v11 = vstv %s4144_s21  ;;  %s4160_s21 = sld [smem:[#allocation7 + $0x91]] }
 0xa59   :  { %1673 = vrot.lane.b32.xlu2 %v1648_v56, %s4532_s26  ;;  %1677 = vrot.lane.b32.xlu1 %v1647_v20, %s4533_s3  ;;  %v1661_v44 = vadd.f32 %v1659_v16, %v1657_v35  ;;  %v1662_v1 = vadd.f32 %v1660_v59, %v1658_v53  ;;  %v1716_v36 = vmul.f32 %v1688_v25, %v1648_v56  ;;  %v1765_v55 = vstv %s4150_s23  ;;  %s4161_s1 = sld [smem:[#allocation7 + $0x92]] }
 0xa5a   :  { %1671 = vrot.lane.b32.xlu0 %v1647_v20, %s4532_s26  ;;  %v1715_v23 = vmul.f32 %v1687_v10, %v1647_v20  ;;  %v1732_v51 = vmul.f32 %v1692_v4, %v1648_v56  ;;  %v1731_v0 = vmul.f32 %v1691_v46, %v1647_v20  ;;  %v1766_v9 = vstv %s4147_s22  ;;  %s4163_s22 = sld [smem:[#allocation7 + $0x34]] }
 0xa5b   :  { %v1717_v58 = vmul.f32 %v1691_v46, %v1661_v44  ;;  %v1718_v50 = vmul.f32 %v1692_v4, %v1662_v1  ;;  %v1729_v26 = vmul.f32 %v1687_v10, %v1661_v44  ;;  %v1730_v29 = vmul.f32 %v1688_v25, %v1662_v1  ;;  %s4166_s23 = sld [smem:[#allocation7 + $0x37]] }
 0xa5c   :  { %v1699_v4 = vsel %vm778_vm5, %v1697_v61, %v1698_v11  ;;  %v1700_v35 = vsel %vm779_vm6, %v1697_v61, %v1698_v11  ;;  %v1767_v20 = vsel %vm6890_vm7, %v1765_v55, %v1766_v9 }
 0xa5d   :  { %v1720_v57 = vsub.f32 %v1716_v36, %v1718_v50  ;;  %v1719_v8 = vsub.f32 %v1715_v23, %v1717_v58  ;;  %v1734_v42 = vadd.f32 %v1732_v51, %v1730_v29  ;;  %v1733_v27 = vadd.f32 %v1731_v0, %v1729_v26 }
 0xa5e   :  { %v1770_v36 = vstv %s5577_s24  ;;  %s5685_s24 = sld [smem:[#allocation7 + $0x94]] }
 0xa61   :  { %1701 = vrot.lane.b32.xlu2 %v1661_v44, %s4532_s26  ;;  %1703 = vrot.lane.b32.xlu1 %v1662_v1, %s4532_s26 }
 0xa62   :  { %1679 = vrot.lane.b32.xlu0 %v1648_v56, %s4533_s3 }
 0xa69   :  { %1709 = vrot.lane.b32.xlu2 %v1662_v1, %s4533_s3  ;;  %v1769_v1 = vstv %s5579_s25  ;;  %s5695_s25 = sld [smem:[#allocation7 + $0x97]] }
 0xa6a   :  { %1707 = vrot.lane.b32.xlu0 %v1661_v44, %s4533_s3  ;;  %v1768_v44 = vsel %vm6889_vm8, %v1765_v55, %v1766_v9 }
 0xab3   :  { %v1674_v33 = vpop.permute.xlu2 %1673 }
 0xabb   :  { %v1702_v19 = vpop.permute.xlu2 %1701 }
 0xac3   :  { %v1710_v53 = vpop.permute.xlu2 %1709 }
 0xacb   :  { %v1678_v17 = vpop.permute.xlu1 %1677 }
 0xacc   :  { %v1672_v15 = vpop.permute.xlu0 %1671 }
 0xacd   :  { %v1675_v10 = vsel %vm6909_vm13, %v1672_v15, %v1674_v33  ;;  %v1676_v25 = vsel %vm6910_vm2, %v1674_v33, %v1672_v15  ;;  %vm6913_vm13 = vcmp.lt.s32.totalorder %v4783_v12, 96 }
 0xad3   :  { %v1704_v16 = vpop.permute.xlu1 %1703 }
 0xad4   :  { %v1680_v22 = vpop.permute.xlu0 %1679 }
 0xad5   :  { %v1681_v40 = vsel %vm6907_vm11, %v1678_v17, %v1680_v22  ;;  %v1682_v5 = vsel %vm6908_vm12, %v1680_v22, %v1678_v17  ;;  %vm6911_vm11 = vmmov %vm6910_vm2 }
 0xad6   :  { %v1683_v31 = vsel %vm778_vm5, %v1676_v25, %v1681_v40  ;;  %v1684_v3 = vsel %vm779_vm6, %v1675_v10, %v1682_v5  ;;  %v1705_v23 = vsel %vm6911_vm11, %v1702_v19, %v1704_v16  ;;  %vm6912_vm12 = vmmov %vm6910_vm2  ;;  %v1771_v40 = vsel %vm6890_vm7, %v1769_v1, %v1770_v36 }
 0xad7   :  { %v1721_v59 = vmul.f32 %v1695_v34, %v1683_v31  ;;  %v1722_v46 = vmul.f32 %v1696_v32, %v1684_v3  ;;  %v1706_v51 = vsel %vm6912_vm12, %v1704_v16, %v1702_v19  ;;  %vm6914_vm2 = vmmov %vm6913_vm13  ;;  %v1739_v22 = vmul.f32 %v1699_v4, %v1683_v31 }
 0xad8   :  { %v1740_v19 = vmul.f32 %v1700_v35, %v1684_v3  ;;  %v1772_v5 = vsel %vm6889_vm8, %v1769_v1, %v1770_v36  ;;  %v1774_v1 = vstv %s4148_s28  ;;  %vm6915_vm11 = vcmp.lt.s32.totalorder %v4783_v12, 112  ;;  %s4164_s28 = sld [smem:[#allocation7 + $0x35]] }
 0xad9   :  { %v1723_v50 = vadd.f32 %v1721_v59, %v1719_v8  ;;  %v1724_v26 = vadd.f32 %v1722_v46, %v1720_v57  ;;  %vm6916_vm12 = vmmov %vm6915_vm11 }
 0xadc   :  { %v1708_v56 = vpop.permute.xlu0 %1707 }
 0xadd   :  { %v1711_v0 = vsel %vm6913_vm13, %v1708_v56, %v1710_v53  ;;  %v1712_v58 = vsel %vm6914_vm2, %v1710_v53, %v1708_v56  ;;  %vm6917_vm13 = vcmp.lt.s32.totalorder %v4783_v12, 16 }
 0xade   :  { %v1713_v29 = vsel %vm778_vm5, %v1706_v51, %v1711_v0  ;;  %v1714_v33 = vsel %vm779_vm6, %v1705_v23, %v1712_v58  ;;  %vm6918_vm2 = vmmov %vm6917_vm13 }
 0xadf   :  { %v1725_v15 = vmul.f32 %v1713_v29, %v1699_v4  ;;  %v1726_v17 = vmul.f32 %v1714_v33, %v1700_v35  ;;  %v1735_v60 = vmul.f32 %v1713_v29, %v1695_v34  ;;  %v1736_v2 = vmul.f32 %v1714_v33, %v1696_v32 }
 0xae1   :  { %v1737_v8 = vadd.f32 %v1735_v60, %v1733_v27  ;;  %v1738_v57 = vadd.f32 %v1736_v2, %v1734_v42  ;;  %v1728_v10 = vsub.f32 %v1724_v26, %v1726_v17  ;;  %v1727_v25 = vsub.f32 %v1723_v50, %v1725_v15 }
 0xae2   :  { %v1777_v15 = vstv %s4153_s30  ;;  %v1778_v17 = vstv %s4152_s29  ;;  %v1845_v60 = vstv %s4158_s12  ;;  %v1846_v2 = vstv %s4155_s11  ;;  %s4168_s29 = sld [smem:[#allocation7 + $0x95]] }
 0xae3   :  { %1753 = vrot.lane.b32.xlu0 %v1728_v10, %s4534_s9  ;;  %1757 = vrot.lane.b32.xlu2 %v1727_v25, %s4535_s10  ;;  %v1741_v61 = vadd.f32 %v1739_v22, %v1737_v8  ;;  %v1742_v11 = vadd.f32 %v1740_v19, %v1738_v57  ;;  %v1796_v34 = vmul.f32 %v1768_v44, %v1728_v10  ;;  %s4169_s30 = sld [smem:[#allocation7 + $0x96]] }
 0xae4   :  { %1751 = vrot.lane.b32.xlu1 %v1727_v25, %s4534_s9  ;;  %v1795_v32 = vmul.f32 %v1767_v20, %v1727_v25  ;;  %v1812_v31 = vmul.f32 %v1772_v5, %v1728_v10  ;;  %v1811_v3 = vmul.f32 %v1771_v40, %v1727_v25  ;;  %v1847_v25 = vsel %vm766_vm9, %v1845_v60, %v1846_v2  ;;  %s4171_s11 = sld [smem:[#allocation7 + $0x38]] }
 0xae5   :  { %v1797_v55 = vmul.f32 %v1771_v40, %v1741_v61  ;;  %v1798_v9 = vmul.f32 %v1772_v5, %v1742_v11  ;;  %v1809_v16 = vmul.f32 %v1767_v20, %v1741_v61  ;;  %v1810_v59 = vmul.f32 %v1768_v44, %v1742_v11  ;;  %s4174_s12 = sld [smem:[#allocation7 + $0x3b]] }
 0xae6   :  { %v1773_v44 = vstv %s4149_s4  ;;  %v1779_v40 = vsel %vm6890_vm7, %v1777_v15, %v1778_v17  ;;  %v1780_v5 = vsel %vm6889_vm8, %v1777_v15, %v1778_v17  ;;  %s4165_s4 = sld [smem:[#allocation7 + $0x36]] }
 0xae7   :  { %v1800_v27 = vsub.f32 %v1796_v34, %v1798_v9  ;;  %v1799_v42 = vsub.f32 %v1795_v32, %v1797_v55  ;;  %v1814_v46 = vadd.f32 %v1812_v31, %v1810_v59  ;;  %v1813_v4 = vadd.f32 %v1811_v3, %v1809_v16 }
 0xae8   :  { %v1775_v50 = vsel %vm6890_vm7, %v1773_v44, %v1774_v1  ;;  %v1776_v26 = vsel %vm6889_vm8, %v1773_v44, %v1774_v1  ;;  %v1850_v34 = vstv %s5631_s13  ;;  %s5739_s13 = sld [smem:[#allocation7 + $0x98]] }
 0xaeb   :  { %1781 = vrot.lane.b32.xlu0 %v1741_v61, %s4534_s9  ;;  %1783 = vrot.lane.b32.xlu2 %v1742_v11, %s4534_s9 }
 0xaec   :  { %1759 = vrot.lane.b32.xlu1 %v1728_v10, %s4535_s10 }
 0xaf3   :  { %1789 = vrot.lane.b32.xlu0 %v1742_v11, %s4535_s10  ;;  %v1849_v11 = vstv %s5633_s15  ;;  %s5741_s15 = sld [smem:[#allocation7 + $0x9b]] }
 0xaf4   :  { %1787 = vrot.lane.b32.xlu1 %v1741_v61, %s4535_s10  ;;  %v1848_v61 = vsel %vm6891_vm10, %v1845_v60, %v1846_v2 }
 0xb3d   :  { %v1758_v56 = vpop.permute.xlu2 %1757 }
 0xb45   :  { %v1784_v57 = vpop.permute.xlu2 %1783 }
 0xb55   :  { %v1754_v35 = vpop.permute.xlu0 %1753 }
 0xb56   :  { %v1752_v53 = vpop.permute.xlu1 %1751 }
 0xb57   :  { %v1755_v0 = vsel %vm6917_vm13, %v1752_v53, %v1754_v35  ;;  %v1756_v58 = vsel %vm6918_vm2, %v1754_v35, %v1752_v53  ;;  %vm6921_vm13 = vcmp.lt.s32.totalorder %v4783_v12, 112 }
 0xb5d   :  { %v1782_v20 = vpop.permute.xlu0 %1781 }
 0xb5e   :  { %v1760_v36 = vpop.permute.xlu1 %1759 }
 0xb5f   :  { %v1761_v23 = vsel %vm6915_vm11, %v1758_v56, %v1760_v36  ;;  %v1762_v51 = vsel %vm6916_vm12, %v1760_v36, %v1758_v56  ;;  %vm6919_vm11 = vmmov %vm6918_vm2 }
 0xb60   :  { %v1763_v29 = vsel %vm6890_vm7, %v1756_v58, %v1761_v23  ;;  %v1764_v33 = vsel %vm6889_vm8, %v1755_v0, %v1762_v51  ;;  %v1785_v32 = vsel %vm6919_vm11, %v1782_v20, %v1784_v57  ;;  %vm6920_vm12 = vmmov %vm6918_vm2  ;;  %v1851_v23 = vsel %vm766_vm9, %v1849_v11, %v1850_v34 }
 0xb61   :  { %v1801_v22 = vmul.f32 %v1775_v50, %v1763_v29  ;;  %v1802_v19 = vmul.f32 %v1776_v26, %v1764_v33  ;;  %v1786_v31 = vsel %vm6920_vm12, %v1784_v57, %v1782_v20  ;;  %vm6922_vm2 = vmmov %vm6921_vm13  ;;  %v1819_v36 = vmul.f32 %v1779_v40, %v1763_v29 }
 0xb62   :  { %v1820_v20 = vmul.f32 %v1780_v5, %v1764_v33  ;;  %v1852_v51 = vsel %vm6891_vm10, %v1849_v11, %v1850_v34  ;;  %v1854_v11 = vstv %s4156_s18  ;;  %vm6923_vm11 = vcmp.lt.s32.totalorder %v4783_v12, 8  ;;  %s4172_s18 = sld [smem:[#allocation7 + $0x39]] }
 0xb63   :  { %v1803_v9 = vadd.f32 %v1801_v22, %v1799_v42  ;;  %v1804_v16 = vadd.f32 %v1802_v19, %v1800_v27  ;;  %vm6924_vm12 = vmmov %vm6923_vm11 }
 0xb65   :  { %v1790_v8 = vpop.permute.xlu0 %1789 }
 0xb66   :  { %v1788_v10 = vpop.permute.xlu1 %1787 }
 0xb67   :  { %v1791_v3 = vsel %vm6921_vm13, %v1788_v10, %v1790_v8  ;;  %v1792_v55 = vsel %vm6922_vm2, %v1790_v8, %v1788_v10  ;;  %vm6925_vm13 = vcmp.lt.s32.totalorder %v4783_v12, 120 }
 0xb68   :  { %v1793_v59 = vsel %vm6890_vm7, %v1786_v31, %v1791_v3  ;;  %v1794_v35 = vsel %vm6889_vm8, %v1785_v32, %v1792_v55  ;;  %vm6926_vm2 = vmmov %vm6925_vm13  ;;  %vm6931_vm8 = vcmp.lt.s32.totalorder %v4783_v12, 120 }
 0xb69   :  { %v1805_v53 = vmul.f32 %v1793_v59, %v1779_v40  ;;  %v1806_v56 = vmul.f32 %v1794_v35, %v1780_v5  ;;  %v1815_v44 = vmul.f32 %v1793_v59, %v1775_v50  ;;  %v1816_v1 = vmul.f32 %v1794_v35, %v1776_v26  ;;  %vm6932_vm7 = vmmov %vm6931_vm8 }
 0xb6b   :  { %v1817_v42 = vadd.f32 %v1815_v44, %v1813_v4  ;;  %v1818_v27 = vadd.f32 %v1816_v1, %v1814_v46  ;;  %v1808_v0 = vsub.f32 %v1804_v16, %v1806_v56  ;;  %v1807_v58 = vsub.f32 %v1803_v9, %v1805_v53 }
 0xb6c   :  { %v1857_v53 = vstv %s4161_s1  ;;  %v1858_v56 = vstv %s4160_s21  ;;  %v1925_v44 = vstv %s4166_s23  ;;  %v1926_v1 = vstv %s4163_s22  ;;  %s4176_s21 = sld [smem:[#allocation7 + $0x99]] }
 0xb6d   :  { %1833 = vrot.lane.b32.xlu1 %v1808_v0, %s4512_s14  ;;  %1837 = vrot.lane.b32.xlu0 %v1807_v58, %s4536_s20  ;;  %v1821_v15 = vadd.f32 %v1819_v36, %v1817_v42  ;;  %v1822_v17 = vadd.f32 %v1820_v20, %v1818_v27  ;;  %v1876_v50 = vmul.f32 %v1848_v61, %v1808_v0  ;;  %s4177_s1 = sld [smem:[#allocation7 + $0x9a]] }
 0xb6e   :  { %1831 = vrot.lane.b32.xlu2 %v1807_v58, %s4512_s14  ;;  %v1875_v26 = vmul.f32 %v1847_v25, %v1807_v58  ;;  %v1892_v29 = vmul.f32 %v1852_v51, %v1808_v0  ;;  %v1891_v33 = vmul.f32 %v1851_v23, %v1807_v58  ;;  %v1860_v42 = vsel %vm6891_vm10, %v1857_v53, %v1858_v56  ;;  %s4179_s22 = sld [smem:[#allocation7 + $0x3c]] }
 0xb6f   :  { %v1877_v60 = vmul.f32 %v1851_v23, %v1821_v15  ;;  %v1878_v2 = vmul.f32 %v1852_v51, %v1822_v17  ;;  %v1890_v22 = vmul.f32 %v1848_v61, %v1822_v17  ;;  %v1889_v19 = vmul.f32 %v1847_v25, %v1821_v15  ;;  %s4182_s23 = sld [smem:[#allocation7 + $0x3f]] }
 0xb70   :  { %v1853_v61 = vstv %s4157_s2  ;;  %v1859_v51 = vsel %vm766_vm9, %v1857_v53, %v1858_v56  ;;  %s4173_s2 = sld [smem:[#allocation7 + $0x3a]] }
 0xb71   :  { %v1880_v4 = vsub.f32 %v1876_v50, %v1878_v2  ;;  %v1879_v46 = vsub.f32 %v1875_v26, %v1877_v60  ;;  %v1894_v40 = vadd.f32 %v1892_v29, %v1890_v22  ;;  %v1893_v5 = vadd.f32 %v1891_v33, %v1889_v19 }
 0xb72   :  { %v1855_v9 = vsel %vm766_vm9, %v1853_v61, %v1854_v11  ;;  %v1856_v16 = vsel %vm6891_vm10, %v1853_v61, %v1854_v11  ;;  %v1930_v50 = vstv %s5685_s24  ;;  %s5793_s24 = sld [smem:[#allocation7 + $0x9c]] }
 0xb75   :  { %1861 = vrot.lane.b32.xlu1 %v1821_v15, %s4512_s14  ;;  %1863 = vrot.lane.b32.xlu0 %v1822_v17, %s4512_s14 }
 0xb76   :  { %1839 = vrot.lane.b32.xlu2 %v1808_v0, %s4536_s20 }
 0xb7d   :  { %1869 = vrot.lane.b32.xlu1 %v1822_v17, %s4536_s20  ;;  %v1929_v17 = vstv %s5695_s25  ;;  %s5795_s25 = sld [smem:[#allocation7 + $0x9f]] }
 0xb7e   :  { %1867 = vrot.lane.b32.xlu2 %v1821_v15, %s4536_s20 }
 0xbc8   :  { %v1832_v8 = vpop.permute.xlu2 %1831 }
 0xbd0   :  { %v1840_v25 = vpop.permute.xlu2 %1839 }
 0xbd8   :  { %v1868_v27 = vpop.permute.xlu2 %1867 }
 0xbdf   :  { %v1834_v57 = vpop.permute.xlu1 %1833  ;;  %v1838_v10 = vpop.permute.xlu0 %1837 }
 0xbe0   :  { %v1835_v34 = vsel %vm6923_vm11, %v1832_v8, %v1834_v57  ;;  %v1836_v32 = vsel %vm6924_vm12, %v1834_v57, %v1832_v8  ;;  %v1841_v31 = vsel %vm6925_vm13, %v1838_v10, %v1840_v25  ;;  %v1842_v3 = vsel %vm6926_vm2, %v1840_v25, %v1838_v10 }
 0xbe1   :  { %v1843_v59 = vsel %vm766_vm9, %v1836_v32, %v1841_v31  ;;  %v1844_v35 = vsel %vm6891_vm10, %v1835_v34, %v1842_v3  ;;  %vm6927_vm11 = vcmp.eq.s32.totalorder %v4856_v39, 1  ;;  %vm6928_vm12 = vcmp.eq.s32.totalorder %v4858_v63, 1 }
 0xbe2   :  { %v1881_v36 = vmul.f32 %v1855_v9, %v1843_v59  ;;  %v1882_v20 = vmul.f32 %v1856_v16, %v1844_v35  ;;  %v1927_v58 = vsel %vm6927_vm11, %v1925_v44, %v1926_v1  ;;  %v1928_v15 = vsel %vm6928_vm12, %v1925_v44, %v1926_v1 }
 0xbe3   :  { %vm6929_vm13 = vcmp.lt.s32.totalorder %v4783_v12, 8  ;;  %v1899_v11 = vmul.f32 %v1859_v51, %v1843_v59  ;;  %v1900_v34 = vmul.f32 %v1860_v42, %v1844_v35  ;;  %v1931_v32 = vsel %vm6927_vm11, %v1929_v17, %v1930_v50 }
 0xbe4   :  { %vm6930_vm2 = vmmov %vm6929_vm13  ;;  %v1883_v2 = vadd.f32 %v1881_v36, %v1879_v46  ;;  %v1884_v22 = vadd.f32 %v1882_v20, %v1880_v4 }
 0xbe7   :  { %v1862_v55 = vpop.permute.xlu1 %1861  ;;  %v1864_v23 = vpop.permute.xlu0 %1863 }
 0xbe8   :  { %v1865_v26 = vsel %vm6929_vm13, %v1862_v55, %v1864_v23  ;;  %v1866_v29 = vsel %vm6930_vm2, %v1864_v23, %v1862_v55  ;;  %vm6936_vm13 = vcmp.lt.s32.totalorder %v4783_v12, 4 }
 0xbe9   :  { %vm6937_vm2 = vmmov %vm6936_vm13 }
 0xbef   :  { %v1870_v0 = vpop.permute.xlu1 %1869 }
 0xbf0   :  { %v1871_v33 = vsel %vm6931_vm8, %v1868_v27, %v1870_v0  ;;  %v1872_v60 = vsel %vm6932_vm7, %v1870_v0, %v1868_v27  ;;  %vm6933_vm8 = vmmov %vm6928_vm12  ;;  %vm6934_vm7 = vcmp.lt.s32.totalorder %v4783_v12, 124 }
 0xbf1   :  { %v1873_v19 = vsel %vm766_vm9, %v1866_v29, %v1871_v33  ;;  %v1874_v8 = vsel %vm6891_vm10, %v1865_v26, %v1872_v60  ;;  %v1932_v31 = vsel %vm6933_vm8, %v1929_v17, %v1930_v50  ;;  %v1934_v17 = vstv %s4164_s28  ;;  %vm6935_vm12 = vmmov %vm6934_vm7  ;;  %s4180_s28 = sld [smem:[#allocation7 + $0x3d]] }
 0xbf2   :  { %v1885_v57 = vmul.f32 %v1873_v19, %v1859_v51  ;;  %v1886_v10 = vmul.f32 %v1874_v8, %v1860_v42  ;;  %v1895_v25 = vmul.f32 %v1873_v19, %v1855_v9  ;;  %v1896_v61 = vmul.f32 %v1874_v8, %v1856_v16  ;;  %vm6938_vm10 = vmmov %vm6927_vm11 }
 0xbf4   :  { %v1897_v46 = vadd.f32 %v1895_v25, %v1893_v5  ;;  %v1898_v4 = vadd.f32 %v1896_v61, %v1894_v40  ;;  %v1888_v3 = vsub.f32 %v1884_v22, %v1886_v10  ;;  %v1887_v55 = vsub.f32 %v1883_v2, %v1885_v57 }
 0xbf5   :  { %v1937_v57 = vstv %s4169_s30  ;;  %v1938_v10 = vstv %s4168_s29  ;;  %v2005_v25 = vstv %s4174_s12  ;;  %v2006_v61 = vstv %s4171_s11  ;;  %s4184_s29 = sld [smem:[#allocation7 + $0x9d]] }
 0xbf6   :  { %1913 = vrot.lane.b32.xlu2 %v1888_v3, %s4537_s6  ;;  %1917 = vrot.lane.b32.xlu1 %v1887_v55, %s4538_s0  ;;  %v1901_v53 = vadd.f32 %v1899_v11, %v1897_v46  ;;  %v1902_v56 = vadd.f32 %v1900_v34, %v1898_v4  ;;  %v1956_v9 = vmul.f32 %v1928_v15, %v1888_v3  ;;  %s4185_s30 = sld [smem:[#allocation7 + $0x9e]] }
 0xbf7   :  { %1911 = vrot.lane.b32.xlu0 %v1887_v55, %s4537_s6  ;;  %v1955_v16 = vmul.f32 %v1927_v58, %v1887_v55  ;;  %v1972_v59 = vmul.f32 %v1932_v31, %v1888_v3  ;;  %v1971_v35 = vmul.f32 %v1931_v32, %v1887_v55  ;;  %s4193_s11 = sld [smem:[#allocation7 + $0x40]] }
 0xbf8   :  { %v1957_v44 = vmul.f32 %v1931_v32, %v1901_v53  ;;  %v1958_v1 = vmul.f32 %v1932_v31, %v1902_v56  ;;  %v1969_v36 = vmul.f32 %v1927_v58, %v1901_v53  ;;  %v1970_v20 = vmul.f32 %v1928_v15, %v1902_v56  ;;  %s4196_s12 = sld [smem:[#allocation7 + $0x43]] }
 0xbf9   :  { %v1933_v15 = vstv %s4165_s4  ;;  %s4181_s4 = sld [smem:[#allocation7 + $0x3e]] }
 0xbfa   :  { %v1960_v5 = vsub.f32 %v1956_v9, %v1958_v1  ;;  %v1959_v40 = vsub.f32 %v1955_v16, %v1957_v44  ;;  %v1974_v23 = vadd.f32 %v1972_v59, %v1970_v20  ;;  %v1973_v51 = vadd.f32 %v1971_v35, %v1969_v36 }
 0xbfb   :  { %v1935_v2 = vsel %vm6927_vm11, %v1933_v15, %v1934_v17  ;;  %v1936_v22 = vsel %vm6933_vm8, %v1933_v15, %v1934_v17  ;;  %v2010_v9 = vstv %s5739_s13  ;;  %vm6944_vm11 = vcmp.lt.s32.totalorder %v4783_v12, 4  ;;  %s4197_s13 = sld [smem:[#allocation7 + $0xa0]] }
 0xbfe   :  { %1941 = vrot.lane.b32.xlu2 %v1901_v53, %s4537_s6  ;;  %1943 = vrot.lane.b32.xlu1 %v1902_v56, %s4537_s6 }
 0xbff   :  { %1919 = vrot.lane.b32.xlu0 %v1888_v3, %s4538_s0 }
 0xc06   :  { %1949 = vrot.lane.b32.xlu2 %v1902_v56, %s4538_s0  ;;  %v2009_v56 = vstv %s5741_s15  ;;  %s4200_s15 = sld [smem:[#allocation7 + $0xa3]] }
 0xc07   :  { %1947 = vrot.lane.b32.xlu0 %v1901_v53, %s4538_s0 }
 0xc50   :  { %v1914_v42 = vpop.permute.xlu2 %1913 }
 0xc58   :  { %v1942_v58 = vpop.permute.xlu2 %1941 }
 0xc60   :  { %v1950_v4 = vpop.permute.xlu2 %1949 }
 0xc68   :  { %v1918_v0 = vpop.permute.xlu1 %1917 }
 0xc69   :  { %v1912_v27 = vpop.permute.xlu0 %1911 }
 0xc6a   :  { %v1915_v33 = vsel %vm6936_vm13, %v1912_v27, %v1914_v42  ;;  %v1916_v60 = vsel %vm6937_vm2, %v1914_v42, %v1912_v27  ;;  %vm6943_vm2 = vcmp.eq.s32.totalorder %v4864_v7, 1 }
 0xc6b   :  { %v2008_v53 = vsel %vm6943_vm2, %v2005_v25, %v2006_v61  ;;  %vm6950_vm2 = vcmp.eq.s32.totalorder %v4862_v6, 1 }
 0xc70   :  { %v1944_v11 = vpop.permute.xlu1 %1943 }
 0xc71   :  { %v1920_v50 = vpop.permute.xlu0 %1919  ;;  %v1945_v16 = vsel %vm6944_vm11, %v1942_v58, %v1944_v11 }
 0xc72   :  { %v1921_v26 = vsel %vm6934_vm7, %v1918_v0, %v1920_v50  ;;  %v1922_v29 = vsel %vm6935_vm12, %v1920_v50, %v1918_v0  ;;  %vm6939_vm7 = vmmov %vm6933_vm8 }
 0xc73   :  { %v1923_v19 = vsel %vm6938_vm10, %v1916_v60, %v1921_v26  ;;  %v1924_v8 = vsel %vm6939_vm7, %v1915_v33, %v1922_v29  ;;  %vm6940_vm12 = vmmov %vm6938_vm10  ;;  %vm6942_vm10 = vcmp.eq.s32.totalorder %v4862_v6, 1  ;;  %v2011_v26 = vsel %vm6950_vm2, %v2009_v56, %v2010_v9 }
 0xc74   :  { %v1961_v34 = vmul.f32 %v1935_v2, %v1923_v19  ;;  %v1962_v32 = vmul.f32 %v1936_v22, %v1924_v8  ;;  %v1939_v31 = vsel %vm6940_vm12, %v1937_v57, %v1938_v10  ;;  %vm6941_vm13 = vmmov %vm6939_vm7  ;;  %v2007_v55 = vsel %vm6942_vm10, %v2005_v25, %v2006_v61 }
 0xc75   :  { %v1940_v46 = vsel %vm6941_vm13, %v1937_v57, %v1938_v10  ;;  %vm6945_vm8 = vmmov %vm6944_vm11  ;;  %vm6946_vm7 = vcmp.lt.s32.totalorder %v4783_v12, 124  ;;  %vm6948_vm13 = vcmp.eq.s32.totalorder %v4856_v39, 1  ;;  %vm6949_vm10 = vcmp.eq.s32.totalorder %v4858_v63, 1 }
 0xc76   :  { %v1946_v59 = vsel %vm6945_vm8, %v1944_v11, %v1942_v58  ;;  %vm6947_vm12 = vmmov %vm6946_vm7  ;;  %v1963_v1 = vadd.f32 %v1961_v34, %v1959_v40  ;;  %v1964_v36 = vadd.f32 %v1962_v32, %v1960_v5  ;;  %v1979_v50 = vmul.f32 %v1939_v31, %v1923_v19 }
 0xc77   :  { %v1980_v58 = vmul.f32 %v1940_v46, %v1924_v8  ;;  %vm6951_vm11 = vcmp.eq.s32.totalorder %v4864_v7, 1  ;;  %vm6952_vm8 = vcmp.lt.s32.totalorder %v4783_v12, 126 }
 0xc78   :  { %v2012_v29 = vsel %vm6951_vm11, %v2009_v56, %v2010_v9  ;;  %v2014_v56 = vstv %s4172_s18  ;;  %s6154_s18 = sld [smem:[#allocation7 + $0x41]] }
 0xc79   :  { %v1948_v3 = vpop.permute.xlu0 %1947 }
 0xc7a   :  { %v1951_v35 = vsel %vm6946_vm7, %v1948_v3, %v1950_v4  ;;  %v1952_v44 = vsel %vm6947_vm12, %v1950_v4, %v1948_v3  ;;  %vm6953_vm7 = vmmov %vm6952_vm8  ;;  %vm6954_vm12 = vcmp.lt.s32.totalorder %v4783_v12, 2 }
 0xc7b   :  { %v1953_v20 = vsel %vm6948_vm13, %v1946_v59, %v1951_v35  ;;  %v1954_v42 = vsel %vm6949_vm10, %v1945_v16, %v1952_v44  ;;  %vm6955_vm13 = vmmov %vm6954_vm12 }
 0xc7c   :  { %v1965_v27 = vmul.f32 %v1953_v20, %v1939_v31  ;;  %v1966_v0 = vmul.f32 %v1954_v42, %v1940_v46  ;;  %v1975_v15 = vmul.f32 %v1953_v20, %v1935_v2  ;;  %v1976_v17 = vmul.f32 %v1954_v42, %v1936_v22  ;;  %vm6956_vm10 = vmmov %vm6950_vm2 }
 0xc7d   :  { %vm6957_vm2 = vmmov %vm6951_vm11 }
 0xc7e   :  { %v1977_v40 = vadd.f32 %v1975_v15, %v1973_v51  ;;  %v1978_v5 = vadd.f32 %v1976_v17, %v1974_v23  ;;  %v1968_v33 = vsub.f32 %v1964_v36, %v1966_v0  ;;  %v1967_v60 = vsub.f32 %v1963_v1, %v1965_v27  ;;  %vm6958_vm11 = vmmov %vm6956_vm10 }
 0xc7f   :  { %v2017_v27 = vstv %s4177_s1  ;;  %v2018_v0 = vstv %s4176_s21  ;;  %v2085_v15 = vstv %s4182_s23  ;;  %v2086_v17 = vstv %s4179_s22  ;;  %s6158_s21 = sld [smem:[#allocation7 + $0xa1]] }
 0xc80   :  { %1993 = vrot.lane.b32.xlu0 %v1968_v33, %s4539_s16  ;;  %1997 = vrot.lane.b32.xlu2 %v1967_v60, %s4540_s17  ;;  %v1981_v57 = vadd.f32 %v1979_v50, %v1977_v40  ;;  %v1982_v10 = vadd.f32 %v1980_v58, %v1978_v5  ;;  %v2036_v2 = vmul.f32 %v2008_v53, %v1968_v33  ;;  %s6160_s1 = sld [smem:[#allocation7 + $0xa2]] }
 0xc81   :  { %1991 = vrot.lane.b32.xlu1 %v1967_v60, %s4539_s16  ;;  %v2035_v22 = vmul.f32 %v2007_v55, %v1967_v60  ;;  %v2052_v19 = vmul.f32 %v2012_v29, %v1968_v33  ;;  %v2051_v8 = vmul.f32 %v2011_v26, %v1967_v60  ;;  %v2087_v60 = vsel %vm4890_vm15, %v2085_v15, %v2086_v17  ;;  %s6162_s22 = sld [smem:[#allocation7 + $0x44]] }
 0xc82   :  { %v2037_v25 = vmul.f32 %v2011_v26, %v1981_v57  ;;  %v2038_v61 = vmul.f32 %v2012_v29, %v1982_v10  ;;  %v2049_v11 = vmul.f32 %v2007_v55, %v1981_v57  ;;  %v2050_v34 = vmul.f32 %v2008_v53, %v1982_v10  ;;  %s6168_s23 = sld [smem:[#allocation7 + $0x47]] }
 0xc83   :  { %v2013_v53 = vstv %s4173_s2  ;;  %s6156_s2 = sld [smem:[#allocation7 + $0x42]] }
 0xc84   :  { %v2040_v51 = vsub.f32 %v2036_v2, %v2038_v61  ;;  %v2039_v23 = vsub.f32 %v2035_v22, %v2037_v25  ;;  %v2054_v32 = vadd.f32 %v2052_v19, %v2050_v34  ;;  %v2053_v31 = vadd.f32 %v2051_v8, %v2049_v11 }
 0xc85   :  { %v2015_v1 = vsel %vm6956_vm10, %v2013_v53, %v2014_v56  ;;  %v2016_v36 = vsel %vm6957_vm2, %v2013_v53, %v2014_v56  ;;  %v2090_v2 = vstv %s5793_s24  ;;  %s6176_s24 = sld [smem:[#allocation7 + $0xa4]] }
 0xc88   :  { %2021 = vrot.lane.b32.xlu0 %v1981_v57, %s4539_s16  ;;  %2023 = vrot.lane.b32.xlu2 %v1982_v10, %s4539_s16 }
 0xc89   :  { %1999 = vrot.lane.b32.xlu1 %v1968_v33, %s4540_s17 }
 0xc90   :  { %2029 = vrot.lane.b32.xlu0 %v1982_v10, %s4540_s17  ;;  %v2089_v10 = vstv %s5795_s25  ;;  %s6184_s25 = sld [smem:[#allocation7 + $0xa7]] }
 0xc91   :  { %2027 = vrot.lane.b32.xlu1 %v1981_v57, %s4540_s17  ;;  %v2088_v57 = vsel %vm4896_vm0, %v2085_v15, %v2086_v17 }
 0xcda   :  { %v1998_v3 = vpop.permute.xlu2 %1997 }
 0xce2   :  { %v2024_v5 = vpop.permute.xlu2 %2023 }
 0xcf2   :  { %v1994_v46 = vpop.permute.xlu0 %1993 }
 0xcf3   :  { %v1992_v4 = vpop.permute.xlu1 %1991 }
 0xcf4   :  { %v1995_v35 = vsel %vm6954_vm12, %v1992_v4, %v1994_v46  ;;  %v1996_v44 = vsel %vm6955_vm13, %v1994_v46, %v1992_v4  ;;  %vm6961_vm12 = vmmov %vm6957_vm2 }
 0xcf5   :  { %v2020_v29 = vsel %vm6961_vm12, %v2017_v27, %v2018_v0 }
 0xcfa   :  { %v2022_v55 = vpop.permute.xlu0 %2021 }
 0xcfb   :  { %v2000_v9 = vpop.permute.xlu1 %1999  ;;  %v2025_v22 = vsel %vm6955_vm13, %v2022_v55, %v2024_v5 }
 0xcfc   :  { %v2001_v16 = vsel %vm6952_vm8, %v1998_v3, %v2000_v9  ;;  %v2002_v59 = vsel %vm6953_vm7, %v2000_v9, %v1998_v3  ;;  %vm6959_vm8 = vmmov %vm6957_vm2  ;;  %vm6963_vm2 = vcmp.lt.s32.totalorder %v4783_v12, 126 }
 0xcfd   :  { %v2003_v20 = vsel %vm6958_vm11, %v1996_v44, %v2001_v16  ;;  %v2004_v42 = vsel %vm6959_vm8, %v1995_v35, %v2002_v59  ;;  %vm6960_vm7 = vmmov %vm6956_vm10  ;;  %v2091_v16 = vsel %vm4890_vm15, %v2089_v10, %v2090_v2  ;;  %v2092_v59 = vsel %vm4896_vm0, %v2089_v10, %v2090_v2 }
 0xcfe   :  { %v2041_v50 = vmul.f32 %v2015_v1, %v2003_v20  ;;  %v2042_v58 = vmul.f32 %v2016_v36, %v2004_v42  ;;  %v2019_v26 = vsel %vm6960_vm7, %v2017_v27, %v2018_v0  ;;  %vm6962_vm10 = vmmov %vm6955_vm13  ;;  %v2093_v10 = vstv %s4181_s4  ;;  %s4203_s4 = sld [smem:[#allocation7 + $0x46]] }
 0xcff   :  { %v2026_v19 = vsel %vm6962_vm10, %v2024_v5, %v2022_v55  ;;  %vm6964_vm11 = vmmov %vm6963_vm2  ;;  %v2059_v9 = vmul.f32 %v2019_v26, %v2003_v20  ;;  %v2060_v55 = vmul.f32 %v2020_v29, %v2004_v42  ;;  %v2094_v2 = vstv %s4180_s28  ;;  %s4202_s28 = sld [smem:[#allocation7 + $0x45]] }
 0xd00   :  { %v2043_v61 = vadd.f32 %v2041_v50, %v2039_v23  ;;  %v2044_v11 = vadd.f32 %v2042_v58, %v2040_v51  ;;  %vm6965_vm8 = vmmov %vm6960_vm7  ;;  %vm6968_vm13 = vcmp.eq.s32.totalorder %v4800_v45, 1  ;;  %vm6970_vm10 = vcmp.lt.s32.totalorder %v4783_v12, 64 }
 0xd01   :  { %vm6966_vm7 = vmmov %vm6961_vm12  ;;  %vm2293_vm12 = vweird.f32 %v4625_v21 }
 0xd02   :  { %v2030_v40 = vpop.permute.xlu0 %2029  ;;  %v5853_v5 = vsel %vm2293_vm12, nan, %v4763_v48 }
 0xd03   :  { %v2028_v33 = vpop.permute.xlu1 %2027 }
 0xd04   :  { %v2031_v8 = vsel %vm6963_vm2, %v2028_v33, %v2030_v40  ;;  %v2032_v25 = vsel %vm6964_vm11, %v2030_v40, %v2028_v33  ;;  %v5847_v40 = vsel %vm2293_vm12, nan, %v4761_v14  ;;  %vm6971_vm2 = vmmov %vm6970_vm10  ;;  %vm6972_vm11 = vcmp.eq.s32.totalorder %v4796_v41, 1 }
 0xd05   :  { %v2033_v34 = vsel %vm6965_vm8, %v2026_v19, %v2031_v8  ;;  %v2034_v46 = vsel %vm6966_vm7, %v2025_v22, %v2032_v25  ;;  %v5856_v33 = vsub.f32 0.0, %v5847_v40  ;;  %vm6973_vm8 = vmmov %vm6972_vm11 }
 0xd06   :  { %v2045_v4 = vmul.f32 %v2033_v34, %v2019_v26  ;;  %v2046_v3 = vmul.f32 %v2034_v46, %v2020_v29  ;;  %v2055_v53 = vmul.f32 %v2033_v34, %v2015_v1  ;;  %v2056_v56 = vmul.f32 %v2034_v46, %v2016_v36  ;;  %vm6974_vm7 = vmmov %vm6971_vm2 }
 0xd07   :  { %v2096_v34 = vsel %vm4896_vm0, %v2093_v10, %v2094_v2  ;;  %vm6975_vm12 = vmmov %vm6971_vm2 }
 0xd08   :  { %v2057_v23 = vadd.f32 %v2055_v53, %v2053_v31  ;;  %v2058_v51 = vadd.f32 %v2056_v56, %v2054_v32  ;;  %v2048_v35 = vsub.f32 %v2044_v11, %v2046_v3  ;;  %v2047_v44 = vsub.f32 %v2043_v61, %v2045_v4 }
 0xd09   :  { %v2095_v11 = vsel %vm4890_vm15, %v2093_v10, %v2094_v2  ;;  %v2097_v56 = vstv %s4185_s30  ;;  %s4207_s30 = sld [smem:[#allocation7 + $0xa6]] }
 0xd0a   :  { %2073 = vrot.lane.b32.xlu1 %v2048_v35, %s4541_s27  ;;  %2077 = vrot.lane.b32.xlu0 %v2047_v44, %s4542_s5  ;;  %v2061_v27 = vadd.f32 %v2059_v9, %v2057_v23  ;;  %v2062_v0 = vadd.f32 %v2060_v55, %v2058_v51  ;;  %v2116_v1 = vmul.f32 %v2088_v57, %v2048_v35  ;;  %v2098_v9 = vstv %s4184_s29  ;;  %s4206_s29 = sld [smem:[#allocation7 + $0xa5]] }
 0xd0b   :  { %2071 = vrot.lane.b32.xlu2 %v2047_v44, %s4541_s27  ;;  %v2115_v36 = vmul.f32 %v2087_v60, %v2047_v44  ;;  %v2132_v20 = vmul.f32 %v2092_v59, %v2048_v35  ;;  %v2131_v42 = vmul.f32 %v2091_v16, %v2047_v44  ;;  %v2100_v23 = vsel %vm4896_vm0, %v2097_v56, %v2098_v9 }
 0xd0c   :  { %v2117_v15 = vmul.f32 %v2091_v16, %v2061_v27  ;;  %v2118_v17 = vmul.f32 %v2092_v59, %v2062_v0  ;;  %v2130_v50 = vmul.f32 %v2088_v57, %v2062_v0  ;;  %v2129_v58 = vmul.f32 %v2087_v60, %v2061_v27 }
 0xd0d   :  { %v6967_v60 = vmov 1   ;;  %v2099_v59 = vsel %vm4890_vm15, %v2097_v56, %v2098_v9 }
 0xd0e   :  { %v2120_v31 = vsub.f32 %v2116_v1, %v2118_v17  ;;  %v2119_v32 = vsub.f32 %v2115_v36, %v2117_v15  ;;  %v2134_v26 = vadd.f32 %v2132_v20, %v2130_v50  ;;  %v2133_v29 = vadd.f32 %v2131_v42, %v2129_v58 }
 0xd12   :  { %2101 = vrot.lane.b32.xlu1 %v2061_v27, %s4541_s27  ;;  %2103 = vrot.lane.b32.xlu0 %v2062_v0, %s4541_s27 }
 0xd13   :  { %2079 = vrot.lane.b32.xlu2 %v2048_v35, %s4542_s5 }
 0xd1a   :  { %2109 = vrot.lane.b32.xlu1 %v2062_v0, %s4542_s5  ;;  %2462 = vperm.xlu0 %4323, %v5847_v40  }
 0xd1b   :  { %2107 = vrot.lane.b32.xlu2 %v2061_v27, %s4542_s5 }
 0xd22   :  { %2474 = vperm.xlu1 %4325, %v5853_v5   ;;  %4327 = vset.pattern.permute.xlu0 %v6967_v60 }
 0xd23   :  { %2467 = vperm.xlu2 %4324, %v5856_v33  }
 0xd2a   :  { %4326 = vset.pattern.permute.xlu1 %v6967_v60 }
 0xd2b   :  { %4328 = vset.pattern.permute.xlu2 %v6967_v60 }
 0xd65   :  { %v2072_v21 = vpop.permute.xlu2 %2071 }
 0xd6d   :  { %v2080_v48 = vpop.permute.xlu2 %2079 }
 0xd75   :  { %v2108_v53 = vpop.permute.xlu2 %2107 }
 0xd7c   :  { %v2074_v14 = vpop.permute.xlu1 %2073  ;;  %v2078_v57 = vpop.permute.xlu0 %2077 }
 0xd7d   :  { %v2075_v22 = vsel %vm1469_vm4, %v2072_v21, %v2074_v14  ;;  %v2076_v19 = vsel %vm1469_vm4, %v2074_v14, %v2072_v21  ;;  %v2081_v8 = vsel %vm1476_vm14, %v2078_v57, %v2080_v48  ;;  %v2082_v25 = vsel %vm1476_vm14, %v2080_v48, %v2078_v57 }
 0xd7e   :  { %v2083_v46 = vsel %vm4890_vm15, %v2076_v19, %v2081_v8  ;;  %v2084_v4 = vsel %vm4896_vm0, %v2075_v22, %v2082_v25  ;;  %v2468_v22 = vpop.permute.xlu2 %2467 }
 0xd7f   :  { %v2121_v55 = vmul.f32 %v2095_v11, %v2083_v46  ;;  %v2122_v16 = vmul.f32 %v2096_v34, %v2084_v4  ;;  %v2139_v60 = vmul.f32 %v2099_v59, %v2083_v46  ;;  %v2140_v21 = vmul.f32 %v2100_v23, %v2084_v4 }
 0xd81   :  { %v2123_v1 = vadd.f32 %v2121_v55, %v2119_v32  ;;  %v2124_v36 = vadd.f32 %v2122_v16, %v2120_v31 }
 0xd84   :  { %v2102_v61 = vpop.permute.xlu1 %2101  ;;  %v2104_v3 = vpop.permute.xlu0 %2103 }
 0xd85   :  { %v2105_v35 = vsel %vm1469_vm4, %v2102_v61, %v2104_v3  ;;  %v2106_v44 = vsel %vm1469_vm4, %v2104_v3, %v2102_v61 }
 0xd8c   :  { %v2110_v51 = vpop.permute.xlu1 %2109  ;;  %v2463_v48 = vpop.permute.xlu0 %2462 }
 0xd8d   :  { %v2111_v27 = vsel %vm1476_vm14, %v2108_v53, %v2110_v51  ;;  %v2112_v0 = vsel %vm1476_vm14, %v2110_v51, %v2108_v53  ;;  %v2470_v25 = vsel %vm790_vm3, %v2463_v48, %v2468_v22  ;;  %v2471_v61 = vsel %vm6968_vm13, %v2463_v48, %v2468_v22  ;;  %vm6976_vm13 = vmmov %vm6973_vm8 }
 0xd8e   :  { %v2113_v20 = vsel %vm4890_vm15, %v2106_v44, %v2111_v27  ;;  %v2114_v42 = vsel %vm4896_vm0, %v2105_v35, %v2112_v0  ;;  %v6969_v35 = vmov 2  }
 0xd8f   :  { %v2125_v15 = vmul.f32 %v2113_v20, %v2099_v59  ;;  %v2126_v17 = vmul.f32 %v2114_v42, %v2100_v23  ;;  %v2135_v50 = vmul.f32 %v2113_v20, %v2095_v11  ;;  %v2136_v58 = vmul.f32 %v2114_v42, %v2096_v34 }
 0xd91   :  { %v2137_v14 = vadd.f32 %v2135_v50, %v2133_v29  ;;  %v2138_v57 = vadd.f32 %v2136_v58, %v2134_v26  ;;  %v2127_v10 = vsub.f32 %v2123_v1, %v2125_v15  ;;  %v2128_v2 = vsub.f32 %v2124_v36, %v2126_v17 }
 0xd93   :  { %v2141_v32 = vadd.f32 %v2139_v60, %v2137_v14  ;;  %v2142_v31 = vadd.f32 %v2140_v21, %v2138_v57  ;;  %v2143_v19 = vmul.f32 %v2127_v10, %v5465_v18  ;;  %v2144_v8 = vmul.f32 %v2128_v2, %v5469_v13 }
 0xd94   :  { %v2475_v11 = vpop.permute.xlu1 %2474 }
 0xd95   :  { %v2145_v29 = vmul.f32 %v2141_v32, %v5465_v18  ;;  %v2146_v26 = vmul.f32 %v2142_v31, %v5469_v13  ;;  %v2479_v34 = vmul.f32 %v2470_v25, %v2144_v8  ;;  %v2480_v46 = vmul.f32 %v2471_v61, %v2143_v19 }
 0xd96   :  { %v2478_v4 = vmul.f32 %v2475_v11, %v2144_v8  ;;  %v2477_v3 = vmul.f32 %v2475_v11, %v2143_v19 }
 0xd97   :  { %v2485_v53 = vmul.f32 %v2470_v25, %v2146_v26  ;;  %v2486_v56 = vmul.f32 %v2471_v61, %v2145_v29  ;;  %v2483_v9 = vmul.f32 %v2475_v11, %v2145_v29  ;;  %v2484_v55 = vmul.f32 %v2475_v11, %v2146_v26 }
 0xd98   :  { %v2482_v16 = vadd.f32 %v2480_v46, %v2478_v4  ;;  %v2481_v59 = vadd.f32 %v2479_v34, %v2477_v3  ;;  %v6977_v46 = vmov 3  }
 0xd99   :  { %v2487_v23 = vadd.f32 %v2485_v53, %v2483_v9  ;;  %v2488_v51 = vadd.f32 %v2486_v56, %v2484_v55 }
 0xd9a   :  { %2491 = vrot.lane.b32.xlu1 %v2482_v16, %s4531_s19  ;;  %2489 = vrot.lane.b32.xlu2 %v2481_v59, %s4531_s19 }
 0xd9b   :  { %2497 = vrot.lane.b32.xlu0 %v2487_v23, %s4531_s19 }
 0xda2   :  { %2506 = vperm.xlu1 %4326, %v5847_v40   ;;  %2499 = vrot.lane.b32.xlu2 %v2488_v51, %s4531_s19 }
 0xda3   :  { %2510 = vperm.xlu0 %4327, %v5856_v33  }
 0xdaa   :  { %2516 = vperm.xlu2 %4328, %v5853_v5   ;;  %4329 = vset.pattern.permute.xlu1 %v6969_v35 }
 0xdab   :  { %4330 = vset.pattern.permute.xlu0 %v6969_v35 }
 0xdb2   :  { %4331 = vset.pattern.permute.xlu2 %v6969_v35 }
 0xdf4   :  { %v2490_v44 = vpop.permute.xlu2 %2489 }
 0xdfc   :  { %v2500_v27 = vpop.permute.xlu2 %2499 }
 0xe04   :  { %v2517_v42 = vpop.permute.xlu2 %2516 }
 0xe05   :  { %v2520_v48 = vmul.f32 %v2517_v42, %v2482_v16  ;;  %v2519_v10 = vmul.f32 %v2517_v42, %v2481_v59  ;;  %v2525_v25 = vmul.f32 %v2517_v42, %v2487_v23  ;;  %v2526_v26 = vmul.f32 %v2517_v42, %v2488_v51 }
 0xe0c   :  { %v2492_v0 = vpop.permute.xlu1 %2491 }
 0xe0d   :  { %v2498_v1 = vpop.permute.xlu0 %2497  ;;  %v2493_v36 = vsel %vm6970_vm10, %v2490_v44, %v2492_v0  ;;  %v2494_v20 = vsel %vm6971_vm2, %v2492_v0, %v2490_v44  ;;  %vm6978_vm10 = vcmp.lt.s32.totalorder %v4783_v12, 96 }
 0xe0e   :  { %v2495_v50 = vsel %vm784_vm1, %v2494_v20, %v2493_v36  ;;  %v2496_v58 = vsel %vm6972_vm11, %v2493_v36, %v2494_v20  ;;  %v2501_v2 = vsel %vm6974_vm7, %v2498_v1, %v2500_v27  ;;  %v2502_v22 = vsel %vm6975_vm12, %v2500_v27, %v2498_v1  ;;  %vm6979_vm2 = vmmov %vm6978_vm10 }
 0xe0f   :  { %v2503_v19 = vsel %vm784_vm1, %v2502_v22, %v2501_v2  ;;  %v2504_v11 = vsel %vm6976_vm13, %v2501_v2, %v2502_v22  ;;  %vm6980_vm11 = vcmp.lt.s32.totalorder %v4783_v12, 32  ;;  %vm6983_vm12 = vmmov %vm6979_vm2 }
 0xe14   :  { %v2507_v15 = vpop.permute.xlu1 %2506 }
 0xe15   :  { %v2511_v17 = vpop.permute.xlu0 %2510 }
 0xe16   :  { %v2513_v60 = vsel %vm784_vm1, %v2507_v15, %v2511_v17  ;;  %v2514_v21 = vsel %vm6973_vm8, %v2507_v15, %v2511_v17  ;;  %vm6981_vm8 = vmmov %vm6980_vm11 }
 0xe17   :  { %v2521_v14 = vmul.f32 %v2513_v60, %v2495_v50  ;;  %v2522_v57 = vmul.f32 %v2514_v21, %v2496_v58  ;;  %v2527_v8 = vmul.f32 %v2513_v60, %v2503_v19  ;;  %v2528_v29 = vmul.f32 %v2514_v21, %v2504_v11  ;;  %vm6982_vm7 = vmmov %vm6981_vm8 }
 0xe18   :  { %vm6984_vm13 = vmmov %vm6982_vm7 }
 0xe19   :  { %v2524_v32 = vadd.f32 %v2522_v57, %v2520_v48  ;;  %v2523_v31 = vadd.f32 %v2521_v14, %v2519_v10  ;;  %v2529_v61 = vadd.f32 %v2527_v8, %v2525_v25  ;;  %v2530_v34 = vadd.f32 %v2528_v29, %v2526_v26 }
 0xe1b   :  { %2539 = vrot.lane.b32.xlu0 %v2524_v32, %s4533_s3  ;;  %2533 = vrot.lane.b32.xlu2 %v2524_v32, %s4532_s26 }
 0xe1c   :  { %2531 = vrot.lane.b32.xlu1 %v2523_v31, %s4532_s26 }
 0xe23   :  { %2551 = vrot.lane.b32.xlu0 %v2529_v61, %s4533_s3  ;;  %2545 = vrot.lane.b32.xlu2 %v2529_v61, %s4532_s26 }
 0xe24   :  { %2537 = vrot.lane.b32.xlu1 %v2523_v31, %s4533_s3 }
 0xe2b   :  { %2564 = vperm.xlu0 %4330, %v5856_v33   ;;  %2553 = vrot.lane.b32.xlu2 %v2530_v34, %s4533_s3 }
 0xe2c   :  { %2547 = vrot.lane.b32.xlu1 %v2530_v34, %s4532_s26 }
 0xe33   :  { %2570 = vperm.xlu2 %4331, %v5853_v5   ;;  %4333 = vset.pattern.permute.xlu0 %v6977_v46 }
 0xe34   :  { %2560 = vperm.xlu1 %4329, %v5847_v40  }
 0xe3b   :  { %4334 = vset.pattern.permute.xlu2 %v6977_v46 }
 0xe3c   :  { %4332 = vset.pattern.permute.xlu1 %v6977_v46 }
 0xe75   :  { %v2534_v4 = vpop.permute.xlu2 %2533 }
 0xe7d   :  { %v2546_v53 = vpop.permute.xlu2 %2545 }
 0xe85   :  { %v2554_v55 = vpop.permute.xlu2 %2553 }
 0xe8d   :  { %v2540_v56 = vpop.permute.xlu0 %2539  ;;  %v2571_v35 = vpop.permute.xlu2 %2570 }
 0xe8e   :  { %v2532_v3 = vpop.permute.xlu1 %2531  ;;  %v2573_v17 = vmul.f32 %v2571_v35, %v2523_v31  ;;  %v2574_v60 = vmul.f32 %v2571_v35, %v2524_v32  ;;  %v2579_v22 = vmul.f32 %v2571_v35, %v2529_v61  ;;  %v2580_v11 = vmul.f32 %v2571_v35, %v2530_v34 }
 0xe8f   :  { %v2535_v44 = vsel %vm6980_vm11, %v2532_v3, %v2534_v4  ;;  %v2536_v27 = vsel %vm6981_vm8, %v2534_v4, %v2532_v3  ;;  %v6986_v61 = vmov 4   ;;  %vm6989_vm8 = vcmp.lt.s32.totalorder %v4783_v12, 16 }
 0xe95   :  { %v2552_v16 = vpop.permute.xlu0 %2551 }
 0xe96   :  { %v2538_v9 = vpop.permute.xlu1 %2537  ;;  %v2555_v48 = vsel %vm6983_vm12, %v2552_v16, %v2554_v55  ;;  %vm6991_vm12 = vcmp.eq.s32.totalorder %v4818_v54, 1 }
 0xe97   :  { %v2541_v23 = vsel %vm6978_vm10, %v2538_v9, %v2540_v56  ;;  %v2542_v51 = vsel %vm6979_vm2, %v2540_v56, %v2538_v9  ;;  %vm6985_vm10 = vmmov %vm6979_vm2  ;;  %vm6987_vm2 = vcmp.lt.s32.totalorder %v4783_v12, 112 }
 0xe98   :  { %v2543_v36 = vsel %vm778_vm5, %v2536_v27, %v2541_v23  ;;  %v2544_v20 = vsel %vm779_vm6, %v2535_v44, %v2542_v51  ;;  %v2556_v19 = vsel %vm6985_vm10, %v2554_v55, %v2552_v16  ;;  %vm6988_vm11 = vmmov %vm6987_vm2 }
 0xe99   :  { %vm6993_vm10 = vmmov %vm6991_vm12 }
 0xe9d   :  { %v2565_v0 = vpop.permute.xlu0 %2564 }
 0xe9e   :  { %v2548_v59 = vpop.permute.xlu1 %2547 }
 0xe9f   :  { %v2550_v21 = vsel %vm6982_vm7, %v2548_v59, %v2546_v53  ;;  %v2549_v32 = vsel %vm6984_vm13, %v2546_v53, %v2548_v59  ;;  %vm6990_vm7 = vmmov %vm6989_vm8  ;;  %vm6992_vm13 = vcmp.eq.s32.totalorder %v4820_v24, 1 }
 0xea0   :  { %v2557_v10 = vsel %vm778_vm5, %v2550_v21, %v2555_v48  ;;  %v2558_v8 = vsel %vm779_vm6, %v2549_v32, %v2556_v19 }
 0xea6   :  { %v2561_v1 = vpop.permute.xlu1 %2560 }
 0xea7   :  { %v2567_v42 = vsel %vm778_vm5, %v2561_v1, %v2565_v0  ;;  %v2568_v15 = vsel %vm779_vm6, %v2561_v1, %v2565_v0 }
 0xea8   :  { %v2575_v50 = vmul.f32 %v2567_v42, %v2543_v36  ;;  %v2576_v58 = vmul.f32 %v2568_v15, %v2544_v20  ;;  %v2581_v2 = vmul.f32 %v2567_v42, %v2557_v10  ;;  %v2582_v25 = vmul.f32 %v2568_v15, %v2558_v8 }
 0xeaa   :  { %v2577_v14 = vadd.f32 %v2575_v50, %v2573_v17  ;;  %v2578_v57 = vadd.f32 %v2576_v58, %v2574_v60  ;;  %v2583_v31 = vadd.f32 %v2581_v2, %v2579_v22  ;;  %v2584_v29 = vadd.f32 %v2582_v25, %v2580_v11 }
 0xeac   :  { %2593 = vrot.lane.b32.xlu0 %v2578_v57, %s4535_s10  ;;  %2587 = vrot.lane.b32.xlu2 %v2578_v57, %s4534_s9 }
 0xead   :  { %2585 = vrot.lane.b32.xlu1 %v2577_v14, %s4534_s9 }
 0xeb4   :  { %2605 = vrot.lane.b32.xlu0 %v2583_v31, %s4535_s10  ;;  %2599 = vrot.lane.b32.xlu2 %v2583_v31, %s4534_s9 }
 0xeb5   :  { %2591 = vrot.lane.b32.xlu1 %v2577_v14, %s4535_s10 }
 0xebc   :  { %2618 = vperm.xlu0 %4333, %v5856_v33   ;;  %2607 = vrot.lane.b32.xlu2 %v2584_v29, %s4535_s10 }
 0xebd   :  { %2601 = vrot.lane.b32.xlu1 %v2584_v29, %s4534_s9 }
 0xec4   :  { %2624 = vperm.xlu2 %4334, %v5853_v5   ;;  %4336 = vset.pattern.permute.xlu0 %v6986_v61 }
 0xec5   :  { %2614 = vperm.xlu1 %4332, %v5847_v40  }
 0xecc   :  { %4337 = vset.pattern.permute.xlu2 %v6986_v61 }
 0xecd   :  { %4335 = vset.pattern.permute.xlu1 %v6986_v61 }
 0xf06   :  { %v2588_v26 = vpop.permute.xlu2 %2587 }
 0xf0e   :  { %v2600_v34 = vpop.permute.xlu2 %2599 }
 0xf16   :  { %v2608_v53 = vpop.permute.xlu2 %2607 }
 0xf1e   :  { %v2594_v4 = vpop.permute.xlu0 %2593  ;;  %v2625_v59 = vpop.permute.xlu2 %2624 }
 0xf1f   :  { %v2586_v46 = vpop.permute.xlu1 %2585  ;;  %v2628_v20 = vmul.f32 %v2625_v59, %v2578_v57  ;;  %v2627_v17 = vmul.f32 %v2625_v59, %v2577_v14  ;;  %v2633_v10 = vmul.f32 %v2625_v59, %v2583_v31  ;;  %v2634_v8 = vmul.f32 %v2625_v59, %v2584_v29 }
 0xf20   :  { %v2589_v23 = vsel %vm6989_vm8, %v2586_v46, %v2588_v26  ;;  %v2590_v51 = vsel %vm6990_vm7, %v2588_v26, %v2586_v46  ;;  %vm6996_vm8 = vcmp.lt.s32.totalorder %v4783_v12, 112  ;;  %v7001_v31 = vmov 5  }
 0xf26   :  { %v2606_v56 = vpop.permute.xlu0 %2605 }
 0xf27   :  { %v2592_v3 = vpop.permute.xlu1 %2591  ;;  %v2609_v21 = vsel %vm6996_vm8, %v2606_v56, %v2608_v53 }
 0xf28   :  { %v2595_v55 = vsel %vm6987_vm2, %v2592_v3, %v2594_v4  ;;  %v2596_v16 = vsel %vm6988_vm11, %v2594_v4, %v2592_v3  ;;  %vm6994_vm2 = vmmov %vm6992_vm13 }
 0xf29   :  { %v2597_v27 = vsel %vm6991_vm12, %v2590_v51, %v2595_v55  ;;  %v2598_v0 = vsel %vm6992_vm13, %v2589_v23, %v2596_v16  ;;  %vm6995_vm11 = vmmov %vm6990_vm7 }
 0xf2a   :  { %vm6997_vm7 = vmmov %vm6993_vm10 }
 0xf2b   :  { %vm6998_vm12 = vmmov %vm6995_vm11 }
 0xf2c   :  { %vm6999_vm13 = vmmov %vm6996_vm8  ;;  %vm7004_vm8 = vcmp.lt.s32.totalorder %v4783_v12, 8 }
 0xf2d   :  { %v2610_v22 = vsel %vm6999_vm13, %v2608_v53, %v2606_v56 }
 0xf2e   :  { %v2619_v35 = vpop.permute.xlu0 %2618 }
 0xf2f   :  { %v2602_v9 = vpop.permute.xlu1 %2601 }
 0xf30   :  { %v2604_v50 = vsel %vm6995_vm11, %v2602_v9, %v2600_v34  ;;  %v2603_v14 = vsel %vm6998_vm12, %v2600_v34, %v2602_v9  ;;  %vm7006_vm12 = vcmp.eq.s32.totalorder %v4846_v38, 1 }
 0xf31   :  { %v2611_v48 = vsel %vm6997_vm7, %v2604_v50, %v2609_v21  ;;  %vm7005_vm7 = vmmov %vm7004_vm8 }
 0xf32   :  { %vm7007_vm13 = vmmov %vm7006_vm12 }
 0xf37   :  { %v2615_v44 = vpop.permute.xlu1 %2614 }
 0xf38   :  { %v2621_v1 = vsel %vm6993_vm10, %v2615_v44, %v2619_v35  ;;  %v2622_v36 = vsel %vm6994_vm2, %v2615_v44, %v2619_v35  ;;  %vm7000_vm10 = vmmov %vm6994_vm2  ;;  %vm7002_vm2 = vcmp.lt.s32.totalorder %v4783_v12, 120 }
 0xf39   :  { %v2629_v42 = vmul.f32 %v2621_v1, %v2597_v27  ;;  %v2630_v15 = vmul.f32 %v2622_v36, %v2598_v0  ;;  %v2635_v57 = vmul.f32 %v2621_v1, %v2611_v48  ;;  %v2612_v32 = vsel %vm7000_vm10, %v2603_v14, %v2610_v22  ;;  %vm7003_vm11 = vmmov %vm7002_vm2 }
 0xf3a   :  { %v2636_v19 = vmul.f32 %v2622_v36, %v2612_v32  ;;  %vm7008_vm10 = vmmov %vm7005_vm7 }
 0xf3b   :  { %v2632_v58 = vadd.f32 %v2630_v15, %v2628_v20  ;;  %v2631_v60 = vadd.f32 %v2629_v42, %v2627_v17  ;;  %v2637_v2 = vadd.f32 %v2635_v57, %v2633_v10 }
 0xf3c   :  { %v2638_v25 = vadd.f32 %v2636_v19, %v2634_v8 }
 0xf3d   :  { %2647 = vrot.lane.b32.xlu0 %v2632_v58, %s4536_s20  ;;  %2641 = vrot.lane.b32.xlu2 %v2632_v58, %s4512_s14 }
 0xf3e   :  { %2639 = vrot.lane.b32.xlu1 %v2631_v60, %s4512_s14 }
 0xf45   :  { %2659 = vrot.lane.b32.xlu0 %v2637_v2, %s4536_s20  ;;  %2653 = vrot.lane.b32.xlu2 %v2637_v2, %s4512_s14 }
 0xf46   :  { %2645 = vrot.lane.b32.xlu1 %v2631_v60, %s4536_s20 }
 0xf4d   :  { %2672 = vperm.xlu0 %4336, %v5856_v33   ;;  %2661 = vrot.lane.b32.xlu2 %v2638_v25, %s4536_s20 }
 0xf4e   :  { %2655 = vrot.lane.b32.xlu1 %v2638_v25, %s4512_s14 }
 0xf55   :  { %2678 = vperm.xlu2 %4337, %v5853_v5   ;;  %4339 = vset.pattern.permute.xlu0 %v7001_v31 }
 0xf56   :  { %2668 = vperm.xlu1 %4335, %v5847_v40  }
 0xf5d   :  { %4340 = vset.pattern.permute.xlu2 %v7001_v31 }
 0xf5e   :  { %4338 = vset.pattern.permute.xlu1 %v7001_v31 }
 0xf97   :  { %v2642_v11 = vpop.permute.xlu2 %2641 }
 0xf9f   :  { %v2654_v29 = vpop.permute.xlu2 %2653 }
 0xfa7   :  { %v2662_v34 = vpop.permute.xlu2 %2661 }
 0xfaf   :  { %v2648_v26 = vpop.permute.xlu0 %2647  ;;  %v2679_v9 = vpop.permute.xlu2 %2678 }
 0xfb0   :  { %v2640_v61 = vpop.permute.xlu1 %2639  ;;  %v2681_v0 = vmul.f32 %v2679_v9, %v2631_v60  ;;  %v2682_v1 = vmul.f32 %v2679_v9, %v2632_v58  ;;  %v2687_v60 = vmul.f32 %v2679_v9, %v2637_v2  ;;  %v2688_v32 = vmul.f32 %v2679_v9, %v2638_v25 }
 0xfb1   :  { %v2643_v55 = vsel %vm7004_vm8, %v2640_v61, %v2642_v11  ;;  %v2644_v16 = vsel %vm7005_vm7, %v2642_v11, %v2640_v61  ;;  %vm7010_vm8 = vmmov %vm7002_vm2  ;;  %v7012_v2 = vmov 6  }
 0xfb7   :  { %v2660_v4 = vpop.permute.xlu0 %2659 }
 0xfb8   :  { %v2646_v46 = vpop.permute.xlu1 %2645  ;;  %v2663_v50 = vsel %vm7002_vm2, %v2660_v4, %v2662_v34  ;;  %v2664_v10 = vsel %vm7010_vm8, %v2662_v34, %v2660_v4  ;;  %vm7018_vm8 = vcmp.eq.s32.totalorder %v4858_v63, 1 }
 0xfb9   :  { %v2649_v53 = vsel %vm7002_vm2, %v2646_v46, %v2648_v26  ;;  %v2650_v56 = vsel %vm7003_vm11, %v2648_v26, %v2646_v46  ;;  %vm7009_vm11 = vmmov %vm7005_vm7 }
 0xfba   :  { %v2651_v51 = vsel %vm766_vm9, %v2644_v16, %v2649_v53  ;;  %v2652_v35 = vsel %vm7006_vm12, %v2643_v55, %v2650_v56  ;;  %vm7011_vm7 = vmmov %vm7006_vm12  ;;  %vm7013_vm12 = vcmp.lt.s32.totalorder %v4783_v12, 124 }
 0xfbf   :  { %v2673_v59 = vpop.permute.xlu0 %2672 }
 0xfc0   :  { %v2656_v3 = vpop.permute.xlu1 %2655 }
 0xfc1   :  { %v2658_v42 = vsel %vm7008_vm10, %v2656_v3, %v2654_v29  ;;  %v2657_v48 = vsel %vm7009_vm11, %v2654_v29, %v2656_v3  ;;  %vm7015_vm10 = vcmp.lt.s32.totalorder %v4783_v12, 4  ;;  %vm7017_vm11 = vcmp.eq.s32.totalorder %v4856_v39, 1 }
 0xfc2   :  { %v2665_v21 = vsel %vm766_vm9, %v2658_v42, %v2663_v50  ;;  %v2666_v14 = vsel %vm7011_vm7, %v2657_v48, %v2664_v10  ;;  %vm7016_vm2 = vmmov %vm7015_vm10 }
 0xfc3   :  { %vm7019_vm7 = vmmov %vm7017_vm11 }
 0xfc8   :  { %v2669_v23 = vpop.permute.xlu1 %2668 }
 0xfc9   :  { %v2675_v44 = vsel %vm766_vm9, %v2669_v23, %v2673_v59  ;;  %v2676_v27 = vsel %vm7007_vm13, %v2669_v23, %v2673_v59  ;;  %vm7014_vm13 = vmmov %vm7013_vm12 }
 0xfca   :  { %v2683_v36 = vmul.f32 %v2675_v44, %v2651_v51  ;;  %v2684_v20 = vmul.f32 %v2676_v27, %v2652_v35  ;;  %v2689_v58 = vmul.f32 %v2675_v44, %v2665_v21  ;;  %v2690_v22 = vmul.f32 %v2676_v27, %v2666_v14 }
 0xfcc   :  { %v2685_v15 = vadd.f32 %v2683_v36, %v2681_v0  ;;  %v2686_v17 = vadd.f32 %v2684_v20, %v2682_v1  ;;  %v2691_v57 = vadd.f32 %v2689_v58, %v2687_v60  ;;  %v2692_v19 = vadd.f32 %v2690_v22, %v2688_v32 }
 0xfce   :  { %2701 = vrot.lane.b32.xlu0 %v2686_v17, %s4538_s0  ;;  %2695 = vrot.lane.b32.xlu2 %v2686_v17, %s4537_s6 }
 0xfcf   :  { %2693 = vrot.lane.b32.xlu1 %v2685_v15, %s4537_s6 }
 0xfd6   :  { %2713 = vrot.lane.b32.xlu0 %v2691_v57, %s4538_s0  ;;  %2707 = vrot.lane.b32.xlu2 %v2691_v57, %s4537_s6 }
 0xfd7   :  { %2699 = vrot.lane.b32.xlu1 %v2685_v15, %s4538_s0 }
 0xfde   :  { %2726 = vperm.xlu0 %4339, %v5856_v33   ;;  %2715 = vrot.lane.b32.xlu2 %v2692_v19, %s4538_s0 }
 0xfdf   :  { %2709 = vrot.lane.b32.xlu1 %v2692_v19, %s4537_s6 }
 0xfe6   :  { %2732 = vperm.xlu2 %4340, %v5853_v5   ;;  %4342 = vset.pattern.permute.xlu0 %v7012_v2 }
 0xfe7   :  { %2722 = vperm.xlu1 %4338, %v5847_v40  }
 0xfee   :  { %4343 = vset.pattern.permute.xlu2 %v7012_v2 }
 0xfef   :  { %4341 = vset.pattern.permute.xlu1 %v7012_v2 }
0x1028   :  { %v2696_v8 = vpop.permute.xlu2 %2695 }
0x1030   :  { %v2708_v25 = vpop.permute.xlu2 %2707 }
0x1038   :  { %v2716_v29 = vpop.permute.xlu2 %2715 }
0x1040   :  { %v2702_v11 = vpop.permute.xlu0 %2701  ;;  %v2733_v3 = vpop.permute.xlu2 %2732 }
0x1041   :  { %v2694_v31 = vpop.permute.xlu1 %2693  ;;  %v2735_v35 = vmul.f32 %v2733_v3, %v2685_v15  ;;  %v2736_v44 = vmul.f32 %v2733_v3, %v2686_v17  ;;  %v2741_v17 = vmul.f32 %v2733_v3, %v2691_v57  ;;  %v2742_v14 = vmul.f32 %v2733_v3, %v2692_v19 }
0x1042   :  { %v2697_v53 = vsel %vm7015_vm10, %v2694_v31, %v2696_v8  ;;  %v2698_v56 = vsel %vm7016_vm2, %v2696_v8, %v2694_v31  ;;  %vm7022_vm10 = vcmp.lt.s32.totalorder %v4783_v12, 124  ;;  %v7027_v57 = vmov 7  }
0x1048   :  { %v2714_v26 = vpop.permute.xlu0 %2713 }
0x1049   :  { %v2700_v61 = vpop.permute.xlu1 %2699  ;;  %v2717_v42 = vsel %vm7022_vm10, %v2714_v26, %v2716_v29 }
0x104a   :  { %v2703_v34 = vsel %vm7013_vm12, %v2700_v61, %v2702_v11  ;;  %v2704_v4 = vsel %vm7014_vm13, %v2702_v11, %v2700_v61  ;;  %vm7020_vm12 = vmmov %vm7018_vm8 }
0x104b   :  { %v2705_v16 = vsel %vm7017_vm11, %v2698_v56, %v2703_v34  ;;  %v2706_v59 = vsel %vm7018_vm8, %v2697_v53, %v2704_v4  ;;  %vm7021_vm13 = vmmov %vm7016_vm2 }
0x104c   :  { %vm7023_vm2 = vmmov %vm7019_vm7 }
0x104d   :  { %vm7024_vm11 = vmmov %vm7021_vm13 }
0x104e   :  { %vm7025_vm8 = vmmov %vm7022_vm10  ;;  %vm7030_vm10 = vcmp.lt.s32.totalorder %v4783_v12, 2 }
0x104f   :  { %v2718_v60 = vsel %vm7025_vm8, %v2716_v29, %v2714_v26  ;;  %vm7033_vm8 = vcmp.eq.s32.totalorder %v4864_v7, 1 }
0x1050   :  { %v2727_v9 = vpop.permute.xlu0 %2726 }
0x1051   :  { %v2710_v46 = vpop.permute.xlu1 %2709 }
0x1052   :  { %v2712_v1 = vsel %vm7021_vm13, %v2710_v46, %v2708_v25  ;;  %v2711_v21 = vsel %vm7024_vm11, %v2708_v25, %v2710_v46  ;;  %vm7032_vm11 = vcmp.eq.s32.totalorder %v4862_v6, 1 }
0x1053   :  { %v2719_v50 = vsel %vm7023_vm2, %v2712_v1, %v2717_v42  ;;  %vm7031_vm2 = vmmov %vm7030_vm10 }
0x1059   :  { %v2723_v55 = vpop.permute.xlu1 %2722 }
0x105a   :  { %v2729_v23 = vsel %vm7019_vm7, %v2723_v55, %v2727_v9  ;;  %v2730_v51 = vsel %vm7020_vm12, %v2723_v55, %v2727_v9  ;;  %vm7026_vm7 = vmmov %vm7020_vm12  ;;  %vm7028_vm12 = vcmp.lt.s32.totalorder %v4783_v12, 126 }
0x105b   :  { %v2737_v27 = vmul.f32 %v2729_v23, %v2705_v16  ;;  %v2738_v0 = vmul.f32 %v2730_v51, %v2706_v59  ;;  %v2743_v15 = vmul.f32 %v2729_v23, %v2719_v50  ;;  %v2720_v48 = vsel %vm7026_vm7, %v2711_v21, %v2718_v60  ;;  %vm7029_vm13 = vmmov %vm7028_vm12 }
0x105c   :  { %v2744_v10 = vmul.f32 %v2730_v51, %v2720_v48  ;;  %vm7034_vm7 = vmmov %vm7032_vm11 }
0x105d   :  { %v2739_v36 = vadd.f32 %v2737_v27, %v2735_v35  ;;  %v2740_v20 = vadd.f32 %v2738_v0, %v2736_v44  ;;  %v2745_v58 = vadd.f32 %v2743_v15, %v2741_v17 }
0x105e   :  { %v2746_v22 = vadd.f32 %v2744_v10, %v2742_v14 }
0x105f   :  { %2755 = vrot.lane.b32.xlu0 %v2740_v20, %s4540_s17  ;;  %2749 = vrot.lane.b32.xlu2 %v2740_v20, %s4539_s16 }
0x1060   :  { %2747 = vrot.lane.b32.xlu1 %v2739_v36, %s4539_s16 }
0x1067   :  { %2767 = vrot.lane.b32.xlu0 %v2745_v58, %s4540_s17  ;;  %2761 = vrot.lane.b32.xlu2 %v2745_v58, %s4539_s16 }
0x1068   :  { %2753 = vrot.lane.b32.xlu1 %v2739_v36, %s4540_s17 }
0x106f   :  { %2780 = vperm.xlu0 %4342, %v5856_v33   ;;  %2769 = vrot.lane.b32.xlu2 %v2746_v22, %s4540_s17 }
0x1070   :  { %2763 = vrot.lane.b32.xlu1 %v2746_v22, %s4539_s16 }
0x1077   :  { %2786 = vperm.xlu2 %4343, %v5853_v5   ;;  %4345 = vset.pattern.permute.xlu0 %v7027_v57 }
0x1078   :  { %2776 = vperm.xlu1 %4341, %v5847_v40  }
0x107f   :  { %4346 = vset.pattern.permute.xlu2 %v7027_v57 }
0x1080   :  { %4344 = vset.pattern.permute.xlu1 %v7027_v57 }
0x10b9   :  { %v2750_v32 = vpop.permute.xlu2 %2749 }
0x10c1   :  { %v2762_v19 = vpop.permute.xlu2 %2761 }
0x10c9   :  { %v2770_v25 = vpop.permute.xlu2 %2769 }
0x10d1   :  { %v2756_v8 = vpop.permute.xlu0 %2755  ;;  %v2787_v46 = vpop.permute.xlu2 %2786 }
0x10d2   :  { %v2748_v2 = vpop.permute.xlu1 %2747  ;;  %v2789_v59 = vmul.f32 %v2787_v46, %v2739_v36  ;;  %v2790_v23 = vmul.f32 %v2787_v46, %v2740_v20  ;;  %v2795_v20 = vmul.f32 %v2787_v46, %v2745_v58  ;;  %v2796_v48 = vmul.f32 %v2787_v46, %v2746_v22 }
0x10d3   :  { %v2751_v34 = vsel %vm7030_vm10, %v2748_v2, %v2750_v32  ;;  %v2752_v4 = vsel %vm7031_vm2, %v2750_v32, %v2748_v2  ;;  %vm7037_vm10 = vcmp.lt.s32.totalorder %v4783_v12, 126  ;;  %v2871_v46 = vstv %s6156_s2  ;;  %s4211_s2 = sld [smem:[#allocation7 + $0x4a]] }
0x10d9   :  { %v2768_v11 = vpop.permute.xlu0 %2767 }
0x10da   :  { %v2754_v31 = vpop.permute.xlu1 %2753  ;;  %v2771_v1 = vsel %vm7037_vm10, %v2768_v11, %v2770_v25 }
0x10db   :  { %v2757_v29 = vsel %vm7028_vm12, %v2754_v31, %v2756_v8  ;;  %v2758_v26 = vsel %vm7029_vm13, %v2756_v8, %v2754_v31  ;;  %vm7035_vm12 = vmmov %vm7033_vm8  ;;  %v2867_v8 = vstv %s4200_s15  ;;  %v2868_v31 = vstv %s4197_s13  ;;  %s6234_s13 = sld [smem:[#allocation7 + $0xa8]] }
0x10dc   :  { %v2759_v56 = vsel %vm7032_vm11, %v2752_v4, %v2757_v29  ;;  %v2760_v9 = vsel %vm7033_vm8, %v2751_v34, %v2758_v26  ;;  %vm7036_vm13 = vmmov %vm7031_vm2  ;;  %v2869_v29 = vsel %vm790_vm3, %v2867_v8, %v2868_v31  ;;  %v2872_v34 = vstv %s6154_s18  ;;  %s6236_s15 = sld [smem:[#allocation7 + $0xab]] }
0x10dd   :  { %vm7038_vm2 = vmmov %vm7034_vm7  ;;  %s4210_s18 = sld [smem:[#allocation7 + $0x49]] }
0x10de   :  { %vm7039_vm11 = vmmov %vm7036_vm13 }
0x10df   :  { %vm7040_vm8 = vmmov %vm7037_vm10 }
0x10e0   :  { %v2772_v17 = vsel %vm7040_vm8, %v2770_v25, %v2768_v11  ;;  %vm7048_vm8 = vcmp.lt.s32.totalorder %v4783_v12, 64 }
0x10e1   :  { %v2781_v3 = vpop.permute.xlu0 %2780 }
0x10e2   :  { %v2764_v61 = vpop.permute.xlu1 %2763 }
0x10e3   :  { %v2766_v44 = vsel %vm7036_vm13, %v2764_v61, %v2762_v19  ;;  %v2765_v50 = vsel %vm7039_vm11, %v2762_v19, %v2764_v61  ;;  %v2864_v19 = vstv %s4193_s11  ;;  %s4209_s11 = sld [smem:[#allocation7 + $0x48]] }
0x10e4   :  { %v2773_v42 = vsel %vm7038_vm2, %v2766_v44, %v2771_v1 }
0x10ea   :  { %v2777_v53 = vpop.permute.xlu1 %2776 }
0x10eb   :  { %v2783_v55 = vsel %vm7034_vm7, %v2777_v53, %v2781_v3  ;;  %v2784_v16 = vsel %vm7035_vm12, %v2777_v53, %v2781_v3  ;;  %vm7041_vm7 = vmmov %vm7035_vm12  ;;  %vm7042_vm12 = vcmp.eq.s32.totalorder %v4800_v45, 1  ;;  %v2875_v53 = vstv %s6160_s1  ;;  %s4215_s1 = sld [smem:[#allocation7 + $0xaa]] }
0x10ec   :  { %v2791_v51 = vmul.f32 %v2783_v55, %v2759_v56  ;;  %v2792_v35 = vmul.f32 %v2784_v16, %v2760_v9  ;;  %v2797_v36 = vmul.f32 %v2783_v55, %v2773_v42  ;;  %v2774_v21 = vsel %vm7041_vm7, %v2765_v50, %v2772_v17  ;;  %vm7043_vm13 = vmmov %vm7042_vm12 }
0x10ed   :  { %v2798_v60 = vmul.f32 %v2784_v16, %v2774_v21  ;;  %v2870_v26 = vsel %vm7043_vm13, %v2867_v8, %v2868_v31  ;;  %v2876_v56 = vstv %s6158_s21  ;;  %vm7044_vm10 = vmmov %vm7042_vm12  ;;  %v2924_v8 = vstv %s6162_s22  ;;  %s4214_s21 = sld [smem:[#allocation7 + $0xa9]] }
0x10ee   :  { %v2793_v27 = vadd.f32 %v2791_v51, %v2789_v59  ;;  %v2794_v0 = vadd.f32 %v2792_v35, %v2790_v23  ;;  %v2799_v15 = vadd.f32 %v2797_v36, %v2795_v20  ;;  %vm7045_vm2 = vmmov %vm7044_vm10  ;;  %v2927_v31 = vstv %s6184_s25  ;;  %s4217_s22 = sld [smem:[#allocation7 + $0x4c]] }
0x10ef   :  { %v2800_v10 = vadd.f32 %v2798_v60, %v2796_v48  ;;  %vm7049_vm7 = vmmov %vm7048_vm8  ;;  %s6292_s25 = sld [smem:[#allocation7 + $0xaf]] }
0x10f0   :  { %2809 = vrot.lane.b32.xlu0 %v2794_v0, %s4542_s5  ;;  %2803 = vrot.lane.b32.xlu2 %v2794_v0, %s4541_s27 }
0x10f1   :  { %2801 = vrot.lane.b32.xlu1 %v2793_v27, %s4541_s27 }
0x10f8   :  { %2821 = vrot.lane.b32.xlu0 %v2799_v15, %s4542_s5  ;;  %2815 = vrot.lane.b32.xlu2 %v2799_v15, %s4541_s27 }
0x10f9   :  { %2807 = vrot.lane.b32.xlu1 %v2793_v27, %s4542_s5 }
0x1100   :  { %2834 = vperm.xlu0 %4345, %v5856_v33   ;;  %2823 = vrot.lane.b32.xlu2 %v2800_v10, %s4542_s5  ;;  %v2863_v33 = vstv %s4196_s12  ;;  %s4212_s12 = sld [smem:[#allocation7 + $0x4b]] }
0x1101   :  { %2817 = vrot.lane.b32.xlu1 %v2800_v10, %s4541_s27  ;;  %v2865_v11 = vsel %vm790_vm3, %v2863_v33, %v2864_v19  ;;  %v2866_v61 = vsel %vm7042_vm12, %v2863_v33, %v2864_v19  ;;  %v2923_v19 = vstv %s6168_s23  ;;  %s4220_s23 = sld [smem:[#allocation7 + $0x4f]] }
0x1108   :  { %2840 = vperm.xlu2 %4346, %v5853_v5  }
0x1109   :  { %2830 = vperm.xlu1 %4344, %v5847_v40  }
0x114a   :  { %v2804_v58 = vpop.permute.xlu2 %2803 }
0x1152   :  { %v2816_v14 = vpop.permute.xlu2 %2815 }
0x115a   :  { %v2824_v22 = vpop.permute.xlu2 %2823 }
0x1162   :  { %v2810_v32 = vpop.permute.xlu0 %2809  ;;  %v2841_v25 = vpop.permute.xlu2 %2840 }
0x1163   :  { %v2802_v57 = vpop.permute.xlu1 %2801  ;;  %v2843_v9 = vmul.f32 %v2841_v25, %v2793_v27  ;;  %v2844_v55 = vmul.f32 %v2841_v25, %v2794_v0  ;;  %v2849_v23 = vmul.f32 %v2841_v25, %v2799_v15  ;;  %v2850_v51 = vmul.f32 %v2841_v25, %v2800_v10 }
0x1164   :  { %v2805_v35 = vsel %vm1469_vm4, %v2802_v57, %v2804_v58  ;;  %v2806_v44 = vsel %vm1469_vm4, %v2804_v58, %v2802_v57  ;;  %v2878_v57 = vsel %vm7045_vm2, %v2875_v53, %v2876_v56  ;;  %v2928_v25 = vstv %s6176_s24  ;;  %vm7053_vm2 = vmmov %vm7049_vm7  ;;  %s6282_s24 = sld [smem:[#allocation7 + $0xac]] }
0x116a   :  { %v2822_v40 = vpop.permute.xlu0 %2821 }
0x116b   :  { %v2808_v2 = vpop.permute.xlu1 %2807  ;;  %v2825_v1 = vsel %vm1476_vm14, %v2822_v40, %v2824_v22  ;;  %v2826_v27 = vsel %vm1476_vm14, %v2824_v22, %v2822_v40 }
0x116c   :  { %v2811_v4 = vsel %vm1476_vm14, %v2808_v2, %v2810_v32  ;;  %v2812_v3 = vsel %vm1476_vm14, %v2810_v32, %v2808_v2  ;;  %v2873_v32 = vsel %vm790_vm3, %v2871_v46, %v2872_v34  ;;  %v2877_v2 = vsel %vm790_vm3, %v2875_v53, %v2876_v56 }
0x116d   :  { %v2813_v42 = vsel %vm4890_vm15, %v2806_v44, %v2811_v4  ;;  %v2814_v36 = vsel %vm4896_vm0, %v2805_v35, %v2812_v3  ;;  %vm7046_vm3 = vcmp.eq.s32.totalorder %v4796_v41, 1 }
0x116e   :  { %v2926_v43 = vsel %vm7046_vm3, %v2923_v19, %v2924_v8  ;;  %vm7047_vm11 = vmmov %vm7046_vm3 }
0x116f   :  { %v2930_v53 = vsel %vm7047_vm11, %v2927_v31, %v2928_v25  ;;  %vm7050_vm12 = vmmov %vm7046_vm3 }
0x1170   :  { %vm7051_vm13 = vmmov %vm7046_vm3 }
0x1172   :  { %v2835_v0 = vpop.permute.xlu0 %2834 }
0x1173   :  { %v2818_v5 = vpop.permute.xlu1 %2817 }
0x1174   :  { %v2819_v16 = vsel %vm1469_vm4, %v2816_v14, %v2818_v5  ;;  %v2820_v59 = vsel %vm1469_vm4, %v2818_v5, %v2816_v14  ;;  %v2874_v14 = vsel %vm7044_vm10, %v2871_v46, %v2872_v34  ;;  %vm7052_vm10 = vmmov %vm7046_vm3 }
0x1175   :  { %v2827_v50 = vsel %vm4890_vm15, %v2820_v59, %v2825_v1  ;;  %v2828_v15 = vsel %vm4896_vm0, %v2819_v16, %v2826_v27  ;;  %vm7054_vm3 = vmmov %vm7053_vm2 }
0x1176   :  { %vm7055_vm11 = vmmov %vm7052_vm10 }
0x117b   :  { %v2831_v20 = vpop.permute.xlu1 %2830 }
0x117c   :  { %v2837_v17 = vsel %vm4890_vm15, %v2831_v20, %v2835_v0  ;;  %v2838_v21 = vsel %vm4896_vm0, %v2831_v20, %v2835_v0 }
0x117d   :  { %v2845_v60 = vmul.f32 %v2837_v17, %v2813_v42  ;;  %v2846_v48 = vmul.f32 %v2838_v21, %v2814_v36  ;;  %v2851_v10 = vmul.f32 %v2837_v17, %v2827_v50  ;;  %v2852_v58 = vmul.f32 %v2838_v21, %v2828_v15 }
0x117e   :  { %v2925_v15 = vsel %vm784_vm1, %v2923_v19, %v2924_v8 }
0x117f   :  { %v2847_v22 = vadd.f32 %v2845_v60, %v2843_v9  ;;  %v2848_v40 = vadd.f32 %v2846_v48, %v2844_v55  ;;  %v2853_v5 = vadd.f32 %v2851_v10, %v2849_v23  ;;  %v2854_v33 = vadd.f32 %v2852_v58, %v2850_v51 }
0x1180   :  { %v2929_v60 = vsel %vm784_vm1, %v2927_v31, %v2928_v25  ;;  %v2931_v25 = vstv %s4203_s4  ;;  %s4219_s4 = sld [smem:[#allocation7 + $0x4e]] }
0x1181   :  { %v2879_v4 = vmul.f32 %v2865_v11, %v2847_v22  ;;  %v2880_v3 = vmul.f32 %v2866_v61, %v2848_v40  ;;  %v2881_v16 = vmul.f32 %v2869_v29, %v2853_v5  ;;  %v2882_v59 = vmul.f32 %v2870_v26, %v2854_v33 }
0x1182   :  { %v2893_v45 = vmul.f32 %v2865_v11, %v2853_v5  ;;  %v2894_v35 = vmul.f32 %v2866_v61, %v2854_v33  ;;  %v2895_v44 = vmul.f32 %v2869_v29, %v2847_v22  ;;  %v2896_v1 = vmul.f32 %v2870_v26, %v2848_v40 }
0x1183   :  { %v2884_v46 = vsub.f32 %v2880_v3, %v2882_v59  ;;  %v2886_v34 = vmul.f32 %v2874_v14, %v2847_v22  ;;  %v2900_v9 = vmul.f32 %v2874_v14, %v2853_v5  ;;  %v2883_v55 = vsub.f32 %v2879_v4, %v2881_v16 }
0x1184   :  { %v2898_v56 = vadd.f32 %v2896_v1, %v2894_v35  ;;  %v2885_v23 = vmul.f32 %v2873_v32, %v2848_v40  ;;  %v2890_v27 = vmul.f32 %v2878_v57, %v2853_v5  ;;  %v2897_v0 = vadd.f32 %v2895_v44, %v2893_v45 }
0x1185   :  { %v2888_v51 = vadd.f32 %v2886_v34, %v2884_v46  ;;  %v2899_v42 = vmul.f32 %v2873_v32, %v2854_v33  ;;  %v2904_v61 = vmul.f32 %v2878_v57, %v2847_v22  ;;  %v2889_v26 = vmul.f32 %v2877_v2, %v2854_v33 }
0x1186   :  { %v2902_v11 = vadd.f32 %v2900_v9, %v2898_v56  ;;  %v2887_v29 = vadd.f32 %v2885_v23, %v2883_v55  ;;  %v2903_v50 = vmul.f32 %v2877_v2, %v2848_v40  ;;  %v2932_v4 = vstv %s4202_s28  ;;  %s4218_s28 = sld [smem:[#allocation7 + $0x4d]] }
0x1187   :  { %v2892_v36 = vsub.f32 %v2888_v51, %v2890_v27  ;;  %v2901_v20 = vadd.f32 %v2899_v42, %v2897_v0  ;;  %v2933_v45 = vsel %vm784_vm1, %v2931_v25, %v2932_v4  ;;  %v2934_v35 = vsel %vm7050_vm12, %v2931_v25, %v2932_v4 }
0x1188   :  { %v2906_v17 = vadd.f32 %v2904_v61, %v2902_v11  ;;  %v2891_v21 = vsub.f32 %v2887_v29, %v2889_v26  ;;  %v2935_v46 = vstv %s4207_s30  ;;  %v2936_v34 = vstv %s4206_s29  ;;  %s4222_s29 = sld [smem:[#allocation7 + $0xad]] }
0x1189   :  { %2917 = vrot.lane.b32.xlu2 %v2892_v36, %s4531_s19  ;;  %v2905_v48 = vadd.f32 %v2903_v50, %v2901_v20  ;;  %v2948_v10 = vmul.f32 %v2926_v43, %v2892_v36  ;;  %v2964_v58 = vmul.f32 %v2930_v53, %v2892_v36  ;;  %v2997_v56 = vstv %s4212_s12  ;;  %s4223_s30 = sld [smem:[#allocation7 + $0xae]] }
0x118a   :  { %2941 = vrot.lane.b32.xlu0 %v2906_v17, %s4531_s19  ;;  %2915 = vrot.lane.b32.xlu1 %v2891_v21, %s4531_s19  ;;  %v2950_v14 = vmul.f32 %v2930_v53, %v2906_v17  ;;  %v2947_v57 = vmul.f32 %v2925_v15, %v2891_v21  ;;  %v2962_v32 = vmul.f32 %v2926_v43, %v2906_v17  ;;  %v2998_v9 = vstv %s4209_s11  ;;  %s4225_s11 = sld [smem:[#allocation7 + $0x50]] }
0x118b   :  { %v2949_v2 = vmul.f32 %v2929_v60, %v2905_v48  ;;  %v2961_v22 = vmul.f32 %v2925_v15, %v2905_v48  ;;  %v2963_v40 = vmul.f32 %v2929_v60, %v2891_v21  ;;  %v2937_v23 = vsel %vm784_vm1, %v2935_v46, %v2936_v34  ;;  %s4228_s12 = sld [smem:[#allocation7 + $0x53]] }
0x118c   :  { %v2952_v5 = vsub.f32 %v2948_v10, %v2950_v14  ;;  %v2966_v33 = vadd.f32 %v2964_v58, %v2962_v32  ;;  %v2938_v51 = vsel %vm7052_vm10, %v2935_v46, %v2936_v34  ;;  %v3001_v0 = vstv %s6236_s15  ;;  %s6341_s15 = sld [smem:[#allocation7 + $0xb3]] }
0x118d   :  { %v2951_v19 = vsub.f32 %v2947_v57, %v2949_v2  ;;  %v2965_v8 = vadd.f32 %v2963_v40, %v2961_v22  ;;  %v3002_v42 = vstv %s6234_s13  ;;  %v2999_v29 = vsel %vm778_vm5, %v2997_v56, %v2998_v9  ;;  %s6339_s13 = sld [smem:[#allocation7 + $0xb0]] }
0x118e   :  { %v3000_v26 = vsel %vm779_vm6, %v2997_v56, %v2998_v9  ;;  %v3003_v14 = vsel %vm778_vm5, %v3001_v0, %v3002_v42  ;;  %v3004_v57 = vsel %vm779_vm6, %v3001_v0, %v3002_v42  ;;  %v3005_v56 = vstv %s4211_s2  ;;  %s4227_s2 = sld [smem:[#allocation7 + $0x52]] }
0x118f   :  { %v3006_v9 = vstv %s4210_s18  ;;  %vm7058_vm12 = vcmp.lt.s32.totalorder %v4783_v12, 96  ;;  %vm7060_vm10 = vcmp.eq.s32.totalorder %v4818_v54, 1  ;;  %s4226_s18 = sld [smem:[#allocation7 + $0x51]] }
0x1190   :  { %v3007_v42 = vsel %vm778_vm5, %v3005_v56, %v3006_v9 }
0x1192   :  { %2939 = vrot.lane.b32.xlu1 %v2905_v48, %s4531_s19 }
0x11e3   :  { %v2918_v31 = vpop.permute.xlu2 %2917 }
0x11fc   :  { %v2916_v3 = vpop.permute.xlu1 %2915  ;;  %v2942_v55 = vpop.permute.xlu0 %2941 }
0x11fd   :  { %v2919_v16 = vsel %vm7048_vm8, %v2916_v3, %v2918_v31  ;;  %v2920_v59 = vsel %vm7049_vm7, %v2918_v31, %v2916_v3  ;;  %vm7056_vm8 = vcmp.lt.s32.totalorder %v4783_v12, 32 }
0x11fe   :  { %v2921_v44 = vsel %vm784_vm1, %v2920_v59, %v2919_v16  ;;  %v2922_v1 = vsel %vm7051_vm13, %v2919_v16, %v2920_v59  ;;  %vm7057_vm7 = vmmov %vm7056_vm8 }
0x11ff   :  { %v2953_v43 = vmul.f32 %v2933_v45, %v2921_v44  ;;  %v2954_v53 = vmul.f32 %v2934_v35, %v2922_v1  ;;  %v2971_v10 = vmul.f32 %v2937_v23, %v2921_v44  ;;  %v2972_v58 = vmul.f32 %v2938_v51, %v2922_v1  ;;  %vm7059_vm13 = vmmov %vm7058_vm12 }
0x1201   :  { %v2955_v36 = vadd.f32 %v2953_v43, %v2951_v19  ;;  %v2956_v20 = vadd.f32 %v2954_v53, %v2952_v5 }
0x1204   :  { %v2940_v27 = vpop.permute.xlu1 %2939 }
0x1205   :  { %v2943_v11 = vsel %vm7053_vm2, %v2940_v27, %v2942_v55  ;;  %v2944_v61 = vsel %vm7054_vm3, %v2942_v55, %v2940_v27  ;;  %vm7061_vm2 = vcmp.eq.s32.totalorder %v4820_v24, 1  ;;  %vm7062_vm3 = vmmov %vm7057_vm7 }
0x1206   :  { %v2945_v50 = vsel %vm784_vm1, %v2944_v61, %v2943_v11  ;;  %v2946_v15 = vsel %vm7055_vm11, %v2943_v11, %v2944_v61  ;;  %v3008_v11 = vsel %vm779_vm6, %v3005_v56, %v3006_v9  ;;  %vm7063_vm11 = vmmov %vm7062_vm3 }
0x1207   :  { %v2957_v17 = vmul.f32 %v2945_v50, %v2937_v23  ;;  %v2958_v21 = vmul.f32 %v2946_v15, %v2938_v51  ;;  %v2967_v60 = vmul.f32 %v2945_v50, %v2933_v45  ;;  %v2968_v48 = vmul.f32 %v2946_v15, %v2934_v35 }
0x1208   :  { %v3078_v50 = vstv %s4217_s22  ;;  %s4233_s22 = sld [smem:[#allocation7 + $0x54]] }
0x1209   :  { %v2959_v32 = vsub.f32 %v2955_v36, %v2957_v17  ;;  %v2960_v2 = vsub.f32 %v2956_v20, %v2958_v21  ;;  %v2969_v22 = vadd.f32 %v2967_v60, %v2965_v8  ;;  %v2970_v40 = vadd.f32 %v2968_v48, %v2966_v33 }
0x120a   :  { %v3010_v36 = vstv %s4214_s21  ;;  %v3077_v20 = vstv %s4220_s23  ;;  %s4230_s21 = sld [smem:[#allocation7 + $0xb1]] }
0x120b   :  { %2985 = vrot.lane.b32.xlu1 %v2960_v2, %s4532_s26  ;;  %2989 = vrot.lane.b32.xlu0 %v2959_v32, %s4533_s3  ;;  %v2973_v5 = vadd.f32 %v2971_v10, %v2969_v22  ;;  %v2974_v19 = vadd.f32 %v2972_v58, %v2970_v40  ;;  %v3028_v31 = vmul.f32 %v3000_v26, %v2960_v2  ;;  %s4236_s23 = sld [smem:[#allocation7 + $0x57]] }
0x120c   :  { %2983 = vrot.lane.b32.xlu2 %v2959_v32, %s4532_s26  ;;  %v3027_v25 = vmul.f32 %v2999_v29, %v2959_v32  ;;  %v3044_v4 = vmul.f32 %v3004_v57, %v2960_v2  ;;  %v3043_v3 = vmul.f32 %v3003_v14, %v2959_v32  ;;  %v3081_v32 = vstv %s6292_s25  ;;  %s6398_s25 = sld [smem:[#allocation7 + $0xb7]] }
0x120d   :  { %v3029_v16 = vmul.f32 %v3003_v14, %v2973_v5  ;;  %v3030_v59 = vmul.f32 %v3004_v57, %v2974_v19  ;;  %v3042_v45 = vmul.f32 %v3000_v26, %v2974_v19  ;;  %v3041_v35 = vmul.f32 %v2999_v29, %v2973_v5 }
0x120e   :  { %v3009_v26 = vstv %s4215_s1  ;;  %v3079_v14 = vsel %vm7060_vm10, %v3077_v20, %v3078_v50  ;;  %v3080_v57 = vsel %vm7061_vm2, %v3077_v20, %v3078_v50  ;;  %s4231_s1 = sld [smem:[#allocation7 + $0xb2]] }
0x120f   :  { %v3032_v44 = vsub.f32 %v3028_v31, %v3030_v59  ;;  %v3031_v1 = vsub.f32 %v3027_v25, %v3029_v16  ;;  %v6275_v8 = vadd.f32 %v3044_v4, %v3042_v45  ;;  %v3045_v33 = vadd.f32 %v3043_v3, %v3041_v35 }
0x1210   :  { %v3011_v60 = vsel %vm778_vm5, %v3009_v26, %v3010_v36  ;;  %v3012_v48 = vsel %vm779_vm6, %v3009_v26, %v3010_v36 }
0x1213   :  { %3013 = vrot.lane.b32.xlu1 %v2973_v5, %s4532_s26  ;;  %3015 = vrot.lane.b32.xlu0 %v2974_v19, %s4532_s26 }
0x1214   :  { %2991 = vrot.lane.b32.xlu2 %v2960_v2, %s4533_s3  ;;  %v3082_v2 = vstv %s6282_s24  ;;  %s6396_s24 = sld [smem:[#allocation7 + $0xb4]] }
0x121b   :  { %3021 = vrot.lane.b32.xlu1 %v2974_v19, %s4533_s3 }
0x121c   :  { %3019 = vrot.lane.b32.xlu2 %v2973_v5, %s4533_s3 }
0x1266   :  { %v2984_v46 = vpop.permute.xlu2 %2983 }
0x126e   :  { %v2992_v53 = vpop.permute.xlu2 %2991 }
0x1276   :  { %v3020_v10 = vpop.permute.xlu2 %3019 }
0x127d   :  { %v2986_v34 = vpop.permute.xlu1 %2985  ;;  %v2990_v43 = vpop.permute.xlu0 %2989 }
0x127e   :  { %v2987_v55 = vsel %vm7056_vm8, %v2984_v46, %v2986_v34  ;;  %v2988_v23 = vsel %vm7057_vm7, %v2986_v34, %v2984_v46  ;;  %v2993_v51 = vsel %vm7058_vm12, %v2990_v43, %v2992_v53  ;;  %v2994_v27 = vsel %vm7059_vm13, %v2992_v53, %v2990_v43  ;;  %vm7064_vm8 = vmmov %vm7058_vm12 }
0x127f   :  { %v2995_v61 = vsel %vm778_vm5, %v2988_v23, %v2993_v51  ;;  %v2996_v29 = vsel %vm779_vm6, %v2987_v55, %v2994_v27  ;;  %vm7065_vm7 = vmmov %vm7064_vm8 }
0x1280   :  { %v3033_v15 = vmul.f32 %v3007_v42, %v2995_v61  ;;  %v3034_v17 = vmul.f32 %v3008_v11, %v2996_v29  ;;  %v3051_v46 = vmul.f32 %v3011_v60, %v2995_v61  ;;  %v3052_v34 = vmul.f32 %v3012_v48, %v2996_v29  ;;  %vm7066_vm12 = vmmov %vm7060_vm10 }
0x1281   :  { %v3083_v43 = vsel %vm7066_vm12, %v3081_v32, %v3082_v2  ;;  %vm7067_vm13 = vmmov %vm7061_vm2  ;;  %vm7068_vm10 = vcmp.lt.s32.totalorder %v4783_v12, 112 }
0x1282   :  { %v3035_v31 = vadd.f32 %v3033_v15, %v3031_v1  ;;  %v3036_v25 = vadd.f32 %v3034_v17, %v3032_v44  ;;  %v3084_v53 = vsel %vm7067_vm13, %v3081_v32, %v3082_v2  ;;  %vm7069_vm2 = vmmov %vm7068_vm10 }
0x1285   :  { %v3014_v0 = vpop.permute.xlu1 %3013  ;;  %v3016_v21 = vpop.permute.xlu0 %3015 }
0x1286   :  { %v3017_v22 = vsel %vm7062_vm3, %v3014_v0, %v3016_v21  ;;  %v3018_v40 = vsel %vm7063_vm11, %v3016_v21, %v3014_v0  ;;  %vm7070_vm3 = vcmp.lt.s32.totalorder %v4783_v12, 16 }
0x1287   :  { %vm7071_vm11 = vmmov %vm7070_vm3 }
0x128d   :  { %v3022_v58 = vpop.permute.xlu1 %3021 }
0x128e   :  { %v3023_v5 = vsel %vm7064_vm8, %v3020_v10, %v3022_v58  ;;  %v3024_v19 = vsel %vm7065_vm7, %v3022_v58, %v3020_v10  ;;  %vm7072_vm8 = vmmov %vm7066_vm12 }
0x128f   :  { %v3025_v4 = vsel %vm778_vm5, %v3018_v40, %v3023_v5  ;;  %v3026_v3 = vsel %vm779_vm6, %v3017_v22, %v3024_v19  ;;  %vm7073_vm7 = vmmov %vm7067_vm13  ;;  %v3089_v19 = vstv %s4223_s30  ;;  %s4239_s30 = sld [smem:[#allocation7 + $0xb6]] }
0x1290   :  { %v3037_v16 = vmul.f32 %v3025_v4, %v3011_v60  ;;  %v3038_v59 = vmul.f32 %v3026_v3, %v3012_v48  ;;  %v3047_v45 = vmul.f32 %v3025_v4, %v3007_v42  ;;  %v3048_v35 = vmul.f32 %v3026_v3, %v3008_v11  ;;  %vm7074_vm12 = vmmov %vm7072_vm8 }
0x1291   :  { %v3085_v60 = vstv %s4219_s4  ;;  %v3086_v48 = vstv %s4218_s28  ;;  %vm7075_vm13 = vmmov %vm7073_vm7  ;;  %v3158_v4 = vstv %s4225_s11  ;;  %s4234_s28 = sld [smem:[#allocation7 + $0x55]] }
0x1292   :  { %v3039_v1 = vsub.f32 %v3035_v31, %v3037_v16  ;;  %v3040_v44 = vsub.f32 %v3036_v25, %v3038_v59  ;;  %v3049_v56 = vadd.f32 %v3047_v45, %v3045_v33  ;;  %v3050_v9 = vadd.f32 %v3048_v35, %v6275_v8  ;;  %s4235_s4 = sld [smem:[#allocation7 + $0x56]] }
0x1293   :  { %v3087_v2 = vsel %vm7072_vm8, %v3085_v60, %v3086_v48  ;;  %v3088_v22 = vsel %vm7073_vm7, %v3085_v60, %v3086_v48  ;;  %v3090_v31 = vstv %s4222_s29  ;;  %v3157_v25 = vstv %s4228_s12  ;;  %s4238_s29 = sld [smem:[#allocation7 + $0xb5]] }
0x1294   :  { %3065 = vrot.lane.b32.xlu2 %v3040_v44, %s4534_s9  ;;  %3069 = vrot.lane.b32.xlu1 %v3039_v1, %s4535_s10  ;;  %v3053_v55 = vadd.f32 %v3051_v46, %v3049_v56  ;;  %v3054_v23 = vadd.f32 %v3052_v34, %v3050_v9  ;;  %v3108_v51 = vmul.f32 %v3080_v57, %v3040_v44  ;;  %s4241_s11 = sld [smem:[#allocation7 + $0x58]] }
0x1295   :  { %3063 = vrot.lane.b32.xlu0 %v3039_v1, %s4534_s9  ;;  %v3107_v27 = vmul.f32 %v3079_v14, %v3039_v1  ;;  %v3124_v0 = vmul.f32 %v3084_v53, %v3040_v44  ;;  %v3123_v42 = vmul.f32 %v3083_v43, %v3039_v1  ;;  %v3161_v1 = vstv %s6341_s15  ;;  %s4244_s12 = sld [smem:[#allocation7 + $0x5b]] }
0x1296   :  { %v3109_v11 = vmul.f32 %v3083_v43, %v3053_v55  ;;  %v3110_v61 = vmul.f32 %v3084_v53, %v3054_v23  ;;  %v3121_v29 = vmul.f32 %v3079_v14, %v3053_v55  ;;  %v3122_v26 = vmul.f32 %v3080_v57, %v3054_v23  ;;  %s6463_s15 = sld [smem:[#allocation7 + $0xbb]] }
0x1297   :  { %v3159_v43 = vsel %vm766_vm9, %v3157_v25, %v3158_v4 }
0x1298   :  { %v3112_v36 = vsub.f32 %v3108_v51, %v3110_v61  ;;  %v3111_v33 = vsub.f32 %v3107_v27, %v3109_v11  ;;  %v6332_v20 = vadd.f32 %v3124_v0, %v3122_v26  ;;  %v3125_v8 = vadd.f32 %v3123_v42, %v3121_v29 }
0x129c   :  { %3093 = vrot.lane.b32.xlu2 %v3053_v55, %s4534_s9  ;;  %3095 = vrot.lane.b32.xlu1 %v3054_v23, %s4534_s9 }
0x129d   :  { %3071 = vrot.lane.b32.xlu0 %v3040_v44, %s4535_s10  ;;  %v3162_v44 = vstv %s6339_s13  ;;  %s6453_s13 = sld [smem:[#allocation7 + $0xb8]] }
0x12a4   :  { %3101 = vrot.lane.b32.xlu2 %v3054_v23, %s4535_s10 }
0x12a5   :  { %3099 = vrot.lane.b32.xlu0 %v3053_v55, %s4535_s10 }
0x12ee   :  { %v3066_v50 = vpop.permute.xlu2 %3065 }
0x12f6   :  { %v3094_v21 = vpop.permute.xlu2 %3093 }
0x12fe   :  { %v3102_v46 = vpop.permute.xlu2 %3101 }
0x1306   :  { %v3070_v17 = vpop.permute.xlu1 %3069 }
0x1307   :  { %v3064_v15 = vpop.permute.xlu0 %3063 }
0x1308   :  { %v3067_v57 = vsel %vm7070_vm3, %v3064_v15, %v3066_v50  ;;  %v3068_v32 = vsel %vm7071_vm11, %v3066_v50, %v3064_v15  ;;  %vm7078_vm3 = vcmp.eq.s32.totalorder %v4846_v38, 1 }
0x1309   :  { %v3160_v53 = vsel %vm7078_vm3, %v3157_v25, %v3158_v4 }
0x130e   :  { %v3096_v3 = vpop.permute.xlu1 %3095 }
0x130f   :  { %v3072_v10 = vpop.permute.xlu0 %3071  ;;  %v3097_v56 = vsel %vm7071_vm11, %v3094_v21, %v3096_v3 }
0x1310   :  { %v3073_v58 = vsel %vm7068_vm10, %v3070_v17, %v3072_v10  ;;  %v3074_v14 = vsel %vm7069_vm2, %v3072_v10, %v3070_v17  ;;  %vm7076_vm10 = vmmov %vm7072_vm8  ;;  %v3163_v17 = vsel %vm766_vm9, %v3161_v1, %v3162_v44 }
0x1311   :  { %v3075_v40 = vsel %vm7074_vm12, %v3068_v32, %v3073_v58  ;;  %v3076_v5 = vsel %vm7075_vm13, %v3067_v57, %v3074_v14  ;;  %v3091_v45 = vsel %vm7076_vm10, %v3089_v19, %v3090_v31  ;;  %vm7077_vm2 = vmmov %vm7073_vm7  ;;  %vm7080_vm7 = vcmp.lt.s32.totalorder %v4783_v12, 112 }
0x1312   :  { %v3113_v16 = vmul.f32 %v3087_v2, %v3075_v40  ;;  %v3114_v59 = vmul.f32 %v3088_v22, %v3076_v5  ;;  %v3092_v35 = vsel %vm7077_vm2, %v3089_v19, %v3090_v31  ;;  %vm7079_vm8 = vmmov %vm7071_vm11  ;;  %v3131_v50 = vmul.f32 %v3091_v45, %v3075_v40 }
0x1313   :  { %v3098_v9 = vsel %vm7079_vm8, %v3096_v3, %v3094_v21  ;;  %vm7081_vm12 = vmmov %vm7080_vm7  ;;  %v3132_v15 = vmul.f32 %v3092_v35, %v3076_v5  ;;  %vm7087_vm8 = vcmp.lt.s32.totalorder %v4783_v12, 8 }
0x1314   :  { %v3115_v51 = vadd.f32 %v3113_v16, %v3111_v33  ;;  %v3116_v27 = vadd.f32 %v3114_v59, %v3112_v36  ;;  %vm7082_vm13 = vmmov %vm7076_vm10 }
0x1315   :  { %vm7083_vm10 = vmmov %vm7077_vm2 }
0x1316   :  { %vm7084_vm2 = vmmov %vm7078_vm3  ;;  %vm7085_vm3 = vcmp.lt.s32.totalorder %v4783_v12, 120 }
0x1317   :  { %v3100_v34 = vpop.permute.xlu0 %3099  ;;  %v3164_v21 = vsel %vm7084_vm2, %v3161_v1, %v3162_v44  ;;  %vm7086_vm11 = vmmov %vm7085_vm3 }
0x1318   :  { %v3103_v55 = vsel %vm7080_vm7, %v3100_v34, %v3102_v46  ;;  %v3104_v23 = vsel %vm7081_vm12, %v3102_v46, %v3100_v34  ;;  %vm7088_vm7 = vmmov %vm7087_vm8 }
0x1319   :  { %v3105_v0 = vsel %vm7082_vm13, %v3098_v9, %v3103_v55  ;;  %v3106_v42 = vsel %vm7083_vm10, %v3097_v56, %v3104_v23  ;;  %vm7089_vm12 = vmmov %vm7084_vm2  ;;  %v3169_v23 = vstv %s4231_s1  ;;  %s4247_s1 = sld [smem:[#allocation7 + $0xba]] }
0x131a   :  { %v3117_v11 = vmul.f32 %v3105_v0, %v3091_v45  ;;  %v3118_v61 = vmul.f32 %v3106_v42, %v3092_v35  ;;  %v3127_v29 = vmul.f32 %v3105_v0, %v3087_v2  ;;  %v3128_v26 = vmul.f32 %v3106_v42, %v3088_v22  ;;  %vm7090_vm13 = vmmov %vm7084_vm2 }
0x131b   :  { %v3165_v45 = vstv %s4227_s2  ;;  %v3166_v35 = vstv %s4226_s18  ;;  %v3238_v0 = vstv %s4233_s22  ;;  %vm7091_vm10 = vmmov %vm7084_vm2  ;;  %vm7092_vm2 = vcmp.eq.s32.totalorder %v4856_v39, 1  ;;  %s4242_s18 = sld [smem:[#allocation7 + $0x59]] }
0x131c   :  { %v3119_v33 = vsub.f32 %v3115_v51, %v3117_v11  ;;  %v3120_v36 = vsub.f32 %v3116_v27, %v3118_v61  ;;  %v3129_v60 = vadd.f32 %v3127_v29, %v3125_v8  ;;  %v3130_v48 = vadd.f32 %v3128_v26, %v6332_v20  ;;  %s4243_s2 = sld [smem:[#allocation7 + $0x5a]] }
0x131d   :  { %v3167_v44 = vsel %vm766_vm9, %v3165_v45, %v3166_v35  ;;  %v3168_v56 = vsel %vm7089_vm12, %v3165_v45, %v3166_v35  ;;  %v3170_v51 = vstv %s4230_s21  ;;  %v3237_v27 = vstv %s4236_s23  ;;  %s4246_s21 = sld [smem:[#allocation7 + $0xb9]] }
0x131e   :  { %3145 = vrot.lane.b32.xlu0 %v3120_v36, %s4512_s14  ;;  %3149 = vrot.lane.b32.xlu2 %v3119_v33, %s4536_s20  ;;  %v3133_v10 = vadd.f32 %v3131_v50, %v3129_v60  ;;  %v3134_v58 = vadd.f32 %v3132_v15, %v3130_v48  ;;  %v3188_v14 = vmul.f32 %v3160_v53, %v3120_v36  ;;  %s4249_s22 = sld [smem:[#allocation7 + $0x5c]] }
0x131f   :  { %3143 = vrot.lane.b32.xlu1 %v3119_v33, %s4512_s14  ;;  %v3187_v57 = vmul.f32 %v3159_v43, %v3119_v33  ;;  %v3204_v32 = vmul.f32 %v3164_v21, %v3120_v36  ;;  %v3203_v2 = vmul.f32 %v3163_v17, %v3119_v33  ;;  %v3171_v61 = vsel %vm766_vm9, %v3169_v23, %v3170_v51  ;;  %s4252_s23 = sld [smem:[#allocation7 + $0x5f]] }
0x1320   :  { %v3189_v22 = vmul.f32 %v3163_v17, %v3133_v10  ;;  %v3190_v40 = vmul.f32 %v3164_v21, %v3134_v58  ;;  %v3201_v5 = vmul.f32 %v3159_v43, %v3133_v10  ;;  %v3202_v19 = vmul.f32 %v3160_v53, %v3134_v58 }
0x1321   :  { %v3172_v29 = vsel %vm7091_vm10, %v3169_v23, %v3170_v51  ;;  %v3239_v17 = vsel %vm7092_vm2, %v3237_v27, %v3238_v0  ;;  %v3241_v33 = vstv %s6398_s25  ;;  %s6512_s25 = sld [smem:[#allocation7 + $0xbf]] }
0x1322   :  { %v3192_v31 = vsub.f32 %v3188_v14, %v3190_v40  ;;  %v3191_v8 = vsub.f32 %v3187_v57, %v3189_v22  ;;  %v6389_v25 = vadd.f32 %v3204_v32, %v3202_v19  ;;  %v3205_v20 = vadd.f32 %v3203_v2, %v3201_v5 }
0x1326   :  { %3173 = vrot.lane.b32.xlu0 %v3133_v10, %s4512_s14  ;;  %3175 = vrot.lane.b32.xlu2 %v3134_v58, %s4512_s14 }
0x1327   :  { %3151 = vrot.lane.b32.xlu1 %v3120_v36, %s4536_s20  ;;  %v3242_v36 = vstv %s6396_s24  ;;  %s6510_s24 = sld [smem:[#allocation7 + $0xbc]] }
0x132e   :  { %3181 = vrot.lane.b32.xlu0 %v3134_v58, %s4536_s20 }
0x132f   :  { %3179 = vrot.lane.b32.xlu1 %v3133_v10, %s4536_s20 }
0x1378   :  { %v3150_v16 = vpop.permute.xlu2 %3149 }
0x1380   :  { %v3176_v50 = vpop.permute.xlu2 %3175 }
0x1390   :  { %v3146_v4 = vpop.permute.xlu0 %3145 }
0x1391   :  { %v3144_v3 = vpop.permute.xlu1 %3143 }
0x1392   :  { %v3147_v53 = vsel %vm7087_vm8, %v3144_v3, %v3146_v4  ;;  %v3148_v1 = vsel %vm7088_vm7, %v3146_v4, %v3144_v3  ;;  %vm7095_vm8 = vmmov %vm7088_vm7 }
0x1398   :  { %v3174_v59 = vpop.permute.xlu0 %3173 }
0x1399   :  { %v3152_v46 = vpop.permute.xlu1 %3151  ;;  %v3178_v48 = vsel %vm7095_vm8, %v3176_v50, %v3174_v59  ;;  %vm7103_vm8 = vcmp.lt.s32.totalorder %v4783_v12, 124 }
0x139a   :  { %v3153_v34 = vsel %vm7085_vm3, %v3150_v16, %v3152_v46  ;;  %v3154_v43 = vsel %vm7086_vm11, %v3152_v46, %v3150_v16  ;;  %vm7093_vm3 = vcmp.eq.s32.totalorder %v4858_v63, 1  ;;  %vm7094_vm11 = vmmov %vm7088_vm7  ;;  %vm7096_vm7 = vcmp.lt.s32.totalorder %v4783_v12, 120 }
0x139b   :  { %v3155_v9 = vsel %vm766_vm9, %v3148_v1, %v3153_v34  ;;  %v3156_v55 = vsel %vm7090_vm13, %v3147_v53, %v3154_v43  ;;  %v3240_v21 = vsel %vm7093_vm3, %v3237_v27, %v3238_v0  ;;  %v3177_v60 = vsel %vm7094_vm11, %v3174_v59, %v3176_v50  ;;  %vm7097_vm12 = vmmov %vm7096_vm7 }
0x139c   :  { %v3193_v42 = vmul.f32 %v3167_v44, %v3155_v9  ;;  %v3194_v11 = vmul.f32 %v3168_v56, %v3156_v55  ;;  %vm7098_vm13 = vmmov %vm7091_vm10  ;;  %v3211_v4 = vmul.f32 %v3171_v61, %v3155_v9  ;;  %v3212_v3 = vmul.f32 %v3172_v29, %v3156_v55 }
0x139d   :  { %vm7099_vm10 = vmmov %vm7092_vm2 }
0x139e   :  { %v3195_v14 = vadd.f32 %v3193_v42, %v3191_v8  ;;  %v3196_v57 = vadd.f32 %v3194_v11, %v3192_v31  ;;  %v3243_v16 = vsel %vm7099_vm10, %v3241_v33, %v3242_v36  ;;  %vm7100_vm2 = vmmov %vm7093_vm3  ;;  %vm7101_vm3 = vcmp.lt.s32.totalorder %v4783_v12, 4 }
0x139f   :  { %v3244_v59 = vsel %vm7100_vm2, %v3241_v33, %v3242_v36  ;;  %vm7102_vm11 = vmmov %vm7101_vm3 }
0x13a0   :  { %v3182_v26 = vpop.permute.xlu0 %3181 }
0x13a1   :  { %v3180_v15 = vpop.permute.xlu1 %3179 }
0x13a2   :  { %v3183_v10 = vsel %vm7096_vm7, %v3180_v15, %v3182_v26  ;;  %v3184_v58 = vsel %vm7097_vm12, %v3182_v26, %v3180_v15  ;;  %v3246_v26 = vstv %s4234_s28  ;;  %vm7104_vm7 = vmmov %vm7103_vm8  ;;  %s4250_s28 = sld [smem:[#allocation7 + $0x5d]] }
0x13a3   :  { %v3185_v32 = vsel %vm766_vm9, %v3178_v48, %v3183_v10  ;;  %v3186_v2 = vsel %vm7098_vm13, %v3177_v60, %v3184_v58  ;;  %vm7105_vm12 = vmmov %vm7099_vm10  ;;  %v3249_v58 = vstv %s4239_s30  ;;  %s4255_s30 = sld [smem:[#allocation7 + $0xbe]] }
0x13a4   :  { %v3197_v22 = vmul.f32 %v3185_v32, %v3171_v61  ;;  %v3198_v40 = vmul.f32 %v3186_v2, %v3172_v29  ;;  %v3207_v5 = vmul.f32 %v3185_v32, %v3167_v44  ;;  %v3208_v19 = vmul.f32 %v3186_v2, %v3168_v56  ;;  %vm7106_vm13 = vmmov %vm7100_vm2 }
0x13a5   :  { %v3245_v29 = vstv %s4235_s4  ;;  %v3318_v32 = vstv %s4241_s11  ;;  %s4251_s4 = sld [smem:[#allocation7 + $0x5e]] }
0x13a6   :  { %v3199_v8 = vsub.f32 %v3195_v14, %v3197_v22  ;;  %v3200_v31 = vsub.f32 %v3196_v57, %v3198_v40  ;;  %v3209_v45 = vadd.f32 %v3207_v5, %v3205_v20  ;;  %v3210_v35 = vadd.f32 %v3208_v19, %v6389_v25  ;;  %s4257_s11 = sld [smem:[#allocation7 + $0xc0]] }
0x13a7   :  { %v3247_v36 = vsel %vm7105_vm12, %v3245_v29, %v3246_v26  ;;  %v3248_v60 = vsel %vm7106_vm13, %v3245_v29, %v3246_v26  ;;  %v3250_v14 = vstv %s4238_s29  ;;  %v3317_v57 = vstv %s4244_s12  ;;  %s4254_s29 = sld [smem:[#allocation7 + $0xbd]] }
0x13a8   :  { %3225 = vrot.lane.b32.xlu1 %v3200_v31, %s4537_s6  ;;  %3229 = vrot.lane.b32.xlu0 %v3199_v8, %s4538_s0  ;;  %v3213_v46 = vadd.f32 %v3211_v4, %v3209_v45  ;;  %v3214_v34 = vadd.f32 %v3212_v3, %v3210_v35  ;;  %v3268_v43 = vmul.f32 %v3240_v21, %v3200_v31  ;;  %vm7111_vm12 = vcmp.lt.s32.totalorder %v4783_v12, 4  ;;  %s4258_s12 = sld [smem:[#allocation7 + $0xc8]] }
0x13a9   :  { %3223 = vrot.lane.b32.xlu2 %v3199_v8, %s4537_s6  ;;  %v3267_v53 = vmul.f32 %v3239_v17, %v3199_v8  ;;  %v3284_v1 = vmul.f32 %v3244_v59, %v3200_v31  ;;  %v3283_v44 = vmul.f32 %v3243_v16, %v3199_v8  ;;  %v3321_v8 = vstv %s6463_s15  ;;  %vm7112_vm13 = vmmov %vm7111_vm12  ;;  %s4260_s15 = sld [smem:[#allocation7 + $0xc9]] }
0x13aa   :  { %v3269_v56 = vmul.f32 %v3243_v16, %v3213_v46  ;;  %v3270_v9 = vmul.f32 %v3244_v59, %v3214_v34  ;;  %v3282_v55 = vmul.f32 %v3240_v21, %v3214_v34  ;;  %v3281_v23 = vmul.f32 %v3239_v17, %v3213_v46 }
0x13ac   :  { %v3272_v51 = vsub.f32 %v3268_v43, %v3270_v9  ;;  %v3271_v20 = vsub.f32 %v3267_v53, %v3269_v56  ;;  %v6446_v27 = vadd.f32 %v3284_v1, %v3282_v55  ;;  %v3285_v25 = vadd.f32 %v3283_v44, %v3281_v23 }
0x13b0   :  { %3253 = vrot.lane.b32.xlu1 %v3213_v46, %s4537_s6  ;;  %3255 = vrot.lane.b32.xlu0 %v3214_v34, %s4537_s6 }
0x13b1   :  { %3231 = vrot.lane.b32.xlu2 %v3200_v31, %s4538_s0  ;;  %v3322_v31 = vstv %s6453_s13  ;;  %s4259_s13 = sld [smem:[#allocation7 + $0xc1]] }
0x13b8   :  { %3261 = vrot.lane.b32.xlu1 %v3214_v34, %s4538_s0 }
0x13b9   :  { %3259 = vrot.lane.b32.xlu2 %v3213_v46, %s4538_s0 }
0x1403   :  { %v3224_v0 = vpop.permute.xlu2 %3223 }
0x140b   :  { %v3232_v61 = vpop.permute.xlu2 %3231 }
0x1413   :  { %v3260_v4 = vpop.permute.xlu2 %3259 }
0x141a   :  { %v3226_v42 = vpop.permute.xlu1 %3225  ;;  %v3230_v11 = vpop.permute.xlu0 %3229 }
0x141b   :  { %v3227_v50 = vsel %vm7101_vm3, %v3224_v0, %v3226_v42  ;;  %v3228_v15 = vsel %vm7102_vm11, %v3226_v42, %v3224_v0  ;;  %v3233_v17 = vsel %vm7103_vm8, %v3230_v11, %v3232_v61  ;;  %v3234_v21 = vsel %vm7104_vm7, %v3232_v61, %v3230_v11  ;;  %vm7107_vm3 = vmmov %vm7099_vm10 }
0x141c   :  { %v3235_v48 = vsel %vm7099_vm10, %v3228_v15, %v3233_v17  ;;  %v3236_v10 = vsel %vm7100_vm2, %v3227_v50, %v3234_v21  ;;  %v3251_v5 = vsel %vm7107_vm3, %v3249_v58, %v3250_v14  ;;  %vm7108_vm11 = vmmov %vm7100_vm2  ;;  %vm7109_vm8 = vcmp.eq.s32.totalorder %v4862_v6, 1 }
0x141d   :  { %v3273_v2 = vmul.f32 %v3247_v36, %v3235_v48  ;;  %v3274_v22 = vmul.f32 %v3248_v60, %v3236_v10  ;;  %v3252_v19 = vsel %vm7108_vm11, %v3249_v58, %v3250_v14  ;;  %v3319_v16 = vsel %vm7109_vm8, %v3317_v57, %v3318_v32 }
0x141e   :  { %vm7110_vm7 = vcmp.eq.s32.totalorder %v4864_v7, 1  ;;  %vm7113_vm10 = vcmp.lt.s32.totalorder %v4783_v12, 124  ;;  %v3291_v0 = vmul.f32 %v3251_v5, %v3235_v48  ;;  %v3292_v42 = vmul.f32 %v3252_v19, %v3236_v10 }
0x141f   :  { %v3320_v59 = vsel %vm7110_vm7, %v3317_v57, %v3318_v32  ;;  %vm7114_vm2 = vmmov %vm7113_vm10  ;;  %v3275_v43 = vadd.f32 %v3273_v2, %v3271_v20  ;;  %v3276_v53 = vadd.f32 %v3274_v22, %v3272_v51  ;;  %v3323_v11 = vsel %vm7109_vm8, %v3321_v8, %v3322_v31 }
0x1420   :  { %v3324_v61 = vsel %vm7110_vm7, %v3321_v8, %v3322_v31 }
0x1422   :  { %v3254_v33 = vpop.permute.xlu1 %3253  ;;  %v3256_v40 = vpop.permute.xlu0 %3255 }
0x1423   :  { %v3257_v45 = vsel %vm7111_vm12, %v3254_v33, %v3256_v40  ;;  %v3258_v35 = vsel %vm7112_vm13, %v3256_v40, %v3254_v33  ;;  %vm7115_vm12 = vcmp.lt.s32.totalorder %v4783_v12, 126 }
0x1424   :  { %vm7116_vm13 = vmmov %vm7115_vm12 }
0x142a   :  { %v3262_v3 = vpop.permute.xlu1 %3261 }
0x142b   :  { %v3263_v46 = vsel %vm7113_vm10, %v3260_v4, %v3262_v3  ;;  %v3264_v34 = vsel %vm7114_vm2, %v3262_v3, %v3260_v4  ;;  %vm7117_vm10 = vcmp.lt.s32.totalorder %v4783_v12, 2 }
0x142c   :  { %v3265_v1 = vsel %vm7107_vm3, %v3258_v35, %v3263_v46  ;;  %v3266_v44 = vsel %vm7108_vm11, %v3257_v45, %v3264_v34  ;;  %vm7118_vm2 = vmmov %vm7117_vm10  ;;  %v3329_v34 = vstv %s4247_s1 }
0x142d   :  { %v3277_v56 = vmul.f32 %v3265_v1, %v3251_v5  ;;  %v3278_v9 = vmul.f32 %v3266_v44, %v3252_v19  ;;  %v3287_v55 = vmul.f32 %v3265_v1, %v3247_v36  ;;  %v3288_v23 = vmul.f32 %v3266_v44, %v3248_v60  ;;  %vm7119_vm3 = vmmov %vm7109_vm8 }
0x142e   :  { %v3325_v5 = vstv %s4243_s2  ;;  %v3326_v19 = vstv %s4242_s18  ;;  %vm7120_vm11 = vmmov %vm7110_vm7  ;;  %v3398_v1 = vstv %s4249_s22  ;;  %s4262_s18 = sld [smem:[#allocation7 + $0xca]] }
0x142f   :  { %v3279_v20 = vsub.f32 %v3275_v43, %v3277_v56  ;;  %v3280_v51 = vsub.f32 %v3276_v53, %v3278_v9  ;;  %v3289_v29 = vadd.f32 %v3287_v55, %v3285_v25  ;;  %v3290_v26 = vadd.f32 %v3288_v23, %v6446_v27  ;;  %vm7121_vm8 = vmmov %vm7119_vm3 }
0x1430   :  { %v3327_v31 = vsel %vm7119_vm3, %v3325_v5, %v3326_v19  ;;  %v3328_v45 = vsel %vm7120_vm11, %v3325_v5, %v3326_v19  ;;  %v3330_v43 = vstv %s4246_s21  ;;  %v3397_v53 = vstv %s4252_s23 }
0x1431   :  { %3305 = vrot.lane.b32.xlu2 %v3280_v51, %s4539_s16  ;;  %3309 = vrot.lane.b32.xlu1 %v3279_v20, %s4540_s17  ;;  %v3293_v50 = vadd.f32 %v3291_v0, %v3289_v29  ;;  %v3294_v15 = vadd.f32 %v3292_v42, %v3290_v26  ;;  %v3348_v17 = vmul.f32 %v3320_v59, %v3280_v51 }
0x1432   :  { %3303 = vrot.lane.b32.xlu0 %v3279_v20, %s4539_s16  ;;  %v3347_v21 = vmul.f32 %v3319_v16, %v3279_v20  ;;  %v3364_v33 = vmul.f32 %v3324_v61, %v3280_v51  ;;  %v3363_v36 = vmul.f32 %v3323_v11, %v3279_v20  ;;  %v3401_v20 = vstv %s6512_s25 }
0x1433   :  { %v3349_v60 = vmul.f32 %v3323_v11, %v3293_v50  ;;  %v3350_v48 = vmul.f32 %v3324_v61, %v3294_v15  ;;  %v3361_v10 = vmul.f32 %v3319_v16, %v3293_v50  ;;  %v3362_v58 = vmul.f32 %v3320_v59, %v3294_v15 }
0x1434   :  { %v3399_v11 = vsel %vm4890_vm15, %v3397_v53, %v3398_v1  ;;  %v3400_v61 = vsel %vm4896_vm0, %v3397_v53, %v3398_v1 }
0x1435   :  { %v3352_v14 = vsub.f32 %v3348_v17, %v3350_v48  ;;  %v3351_v25 = vsub.f32 %v3347_v21, %v3349_v60  ;;  %v6503_v57 = vadd.f32 %v3364_v33, %v3362_v58  ;;  %v3365_v27 = vadd.f32 %v3363_v36, %v3361_v10 }
0x1439   :  { %3333 = vrot.lane.b32.xlu2 %v3293_v50, %s4539_s16  ;;  %3335 = vrot.lane.b32.xlu1 %v3294_v15, %s4539_s16 }
0x143a   :  { %3311 = vrot.lane.b32.xlu0 %v3280_v51, %s4540_s17  ;;  %v3402_v51 = vstv %s6510_s24 }
0x1441   :  { %3341 = vrot.lane.b32.xlu2 %v3294_v15, %s4540_s17 }
0x1442   :  { %3339 = vrot.lane.b32.xlu0 %v3293_v50, %s4540_s17 }
0x148b   :  { %v3306_v32 = vpop.permute.xlu2 %3305 }
0x1493   :  { %v3334_v40 = vpop.permute.xlu2 %3333 }
0x149b   :  { %v3342_v0 = vpop.permute.xlu2 %3341 }
0x14a3   :  { %v3310_v22 = vpop.permute.xlu1 %3309 }
0x14a4   :  { %v3304_v2 = vpop.permute.xlu0 %3303 }
0x14a5   :  { %v3307_v59 = vsel %vm7117_vm10, %v3304_v2, %v3306_v32  ;;  %v3308_v8 = vsel %vm7118_vm2, %v3306_v32, %v3304_v2  ;;  %vm7124_vm10 = vmmov %vm7118_vm2 }
0x14ab   :  { %v3336_v44 = vpop.permute.xlu1 %3335 }
0x14ac   :  { %v3312_v4 = vpop.permute.xlu0 %3311  ;;  %v3337_v29 = vsel %vm7124_vm10, %v3334_v40, %v3336_v44  ;;  %v3338_v26 = vsel %vm7118_vm2, %v3336_v44, %v3334_v40  ;;  %v3404_v40 = vsel %vm4896_vm0, %v3401_v20, %v3402_v51  ;;  %vm7129_vm10 = vcmp.eq.s32.totalorder %v4796_v41, 1 }
0x14ad   :  { %v3313_v3 = vsel %vm7115_vm12, %v3310_v22, %v3312_v4  ;;  %v3314_v16 = vsel %vm7116_vm13, %v3312_v4, %v3310_v22  ;;  %vm7122_vm12 = vmmov %vm7119_vm3  ;;  %vm7125_vm3 = vcmp.lt.s32.totalorder %v4783_v12, 126  ;;  %v3403_v22 = vsel %vm4890_vm15, %v3401_v20, %v3402_v51 }
0x14ae   :  { %v3315_v35 = vsel %vm7121_vm8, %v3308_v8, %v3313_v3  ;;  %v3316_v46 = vsel %vm7110_vm7, %v3307_v59, %v3314_v16  ;;  %v3331_v55 = vsel %vm7122_vm12, %v3329_v34, %v3330_v43  ;;  %vm7123_vm13 = vmmov %vm7110_vm7  ;;  %vm7127_vm12 = vcmp.lt.s32.totalorder %v4783_v12, 64 }
0x14af   :  { %v3353_v56 = vmul.f32 %v3327_v31, %v3315_v35  ;;  %v3354_v9 = vmul.f32 %v3328_v45, %v3316_v46  ;;  %v3332_v23 = vsel %vm7123_vm13, %v3329_v34, %v3330_v43  ;;  %vm7126_vm11 = vmmov %vm7125_vm3  ;;  %v3371_v32 = vmul.f32 %v3331_v55, %v3315_v35 }
0x14b0   :  { %v3372_v2 = vmul.f32 %v3332_v23, %v3316_v46  ;;  %vm7128_vm13 = vmmov %vm7127_vm12 }
0x14b1   :  { %v3355_v17 = vadd.f32 %v3353_v56, %v3351_v25  ;;  %v3356_v21 = vadd.f32 %v3354_v9, %v3352_v14  ;;  %vm7130_vm2 = vmmov %vm7127_vm12 }
0x14b4   :  { %v3340_v42 = vpop.permute.xlu0 %3339 }
0x14b5   :  { %v3343_v50 = vsel %vm7125_vm3, %v3340_v42, %v3342_v0  ;;  %v3344_v15 = vsel %vm7126_vm11, %v3342_v0, %v3340_v42  ;;  %vm7131_vm3 = vmmov %vm7130_vm2 }
0x14b6   :  { %v3345_v33 = vsel %vm7121_vm8, %v3338_v26, %v3343_v50  ;;  %v3346_v36 = vsel %vm7110_vm7, %v3337_v29, %v3344_v15  ;;  %v3409_v15 = vstv %s4255_s30  ;;  %vm7132_vm11 = vmmov %vm7129_vm10  ;;  %vm7135_vm7 = vcmp.lt.s32.totalorder %v4783_v12, 96 }
0x14b7   :  { %v3357_v60 = vmul.f32 %v3345_v33, %v3331_v55  ;;  %v3358_v48 = vmul.f32 %v3346_v36, %v3332_v23  ;;  %v3367_v10 = vmul.f32 %v3345_v33, %v3327_v31  ;;  %v3368_v58 = vmul.f32 %v3346_v36, %v3328_v45 }
0x14b8   :  { %v3405_v55 = vstv %s4251_s4  ;;  %v3406_v23 = vstv %s4250_s28 }
0x14b9   :  { %v3359_v25 = vsub.f32 %v3355_v17, %v3357_v60  ;;  %v3360_v14 = vsub.f32 %v3356_v21, %v3358_v48  ;;  %v3369_v5 = vadd.f32 %v3367_v10, %v3365_v27  ;;  %v3370_v19 = vadd.f32 %v3368_v58, %v6503_v57 }
0x14ba   :  { %v3407_v51 = vsel %vm4890_vm15, %v3405_v55, %v3406_v23  ;;  %v3408_v29 = vsel %vm4896_vm0, %v3405_v55, %v3406_v23  ;;  %v3410_v17 = vstv %s4254_s29 }
0x14bb   :  { %3385 = vrot.lane.b32.xlu0 %v3360_v14, %s4541_s27  ;;  %3389 = vrot.lane.b32.xlu2 %v3359_v25, %s4542_s5  ;;  %v3373_v4 = vadd.f32 %v3371_v32, %v3369_v5  ;;  %v3374_v3 = vadd.f32 %v3372_v2, %v3370_v19  ;;  %v3428_v16 = vmul.f32 %v3400_v61, %v3360_v14 }
0x14bc   :  { %3383 = vrot.lane.b32.xlu1 %v3359_v25, %s4541_s27  ;;  %v3427_v59 = vmul.f32 %v3399_v11, %v3359_v25  ;;  %v3444_v8 = vmul.f32 %v3404_v40, %v3360_v14  ;;  %v3443_v31 = vmul.f32 %v3403_v22, %v3359_v25  ;;  %v3411_v48 = vsel %vm4890_vm15, %v3409_v15, %v3410_v17 }
0x14bd   :  { %v3429_v45 = vmul.f32 %v3403_v22, %v3373_v4  ;;  %v3430_v35 = vmul.f32 %v3404_v40, %v3374_v3  ;;  %v3441_v46 = vmul.f32 %v3399_v11, %v3373_v4  ;;  %v3442_v34 = vmul.f32 %v3400_v61, %v3374_v3 }
0x14be   :  { %v3412_v10 = vsel %vm4896_vm0, %v3409_v15, %v3410_v17  ;;  %v3493_v17 = vstv %s4259_s13 }
0x14bf   :  { %v3432_v43 = vsub.f32 %v3428_v16, %v3430_v35  ;;  %v3431_v27 = vsub.f32 %v3427_v59, %v3429_v45  ;;  %v3446_v53 = vadd.f32 %v3444_v8, %v3442_v34  ;;  %v3445_v57 = vadd.f32 %v3443_v31, %v3441_v46 }
0x14c3   :  { %3413 = vrot.lane.b32.xlu0 %v3373_v4, %s4541_s27  ;;  %3415 = vrot.lane.b32.xlu2 %v3374_v3, %s4541_s27 }
0x14c4   :  { %3391 = vrot.lane.b32.xlu1 %v3360_v14, %s4542_s5 }
0x14cb   :  { %3421 = vrot.lane.b32.xlu0 %v3374_v3, %s4542_s5 }
0x14cc   :  { %3419 = vrot.lane.b32.xlu1 %v3373_v4, %s4542_s5 }
0x1515   :  { %v3390_v56 = vpop.permute.xlu2 %3389 }
0x151d   :  { %v3416_v60 = vpop.permute.xlu2 %3415 }
0x152d   :  { %v3386_v1 = vpop.permute.xlu0 %3385 }
0x152e   :  { %v3384_v44 = vpop.permute.xlu1 %3383 }
0x152f   :  { %v3387_v61 = vsel %vm1469_vm4, %v3384_v44, %v3386_v1  ;;  %v3388_v20 = vsel %vm1469_vm4, %v3386_v1, %v3384_v44  ;;  %v3461_v1 = vstv %s4257_s11  ;;  %v3464_v44 = vstv %s4258_s12 }
0x1535   :  { %v3414_v9 = vpop.permute.xlu0 %3413 }
0x1536   :  { %v3392_v0 = vpop.permute.xlu1 %3391  ;;  %v3417_v32 = vsel %vm1469_vm4, %v3414_v9, %v3416_v60  ;;  %v3418_v2 = vsel %vm1469_vm4, %v3416_v60, %v3414_v9 }
0x1537   :  { %v3393_v42 = vsel %vm1476_vm14, %v3390_v56, %v3392_v0  ;;  %v3394_v11 = vsel %vm1476_vm14, %v3392_v0, %v3390_v56 }
0x1538   :  { %v3395_v26 = vsel %vm4890_vm15, %v3388_v20, %v3393_v42  ;;  %v3396_v50 = vsel %vm4896_vm0, %v3387_v61, %v3394_v11 }
0x1539   :  { %v3433_v21 = vmul.f32 %v3407_v51, %v3395_v26  ;;  %v3434_v33 = vmul.f32 %v3408_v29, %v3396_v50  ;;  %v3451_v8 = vmul.f32 %v3411_v48, %v3395_v26  ;;  %v3452_v31 = vmul.f32 %v3412_v10, %v3396_v50 }
0x153b   :  { %v3435_v25 = vadd.f32 %v3433_v21, %v3431_v27  ;;  %v3436_v14 = vadd.f32 %v3434_v33, %v3432_v43  ;;  %v3496_v21 = vstv %s4260_s15 }
0x153d   :  { %v3422_v36 = vpop.permute.xlu0 %3421 }
0x153e   :  { %v3420_v58 = vpop.permute.xlu1 %3419 }
0x153f   :  { %v3423_v22 = vsel %vm1476_vm14, %v3420_v58, %v3422_v36  ;;  %v3424_v40 = vsel %vm1476_vm14, %v3422_v36, %v3420_v58 }
0x1540   :  { %v3425_v5 = vsel %vm4890_vm15, %v3418_v2, %v3423_v22  ;;  %v3426_v19 = vsel %vm4896_vm0, %v3417_v32, %v3424_v40 }
0x1541   :  { %v3437_v4 = vmul.f32 %v3425_v5, %v3411_v48  ;;  %v3438_v3 = vmul.f32 %v3426_v19, %v3412_v10  ;;  %v3447_v16 = vmul.f32 %v3425_v5, %v3407_v51  ;;  %v3448_v59 = vmul.f32 %v3426_v19, %v3408_v29 }
0x1543   :  { %v3439_v45 = vsub.f32 %v3435_v25, %v3437_v4  ;;  %v3440_v35 = vsub.f32 %v3436_v14, %v3438_v3  ;;  %v3449_v46 = vadd.f32 %v3447_v16, %v3445_v57  ;;  %v3450_v34 = vadd.f32 %v3448_v59, %v3446_v53 }
0x1545   :  { %v3453_v27 = vadd.f32 %v3451_v8, %v3449_v46  ;;  %v3454_v43 = vadd.f32 %v3452_v31, %v3450_v34  ;;  %v3455_v56 = vmul.f32 %v3439_v45, %v5465_v18  ;;  %v3456_v9 = vmul.f32 %v3440_v35, %v5469_v13 }
0x1547   :  { %v3457_v55 = vmul.f32 %v3453_v27, %v5465_v18  ;;  %v3458_v23 = vmul.f32 %v3454_v43, %v5469_v13  ;;  %v3471_v0 = vmul.f32 %v3464_v44, %v3456_v9  ;;  %v3463_v42 = vmul.f32 %v3461_v1, %v3456_v9 }
0x1548   :  { %v3462_v11 = vmul.f32 %v3461_v1, %v3455_v56  ;;  %v3472_v61 = vmul.f32 %v3464_v44, %v3455_v56 }
0x1549   :  { %v3469_v20 = vmul.f32 %v3461_v1, %v3457_v55  ;;  %v3466_v51 = vmul.f32 %v3464_v44, %v3457_v55  ;;  %v3465_v57 = vmul.f32 %v3464_v44, %v3458_v23  ;;  %v3470_v53 = vmul.f32 %v3461_v1, %v3458_v23 }
0x154b   :  { %v3473_v29 = vsub.f32 %v3469_v20, %v3471_v0  ;;  %v3468_v26 = vadd.f32 %v3466_v51, %v3463_v42  ;;  %v3467_v50 = vadd.f32 %v3465_v57, %v3462_v11  ;;  %v3474_v15 = vsub.f32 %v3470_v53, %v3472_v61 }
0x154c   :  { %v3540_v11 = vstv %s4262_s18 }
0x154d   :  { %3485 = vrot.lane.b32.xlu0 %v3473_v29, %s4531_s19  ;;  %3479 = vrot.lane.b32.xlu1 %v3468_v26, %s4531_s19  ;;  %v3494_v32 = vmul.f32 %v3493_v17, %v3467_v50  ;;  %v3495_v2 = vmul.f32 %v3493_v17, %v3468_v26  ;;  %v3501_v8 = vmul.f32 %v3493_v17, %v3473_v29 }
0x154e   :  { %3477 = vrot.lane.b32.xlu2 %v3467_v50, %s4531_s19  ;;  %v3502_v31 = vmul.f32 %v3493_v17, %v3474_v15 }
0x1556   :  { %3487 = vrot.lane.b32.xlu2 %v3474_v15, %s4531_s19  ;;  %s4261_s19 = sld [smem:[#allocation7 + $0xc2]] }
0x155c   :  { %v3537_v44 = vstv %s4261_s19 }
0x15a8   :  { %v3478_v18 = vpop.permute.xlu2 %3477 }
0x15b0   :  { %v3488_v13 = vpop.permute.xlu2 %3487 }
0x15bf   :  { %v3486_v33 = vpop.permute.xlu0 %3485  ;;  %v3480_v36 = vpop.permute.xlu1 %3479 }
0x15c0   :  { %v3489_v60 = vsel %vm7127_vm12, %v3486_v33, %v3488_v13  ;;  %v3490_v48 = vsel %vm7128_vm13, %v3488_v13, %v3486_v33  ;;  %v3481_v25 = vsel %vm7130_vm2, %v3478_v18, %v3480_v36  ;;  %v3482_v14 = vsel %vm7131_vm3, %v3480_v36, %v3478_v18  ;;  %vm7136_vm12 = vmmov %vm7135_vm7 }
0x15c1   :  { %v3491_v10 = vsel %vm784_vm1, %v3490_v48, %v3489_v60  ;;  %v3492_v58 = vsel %vm7129_vm10, %v3489_v60, %v3490_v48  ;;  %v3483_v4 = vsel %vm784_vm1, %v3482_v14, %v3481_v25  ;;  %v3484_v3 = vsel %vm7132_vm11, %v3481_v25, %v3482_v14  ;;  %vm7137_vm13 = vmmov %vm7135_vm7 }
0x15c2   :  { %v3497_v22 = vmul.f32 %v3496_v21, %v3491_v10  ;;  %v3498_v40 = vmul.f32 %v3496_v21, %v3492_v58  ;;  %v3503_v16 = vmul.f32 %v3496_v21, %v3483_v4  ;;  %v3504_v59 = vmul.f32 %v3496_v21, %v3484_v3  ;;  %vm7138_vm10 = vmmov %vm7135_vm7 }
0x15c3   :  { %vm7133_vm1 = vcmp.lt.s32.totalorder %v4783_v12, 32  ;;  %vm7143_vm11 = vcmp.lt.s32.totalorder %v4783_v12, 112 }
0x15c4   :  { %v3499_v5 = vadd.f32 %v3497_v22, %v3494_v32  ;;  %v3500_v19 = vadd.f32 %v3498_v40, %v3495_v2  ;;  %v3505_v45 = vsub.f32 %v3501_v8, %v3503_v16  ;;  %v3506_v35 = vsub.f32 %v3502_v31, %v3504_v59  ;;  %vm7134_vm8 = vmmov %vm7133_vm1 }
0x15c5   :  { %vm7139_vm2 = vmmov %vm7133_vm1 }
0x15c6   :  { %3511 = vrot.lane.b32.xlu0 %v3500_v19, %s4532_s26  ;;  %3515 = vrot.lane.b32.xlu2 %v3499_v5, %s4533_s3  ;;  %v3539_v56 = vmul.f32 %v3537_v44, %v3500_v19  ;;  %v3538_v51 = vmul.f32 %v3537_v44, %v3499_v5  ;;  %vm7140_vm3 = vmmov %vm7133_vm1  ;;  %v3545_v60 = vmul.f32 %v3537_v44, %v3505_v45 }
0x15c7   :  { %3509 = vrot.lane.b32.xlu1 %v3499_v5, %s4532_s26  ;;  %v3546_v48 = vmul.f32 %v3537_v44, %v3506_v35 }
0x15ce   :  { %3523 = vrot.lane.b32.xlu0 %v3505_v45, %s4532_s26  ;;  %3525 = vrot.lane.b32.xlu2 %v3506_v35, %s4532_s26  ;;  %s4263_s26 = sld [smem:[#allocation7 + $0xc3]] }
0x15cf   :  { %3517 = vrot.lane.b32.xlu1 %v3500_v19, %s4533_s3 }
0x15d4   :  { %v3581_v25 = vstv %s4263_s26 }
0x15d6   :  { %3531 = vrot.lane.b32.xlu0 %v3506_v35, %s4533_s3 }
0x15d7   :  { %3529 = vrot.lane.b32.xlu1 %v3505_v45, %s4533_s3  ;;  %s4264_s3 = sld [smem:[#allocation7 + $0xcb]] }
0x15dd   :  { %v3584_v5 = vstv %s4264_s3 }
0x1620   :  { %v3516_v46 = vpop.permute.xlu2 %3515 }
0x1628   :  { %v3526_v43 = vpop.permute.xlu2 %3525 }
0x1638   :  { %v3512_v37 = vpop.permute.xlu0 %3511 }
0x1639   :  { %v3510_v41 = vpop.permute.xlu1 %3509 }
0x163a   :  { %v3513_v50 = vsel %vm7139_vm2, %v3510_v41, %v3512_v37  ;;  %v3514_v15 = vsel %vm7140_vm3, %v3512_v37, %v3510_v41 }
0x1640   :  { %v3524_v34 = vpop.permute.xlu0 %3523 }
0x1641   :  { %v3518_v1 = vpop.permute.xlu1 %3517  ;;  %v3527_v55 = vsel %vm7133_vm1, %v3524_v34, %v3526_v43  ;;  %v3528_v23 = vsel %vm7134_vm8, %v3526_v43, %v3524_v34  ;;  %vm7144_vm1 = vmmov %vm7143_vm11 }
0x1642   :  { %v3519_v57 = vsel %vm7137_vm13, %v3516_v46, %v3518_v1  ;;  %v3520_v53 = vsel %vm7138_vm10, %v3518_v1, %v3516_v46  ;;  %vm7148_vm13 = vcmp.eq.s32.totalorder %v4820_v24, 1  ;;  %vm7149_vm10 = vmmov %vm7144_vm1 }
0x1643   :  { %v3521_v17 = vsel %vm778_vm5, %v3514_v15, %v3519_v57  ;;  %v3522_v21 = vsel %vm779_vm6, %v3513_v50, %v3520_v53  ;;  %vm7150_vm2 = vmmov %vm7144_vm1 }
0x1644   :  { %v3547_v33 = vmul.f32 %v3540_v11, %v3521_v17  ;;  %v3548_v36 = vmul.f32 %v3540_v11, %v3522_v21 }
0x1646   :  { %v3549_v10 = vsub.f32 %v3545_v60, %v3547_v33  ;;  %v3550_v58 = vsub.f32 %v3546_v48, %v3548_v36 }
0x1648   :  { %v3532_v27 = vpop.permute.xlu0 %3531 }
0x1649   :  { %v3530_v9 = vpop.permute.xlu1 %3529 }
0x164a   :  { %v3533_v0 = vsel %vm7135_vm7, %v3530_v9, %v3532_v27  ;;  %v3534_v42 = vsel %vm7136_vm12, %v3532_v27, %v3530_v9  ;;  %vm7147_vm12 = vcmp.eq.s32.totalorder %v4818_v54, 1 }
0x164b   :  { %v3535_v61 = vsel %vm778_vm5, %v3528_v23, %v3533_v0  ;;  %v3536_v20 = vsel %vm779_vm6, %v3527_v55, %v3534_v42  ;;  %vm7141_vm5 = vcmp.lt.s32.totalorder %v4783_v12, 16  ;;  %vm7151_vm3 = vmmov %vm7147_vm12  ;;  %v3589_v0 = vmul.f32 %v3581_v25, %v3549_v10 }
0x164c   :  { %v3541_v29 = vmul.f32 %v3540_v11, %v3535_v61  ;;  %v3542_v26 = vmul.f32 %v3540_v11, %v3536_v20  ;;  %vm7142_vm6 = vmmov %vm7141_vm5  ;;  %v3590_v42 = vmul.f32 %v3581_v25, %v3550_v58 }
0x164d   :  { %vm7145_vm8 = vmmov %vm7141_vm5 }
0x164e   :  { %v3543_v18 = vadd.f32 %v3541_v29, %v3538_v51  ;;  %v3544_v13 = vadd.f32 %v3542_v26, %v3539_v56  ;;  %vm7146_vm7 = vmmov %vm7141_vm5 }
0x1650   :  { %3555 = vrot.lane.b32.xlu1 %v3544_v13, %s4534_s9  ;;  %3559 = vrot.lane.b32.xlu0 %v3543_v18, %s4535_s10  ;;  %v3582_v4 = vmul.f32 %v3581_v25, %v3543_v18  ;;  %v3583_v3 = vmul.f32 %v3581_v25, %v3544_v13 }
0x1651   :  { %3553 = vrot.lane.b32.xlu2 %v3543_v18, %s4534_s9 }
0x1658   :  { %3567 = vrot.lane.b32.xlu1 %v3549_v10, %s4534_s9  ;;  %3569 = vrot.lane.b32.xlu0 %v3550_v58, %s4534_s9  ;;  %s4265_s9 = sld [smem:[#allocation7 + $0xc4]] }
0x1659   :  { %3561 = vrot.lane.b32.xlu2 %v3544_v13, %s4535_s10 }
0x165e   :  { %v3625_v29 = vstv %s4265_s9 }
0x1660   :  { %3575 = vrot.lane.b32.xlu1 %v3550_v58, %s4535_s10 }
0x1661   :  { %3573 = vrot.lane.b32.xlu2 %v3549_v10, %s4535_s10  ;;  %s4266_s10 = sld [smem:[#allocation7 + $0xcc]] }
0x1667   :  { %v3628_v33 = vstv %s4266_s10 }
0x16ab   :  { %v3554_v47 = vpop.permute.xlu2 %3553 }
0x16b3   :  { %v3562_v2 = vpop.permute.xlu2 %3561 }
0x16bb   :  { %v3574_v14 = vpop.permute.xlu2 %3573 }
0x16c2   :  { %v3556_v49 = vpop.permute.xlu1 %3555  ;;  %v3560_v32 = vpop.permute.xlu0 %3559 }
0x16c3   :  { %v3557_v45 = vsel %vm7145_vm8, %v3554_v47, %v3556_v49  ;;  %v3558_v35 = vsel %vm7146_vm7, %v3556_v49, %v3554_v47  ;;  %v3563_v46 = vsel %vm7149_vm10, %v3560_v32, %v3562_v2  ;;  %v3564_v34 = vsel %vm7150_vm2, %v3562_v2, %v3560_v32 }
0x16c4   :  { %v3565_v56 = vsel %vm7151_vm3, %v3558_v35, %v3563_v46  ;;  %vm7157_vm7 = vcmp.eq.s32.totalorder %v4846_v38, 1 }
0x16c5   :  { %v3591_v55 = vmul.f32 %v3584_v5, %v3565_v56  ;;  %vm7162_vm3 = vmmov %vm7157_vm7 }
0x16c7   :  { %v3593_v11 = vsub.f32 %v3589_v0, %v3591_v55 }
0x16ca   :  { %v3568_v22 = vpop.permute.xlu1 %3567  ;;  %v3570_v40 = vpop.permute.xlu0 %3569 }
0x16cb   :  { %v3571_v16 = vsel %vm7141_vm5, %v3568_v22, %v3570_v40  ;;  %v3572_v59 = vsel %vm7142_vm6, %v3570_v40, %v3568_v22  ;;  %vm7152_vm5 = vmmov %vm7148_vm13  ;;  %vm7153_vm6 = vcmp.lt.s32.totalorder %v4783_v12, 8 }
0x16cc   :  { %v3566_v9 = vsel %vm7152_vm5, %v3557_v45, %v3564_v34  ;;  %vm7160_vm10 = vmmov %vm7153_vm6 }
0x16cd   :  { %v3592_v23 = vmul.f32 %v3584_v5, %v3566_v9  ;;  %vm7161_vm2 = vmmov %vm7153_vm6 }
0x16cf   :  { %v3594_v61 = vsub.f32 %v3590_v42, %v3592_v23 }
0x16d2   :  { %v3576_v19 = vpop.permute.xlu1 %3575 }
0x16d3   :  { %v3577_v8 = vsel %vm7143_vm11, %v3574_v14, %v3576_v19  ;;  %v3578_v31 = vsel %vm7144_vm1, %v3576_v19, %v3574_v14  ;;  %vm7154_vm11 = vmmov %vm7153_vm6  ;;  %vm7155_vm1 = vcmp.lt.s32.totalorder %v4783_v12, 120 }
0x16d4   :  { %v3579_v37 = vsel %vm7147_vm12, %v3572_v59, %v3577_v8  ;;  %v3580_v41 = vsel %vm7148_vm13, %v3571_v16, %v3578_v31  ;;  %vm7156_vm8 = vmmov %vm7155_vm1 }
0x16d5   :  { %v3585_v1 = vmul.f32 %v3584_v5, %v3579_v37  ;;  %v3586_v44 = vmul.f32 %v3584_v5, %v3580_v41  ;;  %vm7158_vm12 = vmmov %vm7155_vm1 }
0x16d6   :  { %vm7159_vm13 = vmmov %vm7155_vm1 }
0x16d7   :  { %v3587_v27 = vadd.f32 %v3585_v1, %v3582_v4  ;;  %v3588_v43 = vadd.f32 %v3586_v44, %v3583_v3  ;;  %v3633_v4 = vmul.f32 %v3625_v29, %v3593_v11  ;;  %v3634_v3 = vmul.f32 %v3625_v29, %v3594_v61 }
0x16d9   :  { %3599 = vrot.lane.b32.xlu2 %v3588_v43, %s4512_s14  ;;  %3603 = vrot.lane.b32.xlu1 %v3587_v27, %s4536_s20  ;;  %v3627_v26 = vmul.f32 %v3625_v29, %v3588_v43  ;;  %v3626_v48 = vmul.f32 %v3625_v29, %v3587_v27 }
0x16da   :  { %3597 = vrot.lane.b32.xlu0 %v3587_v27, %s4512_s14 }
0x16e1   :  { %3611 = vrot.lane.b32.xlu2 %v3593_v11, %s4512_s14  ;;  %3613 = vrot.lane.b32.xlu1 %v3594_v61, %s4512_s14  ;;  %s4267_s14 = sld [smem:[#allocation7 + $0xc5]] }
0x16e2   :  { %3605 = vrot.lane.b32.xlu0 %v3588_v43, %s4536_s20 }
0x16e7   :  { %v3669_v35 = vstv %s4267_s14 }
0x16e9   :  { %3619 = vrot.lane.b32.xlu2 %v3594_v61, %s4536_s20 }
0x16ea   :  { %3617 = vrot.lane.b32.xlu0 %v3593_v11, %s4536_s20  ;;  %s4268_s20 = sld [smem:[#allocation7 + $0xcd]] }
0x16f0   :  { %v3672_v56 = vstv %s4268_s20 }
0x1733   :  { %v3600_v54 = vpop.permute.xlu2 %3599 }
0x173b   :  { %v3612_v51 = vpop.permute.xlu2 %3611 }
0x1743   :  { %v3620_v50 = vpop.permute.xlu2 %3619 }
0x174b   :  { %v3604_v20 = vpop.permute.xlu1 %3603 }
0x174c   :  { %v3598_v24 = vpop.permute.xlu0 %3597 }
0x174d   :  { %v3601_v32 = vsel %vm7160_vm10, %v3598_v24, %v3600_v54  ;;  %v3602_v2 = vsel %vm7161_vm2, %v3600_v54, %v3598_v24 }
0x1753   :  { %v3614_v53 = vpop.permute.xlu1 %3613 }
0x1754   :  { %v3606_v57 = vpop.permute.xlu0 %3605  ;;  %v3615_v18 = vsel %vm7153_vm6, %v3612_v51, %v3614_v53  ;;  %v3616_v13 = vsel %vm7154_vm11, %v3614_v53, %v3612_v51  ;;  %vm7165_vm6 = vcmp.lt.s32.totalorder %v4783_v12, 124 }
0x1755   :  { %v3607_v10 = vsel %vm7158_vm12, %v3604_v20, %v3606_v57  ;;  %v3608_v58 = vsel %vm7159_vm13, %v3606_v57, %v3604_v20  ;;  %vm7166_vm11 = vmmov %vm7165_vm6 }
0x1756   :  { %v3609_v25 = vsel %vm766_vm9, %v3602_v2, %v3607_v10  ;;  %v3610_v14 = vsel %vm7162_vm3, %v3601_v32, %v3608_v58  ;;  %vm7170_vm12 = vmmov %vm7165_vm6 }
0x1757   :  { %v3635_v5 = vmul.f32 %v3628_v33, %v3609_v25  ;;  %v3636_v19 = vmul.f32 %v3628_v33, %v3610_v14 }
0x1759   :  { %v3637_v16 = vsub.f32 %v3633_v4, %v3635_v5  ;;  %v3638_v59 = vsub.f32 %v3634_v3, %v3636_v19 }
0x175c   :  { %v3618_v15 = vpop.permute.xlu0 %3617 }
0x175d   :  { %v3621_v17 = vsel %vm7155_vm1, %v3618_v15, %v3620_v50  ;;  %v3622_v21 = vsel %vm7156_vm8, %v3620_v50, %v3618_v15  ;;  %vm7167_vm1 = vcmp.eq.s32.totalorder %v4856_v39, 1  ;;  %vm7168_vm8 = vcmp.eq.s32.totalorder %v4858_v63, 1 }
0x175e   :  { %v3623_v36 = vsel %vm766_vm9, %v3616_v13, %v3621_v17  ;;  %v3624_v60 = vsel %vm7157_vm7, %v3615_v18, %v3622_v21  ;;  %vm7163_vm9 = vcmp.lt.s32.totalorder %v4783_v12, 4  ;;  %vm7169_vm7 = vmmov %vm7165_vm6  ;;  %v3677_v50 = vmul.f32 %v3669_v35, %v3637_v16 }
0x175f   :  { %v3629_v47 = vmul.f32 %v3628_v33, %v3623_v36  ;;  %v3630_v49 = vmul.f32 %v3628_v33, %v3624_v60  ;;  %vm7164_vm5 = vmmov %vm7163_vm9  ;;  %v3678_v15 = vmul.f32 %v3669_v35, %v3638_v59 }
0x1760   :  { %vm7171_vm13 = vmmov %vm7164_vm5 }
0x1761   :  { %v3631_v22 = vadd.f32 %v3629_v47, %v3626_v48  ;;  %v3632_v40 = vadd.f32 %v3630_v49, %v3627_v26  ;;  %vm7172_vm10 = vmmov %vm7164_vm5 }
0x1762   :  { %vm7173_vm2 = vmmov %vm7167_vm1 }
0x1763   :  { %3643 = vrot.lane.b32.xlu0 %v3632_v40, %s4537_s6  ;;  %3647 = vrot.lane.b32.xlu2 %v3631_v22, %s4538_s0  ;;  %v3671_v46 = vmul.f32 %v3669_v35, %v3632_v40  ;;  %v3670_v23 = vmul.f32 %v3669_v35, %v3631_v22  ;;  %vm7174_vm3 = vmmov %vm7168_vm8 }
0x1764   :  { %3641 = vrot.lane.b32.xlu1 %v3631_v22, %s4537_s6 }
0x176b   :  { %3655 = vrot.lane.b32.xlu0 %v3637_v16, %s4537_s6  ;;  %3657 = vrot.lane.b32.xlu2 %v3638_v59, %s4537_s6  ;;  %s4269_s6 = sld [smem:[#allocation7 + $0xc6]] }
0x176c   :  { %3649 = vrot.lane.b32.xlu1 %v3632_v40, %s4538_s0 }
0x1771   :  { %v3713_v60 = vstv %s4269_s6 }
0x1773   :  { %3663 = vrot.lane.b32.xlu0 %v3638_v59, %s4538_s0 }
0x1774   :  { %3661 = vrot.lane.b32.xlu1 %v3637_v16, %s4538_s0  ;;  %s4270_s0 = sld [smem:[#allocation7 + $0xce]] }
0x177a   :  { %v3716_v10 = vstv %s4270_s0 }
0x17bd   :  { %v3648_v8 = vpop.permute.xlu2 %3647 }
0x17c5   :  { %v3658_v41 = vpop.permute.xlu2 %3657 }
0x17d5   :  { %v3644_v52 = vpop.permute.xlu0 %3643 }
0x17d6   :  { %v3642_v38 = vpop.permute.xlu1 %3641 }
0x17d7   :  { %v3645_v54 = vsel %vm7171_vm13, %v3642_v38, %v3644_v52  ;;  %v3646_v24 = vsel %vm7172_vm10, %v3644_v52, %v3642_v38 }
0x17dd   :  { %v3656_v31 = vpop.permute.xlu0 %3655 }
0x17de   :  { %v3650_v45 = vpop.permute.xlu1 %3649  ;;  %v3659_v1 = vsel %vm7163_vm9, %v3656_v31, %v3658_v41  ;;  %v3660_v44 = vsel %vm7164_vm5, %v3658_v41, %v3656_v31  ;;  %vm7175_vm9 = vcmp.lt.s32.totalorder %v4783_v12, 2 }
0x17df   :  { %v3651_v0 = vsel %vm7169_vm7, %v3648_v8, %v3650_v45  ;;  %v3652_v42 = vsel %vm7170_vm12, %v3650_v45, %v3648_v8  ;;  %vm7176_vm5 = vmmov %vm7175_vm9  ;;  %vm7181_vm7 = vcmp.eq.s32.totalorder %v4862_v6, 1  ;;  %vm7182_vm12 = vcmp.eq.s32.totalorder %v4864_v7, 1  ;;  %v3792_v7 = vld [vmem:[#allocation8 + $0x78] sm:$0xff] }
0x17e0   :  { %v3653_v57 = vsel %vm7173_vm2, %v3646_v24, %v3651_v0  ;;  %v3654_v53 = vsel %vm7174_vm3, %v3645_v54, %v3652_v42  ;;  %vm7185_vm2 = vmmov %vm7181_vm7  ;;  %3809 = vmatpush.msrb.mxu0 %v3792_v7  ;;  %v3787_v0 = vld [vmem:[#allocation8 + $0x50] sm:$0xff]  ;;  %v3785_v54 = vld [vmem:[#allocation8 + $0x40] sm:$0xff] }
0x17e1   :  { %v3679_v29 = vmul.f32 %v3672_v56, %v3653_v57  ;;  %v3680_v26 = vmul.f32 %v3672_v56, %v3654_v53  ;;  %vm7186_vm3 = vmmov %vm7182_vm12  ;;  %v3803_v42 = vld [vmem:[#allocation8 + $0xd0] sm:$0xff]  ;;  %v3801_v24 = vld [vmem:[#allocation8 + $0xc0] sm:$0xff] }
0x17e2   :  { %v3783_v57 = vld [vmem:[#allocation8 + $0x30] sm:$0xff] }
0x17e3   :  { %v3681_v18 = vsub.f32 %v3677_v50, %v3679_v29  ;;  %v3682_v13 = vsub.f32 %v3678_v15, %v3680_v26  ;;  %v3799_v53 = vld [vmem:[#allocation8 + $0xb0] sm:$0xff]  ;;  %v3782_v29 = vld [vmem:[#allocation8 + $0x28] sm:$0xff]  ;;  %v3781_v50 = vld [vmem:[#allocation8 + $0x20] sm:$0xff] }
0x17e4   :  { %v3798_v26 = vld [vmem:[#allocation8 + $0xa8] sm:$0xff]  ;;  %v3797_v15 = vld [vmem:[#allocation8 + $0xa0] sm:$0xff] }
0x17e5   :  { %v3664_v37 = vpop.permute.xlu0 %3663  ;;  %v3722_v41 = vmul.f32 %v3713_v60, %v3682_v13 }
0x17e6   :  { %v3662_v34 = vpop.permute.xlu1 %3661 }
0x17e7   :  { %v3665_v27 = vsel %vm7165_vm6, %v3662_v34, %v3664_v37  ;;  %v3666_v43 = vsel %vm7166_vm11, %v3664_v37, %v3662_v34  ;;  %vm7177_vm6 = vcmp.lt.s32.totalorder %v4783_v12, 126  ;;  %v3721_v37 = vmul.f32 %v3713_v60, %v3681_v18  ;;  %v3808_v34 = vld [vmem:[#allocation8 + $0xf8] sm:$0xff] }
0x17e8   :  { %v3667_v9 = vsel %vm7167_vm1, %v3660_v44, %v3665_v27  ;;  %v3668_v55 = vsel %vm7168_vm8, %v3659_v1, %v3666_v43  ;;  %vm7178_vm11 = vmmov %vm7177_vm6  ;;  %v3791_v1 = vld [vmem:[#allocation8 + $0x70] sm:$0xff]  ;;  %3829 = vmatpush.msrb.mxu1 %v3808_v34  ;;  %v3790_v27 = vld [vmem:[#allocation8 + $0x68] sm:$0xff] }
0x17e9   :  { %v3673_v11 = vmul.f32 %v3672_v56, %v3667_v9  ;;  %v3674_v61 = vmul.f32 %v3672_v56, %v3668_v55  ;;  %vm7179_vm1 = vmmov %vm7176_vm5  ;;  %v3807_v44 = vld [vmem:[#allocation8 + $0xf0] sm:$0xff]  ;;  %v3806_v43 = vld [vmem:[#allocation8 + $0xe8] sm:$0xff]  ;;  %3810 = vmatpush.msrb.mxu0 %v3791_v1 }
0x17ea   :  { %vm7180_vm8 = vmmov %vm7179_vm1  ;;  %3830 = vmatpush.msrb.mxu1 %v3807_v44  ;;  %v3789_v56 = vld [vmem:[#allocation8 + $0x60] sm:$0xff]  ;;  %v3788_v55 = vld [vmem:[#allocation8 + $0x58] sm:$0xff] }
0x17eb   :  { %v3675_v20 = vadd.f32 %v3673_v11, %v3670_v23  ;;  %v3676_v51 = vadd.f32 %v3674_v61, %v3671_v46  ;;  %vm7183_vm13 = vmmov %vm7177_vm6  ;;  %3811 = vmatpush.msrb.mxu0 %v3790_v27  ;;  %v3805_v9 = vld [vmem:[#allocation8 + $0xe0] sm:$0xff]  ;;  %v3804_v23 = vld [vmem:[#allocation8 + $0xd8] sm:$0xff] }
0x17ec   :  { %vm7184_vm10 = vmmov %vm7177_vm6  ;;  %3831 = vmatpush.msrb.mxu1 %v3806_v43  ;;  %v3786_v11 = vld [vmem:[#allocation8 + $0x48] sm:$0xff]  ;;  %v3853_v44 = vld [vmem:[#allocation9 + $0x20] sm:$0xff] }
0x17ed   :  { %3687 = vrot.lane.b32.xlu1 %v3676_v51, %s4539_s16  ;;  %3691 = vrot.lane.b32.xlu0 %v3675_v20, %s4540_s17  ;;  %v3714_v47 = vmul.f32 %v3713_v60, %v3675_v20  ;;  %v3715_v49 = vmul.f32 %v3713_v60, %v3676_v51  ;;  %v3802_v61 = vld [vmem:[#allocation8 + $0xc8] sm:$0xff]  ;;  %v3864_v60 = vld [vmem:[#allocation9 + $0x78] sm:$0xff] }
0x17ee   :  { %3685 = vrot.lane.b32.xlu2 %v3675_v20, %s4539_s16  ;;  %3812 = vmatpush.msrb.mxu0 %v3789_v56  ;;  %v3784_v20 = vld [vmem:[#allocation8 + $0x38] sm:$0xff] }
0x17ef   :  { %3832 = vmatpush.msrb.mxu1 %v3805_v9  ;;  %3867 = vmatpush.msrb.mxu2 %v3864_v60  ;;  %v3919_v60 = vld [vmem:[#allocation9 + $0xd8] sm:$0xff] }
0x17f0   :  { %3813 = vmatpush.msrb.mxu0 %v3788_v55 }
0x17f1   :  { %3833 = vmatpush.msrb.mxu1 %v3804_v23 }
0x17f2   :  { %3814 = vmatpush.msrb.mxu0 %v3787_v0 }
0x17f3   :  { %3834 = vmatpush.msrb.mxu1 %v3803_v42 }
0x17f4   :  { %3815 = vmatpush.msrb.mxu0 %v3786_v11  ;;  %v3852_v11 = vld [vmem:[#allocation9 + $0x18] sm:$0xff] }
0x17f5   :  { %3699 = vrot.lane.b32.xlu1 %v3681_v18, %s4539_s16  ;;  %3701 = vrot.lane.b32.xlu0 %v3682_v13, %s4539_s16  ;;  %s4272_s16 = sld [smem:[#allocation7 + $0xcf]] }
0x17f6   :  { %3693 = vrot.lane.b32.xlu2 %v3676_v51, %s4540_s17  ;;  %3835 = vmatpush.msrb.mxu1 %v3802_v61  ;;  %v3800_v51 = vld [vmem:[#allocation8 + $0xb8] sm:$0xff] }
0x17f7   :  { %3816 = vmatpush.msrb.mxu0 %v3785_v54 }
0x17f8   :  { %3836 = vmatpush.msrb.mxu1 %v3801_v24 }
0x17f9   :  { %3817 = vmatpush.msrb.mxu0 %v3784_v20 }
0x17fa   :  { %3837 = vmatpush.msrb.mxu1 %v3800_v51 }
0x17fb   :  { %3818 = vmatpush.msrb.mxu0 %v3783_v57 }
0x17fc   :  { %3838 = vmatpush.msrb.mxu1 %v3799_v53  ;;  %v3851_v53 = vld [vmem:[#allocation9 + $0x10] sm:$0xff] }
0x17fd   :  { %3707 = vrot.lane.b32.xlu1 %v3682_v13, %s4540_s17  ;;  %3819 = vmatpush.msrb.mxu0 %v3782_v29  ;;  %v3796_v13 = vld [vmem:[#allocation8 + $0x98] sm:$0xff] }
0x17fe   :  { %3705 = vrot.lane.b32.xlu2 %v3681_v18, %s4540_s17  ;;  %3839 = vmatpush.msrb.mxu1 %v3798_v26  ;;  %v3780_v18 = vld [vmem:[#allocation8 + $0x18] sm:$0xff]  ;;  %s4271_s17 = sld [smem:[#allocation7 + $0xc7]] }
0x17ff   :  { %3820 = vmatpush.msrb.mxu0 %v3781_v50 }
0x1800   :  { %3840 = vmatpush.msrb.mxu1 %v3797_v15 }
0x1801   :  { %3821 = vmatpush.msrb.mxu0 %v3780_v18 }
0x1802   :  { %3841 = vmatpush.msrb.mxu1 %v3796_v13 }
0x1848   :  { %v3686_v39 = vpop.permute.xlu2 %3685 }
0x1850   :  { %v3694_v21 = vpop.permute.xlu2 %3693 }
0x1858   :  { %v3706_v48 = vpop.permute.xlu2 %3705 }
0x185f   :  { %v3688_v63 = vpop.permute.xlu1 %3687  ;;  %v3692_v17 = vpop.permute.xlu0 %3691 }
0x1860   :  { %v3689_v25 = vsel %vm7179_vm1, %v3686_v39, %v3688_v63  ;;  %v3690_v14 = vsel %vm7180_vm8, %v3688_v63, %v3686_v39  ;;  %v3695_v4 = vsel %vm7183_vm13, %v3692_v17, %v3694_v21  ;;  %v3696_v3 = vsel %vm7184_vm10, %v3694_v21, %v3692_v17  ;;  %v3779_v39 = vld [vmem:[#allocation8 + $0x10] sm:$0xff]  ;;  %v3778_v17 = vld [vmem:[#allocation8 + $0x8] sm:$0xff] }
0x1861   :  { %v3697_v8 = vsel %vm7185_vm2, %v3690_v14, %v3695_v4  ;;  %v3698_v31 = vsel %vm7186_vm3, %v3689_v25, %v3696_v3  ;;  %v3795_v63 = vld [vmem:[#allocation8 + $0x90] sm:$0xff]  ;;  %v3794_v21 = vld [vmem:[#allocation8 + $0x88] sm:$0xff]  ;;  %3822 = vmatpush.msrb.mxu0 %v3779_v39  ;;  %v3857_v14 = vld [vmem:[#allocation9 + $0x40] sm:$0xff] }
0x1862   :  { %v3723_v45 = vmul.f32 %v3716_v10, %v3697_v8  ;;  %v3724_v35 = vmul.f32 %v3716_v10, %v3698_v31  ;;  %3842 = vmatpush.msrb.mxu1 %v3795_v63  ;;  %v3856_v3 = vld [vmem:[#allocation9 + $0x38] sm:$0xff]  ;;  %v3855_v8 = vld [vmem:[#allocation9 + $0x30] sm:$0xff]  ;;  %v3760_v31 = vstv %s4272_s16 }
0x1863   :  { %3823 = vmatpush.msrb.mxu0 %v3778_v17  ;;  %v3923_v17 = vld [vmem:[#allocation9 + $0xf8] sm:$0xff] }
0x1864   :  { %v6791_v46 = vsub.f32 %v3721_v37, %v3723_v45  ;;  %v6793_v6 = vsub.f32 %v3722_v41, %v3724_v35  ;;  %3843 = vmatpush.msrb.mxu1 %v3794_v21  ;;  %v3757_v37 = vstv %s4271_s17  ;;  %v3854_v41 = vld [vmem:[#allocation9 + $0x28] sm:$0xff]  ;;  %3926 = vmatpush.msrb.mxu3 %v3923_v17  ;;  %v3922_v21 = vld [vmem:[#allocation9 + $0xf0] sm:$0xff] }
0x1865   :  { %v4012_v17 = vld [vmem:[#allocation9 + $0x1a8] sm:$0xff] }
0x1866   :  { %v3765_v56 = vmul.f32 %v3757_v37, %v6791_v46  ;;  %v3766_v9 = vmul.f32 %v3757_v37, %v6793_v6  ;;  %3927 = vmatpush.msrb.mxu3 %v3922_v21  ;;  %v4011_v21 = vld [vmem:[#allocation9 + $0x1a0] sm:$0xff] }
0x1867   :  { %v3700_v33 = vpop.permute.xlu1 %3699  ;;  %v3702_v36 = vpop.permute.xlu0 %3701 }
0x1868   :  { %v3703_v32 = vsel %vm7175_vm9, %v3700_v33, %v3702_v36  ;;  %v3704_v2 = vsel %vm7176_vm5, %v3702_v36, %v3700_v33  ;;  %v3777_v33 = vld [vmem:[#allocation8] sm:$0xff] }
0x1869   :  { %v3793_v36 = vld [vmem:[#allocation8 + $0x80] sm:$0xff]  ;;  %3824 = vmatpush.msrb.mxu0 %v3777_v33  ;;  %v3921_v33 = vld [vmem:[#allocation9 + $0xe8] sm:$0xff] }
0x186a   :  { %3844 = vmatpush.msrb.mxu1 %v3793_v36  ;;  %3928 = vmatpush.msrb.mxu3 %v3921_v33  ;;  %v3920_v36 = vld [vmem:[#allocation9 + $0xe0] sm:$0xff]  ;;  %v4010_v33 = vld [vmem:[#allocation9 + $0x198] sm:$0xff] }
0x186c   :  { %3929 = vmatpush.msrb.mxu3 %v3920_v36  ;;  %v4362_v36 = vld [vmem:[%s6856_s7 + $0x2] ss:$0 sm:$0xff] }
0x186e   :  { %3930 = vmatpush.msrb.mxu3 %v3919_v60  ;;  %v4009_v60 = vld [vmem:[#allocation9 + $0x190] sm:$0xff] }
0x186f   :  { %v3708_v58 = vpop.permute.xlu1 %3707 }
0x1870   :  { %v3709_v22 = vsel %vm7177_vm6, %v3706_v48, %v3708_v58  ;;  %v3710_v40 = vsel %vm7178_vm11, %v3708_v58, %v3706_v48  ;;  %v3863_v48 = vld [vmem:[#allocation9 + $0x70] sm:$0xff]  ;;  %v3862_v58 = vld [vmem:[#allocation9 + $0x68] sm:$0xff] }
0x1871   :  { %v3711_v5 = vsel %vm7181_vm7, %v3704_v2, %v3709_v22  ;;  %v3712_v19 = vsel %vm7182_vm12, %v3703_v32, %v3710_v40  ;;  %3868 = vmatpush.msrb.mxu2 %v3863_v48  ;;  %v3860_v32 = vld [vmem:[#allocation9 + $0x58] sm:$0xff]  ;;  %v3859_v2 = vld [vmem:[#allocation9 + $0x50] sm:$0xff]  ;;  %v3858_v40 = vld [vmem:[#allocation9 + $0x48] sm:$0xff] }
0x1872   :  { %v3717_v16 = vmul.f32 %v3716_v10, %v3711_v5  ;;  %v3718_v59 = vmul.f32 %v3716_v10, %v3712_v19  ;;  %v3918_v48 = vld [vmem:[#allocation9 + $0xd0] sm:$0xff] }
0x1873   :  { %3869 = vmatpush.msrb.mxu2 %v3862_v58  ;;  %3931 = vmatpush.msrb.mxu3 %v3918_v48  ;;  %v3916_v58 = vld [vmem:[#allocation9 + $0xc0] sm:$0xff]  ;;  %v4008_v48 = vld [vmem:[#allocation9 + $0x188] sm:$0xff] }
0x1874   :  { %v6777_v52 = vadd.f32 %v3717_v16, %v3714_v47  ;;  %v6779_v38 = vadd.f32 %v3718_v59, %v3715_v49  ;;  %v3861_v47 = vld [vmem:[#allocation9 + $0x60] sm:$0xff] }
0x1875   :  { %3870 = vmatpush.msrb.mxu2 %v3861_v47  ;;  %v3915_v47 = vld [vmem:[#allocation9 + $0xb8] sm:$0xff] }
0x1876   :  { %3731 = vrot.lane.b32.xlu2 %v6779_v38, %s4541_s27  ;;  %3735 = vrot.lane.b32.xlu1 %v6777_v52, %s4542_s5  ;;  %v3759_v54 = vmul.f32 %v3757_v37, %v6779_v38 }
0x1877   :  { %3729 = vrot.lane.b32.xlu0 %v6777_v52, %s4541_s27  ;;  %3871 = vmatpush.msrb.mxu2 %v3860_v32  ;;  %v3913_v32 = vld [vmem:[#allocation9 + $0xa8] sm:$0xff] }
0x1879   :  { %3872 = vmatpush.msrb.mxu2 %v3859_v2  ;;  %v3912_v2 = vld [vmem:[#allocation9 + $0xa0] sm:$0xff] }
0x187b   :  { %3873 = vmatpush.msrb.mxu2 %v3858_v40  ;;  %v4360_v40 = vld [vmem:[%s6856_s7] ss:$0 sm:$0xff] }
0x187d   :  { %3874 = vmatpush.msrb.mxu2 %v3857_v14  ;;  %v3909_v14 = vld [vmem:[#allocation9 + $0x88] sm:$0xff] }
0x187e   :  { %3743 = vrot.lane.b32.xlu2 %v6791_v46, %s4541_s27  ;;  %3745 = vrot.lane.b32.xlu1 %v6793_v6, %s4541_s27 }
0x187f   :  { %3737 = vrot.lane.b32.xlu0 %v6779_v38, %s4542_s5  ;;  %3875 = vmatpush.msrb.mxu2 %v3856_v3  ;;  %v3849_v38 = vld [vmem:[#allocation9] sm:$0xff] }
0x1881   :  { %3876 = vmatpush.msrb.mxu2 %v3855_v8 }
0x1883   :  { %3877 = vmatpush.msrb.mxu2 %v3854_v41 }
0x1885   :  { %3878 = vmatpush.msrb.mxu2 %v3853_v44  ;;  %v3955_v44 = vld [vmem:[#allocation9 + $0x138] sm:$0xff] }
0x1886   :  { %3751 = vrot.lane.b32.xlu2 %v6793_v6, %s4542_s5  ;;  %v3758_v6 = vmul.f32 %v3757_v37, %v6777_v52  ;;  %v3850_v52 = vld [vmem:[#allocation9 + $0x8] sm:$0xff]  ;;  %v3958_v37 = vld [vmem:[#allocation9 + $0x150] sm:$0xff] }
0x1887   :  { %3749 = vrot.lane.b32.xlu0 %v6791_v46, %s4542_s5  ;;  %3879 = vmatpush.msrb.mxu2 %v3852_v11 }
0x1889   :  { %3880 = vmatpush.msrb.mxu2 %v3851_v53  ;;  %v3948_v53 = vld [vmem:[#allocation9 + $0x100] sm:$0xff] }
0x188b   :  { %3881 = vmatpush.msrb.mxu2 %v3850_v52  ;;  %v4018_v52 = vld [vmem:[#allocation9 + $0x1d8] sm:$0xff] }
0x188d   :  { %3882 = vmatpush.msrb.mxu2 %v3849_v38  ;;  %v4017_v38 = vld [vmem:[#allocation9 + $0x1d0] sm:$0xff] }
0x18d0   :  { %v3732_v10 = vpop.permute.xlu2 %3731 }
0x18d8   :  { %v3744_v25 = vpop.permute.xlu2 %3743 }
0x18e0   :  { %v3752_v27 = vpop.permute.xlu2 %3751 }
0x18e8   :  { %v3736_v22 = vpop.permute.xlu1 %3735 }
0x18e9   :  { %v3730_v49 = vpop.permute.xlu0 %3729 }
0x18ea   :  { %v3733_v16 = vsel %vm1469_vm4, %v3730_v49, %v3732_v10  ;;  %v3734_v59 = vsel %vm1469_vm4, %v3732_v10, %v3730_v49  ;;  %v3917_v10 = vld [vmem:[#allocation9 + $0xc8] sm:$0xff]  ;;  %v3914_v49 = vld [vmem:[#allocation9 + $0xb0] sm:$0xff] }
0x18eb   :  { %3932 = vmatpush.msrb.mxu3 %v3917_v10 }
0x18ed   :  { %3933 = vmatpush.msrb.mxu3 %v3916_v58 }
0x18ef   :  { %3934 = vmatpush.msrb.mxu3 %v3915_v47  ;;  %v4007_v47 = vld [vmem:[#allocation9 + $0x180] sm:$0xff] }
0x18f0   :  { %v3746_v7 = vpop.permute.xlu1 %3745 }
0x18f1   :  { %v3738_v5 = vpop.permute.xlu0 %3737  ;;  %v3747_v55 = vsel %vm1469_vm4, %v3744_v25, %v3746_v7  ;;  %v3748_v23 = vsel %vm1469_vm4, %v3746_v7, %v3744_v25  ;;  %3935 = vmatpush.msrb.mxu3 %v3914_v49  ;;  %v3910_v25 = vld [vmem:[#allocation9 + $0x90] sm:$0xff]  ;;  %v3957_v7 = vld [vmem:[#allocation9 + $0x148] sm:$0xff] }
0x18f2   :  { %v3739_v19 = vsel %vm1476_vm14, %v3736_v22, %v3738_v5  ;;  %v3740_v4 = vsel %vm1476_vm14, %v3738_v5, %v3736_v22  ;;  %v3911_v22 = vld [vmem:[#allocation9 + $0x98] sm:$0xff] }
0x18f3   :  { %v3741_v45 = vsel %vm4890_vm15, %v3734_v59, %v3739_v19  ;;  %v3742_v35 = vsel %vm4896_vm0, %v3733_v16, %v3740_v4  ;;  %3936 = vmatpush.msrb.mxu3 %v3913_v32  ;;  %v3908_v4 = vld [vmem:[#allocation9 + $0x80] sm:$0xff]  ;;  %v3963_v16 = vld [vmem:[#allocation9 + $0x178] sm:$0xff]  ;;  %v3962_v59 = vld [vmem:[#allocation9 + $0x170] sm:$0xff] }
0x18f4   :  { %v3767_v34 = vmul.f32 %v3760_v31, %v3741_v45  ;;  %v3768_v1 = vmul.f32 %v3760_v31, %v3742_v35  ;;  %3966 = vmatpush.msra.mxu0 %v3963_v16  ;;  %v3960_v45 = vld [vmem:[#allocation9 + $0x160] sm:$0xff]  ;;  %v3959_v35 = vld [vmem:[#allocation9 + $0x158] sm:$0xff] }
0x18f5   :  { %3937 = vmatpush.msrb.mxu3 %v3912_v2 }
0x18f6   :  { %v3769_v51 = vsub.f32 %v3765_v56, %v3767_v34  ;;  %v3770_v57 = vsub.f32 %v3766_v9, %v3768_v1  ;;  %3967 = vmatpush.msra.mxu0 %v3962_v59  ;;  %v3956_v1 = vld [vmem:[#allocation9 + $0x140] sm:$0xff] }
0x18f7   :  { %3938 = vmatpush.msrb.mxu3 %v3911_v22 }
0x18f8   :  { %v3773_v28 = vmul.f32 %v3769_v51, %v3769_v51  ;;  %v3774_v15 = vmul.f32 %v3770_v57, %v3770_v57  ;;  %v3950_v51 = vld [vmem:[#allocation9 + $0x110] sm:$0xff]  ;;  %v3949_v57 = vld [vmem:[#allocation9 + $0x108] sm:$0xff] }
0x18f9   :  { %v3750_v43 = vpop.permute.xlu0 %3749  ;;  %3939 = vmatpush.msrb.mxu3 %v3910_v25 }
0x18fa   :  { %v3753_v0 = vsel %vm1476_vm14, %v3750_v43, %v3752_v27  ;;  %v3754_v42 = vsel %vm1476_vm14, %v3752_v27, %v3750_v43  ;;  %v3954_v27 = vld [vmem:[#allocation9 + $0x130] sm:$0xff]  ;;  %v3953_v43 = vld [vmem:[#allocation9 + $0x128] sm:$0xff] }
0x18fb   :  { %v3755_v61 = vsel %vm4890_vm15, %v3748_v23, %v3753_v0  ;;  %v3756_v46 = vsel %vm4896_vm0, %v3747_v55, %v3754_v42  ;;  %3940 = vmatpush.msrb.mxu3 %v3909_v14  ;;  %v3952_v55 = vld [vmem:[#allocation9 + $0x120] sm:$0xff]  ;;  %v3951_v0 = vld [vmem:[#allocation9 + $0x118] sm:$0xff] }
0x18fc   :  { %v3761_v24 = vmul.f32 %v3760_v31, %v3755_v61  ;;  %v3762_v20 = vmul.f32 %v3760_v31, %v3756_v46  ;;  %v3961_v31 = vld [vmem:[#allocation9 + $0x168] sm:$0xff] }
0x18fd   :  { %3941 = vmatpush.msrb.mxu3 %v3908_v4  ;;  %3968 = vmatpush.msra.mxu0 %v3961_v31 }
0x18fe   :  { %v3763_v12 = vadd.f32 %v3761_v24, %v3758_v6  ;;  %v3764_v29 = vadd.f32 %v3762_v20, %v3759_v54 }
0x18ff   :  { %3969 = vmatpush.msra.mxu0 %v3960_v45  ;;  %v4363_v45 = vld [vmem:[%s6856_s7 + $0x3] ss:$0 sm:$0xff] }
0x1900   :  { %v3771_v26 = vmul.f32 %v3763_v12, %v3763_v12  ;;  %v3772_v50 = vmul.f32 %v3764_v29, %v3764_v29  ;;  %v4361_v12 = vld [vmem:[%s6856_s7 + $0x1] ss:$0 sm:$0xff] }
0x1901   :  { %3970 = vmatpush.msra.mxu0 %v3959_v35 }
0x1902   :  { %v3775_v30 = vadd.f32 %v3773_v28, %v3771_v26  ;;  %v3776_v18 = vadd.f32 %v3774_v15, %v3772_v50  ;;  %v4022_v50 = vld [vmem:[#allocation9 + $0x1f8] sm:$0xff]  ;;  %v4021_v15 = vld [vmem:[#allocation9 + $0x1f0] sm:$0xff] }
0x1903   :  { %3971 = vmatpush.msra.mxu0 %v3958_v37  ;;  %4025 = vmatpush.msra.mxu1 %v4022_v50 }
0x1904   :  { %3825 = vmatmul.f32.vlgmr.msrb.gmra.mxu0 %v3775_v30  ;;  %3845 = vmatmul.f32.vlgmr.msrb.gmra.mxu1 %v3776_v18  ;;  %v4020_v30 = vld [vmem:[#allocation9 + $0x1e8] sm:$0xff]  ;;  %v4019_v18 = vld [vmem:[#allocation9 + $0x1e0] sm:$0xff] }
0x1905   :  { %3972 = vmatpush.msra.mxu0 %v3957_v7  ;;  %4026 = vmatpush.msra.mxu1 %v4021_v15 }
0x1907   :  { %3973 = vmatpush.msra.mxu0 %v3956_v1  ;;  %4027 = vmatpush.msra.mxu1 %v4020_v30 }
0x1909   :  { %3974 = vmatpush.msra.mxu0 %v3955_v44  ;;  %4028 = vmatpush.msra.mxu1 %v4019_v18 }
0x190b   :  { %3975 = vmatpush.msra.mxu0 %v3954_v27  ;;  %4029 = vmatpush.msra.mxu1 %v4018_v52 }
0x190d   :  { %3976 = vmatpush.msra.mxu0 %v3953_v43  ;;  %4030 = vmatpush.msra.mxu1 %v4017_v38 }
0x190f   :  { %3977 = vmatpush.msra.mxu0 %v3952_v55 }
0x1911   :  { %3978 = vmatpush.msra.mxu0 %v3951_v0 }
0x1913   :  { %3979 = vmatpush.msra.mxu0 %v3950_v51 }
0x1915   :  { %3980 = vmatpush.msra.mxu0 %v3949_v57 }
0x1917   :  { %3981 = vmatpush.msra.mxu0 %v3948_v53 }
0x1981   :  { %v3826_v13 = vpop.f32.mrf.mxu0  ;;  %v3846_v39 = vpop.f32.mrf.mxu1 }
0x1982   :  { %v3847_v63 = vadd.f32 %v3846_v39, %v3826_v13  ;;  %v4016_v13 = vld [vmem:[#allocation9 + $0x1c8] sm:$0xff]  ;;  %v4015_v39 = vld [vmem:[#allocation9 + $0x1c0] sm:$0xff] }
0x1983   :  { %4031 = vmatpush.msra.mxu1 %v4016_v13 }
0x1984   :  { %3883 = vmatmul.f32.vlgmr.msrb.gmra.mxu2 %v3847_v63  ;;  %v4014_v63 = vld [vmem:[#allocation9 + $0x1b8] sm:$0xff] }
0x1985   :  { %4032 = vmatpush.msra.mxu1 %v4015_v39 }
0x1987   :  { %4033 = vmatpush.msra.mxu1 %v4014_v63 }
0x1a07   :  { %v3884_v5 = vpop.f32.mrf.mxu2 }
0x1a08   :  { %v3885_v19 = vadd.f32 %v4360_v40, %v3884_v5 }
0x1a0a   :  { %v3887_v3 = vsub.f32 0.0, %v3885_v19 }
0x1a0c   :  { %v3888_v8 = vmul.f32 1.442695, %v3887_v3 }
0x1a0e   :  { %4384 = vpow2.f32 %v3888_v8 }
0x1a14   :  { %v4385_v41 = vpop.eup %4384 }
0x1a15   :  { %v3890_v34 = vadd.f32 1.0, %v4385_v41 }
0x1a17   :  { %4386 = vrcp.f32 %v3890_v34  ;;  %v3902_v42 = vand.u32 2147483648, %v3890_v34  ;;  %v3900_v61 = vand.u32 2147483647, %v3890_v34  ;;  %vm3896_vm0 = vweird.f32 %v3890_v34 }
0x1a19   :  { %v3903_v6 = vor.u32 1.1754944e-38, %v3902_v42  ;;  %vm3901_vm4 = vcmp.eq.f32.partialorder %v3900_v61, 8.507059e+37 }
0x1a1d   :  { %v4387_v56 = vpop.eup %4386 }
0x1a1e   :  { %v3892_v9 = vmul.f32 %v4387_v56, %v3890_v34  ;;  %vm3897_vm15 = vweird.f32 %v4387_v56 }
0x1a1f   :  { %vm3898_vm14 = vmor %vm3896_vm0, %vm3897_vm15 }
0x1a20   :  { %v3893_v23 = vsub.f32 1.0, %v3892_v9 }
0x1a22   :  { %v3894_v11 = vmul.f32 %v4387_v56, %v3893_v23 }
0x1a24   :  { %v3895_v46 = vadd.f32 %v4387_v56, %v3894_v11 }
0x1a26   :  { %v3899_v54 = vsel %vm3898_vm14, %v4387_v56, %v3895_v46 }
0x1a27   :  { %v3904_v24 = vsel %vm3901_vm4, %v3903_v6, %v3899_v54 }
0x1a28   :  { %v3906_v20 = vmul.f32 %v3904_v24, %v3885_v19 }
0x1a2a   :  { %3942 = vmatmul.f32.vlgmr.msrb.gmra.mxu3 %v3906_v20 }
0x1aad   :  { %v3943_v29 = vpop.f32.mrf.mxu3 }
0x1aae   :  { %v3944_v26 = vadd.f32 %v4361_v12, %v3943_v29 }
0x1ab0   :  { %v3946_v28 = vadd.f32 %v3944_v26, %v4611_v62  ;;  %v4013_v62 = vld [vmem:[#allocation9 + $0x1b0] sm:$0xff] }
0x1ab1   :  { %4034 = vmatpush.msra.mxu1 %v4013_v62 }
0x1ab2   :  { %3982 = vmatmul.f32.vlgmr.msra.gmra.mxu0 %v3946_v28 }
0x1ab3   :  { %4035 = vmatpush.msra.mxu1 %v4012_v17 }
0x1ab5   :  { %4036 = vmatpush.msra.mxu1 %v4011_v21 }
0x1ab7   :  { %4037 = vmatpush.msra.mxu1 %v4010_v33 }
0x1ab9   :  { %4038 = vmatpush.msra.mxu1 %v4009_v60 }
0x1abb   :  { %4039 = vmatpush.msra.mxu1 %v4008_v48 }
0x1abd   :  { %4040 = vmatpush.msra.mxu1 %v4007_v47 }
0x1b2f   :  { %v3983_v10 = vpop.f32.mrf.mxu0 }
0x1b30   :  { %v3984_v58 = vadd.f32 %v4362_v36, %v3983_v10 }
0x1b32   :  { %v3986_v49 = vsub.f32 0.0, %v3984_v58 }
0x1b34   :  { %v3987_v32 = vmul.f32 1.442695, %v3986_v49 }
0x1b36   :  { %4388 = vpow2.f32 %v3987_v32 }
0x1b3c   :  { %v4389_v2 = vpop.eup %4388 }
0x1b3d   :  { %v3989_v22 = vadd.f32 1.0, %v4389_v2 }
0x1b3f   :  { %4390 = vrcp.f32 %v3989_v22  ;;  %v4001_v5 = vand.u32 2147483648, %v3989_v22  ;;  %v3999_v4 = vand.u32 2147483647, %v3989_v22  ;;  %vm3995_vm5 = vweird.f32 %v3989_v22 }
0x1b41   :  { %v4002_v16 = vor.u32 1.1754944e-38, %v4001_v5  ;;  %vm4000_vm11 = vcmp.eq.f32.partialorder %v3999_v4, 8.507059e+37 }
0x1b45   :  { %v4391_v40 = vpop.eup %4390 }
0x1b46   :  { %v3991_v25 = vmul.f32 %v4391_v40, %v3989_v22  ;;  %vm3996_vm9 = vweird.f32 %v4391_v40 }
0x1b47   :  { %vm3997_vm6 = vmor %vm3995_vm5, %vm3996_vm9 }
0x1b48   :  { %v3992_v14 = vsub.f32 1.0, %v3991_v25 }
0x1b4a   :  { %v3993_v19 = vmul.f32 %v4391_v40, %v3992_v14 }
0x1b4c   :  { %v3994_v3 = vadd.f32 %v4391_v40, %v3993_v19 }
0x1b4e   :  { %v3998_v59 = vsel %vm3997_vm6, %v4391_v40, %v3994_v3 }
0x1b4f   :  { %v4003_v8 = vsel %vm4000_vm11, %v4002_v16, %v3998_v59 }
0x1b50   :  { %v4005_v31 = vmul.f32 %v4003_v8, %v3984_v58 }
0x1b52   :  { %4041 = vmatmul.f32.vlgmr.msra.gmra.mxu1 %v4005_v31 }
0x1bcf   :  { %v4042_v35 = vpop.f32.mrf.mxu1 }
0x1bd0   :  { %v4043_v37 = vadd.f32 %v4363_v45, %v4042_v35 }
0x1bd2   :  { %4045 = vst [vmem:[%s6857_s8] sm:$0xff] %v4043_v37 }
0x1bd3   :  { %4050 = vsyncpa [#allocation3], 1 }
0x1bd4   :  { %4051 = vsyncpa [#allocation6], 1 }
0x1bd5   :  { %4052 = vsyncpa [#allocation10], 1 }
0x1bd6   :  { %4053 = vsyncpa [#allocation4], 1 }

</bundles_post_ra>
